<compile_context>
chip_gen: v7x
topology: tpu7x:2x2x1
jax: 0.10.0
libtpu: 0.0.40
codegen_flags: <defaults>
</compile_context>

<pallas_src>
import functools

import jax
import jax.numpy as jnp
from jax.experimental import pallas as pl
from jax.experimental.pallas import tpu as pltpu

BN_EPS = 1e-3            # nn.BatchNorm2d(..., eps=0.001)
FC1_OUT = 1164
FC1_TK = 2048            # K tile used for the large fc1 contraction (was 512)
FC1_TN = 128             # 10 N tiles over the padded 1280 cols (v7x 2-TC balance)

CONV_DEFS = (            # (name, out_channels, kernel, stride)
    ("c1", 24, 5, 2),
    ("c2", 36, 5, 2),
    ("c3", 48, 5, 2),
    ("c4", 64, 3, 1),
    ("c5", 64, 3, 1),
)


def _round_up(x, m):
    return ((x + m - 1) // m) * m


def _vmem_limit_bytes():
    # Derive the scoped-VMEM request from the device so it is legal on v7x
    # (64 MiB physical per TensorCore) as well as v5e/v6e (128 MiB).
    try:
        cap = int(pltpu.get_tpu_info().vmem_capacity_bytes)
    except Exception:
        cap = 64 << 20
    return int(min(cap * 3 // 4, 96 << 20))


_VMEM_LIMIT = _vmem_limit_bytes()


def _buffered_weight_spec(shape, index_map, buffers):
    """Weight BlockSpec with deeper pipelining when supported (guarded)."""
    if buffers is not None:
        try:
            return pl.BlockSpec(shape, index_map,
                                pipeline_mode=pl.Buffered(buffers))
        except TypeError:
            pass
    return pl.BlockSpec(shape, index_map)


# ----------------------------------------------------------------------------
# Pallas kernels
# ----------------------------------------------------------------------------
def _matmul_bias_direct_kernel(a_ref, w_ref, b_ref, o_ref, *, relu):
    """Single-K-tile path: out = A @ W + b (optional ReLU), no scratch."""
    out = jnp.dot(a_ref[...], w_ref[...], preferred_element_type=jnp.float32)
    out = out + b_ref[...]
    if relu:
        out = jnp.maximum(out, 0.0)
    o_ref[...] = out.astype(o_ref.dtype)


def _matmul_bias_acc_kernel(a_ref, w_ref, b_ref, o_ref, acc_ref, *, relu):
    """K-tiled path: fp32 VMEM accumulator; bias/ReLU/store on the last K step."""
    @pl.when(pl.program_id(2) == 0)
    def _zero():
        acc_ref[...] = jnp.zeros_like(acc_ref)

    acc_ref[...] += jnp.dot(a_ref[...], w_ref[...],
                            preferred_element_type=jnp.float32)

    @pl.when(pl.program_id(2) == pl.num_programs(2) - 1)
    def _finalize():
        out = acc_ref[...] + b_ref[...]
        if relu:
            out = jnp.maximum(out, 0.0)
        o_ref[...] = out.astype(o_ref.dtype)


def _mlp_head_kernel(x_ref, w2_ref, b2_ref, w3_ref, b3_ref, w4_ref, b4_ref,
                     w5_ref, b5_ref, o_ref):
    """fc2..fc5 fused in a single kernel (no activations), bf16 ops, f32 acc."""
    h = x_ref[...].astype(jnp.bfloat16)
    h = jnp.dot(h, w2_ref[...], preferred_element_type=jnp.float32) + b2_ref[...]
    h = jnp.dot(h.astype(jnp.bfloat16), w3_ref[...],
                preferred_element_type=jnp.float32) + b3_ref[...]
    h = jnp.dot(h.astype(jnp.bfloat16), w4_ref[...],
                preferred_element_type=jnp.float32) + b4_ref[...]
    o_ref[...] = (jnp.dot(h.astype(jnp.bfloat16), w5_ref[...],
                          preferred_element_type=jnp.float32)
                  + b5_ref[...]).astype(o_ref.dtype)


# ----------------------------------------------------------------------------
# Pallas wrappers
# ----------------------------------------------------------------------------
def matmul_bias_act(a, w, b, *, relu, out_dtype, tm=512, tn=256, tk=FC1_TK,
                    weight_buffers=None):
    """a:(M,K) @ w:(Kw,N) + b -> (M, N).

    Weight layout contract (enforced by prepare_params, outside jit):
      * if Kw > tk, Kw is a multiple of tk (zero-padded rows),
      * N is either small (single full-extent tile, masked stores) or a
        multiple of 128 (lane-dense tiles of width tn).
    A is cast to bf16 and zero-padded along K to match Kw (only fc1 at real
    resolution needs that pad and its M is just the batch size).
    """
    M, K = a.shape
    Kw, N = w.shape

    a = a.astype(jnp.bfloat16)
    if Kw != K:
        a = jnp.pad(a, ((0, 0), (0, Kw - K)))
    w = w.astype(jnp.bfloat16)
    b = jnp.asarray(b, jnp.float32).reshape(1, N)

    # --- N tiling: lane-dense tiles when N is a 128-multiple ------------------
    if N % 128 == 0 and N > tn:
        tn_eff = tn if N % tn == 0 else 128
    else:
        tn_eff = N
    n_tiles = N // tn_eff

    # --- M: ragged grid, no row padding of the activation ---------------------
    tm_eff = min(tm, _round_up(M, 8))
    m_tiles = pl.cdiv(M, tm_eff)

    if Kw <= tk:
        # Single K tile -> no accumulator scratch, no init/finalize phases.
        tk_eff = Kw
        return pl.pallas_call(
            functools.partial(_matmul_bias_direct_kernel, relu=relu),
            out_shape=jax.ShapeDtypeStruct((M, N), out_dtype),
            grid=(m_tiles, n_tiles),
            in_specs=[
                pl.BlockSpec((tm_eff, tk_eff), lambda i, j: (i, 0)),
                pl.BlockSpec((tk_eff, tn_eff), lambda i, j: (0, j)),
                pl.BlockSpec((1, tn_eff), lambda i, j: (0, j)),
            ],
            out_specs=pl.BlockSpec((tm_eff, tn_eff), lambda i, j: (i, j)),
            compiler_params=pltpu.CompilerParams(
                dimension_semantics=("parallel", "parallel"),
                vmem_limit_bytes=_VMEM_LIMIT,
            ),
        )(a, w, b)

    assert Kw % tk == 0, "prepare_params must pad K to a multiple of tk"
    k_tiles = Kw // tk
    return pl.pallas_call(
        functools.partial(_matmul_bias_acc_kernel, relu=relu),
        out_shape=jax.ShapeDtypeStruct((M, N), out_dtype),
        grid=(m_tiles, n_tiles, k_tiles),
        in_specs=[
            pl.BlockSpec((tm_eff, tk), lambda i, j, k: (i, k)),
            _buffered_weight_spec((tk, tn_eff), lambda i, j, k: (k, j),
                                  weight_buffers),
            pl.BlockSpec((1, tn_eff), lambda i, j, k: (0, j)),
        ],
        out_specs=pl.BlockSpec((tm_eff, tn_eff), lambda i, j, k: (i, j)),
        scratch_shapes=[pltpu.VMEM((tm_eff, tn_eff), jnp.float32)],
        compiler_params=pltpu.CompilerParams(
            dimension_semantics=("parallel", "parallel", "arbitrary"),
            vmem_limit_bytes=_VMEM_LIMIT,
        ),
    )(a, w, b)


def mlp_head(x, prep):
    """fc2..fc5, one pallas_call, full-extent blocks (all weights are tiny)."""
    B = x.shape[0]
    args = [x]
    in_specs = [pl.BlockSpec(x.shape, lambda i: (0, 0))]
    for idx in range(2, 6):
        w = prep[f"fc{idx}_w"]
        bias = prep[f"fc{idx}_b"]
        args += [w, bias]
        in_specs += [pl.BlockSpec(w.shape, lambda i: (0, 0)),
                     pl.BlockSpec(bias.shape, lambda i: (0, 0))]
    n_out = prep["fc5_w"].shape[1]
    return pl.pallas_call(
        _mlp_head_kernel,
        out_shape=jax.ShapeDtypeStruct((B, n_out), jnp.float32),
        grid=(1,),
        in_specs=in_specs,
        out_specs=pl.BlockSpec((B, n_out), lambda i: (0, 0)),
        compiler_params=pltpu.CompilerParams(vmem_limit_bytes=_VMEM_LIMIT),
    )(*args)


# ----------------------------------------------------------------------------
# Conv-as-matmul glue
# ----------------------------------------------------------------------------
def _conv_out(s, k, stride):
    return (s - k) // stride + 1


def im2col(x_nhwc, kh, kw, stride):
    N, H, W, C = x_nhwc.shape
    OH = _conv_out(H, kh, stride)
    OW = _conv_out(W, kw, stride)
    cols = []
    for i in range(kh):
        for j in range(kw):
            cols.append(
                x_nhwc[:, i:i + stride * (OH - 1) + 1:stride,
                       j:j + stride * (OW - 1) + 1:stride, :])
    patches = jnp.stack(cols, axis=3)              # (N, OH, OW, kh*kw, C)
    return patches.reshape(N * OH * OW, kh * kw * C), OH, OW


def conv2d_relu(x_nhwc, w_mat, bias, k, stride):
    # TODO(synk): build the (tm, k*k*C) patch tile in-kernel from an HBM NHWC
    #             window instead of materializing `patches` (perf-review #1).
    N = x_nhwc.shape[0]
    oc = w_mat.shape[1]
    patches, OH, OW = im2col(x_nhwc, k, k, stride)
    # Single K tile, single full-extent N tile -> direct kernel, output written
    # at (M, oc) so no post-slice copy is needed before the next layer.
    out = matmul_bias_act(patches, w_mat, bias, relu=True,
                          out_dtype=jnp.bfloat16, tm=1024)
    return out.reshape(N, OH, OW, oc)


# ----------------------------------------------------------------------------
# Model
# ----------------------------------------------------------------------------
def pilotnet_forward(prep, x_nchw):
    # BatchNorm2d, training-mode semantics (batch stats, biased variance,
    # eps=1e-3), folded into conv1's weight/bias (conv is linear in its input).
    # One-pass E[x] / E[x^2] formulation so XLA fuses both reductions.
    mean = jnp.mean(x_nchw, axis=(0, 2, 3))
    meansq = jnp.mean(jnp.square(x_nchw), axis=(0, 2, 3))
    var = jnp.maximum(meansq - jnp.square(mean), 0.0)
    inv = jax.lax.rsqrt(var + BN_EPS)
    scale = prep["bn_g"] * inv                     # (3,)
    shift = prep["bn_b"] - mean * scale            # (3,)

    x = jnp.transpose(x_nchw, (0, 2, 3, 1)).astype(jnp.bfloat16)   # NHWC bf16

    for idx, (name, oc, k, stride) in enumerate(CONV_DEFS):
        w_mat = prep[f"{name}_w"]                  # (k*k*ic, oc)
        bias = prep[f"{name}_b"]
        if idx == 0:
            # x_bn[c] = scale[c]*x[c] + shift[c]  ->  rescale conv1's rows.
            bias = bias + jnp.tile(shift, k * k) @ w_mat
            w_mat = w_mat * jnp.tile(scale, k * k)[:, None]
        x = conv2d_relu(x, w_mat, bias, k, stride)

    # torch.flatten(x, 1): fc1's weight columns were permuted to NHWC flatten
    # order at prep time, so flatten the NHWC activation directly.
    xf = x.reshape(x.shape[0], -1)
    # fc1 output stays OC-padded (1280 lanes); fc2's weight rows were padded to
    # match, so no [:, :1164] slice (HBM copy) is needed before the head.
    h = matmul_bias_act(xf, prep["fc1_w"], prep["fc1_b"], relu=False,
                        out_dtype=jnp.float32, tn=FC1_TN, tk=FC1_TK,
                        weight_buffers=3)
    return mlp_head(h, prep)


# ----------------------------------------------------------------------------
# Parameters
# ----------------------------------------------------------------------------
def init_params(key, in_h, in_w):
    """Raw parameters in PyTorch layout (Conv2d OIHW, Linear (out, in))."""
    def winit(k, shape, fan_in):
        return jax.random.normal(k, shape, jnp.float32) / jnp.sqrt(
            jnp.float32(fan_in))

    h, w = in_h, in_w
    for _, _, k, s in CONV_DEFS:
        h, w = _conv_out(h, k, s), _conv_out(w, k, s)
    flat = 64 * h * w   # original module: 69696 (for ~318x318 inputs)

    ks = jax.random.split(key, 24)
    p = {}
    p["bn_g"] = 1.0 + 0.1 * jax.random.normal(ks[0], (3,), jnp.float32)
    p["bn_b"] = 0.1 * jax.random.normal(ks[1], (3,), jnp.float32)

    ki = 2
    ic = 3
    for name, oc, k, _ in CONV_DEFS:
        p[f"{name}_w"] = winit(ks[ki], (oc, ic, k, k), ic * k * k); ki += 1
        p[f"{name}_b"] = winit(ks[ki], (oc,), ic * k * k); ki += 1
        ic = oc

    fc_defs = [("fc1", FC1_OUT, flat), ("fc2", 100, FC1_OUT), ("fc3", 50, 100),
               ("fc4", 10, 50), ("fc5", 2, 10)]
    for name, out_f, in_f in fc_defs:
        p[f"{name}_w"] = winit(ks[ki], (out_f, in_f), in_f); ki += 1
        p[f"{name}_b"] = winit(ks[ki], (out_f,), in_f); ki += 1
    return p, (h, w)


def prepare_params(raw, h5, w5):
    """One-time (outside jit) re-layout of the PyTorch parameters:
       * conv weights -> (kh*kw*ic, oc) matrices, bf16 (conv1 stays fp32 so the
         data-dependent BN fold can rescale it inside jit),
       * fc1 weight columns permuted from NCHW- to NHWC-flatten order, K padded
         to a tk multiple when K-tiled, N padded to 1280, bf16,
       * fc2 weight rows padded 1164 -> 1280 (zeros) so the padded fc1 output
         feeds the head directly; fc2..fc5 transposed to (in, out), bf16.
    """
    prep = {"bn_g": raw["bn_g"], "bn_b": raw["bn_b"]}

    ic = 3
    for name, oc, k, _ in CONV_DEFS:
        w = raw[f"{name}_w"]                                     # (OC, IC, k, k)
        wm = jnp.transpose(w, (2, 3, 1, 0)).reshape(k * k * ic, oc)
        prep[f"{name}_w"] = wm if name == "c1" else wm.astype(jnp.bfloat16)
        prep[f"{name}_b"] = raw[f"{name}_b"].astype(jnp.float32)
        ic = oc

    flat = 64 * h5 * w5
    w1 = raw["fc1_w"].reshape(FC1_OUT, 64, h5, w5)               # NCHW columns
    w1 = jnp.transpose(w1, (0, 2, 3, 1)).reshape(FC1_OUT, flat).T  # (flat,1164)
    kp = flat if flat <= FC1_TK else _round_up(flat, FC1_TK)
    np_ = _round_up(FC1_OUT, 128)                                # 1280
    prep["fc1_w"] = jnp.pad(
        w1, ((0, kp - flat), (0, np_ - FC1_OUT))).astype(jnp.bfloat16)
    prep["fc1_b"] = jnp.pad(raw["fc1_b"], (0, np_ - FC1_OUT))

    w2 = jnp.pad(raw["fc2_w"].T, ((0, np_ - FC1_OUT), (0, 0)))   # zero rows
    prep["fc2_w"] = w2.astype(jnp.bfloat16)
    prep["fc2_b"] = raw["fc2_b"].reshape(1, -1).astype(jnp.float32)
    for i in range(3, 6):
        prep[f"fc{i}_w"] = raw[f"fc{i}_w"].T.astype(jnp.bfloat16)
        prep[f"fc{i}_b"] = raw[f"fc{i}_b"].reshape(1, -1).astype(jnp.float32)
    return prep


if __name__ == "__main__":
    key = jax.random.PRNGKey(0)
    k_x, k_p = jax.random.split(key)

    H = W = 96                                   # small spatial (orig ~318)
    x = jax.random.normal(k_x, (2, 3, H, W), jnp.float32)
    raw, (h5, w5) = init_params(k_p, H, W)
    prep = prepare_params(raw, h5, w5)           # one-time re-layout, not jitted

    fwd = jax.jit(pilotnet_forward)
    out = jax.block_until_ready(fwd(prep, x))

    assert out.shape == (2, 2), out.shape
    assert bool(jnp.all(jnp.isfinite(out)))
    print("KERNEL_OK")
</pallas_src>

<mosaic_0001>
module attributes {stable_mosaic.version = 11 : i64} {
  func.func @_matmul_bias_direct_kernel(%arg0: i32, %arg1: i32, %arg2: memref<1024x75xbf16, #tpu.memory_space<vmem>>, %arg3: memref<75x24xbf16, #tpu.memory_space<vmem>>, %arg4: memref<1x24xf32, #tpu.memory_space<vmem>>, %arg5: memref<1024x24xbf16, #tpu.memory_space<vmem>>) attributes {dimension_semantics = [#tpu.dimension_semantics<parallel>, #tpu.dimension_semantics<parallel>], iteration_bounds = array<i64: 5, 1>, scalar_prefetch = 0 : i64, scratch_operands = 0 : i64, tpu.core_type = #tpu.core_type<tc>, window_params = [{transform_indices = @transform_0, window_bounds = array<i64: 1024, 75>}, {transform_indices = @transform_1, window_bounds = array<i64: 75, 24>}, {transform_indices = @transform_2, window_bounds = array<i64: 1, 24>}, {transform_indices = @transform_3, window_bounds = array<i64: 1024, 24>}]} {
    %c0 = arith.constant 0 : index
    %c0_0 = arith.constant 0 : index
    %0 = vector.load %arg2[%c0, %c0_0] : memref<1024x75xbf16, #tpu.memory_space<vmem>>, vector<1024x75xbf16>
    %c0_1 = arith.constant 0 : index
    %c0_2 = arith.constant 0 : index
    %1 = vector.load %arg3[%c0_1, %c0_2] : memref<75x24xbf16, #tpu.memory_space<vmem>>, vector<75x24xbf16>
    %cst = arith.constant dense<0.000000e+00> : vector<1024x24xf32>
    %2 = tpu.matmul %0, %1, %cst {dimension_numbers = #tpu.dot_dimension_numbers<[1], [0], [0], [1], [0, 0, 1, 1], [], []>} : vector<1024x75xbf16>, vector<75x24xbf16>, vector<1024x24xf32> -> vector<1024x24xf32>
    %c0_3 = arith.constant 0 : index
    %c0_4 = arith.constant 0 : index
    %3 = vector.load %arg4[%c0_3, %c0_4] : memref<1x24xf32, #tpu.memory_space<vmem>>, vector<1x24xf32>
    %4 = vector.broadcast %3 : vector<1x24xf32> to vector<1024x24xf32>
    %5 = arith.addf %2, %4 : vector<1024x24xf32>
    %cst_5 = arith.constant 0.000000e+00 : f32
    %6 = vector.broadcast %cst_5 : f32 to vector<1024x24xf32>
    %7 = arith.maximumf %5, %6 : vector<1024x24xf32>
    %8 = arith.truncf %7 : vector<1024x24xf32> to vector<1024x24xbf16>
    %c0_6 = arith.constant 0 : index
    %c0_7 = arith.constant 0 : index
    %9 = vector.load %arg5[%c0_6, %c0_7] : memref<1024x24xbf16, #tpu.memory_space<vmem>>, vector<1024x24xbf16>
    tpu.vector_store %arg5[%c0_6, %c0_7], %8 {strides = array<i32>} : memref<1024x24xbf16, #tpu.memory_space<vmem>>, vector<1024x24xbf16>,
    return
  }
  func.func @transform_0(%arg0: i32, %arg1: i32) -> (i32, i32) {
    %c0_i32 = arith.constant 0 : i32
    %c0_i32_0 = arith.constant 0 : i32
    return %arg0, %c0_i32 : i32, i32
  }
  func.func @transform_1(%arg0: i32, %arg1: i32) -> (i32, i32) {
    %c0_i32 = arith.constant 0 : i32
    %c0_i32_0 = arith.constant 0 : i32
    return %c0_i32, %arg1 : i32, i32
  }
  func.func @transform_2(%arg0: i32, %arg1: i32) -> (i32, i32) {
    %c0_i32 = arith.constant 0 : i32
    %c0_i32_0 = arith.constant 0 : i32
    return %c0_i32, %arg1 : i32, i32
  }
  func.func @transform_3(%arg0: i32, %arg1: i32) -> (i32, i32) {
    %c0_i32 = arith.constant 0 : i32
    return %arg0, %arg1 : i32, i32
  }
}

module attributes {stable_mosaic.version = 11 : i64} {
  func.func @_matmul_bias_direct_kernel(%arg0: i32, %arg1: i32, %arg2: memref<888x600xbf16, #tpu.memory_space<vmem>>, %arg3: memref<600x36xbf16, #tpu.memory_space<vmem>>, %arg4: memref<1x36xf32, #tpu.memory_space<vmem>>, %arg5: memref<888x36xbf16, #tpu.memory_space<vmem>>) attributes {dimension_semantics = [#tpu.dimension_semantics<parallel>, #tpu.dimension_semantics<parallel>], iteration_bounds = array<i64: 1, 1>, scalar_prefetch = 0 : i64, scratch_operands = 0 : i64, tpu.core_type = #tpu.core_type<tc>, window_params = [{transform_indices = @transform_0, window_bounds = array<i64: 888, 600>}, {transform_indices = @transform_1, window_bounds = array<i64: 600, 36>}, {transform_indices = @transform_2, window_bounds = array<i64: 1, 36>}, {transform_indices = @transform_3, window_bounds = array<i64: 888, 36>}]} {
    %c0 = arith.constant 0 : index
    %c0_0 = arith.constant 0 : index
    %0 = vector.load %arg2[%c0, %c0_0] : memref<888x600xbf16, #tpu.memory_space<vmem>>, vector<888x600xbf16>
    %c0_1 = arith.constant 0 : index
    %c0_2 = arith.constant 0 : index
    %1 = vector.load %arg3[%c0_1, %c0_2] : memref<600x36xbf16, #tpu.memory_space<vmem>>, vector<600x36xbf16>
    %cst = arith.constant dense<0.000000e+00> : vector<888x36xf32>
    %2 = tpu.matmul %0, %1, %cst {dimension_numbers = #tpu.dot_dimension_numbers<[1], [0], [0], [1], [0, 0, 1, 1], [], []>} : vector<888x600xbf16>, vector<600x36xbf16>, vector<888x36xf32> -> vector<888x36xf32>
    %c0_3 = arith.constant 0 : index
    %c0_4 = arith.constant 0 : index
    %3 = vector.load %arg4[%c0_3, %c0_4] : memref<1x36xf32, #tpu.memory_space<vmem>>, vector<1x36xf32>
    %4 = vector.broadcast %3 : vector<1x36xf32> to vector<888x36xf32>
    %5 = arith.addf %2, %4 : vector<888x36xf32>
    %cst_5 = arith.constant 0.000000e+00 : f32
    %6 = vector.broadcast %cst_5 : f32 to vector<888x36xf32>
    %7 = arith.maximumf %5, %6 : vector<888x36xf32>
    %8 = arith.truncf %7 : vector<888x36xf32> to vector<888x36xbf16>
    %c0_6 = arith.constant 0 : index
    %c0_7 = arith.constant 0 : index
    %9 = vector.load %arg5[%c0_6, %c0_7] : memref<888x36xbf16, #tpu.memory_space<vmem>>, vector<888x36xbf16>
    tpu.vector_store %arg5[%c0_6, %c0_7], %8 {strides = array<i32>} : memref<888x36xbf16, #tpu.memory_space<vmem>>, vector<888x36xbf16>,
    return
  }
  func.func @transform_0(%arg0: i32, %arg1: i32) -> (i32, i32) {
    %c0_i32 = arith.constant 0 : i32
    %c0_i32_0 = arith.constant 0 : i32
    return %arg0, %c0_i32 : i32, i32
  }
  func.func @transform_1(%arg0: i32, %arg1: i32) -> (i32, i32) {
    %c0_i32 = arith.constant 0 : i32
    %c0_i32_0 = arith.constant 0 : i32
    return %c0_i32, %arg1 : i32, i32
  }
  func.func @transform_2(%arg0: i32, %arg1: i32) -> (i32, i32) {
    %c0_i32 = arith.constant 0 : i32
    %c0_i32_0 = arith.constant 0 : i32
    return %c0_i32, %arg1 : i32, i32
  }
  func.func @transform_3(%arg0: i32, %arg1: i32) -> (i32, i32) {
    %c0_i32 = arith.constant 0 : i32
    return %arg0, %arg1 : i32, i32
  }
}

module attributes {stable_mosaic.version = 11 : i64} {
  func.func @_matmul_bias_direct_kernel(%arg0: i32, %arg1: i32, %arg2: memref<168x900xbf16, #tpu.memory_space<vmem>>, %arg3: memref<900x48xbf16, #tpu.memory_space<vmem>>, %arg4: memref<1x48xf32, #tpu.memory_space<vmem>>, %arg5: memref<168x48xbf16, #tpu.memory_space<vmem>>) attributes {dimension_semantics = [#tpu.dimension_semantics<parallel>, #tpu.dimension_semantics<parallel>], iteration_bounds = array<i64: 1, 1>, scalar_prefetch = 0 : i64, scratch_operands = 0 : i64, tpu.core_type = #tpu.core_type<tc>, window_params = [{transform_indices = @transform_0, window_bounds = array<i64: 168, 900>}, {transform_indices = @transform_1, window_bounds = array<i64: 900, 48>}, {transform_indices = @transform_2, window_bounds = array<i64: 1, 48>}, {transform_indices = @transform_3, window_bounds = array<i64: 168, 48>}]} {
    %c0 = arith.constant 0 : index
    %c0_0 = arith.constant 0 : index
    %0 = vector.load %arg2[%c0, %c0_0] : memref<168x900xbf16, #tpu.memory_space<vmem>>, vector<168x900xbf16>
    %c0_1 = arith.constant 0 : index
    %c0_2 = arith.constant 0 : index
    %1 = vector.load %arg3[%c0_1, %c0_2] : memref<900x48xbf16, #tpu.memory_space<vmem>>, vector<900x48xbf16>
    %cst = arith.constant dense<0.000000e+00> : vector<168x48xf32>
    %2 = tpu.matmul %0, %1, %cst {dimension_numbers = #tpu.dot_dimension_numbers<[1], [0], [0], [1], [0, 0, 1, 1], [], []>} : vector<168x900xbf16>, vector<900x48xbf16>, vector<168x48xf32> -> vector<168x48xf32>
    %c0_3 = arith.constant 0 : index
    %c0_4 = arith.constant 0 : index
    %3 = vector.load %arg4[%c0_3, %c0_4] : memref<1x48xf32, #tpu.memory_space<vmem>>, vector<1x48xf32>
    %4 = vector.broadcast %3 : vector<1x48xf32> to vector<168x48xf32>
    %5 = arith.addf %2, %4 : vector<168x48xf32>
    %cst_5 = arith.constant 0.000000e+00 : f32
    %6 = vector.broadcast %cst_5 : f32 to vector<168x48xf32>
    %7 = arith.maximumf %5, %6 : vector<168x48xf32>
    %8 = arith.truncf %7 : vector<168x48xf32> to vector<168x48xbf16>
    %c0_6 = arith.constant 0 : index
    %c0_7 = arith.constant 0 : index
    %9 = vector.load %arg5[%c0_6, %c0_7] : memref<168x48xbf16, #tpu.memory_space<vmem>>, vector<168x48xbf16>
    tpu.vector_store %arg5[%c0_6, %c0_7], %8 {strides = array<i32>} : memref<168x48xbf16, #tpu.memory_space<vmem>>, vector<168x48xbf16>,
    return
  }
  func.func @transform_0(%arg0: i32, %arg1: i32) -> (i32, i32) {
    %c0_i32 = arith.constant 0 : i32
    %c0_i32_0 = arith.constant 0 : i32
    return %arg0, %c0_i32 : i32, i32
  }
  func.func @transform_1(%arg0: i32, %arg1: i32) -> (i32, i32) {
    %c0_i32 = arith.constant 0 : i32
    %c0_i32_0 = arith.constant 0 : i32
    return %c0_i32, %arg1 : i32, i32
  }
  func.func @transform_2(%arg0: i32, %arg1: i32) -> (i32, i32) {
    %c0_i32 = arith.constant 0 : i32
    %c0_i32_0 = arith.constant 0 : i32
    return %c0_i32, %arg1 : i32, i32
  }
  func.func @transform_3(%arg0: i32, %arg1: i32) -> (i32, i32) {
    %c0_i32 = arith.constant 0 : i32
    return %arg0, %arg1 : i32, i32
  }
}

module attributes {stable_mosaic.version = 11 : i64} {
  func.func @_matmul_bias_direct_kernel(%arg0: i32, %arg1: i32, %arg2: memref<104x432xbf16, #tpu.memory_space<vmem>>, %arg3: memref<432x64xbf16, #tpu.memory_space<vmem>>, %arg4: memref<1x64xf32, #tpu.memory_space<vmem>>, %arg5: memref<104x64xbf16, #tpu.memory_space<vmem>>) attributes {dimension_semantics = [#tpu.dimension_semantics<parallel>, #tpu.dimension_semantics<parallel>], iteration_bounds = array<i64: 1, 1>, scalar_prefetch = 0 : i64, scratch_operands = 0 : i64, tpu.core_type = #tpu.core_type<tc>, window_params = [{transform_indices = @transform_0, window_bounds = array<i64: 104, 432>}, {transform_indices = @transform_1, window_bounds = array<i64: 432, 64>}, {transform_indices = @transform_2, window_bounds = array<i64: 1, 64>}, {transform_indices = @transform_3, window_bounds = array<i64: 104, 64>}]} {
    %c0 = arith.constant 0 : index
    %c0_0 = arith.constant 0 : index
    %0 = vector.load %arg2[%c0, %c0_0] : memref<104x432xbf16, #tpu.memory_space<vmem>>, vector<104x432xbf16>
    %c0_1 = arith.constant 0 : index
    %c0_2 = arith.constant 0 : index
    %1 = vector.load %arg3[%c0_1, %c0_2] : memref<432x64xbf16, #tpu.memory_space<vmem>>, vector<432x64xbf16>
    %cst = arith.constant dense<0.000000e+00> : vector<104x64xf32>
    %2 = tpu.matmul %0, %1, %cst {dimension_numbers = #tpu.dot_dimension_numbers<[1], [0], [0], [1], [0, 0, 1, 1], [], []>} : vector<104x432xbf16>, vector<432x64xbf16>, vector<104x64xf32> -> vector<104x64xf32>
    %c0_3 = arith.constant 0 : index
    %c0_4 = arith.constant 0 : index
    %3 = vector.load %arg4[%c0_3, %c0_4] : memref<1x64xf32, #tpu.memory_space<vmem>>, vector<1x64xf32>
    %4 = vector.broadcast %3 : vector<1x64xf32> to vector<104x64xf32>
    %5 = arith.addf %2, %4 : vector<104x64xf32>
    %cst_5 = arith.constant 0.000000e+00 : f32
    %6 = vector.broadcast %cst_5 : f32 to vector<104x64xf32>
    %7 = arith.maximumf %5, %6 : vector<104x64xf32>
    %8 = arith.truncf %7 : vector<104x64xf32> to vector<104x64xbf16>
    %c0_6 = arith.constant 0 : index
    %c0_7 = arith.constant 0 : index
    %9 = vector.load %arg5[%c0_6, %c0_7] : memref<104x64xbf16, #tpu.memory_space<vmem>>, vector<104x64xbf16>
    tpu.vector_store %arg5[%c0_6, %c0_7], %8 {strides = array<i32>} : memref<104x64xbf16, #tpu.memory_space<vmem>>, vector<104x64xbf16>,
    return
  }
  func.func @transform_0(%arg0: i32, %arg1: i32) -> (i32, i32) {
    %c0_i32 = arith.constant 0 : i32
    %c0_i32_0 = arith.constant 0 : i32
    return %arg0, %c0_i32 : i32, i32
  }
  func.func @transform_1(%arg0: i32, %arg1: i32) -> (i32, i32) {
    %c0_i32 = arith.constant 0 : i32
    %c0_i32_0 = arith.constant 0 : i32
    return %c0_i32, %arg1 : i32, i32
  }
  func.func @transform_2(%arg0: i32, %arg1: i32) -> (i32, i32) {
    %c0_i32 = arith.constant 0 : i32
    %c0_i32_0 = arith.constant 0 : i32
    return %c0_i32, %arg1 : i32, i32
  }
  func.func @transform_3(%arg0: i32, %arg1: i32) -> (i32, i32) {
    %c0_i32 = arith.constant 0 : i32
    return %arg0, %arg1 : i32, i32
  }
}

module attributes {stable_mosaic.version = 11 : i64} {
  func.func @_matmul_bias_direct_kernel(%arg0: i32, %arg1: i32, %arg2: memref<56x576xbf16, #tpu.memory_space<vmem>>, %arg3: memref<576x64xbf16, #tpu.memory_space<vmem>>, %arg4: memref<1x64xf32, #tpu.memory_space<vmem>>, %arg5: memref<56x64xbf16, #tpu.memory_space<vmem>>) attributes {dimension_semantics = [#tpu.dimension_semantics<parallel>, #tpu.dimension_semantics<parallel>], iteration_bounds = array<i64: 1, 1>, scalar_prefetch = 0 : i64, scratch_operands = 0 : i64, tpu.core_type = #tpu.core_type<tc>, window_params = [{transform_indices = @transform_0, window_bounds = array<i64: 56, 576>}, {transform_indices = @transform_1, window_bounds = array<i64: 576, 64>}, {transform_indices = @transform_2, window_bounds = array<i64: 1, 64>}, {transform_indices = @transform_3, window_bounds = array<i64: 56, 64>}]} {
    %c0 = arith.constant 0 : index
    %c0_0 = arith.constant 0 : index
    %0 = vector.load %arg2[%c0, %c0_0] : memref<56x576xbf16, #tpu.memory_space<vmem>>, vector<56x576xbf16>
    %c0_1 = arith.constant 0 : index
    %c0_2 = arith.constant 0 : index
    %1 = vector.load %arg3[%c0_1, %c0_2] : memref<576x64xbf16, #tpu.memory_space<vmem>>, vector<576x64xbf16>
    %cst = arith.constant dense<0.000000e+00> : vector<56x64xf32>
    %2 = tpu.matmul %0, %1, %cst {dimension_numbers = #tpu.dot_dimension_numbers<[1], [0], [0], [1], [0, 0, 1, 1], [], []>} : vector<56x576xbf16>, vector<576x64xbf16>, vector<56x64xf32> -> vector<56x64xf32>
    %c0_3 = arith.constant 0 : index
    %c0_4 = arith.constant 0 : index
    %3 = vector.load %arg4[%c0_3, %c0_4] : memref<1x64xf32, #tpu.memory_space<vmem>>, vector<1x64xf32>
    %4 = vector.broadcast %3 : vector<1x64xf32> to vector<56x64xf32>
    %5 = arith.addf %2, %4 : vector<56x64xf32>
    %cst_5 = arith.constant 0.000000e+00 : f32
    %6 = vector.broadcast %cst_5 : f32 to vector<56x64xf32>
    %7 = arith.maximumf %5, %6 : vector<56x64xf32>
    %8 = arith.truncf %7 : vector<56x64xf32> to vector<56x64xbf16>
    %c0_6 = arith.constant 0 : index
    %c0_7 = arith.constant 0 : index
    %9 = vector.load %arg5[%c0_6, %c0_7] : memref<56x64xbf16, #tpu.memory_space<vmem>>, vector<56x64xbf16>
    tpu.vector_store %arg5[%c0_6, %c0_7], %8 {strides = array<i32>} : memref<56x64xbf16, #tpu.memory_space<vmem>>, vector<56x64xbf16>,
    return
  }
  func.func @transform_0(%arg0: i32, %arg1: i32) -> (i32, i32) {
    %c0_i32 = arith.constant 0 : i32
    %c0_i32_0 = arith.constant 0 : i32
    return %arg0, %c0_i32 : i32, i32
  }
  func.func @transform_1(%arg0: i32, %arg1: i32) -> (i32, i32) {
    %c0_i32 = arith.constant 0 : i32
    %c0_i32_0 = arith.constant 0 : i32
    return %c0_i32, %arg1 : i32, i32
  }
  func.func @transform_2(%arg0: i32, %arg1: i32) -> (i32, i32) {
    %c0_i32 = arith.constant 0 : i32
    %c0_i32_0 = arith.constant 0 : i32
    return %c0_i32, %arg1 : i32, i32
  }
  func.func @transform_3(%arg0: i32, %arg1: i32) -> (i32, i32) {
    %c0_i32 = arith.constant 0 : i32
    return %arg0, %arg1 : i32, i32
  }
}

module attributes {stable_mosaic.version = 11 : i64} {
  func.func @_matmul_bias_direct_kernel(%arg0: i32, %arg1: i32, %arg2: memref<8x1600xbf16, #tpu.memory_space<vmem>>, %arg3: memref<1600x128xbf16, #tpu.memory_space<vmem>>, %arg4: memref<1x128xf32, #tpu.memory_space<vmem>>, %arg5: memref<8x128xf32, #tpu.memory_space<vmem>>) attributes {dimension_semantics = [#tpu.dimension_semantics<parallel>, #tpu.dimension_semantics<parallel>], iteration_bounds = array<i64: 1, 10>, scalar_prefetch = 0 : i64, scratch_operands = 0 : i64, tpu.core_type = #tpu.core_type<tc>, window_params = [{transform_indices = @transform_0, window_bounds = array<i64: 8, 1600>}, {transform_indices = @transform_1, window_bounds = array<i64: 1600, 128>}, {transform_indices = @transform_2, window_bounds = array<i64: 1, 128>}, {transform_indices = @transform_3, window_bounds = array<i64: 8, 128>}]} {
    %c0 = arith.constant 0 : index
    %c0_0 = arith.constant 0 : index
    %0 = vector.load %arg2[%c0, %c0_0] : memref<8x1600xbf16, #tpu.memory_space<vmem>>, vector<8x1600xbf16>
    %c0_1 = arith.constant 0 : index
    %c0_2 = arith.constant 0 : index
    %1 = vector.load %arg3[%c0_1, %c0_2] : memref<1600x128xbf16, #tpu.memory_space<vmem>>, vector<1600x128xbf16>
    %cst = arith.constant dense<0.000000e+00> : vector<8x128xf32>
    %2 = tpu.matmul %0, %1, %cst {dimension_numbers = #tpu.dot_dimension_numbers<[1], [0], [0], [1], [0, 0, 1, 1], [], []>} : vector<8x1600xbf16>, vector<1600x128xbf16>, vector<8x128xf32> -> vector<8x128xf32>
    %c0_3 = arith.constant 0 : index
    %c0_4 = arith.constant 0 : index
    %3 = vector.load %arg4[%c0_3, %c0_4] : memref<1x128xf32, #tpu.memory_space<vmem>>, vector<1x128xf32>
    %4 = vector.broadcast %3 : vector<1x128xf32> to vector<8x128xf32>
    %5 = arith.addf %2, %4 : vector<8x128xf32>
    %c0_5 = arith.constant 0 : index
    %c0_6 = arith.constant 0 : index
    %6 = vector.load %arg5[%c0_5, %c0_6] : memref<8x128xf32, #tpu.memory_space<vmem>>, vector<8x128xf32>
    tpu.vector_store %arg5[%c0_5, %c0_6], %5 {strides = array<i32>} : memref<8x128xf32, #tpu.memory_space<vmem>>, vector<8x128xf32>,
    return
  }
  func.func @transform_0(%arg0: i32, %arg1: i32) -> (i32, i32) {
    %c0_i32 = arith.constant 0 : i32
    %c0_i32_0 = arith.constant 0 : i32
    return %arg0, %c0_i32 : i32, i32
  }
  func.func @transform_1(%arg0: i32, %arg1: i32) -> (i32, i32) {
    %c0_i32 = arith.constant 0 : i32
    %c0_i32_0 = arith.constant 0 : i32
    return %c0_i32, %arg1 : i32, i32
  }
  func.func @transform_2(%arg0: i32, %arg1: i32) -> (i32, i32) {
    %c0_i32 = arith.constant 0 : i32
    %c0_i32_0 = arith.constant 0 : i32
    return %c0_i32, %arg1 : i32, i32
  }
  func.func @transform_3(%arg0: i32, %arg1: i32) -> (i32, i32) {
    %c0_i32 = arith.constant 0 : i32
    return %arg0, %arg1 : i32, i32
  }
}

module attributes {stable_mosaic.version = 11 : i64} {
  func.func @_mlp_head_kernel(%arg0: i32, %arg1: memref<2x1280xf32, #tpu.memory_space<vmem>>, %arg2: memref<1280x100xbf16, #tpu.memory_space<vmem>>, %arg3: memref<1x100xf32, #tpu.memory_space<vmem>>, %arg4: memref<100x50xbf16, #tpu.memory_space<vmem>>, %arg5: memref<1x50xf32, #tpu.memory_space<vmem>>, %arg6: memref<50x10xbf16, #tpu.memory_space<vmem>>, %arg7: memref<1x10xf32, #tpu.memory_space<vmem>>, %arg8: memref<10x2xbf16, #tpu.memory_space<vmem>>, %arg9: memref<1x2xf32, #tpu.memory_space<vmem>>, %arg10: memref<2x2xf32, #tpu.memory_space<vmem>>) attributes {dimension_semantics = [#tpu.dimension_semantics<arbitrary>], iteration_bounds = array<i64: 1>, scalar_prefetch = 0 : i64, scratch_operands = 0 : i64, tpu.core_type = #tpu.core_type<tc>, window_params = [{pipeline_mode = #tpu.pipeline_mode<synchronous>, transform_indices = @transform_0, window_bounds = array<i64: 2, 1280>}, {pipeline_mode = #tpu.pipeline_mode<synchronous>, transform_indices = @transform_1, window_bounds = array<i64: 1280, 100>}, {pipeline_mode = #tpu.pipeline_mode<synchronous>, transform_indices = @transform_2, window_bounds = array<i64: 1, 100>}, {pipeline_mode = #tpu.pipeline_mode<synchronous>, transform_indices = @transform_3, window_bounds = array<i64: 100, 50>}, {pipeline_mode = #tpu.pipeline_mode<synchronous>, transform_indices = @transform_4, window_bounds = array<i64: 1, 50>}, {pipeline_mode = #tpu.pipeline_mode<synchronous>, transform_indices = @transform_5, window_bounds = array<i64: 50, 10>}, {pipeline_mode = #tpu.pipeline_mode<synchronous>, transform_indices = @transform_6, window_bounds = array<i64: 1, 10>}, {pipeline_mode = #tpu.pipeline_mode<synchronous>, transform_indices = @transform_7, window_bounds = array<i64: 10, 2>}, {pipeline_mode = #tpu.pipeline_mode<synchronous>, transform_indices = @transform_8, window_bounds = array<i64: 1, 2>}, {pipeline_mode = #tpu.pipeline_mode<synchronous>, transform_indices = @transform_9, window_bounds = array<i64: 2, 2>}]} {
    %c0 = arith.constant 0 : index
    %c0_0 = arith.constant 0 : index
    %0 = vector.load %arg1[%c0, %c0_0] : memref<2x1280xf32, #tpu.memory_space<vmem>>, vector<2x1280xf32>
    %1 = arith.truncf %0 : vector<2x1280xf32> to vector<2x1280xbf16>
    %c0_1 = arith.constant 0 : index
    %c0_2 = arith.constant 0 : index
    %2 = vector.load %arg2[%c0_1, %c0_2] : memref<1280x100xbf16, #tpu.memory_space<vmem>>, vector<1280x100xbf16>
    %cst = arith.constant dense<0.000000e+00> : vector<2x100xf32>
    %3 = tpu.matmul %1, %2, %cst {dimension_numbers = #tpu.dot_dimension_numbers<[1], [0], [0], [1], [0, 0, 1, 1], [], []>} : vector<2x1280xbf16>, vector<1280x100xbf16>, vector<2x100xf32> -> vector<2x100xf32>
    %c0_3 = arith.constant 0 : index
    %c0_4 = arith.constant 0 : index
    %4 = vector.load %arg3[%c0_3, %c0_4] : memref<1x100xf32, #tpu.memory_space<vmem>>, vector<1x100xf32>
    %5 = vector.broadcast %4 : vector<1x100xf32> to vector<2x100xf32>
    %6 = arith.addf %3, %5 : vector<2x100xf32>
    %7 = arith.truncf %6 : vector<2x100xf32> to vector<2x100xbf16>
    %c0_5 = arith.constant 0 : index
    %c0_6 = arith.constant 0 : index
    %8 = vector.load %arg4[%c0_5, %c0_6] : memref<100x50xbf16, #tpu.memory_space<vmem>>, vector<100x50xbf16>
    %cst_7 = arith.constant dense<0.000000e+00> : vector<2x50xf32>
    %9 = tpu.matmul %7, %8, %cst_7 {dimension_numbers = #tpu.dot_dimension_numbers<[1], [0], [0], [1], [0, 0, 1, 1], [], []>} : vector<2x100xbf16>, vector<100x50xbf16>, vector<2x50xf32> -> vector<2x50xf32>
    %c0_8 = arith.constant 0 : index
    %c0_9 = arith.constant 0 : index
    %10 = vector.load %arg5[%c0_8, %c0_9] : memref<1x50xf32, #tpu.memory_space<vmem>>, vector<1x50xf32>
    %11 = vector.broadcast %10 : vector<1x50xf32> to vector<2x50xf32>
    %12 = arith.addf %9, %11 : vector<2x50xf32>
    %13 = arith.truncf %12 : vector<2x50xf32> to vector<2x50xbf16>
    %c0_10 = arith.constant 0 : index
    %c0_11 = arith.constant 0 : index
    %14 = vector.load %arg6[%c0_10, %c0_11] : memref<50x10xbf16, #tpu.memory_space<vmem>>, vector<50x10xbf16>
    %cst_12 = arith.constant dense<0.000000e+00> : vector<2x10xf32>
    %15 = tpu.matmul %13, %14, %cst_12 {dimension_numbers = #tpu.dot_dimension_numbers<[1], [0], [0], [1], [0, 0, 1, 1], [], []>} : vector<2x50xbf16>, vector<50x10xbf16>, vector<2x10xf32> -> vector<2x10xf32>
    %c0_13 = arith.constant 0 : index
    %c0_14 = arith.constant 0 : index
    %16 = vector.load %arg7[%c0_13, %c0_14] : memref<1x10xf32, #tpu.memory_space<vmem>>, vector<1x10xf32>
    %17 = vector.broadcast %16 : vector<1x10xf32> to vector<2x10xf32>
    %18 = arith.addf %15, %17 : vector<2x10xf32>
    %19 = arith.truncf %18 : vector<2x10xf32> to vector<2x10xbf16>
    %c0_15 = arith.constant 0 : index
    %c0_16 = arith.constant 0 : index
    %20 = vector.load %arg8[%c0_15, %c0_16] : memref<10x2xbf16, #tpu.memory_space<vmem>>, vector<10x2xbf16>
    %cst_17 = arith.constant dense<0.000000e+00> : vector<2x2xf32>
    %21 = tpu.matmul %19, %20, %cst_17 {dimension_numbers = #tpu.dot_dimension_numbers<[1], [0], [0], [1], [0, 0, 1, 1], [], []>} : vector<2x10xbf16>, vector<10x2xbf16>, vector<2x2xf32> -> vector<2x2xf32>
    %c0_18 = arith.constant 0 : index
    %c0_19 = arith.constant 0 : index
    %22 = vector.load %arg9[%c0_18, %c0_19] : memref<1x2xf32, #tpu.memory_space<vmem>>, vector<1x2xf32>
    %23 = vector.broadcast %22 : vector<1x2xf32> to vector<2x2xf32>
    %24 = arith.addf %21, %23 : vector<2x2xf32>
    %c0_20 = arith.constant 0 : index
    %c0_21 = arith.constant 0 : index
    %25 = vector.load %arg10[%c0_20, %c0_21] : memref<2x2xf32, #tpu.memory_space<vmem>>, vector<2x2xf32>
    tpu.vector_store %arg10[%c0_20, %c0_21], %24 {strides = array<i32>} : memref<2x2xf32, #tpu.memory_space<vmem>>, vector<2x2xf32>,
    return
  }
  func.func @transform_0(%arg0: i32) -> (i32, i32) {
    %c0_i32 = arith.constant 0 : i32
    %c0_i32_0 = arith.constant 0 : i32
    %c0_i32_1 = arith.constant 0 : i32
    return %c0_i32, %c0_i32_0 : i32, i32
  }
  func.func @transform_1(%arg0: i32) -> (i32, i32) {
    %c0_i32 = arith.constant 0 : i32
    %c0_i32_0 = arith.constant 0 : i32
    %c0_i32_1 = arith.constant 0 : i32
    return %c0_i32, %c0_i32_0 : i32, i32
  }
  func.func @transform_2(%arg0: i32) -> (i32, i32) {
    %c0_i32 = arith.constant 0 : i32
    %c0_i32_0 = arith.constant 0 : i32
    %c0_i32_1 = arith.constant 0 : i32
    return %c0_i32, %c0_i32_0 : i32, i32
  }
  func.func @transform_3(%arg0: i32) -> (i32, i32) {
    %c0_i32 = arith.constant 0 : i32
    %c0_i32_0 = arith.constant 0 : i32
    %c0_i32_1 = arith.constant 0 : i32
    return %c0_i32, %c0_i32_0 : i32, i32
  }
  func.func @transform_4(%arg0: i32) -> (i32, i32) {
    %c0_i32 = arith.constant 0 : i32
    %c0_i32_0 = arith.constant 0 : i32
    %c0_i32_1 = arith.constant 0 : i32
    return %c0_i32, %c0_i32_0 : i32, i32
  }
  func.func @transform_5(%arg0: i32) -> (i32, i32) {
    %c0_i32 = arith.constant 0 : i32
    %c0_i32_0 = arith.constant 0 : i32
    %c0_i32_1 = arith.constant 0 : i32
    return %c0_i32, %c0_i32_0 : i32, i32
  }
  func.func @transform_6(%arg0: i32) -> (i32, i32) {
    %c0_i32 = arith.constant 0 : i32
    %c0_i32_0 = arith.constant 0 : i32
    %c0_i32_1 = arith.constant 0 : i32
    return %c0_i32, %c0_i32_0 : i32, i32
  }
  func.func @transform_7(%arg0: i32) -> (i32, i32) {
    %c0_i32 = arith.constant 0 : i32
    %c0_i32_0 = arith.constant 0 : i32
    %c0_i32_1 = arith.constant 0 : i32
    return %c0_i32, %c0_i32_0 : i32, i32
  }
  func.func @transform_8(%arg0: i32) -> (i32, i32) {
    %c0_i32 = arith.constant 0 : i32
    %c0_i32_0 = arith.constant 0 : i32
    %c0_i32_1 = arith.constant 0 : i32
    return %c0_i32, %c0_i32_0 : i32, i32
  }
  func.func @transform_9(%arg0: i32) -> (i32, i32) {
    %c0_i32 = arith.constant 0 : i32
    %c0_i32_0 = arith.constant 0 : i32
    %c0_i32_1 = arith.constant 0 : i32
    return %c0_i32, %c0_i32_0 : i32, i32
  }
}

</mosaic_0001>

<bundles_post_ra>
// kernel: tile.18
= control target key start
LH: loop header
LB: loop body
LE: loop exit
PB: predicated region body
PF: predicated region fallthrough
CT: control target
= control target key end

     0   :  { %s40_s0 = inlined_call_operand.vmem [shape: f32[3], index: 0, kind: input, shape index: {}]   ;;  %s41_s1 = inlined_call_operand.vmem [shape: f32[25,3], index: 1, kind: output, shape index: {}]  }
   0x1   :  { %v4_v0 = vld [vmem:[%s40_s0] ss:$0 sm:$0xff] }
   0x2   :  { %5 = vst [vmem:[%s41_s1] sm:$0xff] %v4_v0  ;;  %12 = vst [vmem:[%s41_s1 + $0x8] sm:$0xff] %v4_v0 }
   0x3   :  { %13 = vst [vmem:[%s41_s1 + $0x10] sm:$0xff] %v4_v0  ;;  %14 = vst [vmem:[%s41_s1 + $0x18] sm:$0xff] %v4_v0 }

// kernel: mul.9
= control target key start
LH: loop header
LB: loop body
LE: loop exit
PB: predicated region body
PF: predicated region fallthrough
CT: control target
= control target key end

     0   :  { %s203_s10 = smov 72   ;;  %s204_s11 = smov 66   ;;  %vm3_vm0 = vcmask 23552   ;;  %vm9_vm1 = vcmask 613952   ;;  %vm15_vm2 = vcmask 589352   ;;  %vm21_vm3 = vcmask 564752   ;;  %s315_s0 = inlined_call_operand.vmem [shape: f32[25,3], index: 0, kind: input, shape index: {}]   ;;  %s316_s1 = inlined_call_operand.vmem [shape: f32[75], index: 1, kind: output, shape index: {}]  }
   0x1   :  { %v155_v0 = vld [vmem:[%s315_s0 + $0x18] sm:$0x1]   ;;  %v157_v1 = vld [vmem:[%s315_s0 + $0x16] sm:$0x1]   ;;  %v156_v2 = vld [vmem:[%s315_s0 + $0x17] sm:$0x1]  }
   0x2   :  { %7 = vrot.lane.b32.xlu0 %v155_v0, %s203_s10  ;;  %19 = vrot.lane.b32.xlu1 %v157_v1, %s204_s11  ;;  %v158_v3 = vld [vmem:[%s315_s0 + $0x15] sm:$0x1]   ;;  %s205_s16 = smov 69   ;;  %s206_s17 = smov 63   ;;  %v159_v4 = vld [vmem:[%s315_s0 + $0x14] sm:$0x1]  }
   0x3   :  { %v160_v5 = vld [vmem:[%s315_s0 + $0x13] sm:$0x1]   ;;  %s207_s22 = smov 60   ;;  %s208_s23 = smov 57   ;;  %v161_v6 = vld [vmem:[%s315_s0 + $0x12] sm:$0x1]  }
   0x4   :  { %v162_v7 = vld [vmem:[%s315_s0 + $0x11] sm:$0x1]   ;;  %v2_v8 = vld [vmem:[%s315_s0] sm:$0x1]   ;;  %s209_s30 = smov 54   ;;  %s210_s2 = smov 51  }
   0x5   :  { %4 = vst.msk [vmem:[#allocation0] sm:$0x1] %vm3_vm0, %v2_v8   ;;  %v163_v9 = vld [vmem:[%s315_s0 + $0x10] sm:$0x1]   ;;  %v164_v10 = vld [vmem:[%s315_s0 + $0xf] sm:$0x1]  }
   0x6   :  { %13 = vrot.lane.b32.xlu0 %v156_v2, %s205_s16  ;;  %25 = vrot.lane.b32.xlu1 %v158_v3, %s206_s17  ;;  %s211_s7 = smov 48   ;;  %s212_s8 = smov 45   ;;  %v165_v11 = vld [vmem:[%s315_s0 + $0xe] sm:$0x1]   ;;  %v166_v12 = vld [vmem:[%s315_s0 + $0xd] sm:$0x1]  }
   0x7   :  { %s213_s13 = smov 42   ;;  %s214_s14 = smov 39   ;;  %v167_v13 = vld [vmem:[%s315_s0 + $0xc] sm:$0x1]   ;;  %v168_v14 = vld [vmem:[%s315_s0 + $0xb] sm:$0x1]  }
   0x8   :  { %s215_s19 = smov 36   ;;  %s216_s20 = smov 33   ;;  %v169_v15 = vld [vmem:[%s315_s0 + $0xa] sm:$0x1]   ;;  %v170_v16 = vld [vmem:[%s315_s0 + $0x9] sm:$0x1]  }
   0x9   :  { %s217_s25 = smov 30   ;;  %s218_s26 = smov 27   ;;  %v171_v17 = vld [vmem:[%s315_s0 + $0x8] sm:$0x1]   ;;  %v172_v18 = vld [vmem:[%s315_s0 + $0x7] sm:$0x1]  }
   0xa   :  { %31 = vrot.lane.b32.xlu0 %v159_v4, %s207_s22  ;;  %37 = vrot.lane.b32.xlu1 %v160_v5, %s208_s23  ;;  %s220_s3 = smov 21   ;;  %v173_v19 = vld [vmem:[%s315_s0 + $0x6] sm:$0x1]   ;;  %v174_v20 = vld [vmem:[%s315_s0 + $0x5] sm:$0x1]   ;;  %s222_s9 = smov 15  }
   0xb   :  { %v175_v21 = vld [vmem:[%s315_s0 + $0x4] sm:$0x1]   ;;  %v176_v22 = vld [vmem:[%s315_s0 + $0x3] sm:$0x1]   ;;  %s224_s15 = smov 9   ;;  %vm27_vm4 = vcmask 540152  }
   0xc   :  { %v177_v23 = vld [vmem:[%s315_s0 + $0x2] sm:$0x1]   ;;  %v178_v24 = vld [vmem:[%s315_s0 + $0x1] sm:$0x1]   ;;  %s225_s0 = smov 6   ;;  %vm33_vm5 = vcmask 515552  }
   0xd   :  { %vm39_vm6 = vcmask 490952   ;;  %vm45_vm7 = vcmask 466352   ;;  %vm51_vm8 = vcmask 441752   ;;  %vm57_vm9 = vcmask 417152  }
   0xe   :  { %43 = vrot.lane.b32.xlu0 %v161_v6, %s209_s30  ;;  %49 = vrot.lane.b32.xlu1 %v162_v7, %s210_s2  ;;  %s219_s2 = smov 24   ;;  %vm63_vm10 = vcmask 392552   ;;  %vm69_vm11 = vcmask 367952   ;;  %vm75_vm12 = vcmask 343352   ;;  %vm81_vm13 = vcmask 318752  }
   0xf   :  { %vm87_vm14 = vcmask 294152   ;;  %vm93_vm15 = vcmask 269552   ;;  %vm99_vm0 = vcmask 244952  }
  0x12   :  { %55 = vrot.lane.b32.xlu0 %v163_v9, %s211_s7  ;;  %61 = vrot.lane.b32.xlu1 %v164_v10, %s212_s8  ;;  %s221_s8 = smov 18  }
  0x16   :  { %67 = vrot.lane.b32.xlu0 %v165_v11, %s213_s13  ;;  %73 = vrot.lane.b32.xlu1 %v166_v12, %s214_s14  ;;  %s223_s14 = smov 12  }
  0x1a   :  { %79 = vrot.lane.b32.xlu0 %v167_v13, %s215_s19  ;;  %85 = vrot.lane.b32.xlu1 %v168_v14, %s216_s20  ;;  %s226_s20 = smov 3  }
  0x1e   :  { %91 = vrot.lane.b32.xlu0 %v169_v15, %s217_s25  ;;  %97 = vrot.lane.b32.xlu1 %v170_v16, %s218_s26 }
  0x22   :  { %103 = vrot.lane.b32.xlu0 %v171_v17, %s219_s2  ;;  %109 = vrot.lane.b32.xlu1 %v172_v18, %s220_s3 }
  0x26   :  { %115 = vrot.lane.b32.xlu0 %v173_v19, %s221_s8  ;;  %121 = vrot.lane.b32.xlu1 %v174_v20, %s222_s9 }
  0x2a   :  { %127 = vrot.lane.b32.xlu0 %v175_v21, %s223_s14  ;;  %133 = vrot.lane.b32.xlu1 %v176_v22, %s224_s15 }
  0x2e   :  { %139 = vrot.lane.b32.xlu0 %v177_v23, %s225_s0  ;;  %145 = vrot.lane.b32.xlu1 %v178_v24, %s226_s20 }
  0x74   :  { %v8_v25 = vpop.permute.xlu0 %7   ;;  %v20_v26 = vpop.permute.xlu1 %19  }
  0x75   :  { %10 = vst.msk [vmem:[#allocation0] sm:$0x1] %vm9_vm1, %v8_v25   ;;  %vm105_vm1 = vcmask 220352  }
  0x78   :  { %v14_v27 = vpop.permute.xlu0 %13   ;;  %v26_v28 = vpop.permute.xlu1 %25  }
  0x79   :  { %16 = vst.msk [vmem:[#allocation0] sm:$0x1] %vm15_vm2, %v14_v27   ;;  %vm111_vm2 = vcmask 195752  }
  0x7a   :  { %22 = vst.msk [vmem:[#allocation0] sm:$0x1] %vm21_vm3, %v20_v26   ;;  %vm117_vm3 = vcmask 171152  }
  0x7b   :  { %28 = vst.msk [vmem:[#allocation0] sm:$0x1] %vm27_vm4, %v26_v28   ;;  %vm123_vm4 = vcmask 146552  }
  0x7c   :  { %v32_v29 = vpop.permute.xlu0 %31   ;;  %v38_v30 = vpop.permute.xlu1 %37  }
  0x7d   :  { %34 = vst.msk [vmem:[#allocation0] sm:$0x1] %vm33_vm5, %v32_v29   ;;  %vm129_vm5 = vcmask 121952  }
  0x7e   :  { %40 = vst.msk [vmem:[#allocation0] sm:$0x1] %vm39_vm6, %v38_v30   ;;  %vm135_vm6 = vcmask 97352  }
  0x80   :  { %v44_v31 = vpop.permute.xlu0 %43   ;;  %v50_v32 = vpop.permute.xlu1 %49  }
  0x81   :  { %46 = vst.msk [vmem:[#allocation0] sm:$0x1] %vm45_vm7, %v44_v31   ;;  %vm141_vm7 = vcmask 72752  }
  0x82   :  { %52 = vst.msk [vmem:[#allocation0] sm:$0x1] %vm51_vm8, %v50_v32   ;;  %vm147_vm8 = vcmask 48152  }
  0x84   :  { %v56_v33 = vpop.permute.xlu0 %55   ;;  %v62_v34 = vpop.permute.xlu1 %61  }
  0x85   :  { %58 = vst.msk [vmem:[#allocation0] sm:$0x1] %vm57_vm9, %v56_v33  }
  0x86   :  { %64 = vst.msk [vmem:[#allocation0] sm:$0x1] %vm63_vm10, %v62_v34  }
  0x88   :  { %v68_v35 = vpop.permute.xlu0 %67   ;;  %v74_v36 = vpop.permute.xlu1 %73  }
  0x89   :  { %70 = vst.msk [vmem:[#allocation0] sm:$0x1] %vm69_vm11, %v68_v35  }
  0x8a   :  { %76 = vst.msk [vmem:[#allocation0] sm:$0x1] %vm75_vm12, %v74_v36  }
  0x8c   :  { %v80_v37 = vpop.permute.xlu0 %79   ;;  %v86_v38 = vpop.permute.xlu1 %85  }
  0x8d   :  { %82 = vst.msk [vmem:[#allocation0] sm:$0x1] %vm81_vm13, %v80_v37  }
  0x8e   :  { %88 = vst.msk [vmem:[#allocation0] sm:$0x1] %vm87_vm14, %v86_v38  }
  0x90   :  { %v92_v39 = vpop.permute.xlu0 %91   ;;  %v98_v40 = vpop.permute.xlu1 %97  }
  0x91   :  { %94 = vst.msk [vmem:[#allocation0] sm:$0x1] %vm93_vm15, %v92_v39  }
  0x92   :  { %100 = vst.msk [vmem:[#allocation0] sm:$0x1] %vm99_vm0, %v98_v40  }
  0x94   :  { %v104_v41 = vpop.permute.xlu0 %103   ;;  %v110_v42 = vpop.permute.xlu1 %109  }
  0x95   :  { %106 = vst.msk [vmem:[#allocation0] sm:$0x1] %vm105_vm1, %v104_v41  }
  0x96   :  { %112 = vst.msk [vmem:[#allocation0] sm:$0x1] %vm111_vm2, %v110_v42  }
  0x98   :  { %v116_v43 = vpop.permute.xlu0 %115   ;;  %v122_v44 = vpop.permute.xlu1 %121  }
  0x99   :  { %118 = vst.msk [vmem:[#allocation0] sm:$0x1] %vm117_vm3, %v116_v43  }
  0x9a   :  { %124 = vst.msk [vmem:[#allocation0] sm:$0x1] %vm123_vm4, %v122_v44  }
  0x9c   :  { %v128_v45 = vpop.permute.xlu0 %127   ;;  %v134_v46 = vpop.permute.xlu1 %133  }
  0x9d   :  { %130 = vst.msk [vmem:[#allocation0] sm:$0x1] %vm129_vm5, %v128_v45  }
  0x9e   :  { %136 = vst.msk [vmem:[#allocation0] sm:$0x1] %vm135_vm6, %v134_v46  }
  0xa0   :  { %v140_v47 = vpop.permute.xlu0 %139   ;;  %v146_v48 = vpop.permute.xlu1 %145  }
  0xa1   :  { %142 = vst.msk [vmem:[#allocation0] sm:$0x1] %vm141_vm7, %v140_v47  }
  0xa2   :  { %148 = vst.msk [vmem:[#allocation0] sm:$0x1] %vm147_vm8, %v146_v48  }
  0xa9   :  { %v152_v49 = vld [vmem:[#allocation0] sm:$0x1] }
  0xaa   :  { %154 = vst [vmem:[%s316_s1] sm:$0x1] %v152_v49 }

// kernel: pilotnet_forward.7
= control target key start
LH: loop header
LB: loop body
LE: loop exit
PB: predicated region body
PF: predicated region fallthrough
CT: control target
= control target key end

     0   :  { %s3687_s12 = smov 0   ;;  %s3689_s13 = smov 0   ;;  %s4484_s0 = inlined_call_operand.vmem [shape: bf16[4232,75], index: 0, kind: input, shape index: {}]   ;;  %s4485_s1 = inlined_call_operand.vmem [shape: bf16[75,24], index: 1, kind: input, shape index: {}]   ;;  %s4486_s2 = inlined_call_operand.vmem [shape: f32[1,24], index: 2, kind: input, shape index: {}]   ;;  %s4487_s3 = inlined_call_operand.vmem [shape: bf16[4232,24], index: 3, kind: output, shape index: {}]  }
   0x1   :  { %s3691_s14 = smov 0   ;;  %s3693_s15 = smov 0  }
   0x2   :  { %s3695_s16 = smov 0  }
   0x3 LB: > { %s2750_s17 = sadd.s32 4294967295, %s3632_s16   ;;  %s25_s18 = sadd.s32 1, %s3628_s15  ;;  %s3632_s16 = sphi %s3695_s16, %s13_s16   ;;  %s3628_s15 = sphi %s3693_s15, %s4495_s15   ;;  %s3624_s14 = sphi %s3691_s14, %s4494_s14   ;;  %s3620_s13 = sphi %s3689_s13, %s4493_s13   ;;  %s3616_s12 = sphi %s3687_s12, %s4492_s12  }
   0x4   : > { %p27_p0 = scmp.ge.s32.totalorder %s25_s18, 5  ;;  %s112_s19 = sadd.s32 1, %s3620_s13 }
   0x5   : > { %p122_p1 = scmp.ne.s32.totalorder %s3620_s13, %s3616_s12  ;;  %p123_p2 = scmp.eq.s32.totalorder %s2750_s17, 4 }
   0x6   : > { %s4497_s18 = smov (%p27_p0, %s25_s18), 0  ;;  %p2756_p4 = scmp.ge.s32.totalorder %s3632_s16, 1 }
   0x7   : > { %p3719_p3 = por %p123_p2, %p122_p1  ;;  %s107_s21 = ssub.s32 %s3628_s15, %s4497_s18 }
   0x8   : > { %p177_p5 = scmp.lt.s32.totalorder %s3632_s16, 6  ;;  %p110_p6 = scmp.eq.s32.totalorder %s107_s21, 0 }
   0xa   : > { %p178_p7 = pnand %p2756_p4, %p177_p5 }
   0xb   : > { %s3728_s22 = scalar_select %p110_p6, %s3620_s13, %s112_s19  }
   0xc   : > { %181 = sbr.rel (%p178_p7) target bundleno = 466 (0x1d2), region = 32  ;;  %v3492_v0 = vld [vmem:[%s4485_s1] sm:$0xff] (!%p178_p7)   ;;  %v3493_v1 = vld [vmem:[%s4485_s1 + $0x8] sm:$0xff] (!%p178_p7)   ;;  %vm925_vm0 = vcmask (!%p178_p7), 1044480   ;;  %v3494_v2 = vld [vmem:[%s4485_s1 + $0x10] sm:$0xff] (!%p178_p7)   ;;  %s3740_s29 = sshll.u32 (!%p178_p7), %s3624_s14, 7 }
   0xd   : > { %3239 = vmatprep.subr.bf16.mxu0 (!%p178_p7), %v3492_v0  ;;  %3377 = vmatprep.subr.bf16.mxu1 (!%p178_p7), %v3492_v0  ;;  %vm926_vm1 = vcmask (!%p178_p7), 1045504   ;;  %v3666_v3 = vmov (!%p178_p7), 65535   ;;  %p216_p8 = scmp.lt.s32.totalorder (!%p178_p7), %s3740_s29, 528  ;;  %v3495_v5 = vld [vmem:[%s4485_s1 + $0x18] sm:$0xff] (!%p178_p7)   ;;  %v3496_v6 = vld [vmem:[%s4485_s1 + $0x20] sm:$0x3f] (!%p178_p7)  }
   0xe   : > { %3240 = vmatpush3.bf16.msra.mxu0 (!%p178_p7), %v3492_v0  ;;  %3382 = vmatpush3.bf16.msra.mxu1 (!%p178_p7), %v3492_v0  ;;  %v927_v4 = vsel (!%p178_p7), %vm925_vm0, 4294967295, %v3666_v3  ;;  %vm732_vm2 = vcmask (!%p178_p7), 613376   ;;  %s208_s17 = sand.u32 (!%p178_p7), 1, %s3616_s12   ;;  %vm2117_vm3 = vcmask (!%p178_p7), 191488  }
   0xf   : > { %3241 = vmatprep.subr.bf16.mxu0 (!%p178_p7), %v3493_v1  ;;  %3378 = vmatprep.subr.bf16.mxu1 (!%p178_p7), %v3493_v1  ;;  %v928_v7 = vsel (!%p178_p7), %vm926_vm1, %v927_v4, 0  ;;  %s2757_s23 = sshll.u32 (!%p178_p7), %s208_s17, 9 }
  0x10   : > { %v930_v8 = vand.u32 (!%p178_p7), %v3496_v6, %v928_v7  ;;  %s3897_s12 = scalar_lea.vmem (!%p178_p7), [#allocation2], %s2757_s23  }
  0x12   : > { %3242 = vmatpush3.bf16.msra.mxu0 (!%p178_p7), %v3493_v1  ;;  %3383 = vmatpush3.bf16.msra.mxu1 (!%p178_p7), %v3493_v1 }
  0x13   : > { %3243 = vmatprep.subr.bf16.mxu0 %v3494_v2  ;;  %3379 = vmatprep.subr.bf16.mxu1 %v3494_v2  ;;  %s217_s7 = scalar_select %p216_p8, %s3740_s29, 528 }
  0x14   : > { %s2254_s26 = ssub.s32 (%p3719_p3), 529, %s3740_s29  ;;  %s3167_s27 = sshll.u32 (%p3719_p3), %s3624_s14, 9 }
  0x15   : > { %s2759_s8 = sshll.u32 %s217_s7, 2  ;;  %p2255_p9 = scmp.lt.s32.totalorder (%p3719_p3), %s2254_s26, 128 }
  0x16   : > { %3244 = vmatpush3.bf16.msra.mxu0 %v3494_v2  ;;  %3384 = vmatpush3.bf16.msra.mxu1 %v3494_v2  ;;  %s3753_s11 = scalar_lea.vmem %s4484_s0, %s2759_s8  ;;  %s4287_s4 = scalar_lea.vmem (%p3719_p3), %s4487_s3, %s3167_s27  }
  0x17   : > { %3245 = vmatprep.subr.bf16.mxu0 %v3495_v5  ;;  %3380 = vmatprep.subr.bf16.mxu1 %v3495_v5  ;;  %v3497_v9 = vld [vmem:[%s3753_s11] sm:$0xff]   ;;  %v3499_v11 = vld [vmem:[%s3753_s11 + $0x8] sm:$0xff]   ;;  %v3501_v13 = vld [vmem:[%s3753_s11 + $0x10] sm:$0xff]  }
  0x18   : > { %v3498_v10 = vld [vmem:[%s3753_s11 + $0x100] sm:$0xff]   ;;  %3249 = vmatprep.mubr.msk.bf16.mxu0 %vm732_vm2, %v3497_v9  ;;  %v3500_v12 = vld [vmem:[%s3753_s11 + $0x108] sm:$0xff]   ;;  %v3502_v14 = vld [vmem:[%s3753_s11 + $0x110] sm:$0xff]  }
  0x19   : > { %3313 = vmatprep.mubr.msk.bf16.mxu1 %vm732_vm2, %v3498_v10  ;;  %v3503_v15 = vld [vmem:[%s3753_s11 + $0x18] sm:$0xff]   ;;  %v3505_v17 = vld [vmem:[%s3753_s11 + $0x20] sm:$0xff]   ;;  %v3507_v19 = vld [vmem:[%s3753_s11 + $0x28] sm:$0xff]  }
  0x1a   : > { %3246 = vmatpush3.bf16.msra.mxu0 %v3495_v5  ;;  %3385 = vmatpush3.bf16.msra.mxu1 %v3495_v5  ;;  %v3504_v16 = vld [vmem:[%s3753_s11 + $0x118] sm:$0xff]   ;;  %v3506_v18 = vld [vmem:[%s3753_s11 + $0x120] sm:$0xff]   ;;  %v3508_v20 = vld [vmem:[%s3753_s11 + $0x128] sm:$0xff]  }
  0x1b   : > { %3247 = vmatprep.subr.bf16.mxu0 %v930_v8  ;;  %3381 = vmatprep.subr.bf16.mxu1 %v930_v8  ;;  %v3509_v21 = vld [vmem:[%s3753_s11 + $0x30] sm:$0xff]   ;;  %v3511_v23 = vld [vmem:[%s3753_s11 + $0x38] sm:$0xff]   ;;  %v3513_v25 = vld [vmem:[%s3753_s11 + $0x40] sm:$0xff]  }
  0x1c   : > { %v3510_v22 = vld [vmem:[%s3753_s11 + $0x130] sm:$0xff]   ;;  %v3512_v24 = vld [vmem:[%s3753_s11 + $0x138] sm:$0xff]   ;;  %v3514_v26 = vld [vmem:[%s3753_s11 + $0x140] sm:$0xff]  }
  0x1d   : > { %v3515_v27 = vld [vmem:[%s3753_s11 + $0x48] sm:$0xff]   ;;  %v3517_v29 = vld [vmem:[%s3753_s11 + $0x50] sm:$0xff]   ;;  %v3519_v31 = vld [vmem:[%s3753_s11 + $0x58] sm:$0xff]  }
  0x1e   : > { %3248 = vmatpush3.bf16.msra.mxu0 %v930_v8  ;;  %3386 = vmatpush3.bf16.msra.mxu1 %v930_v8  ;;  %v3516_v28 = vld [vmem:[%s3753_s11 + $0x148] sm:$0xff]   ;;  %v3518_v30 = vld [vmem:[%s3753_s11 + $0x150] sm:$0xff]   ;;  %v3520_v32 = vld [vmem:[%s3753_s11 + $0x158] sm:$0xff]  }
  0x1f   : > { %v3521_v33 = vld [vmem:[%s3753_s11 + $0x60] sm:$0xff]   ;;  %v3523_v35 = vld [vmem:[%s3753_s11 + $0x68] sm:$0xff]   ;;  %v3525_v37 = vld [vmem:[%s3753_s11 + $0x70] sm:$0xff]  }
  0x20   : > { %v3522_v34 = vld [vmem:[%s3753_s11 + $0x160] sm:$0xff]   ;;  %v3524_v36 = vld [vmem:[%s3753_s11 + $0x168] sm:$0xff]   ;;  %v3526_v38 = vld [vmem:[%s3753_s11 + $0x170] sm:$0xff]  }
  0x21   : > { %3250 = vmatmul.mubr.msk.bf16.vlgmr.msra.gmra.mrb[0].mxu0 %vm732_vm2, %v3499_v11  ;;  %3314 = vmatmul.mubr.msk.bf16.vlgmr.msra.gmra.mrb[0].mxu1 %vm732_vm2, %v3500_v12  ;;  %v3527_v39 = vld [vmem:[%s3753_s11 + $0x78] sm:$0xff]   ;;  %v3529_v41 = vld [vmem:[%s3753_s11 + $0x80] sm:$0xff]   ;;  %v3531_v43 = vld [vmem:[%s3753_s11 + $0x88] sm:$0xff]  }
  0x22   : > { %3253 = vmatprep.mubr.msk.bf16.mxu0 %vm732_vm2, %v3501_v13  ;;  %3317 = vmatprep.mubr.msk.bf16.mxu1 %vm732_vm2, %v3502_v14  ;;  %v3528_v40 = vld [vmem:[%s3753_s11 + $0x178] sm:$0xff]   ;;  %v3530_v42 = vld [vmem:[%s3753_s11 + $0x180] sm:$0xff]   ;;  %v3532_v44 = vld [vmem:[%s3753_s11 + $0x188] sm:$0xff]  }
  0x23   : > { %v3533_v45 = vld [vmem:[%s3753_s11 + $0x90] sm:$0xff]   ;;  %v3535_v47 = vld [vmem:[%s3753_s11 + $0x98] sm:$0xff]   ;;  %v3537_v49 = vld [vmem:[%s3753_s11 + $0xa0] sm:$0xff]  }
  0x24   : > { %v3534_v46 = vld [vmem:[%s3753_s11 + $0x190] sm:$0xff]   ;;  %v3536_v48 = vld [vmem:[%s3753_s11 + $0x198] sm:$0xff]   ;;  %v3538_v50 = vld [vmem:[%s3753_s11 + $0x1a0] sm:$0xff]  }
  0x25   : > { %v3539_v51 = vld [vmem:[%s3753_s11 + $0xa8] sm:$0xff]   ;;  %v3541_v53 = vld [vmem:[%s3753_s11 + $0xb0] sm:$0xff]   ;;  %v3543_v55 = vld [vmem:[%s3753_s11 + $0xb8] sm:$0xff]  }
  0x26   : > { %v3540_v52 = vld [vmem:[%s3753_s11 + $0x1a8] sm:$0xff]   ;;  %v3542_v54 = vld [vmem:[%s3753_s11 + $0x1b0] sm:$0xff]   ;;  %v3544_v56 = vld [vmem:[%s3753_s11 + $0x1b8] sm:$0xff]  }
  0x27   : > { %v3545_v57 = vld [vmem:[%s3753_s11 + $0xc0] sm:$0xff]   ;;  %v3547_v59 = vld [vmem:[%s3753_s11 + $0xc8] sm:$0xff]   ;;  %v3549_v61 = vld [vmem:[%s3753_s11 + $0xd0] sm:$0xff]  }
  0x28   : > { %v3546_v58 = vld [vmem:[%s3753_s11 + $0x1c0] sm:$0xff]   ;;  %v3548_v60 = vld [vmem:[%s3753_s11 + $0x1c8] sm:$0xff]   ;;  %v3550_v62 = vld [vmem:[%s3753_s11 + $0x1d0] sm:$0xff]  }
  0x29   : > { %3254 = vmatmul.mubr.msk.bf16.gmra.mrb[4].mxu0 %vm732_vm2, %v3503_v15  ;;  %3318 = vmatmul.mubr.msk.bf16.gmra.mrb[4].mxu1 %vm732_vm2, %v3504_v16  ;;  %v3551_v63 = vld [vmem:[%s3753_s11 + $0xd8] sm:$0xff]   ;;  %v3553_v1 = vld [vmem:[%s3753_s11 + $0xe0] sm:$0xff]   ;;  %v3555_v3 = vld [vmem:[%s3753_s11 + $0xe8] sm:$0xff]  }
  0x2a   : > { %3257 = vmatprep.mubr.msk.bf16.mxu0 %vm732_vm2, %v3505_v17  ;;  %3321 = vmatprep.mubr.msk.bf16.mxu1 %vm732_vm2, %v3506_v18  ;;  %v3552_v0 = vld [vmem:[%s3753_s11 + $0x1d8] sm:$0xff]   ;;  %v3554_v2 = vld [vmem:[%s3753_s11 + $0x1e0] sm:$0xff]   ;;  %v3556_v4 = vld [vmem:[%s3753_s11 + $0x1e8] sm:$0xff]  }
  0x2b   : > { %v3557_v5 = vld [vmem:[%s3753_s11 + $0xf0] sm:$0xff]   ;;  %v3559_v7 = vld [vmem:[%s3753_s11 + $0xf8] sm:$0xff]   ;;  %v3887_v9 = vld [vmem:[%s4486_s2] ss:$0 sm:$0xff] }
  0x2c   : > { %v3558_v6 = vld [vmem:[%s3753_s11 + $0x1f0] sm:$0xff]   ;;  %v3560_v8 = vld [vmem:[%s3753_s11 + $0x1f8] sm:$0xff]  }
  0x31   : > { %3258 = vmatmul.mubr.msk.bf16.gmra.mrb[8].mxu0 %vm732_vm2, %v3507_v19  ;;  %3322 = vmatmul.mubr.msk.bf16.gmra.mrb[8].mxu1 %vm732_vm2, %v3508_v20 }
  0x32   : > { %3261 = vmatprep.mubr.msk.bf16.mxu0 %vm732_vm2, %v3509_v21  ;;  %3325 = vmatprep.mubr.msk.bf16.mxu1 %vm732_vm2, %v3510_v22 }
  0x39   : > { %3262 = vmatmul.mubr.msk.bf16.gmra.mrb[12].mxu0 %vm732_vm2, %v3511_v23  ;;  %3326 = vmatmul.mubr.msk.bf16.gmra.mrb[12].mxu1 %vm732_vm2, %v3512_v24 }
  0x3a   : > { %3265 = vmatprep.mubr.msk.bf16.mxu0 %vm732_vm2, %v3513_v25  ;;  %3329 = vmatprep.mubr.msk.bf16.mxu1 %vm732_vm2, %v3514_v26 }
  0x41   : > { %3266 = vmatmul.mubr.msk.bf16.gmra.mrb[16].mxu0 %vm732_vm2, %v3515_v27  ;;  %3330 = vmatmul.mubr.msk.bf16.gmra.mrb[16].mxu1 %vm732_vm2, %v3516_v28 }
  0x42   : > { %3269 = vmatprep.mubr.msk.bf16.mxu0 %vm732_vm2, %v3517_v29  ;;  %3333 = vmatprep.mubr.msk.bf16.mxu1 %vm732_vm2, %v3518_v30 }
  0x49   : > { %3270 = vmatmul.mubr.msk.bf16.gmra.mrb[20].mxu0 %vm732_vm2, %v3519_v31  ;;  %3334 = vmatmul.mubr.msk.bf16.gmra.mrb[20].mxu1 %vm732_vm2, %v3520_v32 }
  0x4a   : > { %3273 = vmatprep.mubr.msk.bf16.mxu0 %vm732_vm2, %v3521_v33  ;;  %3337 = vmatprep.mubr.msk.bf16.mxu1 %vm732_vm2, %v3522_v34 }
  0x51   : > { %3274 = vmatmul.mubr.msk.bf16.gmra.mrb[24].mxu0 %vm732_vm2, %v3523_v35  ;;  %3338 = vmatmul.mubr.msk.bf16.gmra.mrb[24].mxu1 %vm732_vm2, %v3524_v36 }
  0x52   : > { %3277 = vmatprep.mubr.msk.bf16.mxu0 %vm732_vm2, %v3525_v37  ;;  %3341 = vmatprep.mubr.msk.bf16.mxu1 %vm732_vm2, %v3526_v38 }
  0x59   : > { %3278 = vmatmul.mubr.msk.bf16.gmra.mrb[28].mxu0 %vm732_vm2, %v3527_v39  ;;  %3342 = vmatmul.mubr.msk.bf16.gmra.mrb[28].mxu1 %vm732_vm2, %v3528_v40 }
  0x5a   : > { %3281 = vmatprep.mubr.msk.bf16.mxu0 %vm732_vm2, %v3529_v41  ;;  %3345 = vmatprep.mubr.msk.bf16.mxu1 %vm732_vm2, %v3530_v42 }
  0x61   : > { %3282 = vmatmul.mubr.msk.bf16.gmra.mrb[32].mxu0 %vm732_vm2, %v3531_v43  ;;  %3346 = vmatmul.mubr.msk.bf16.gmra.mrb[32].mxu1 %vm732_vm2, %v3532_v44 }
  0x62   : > { %3285 = vmatprep.mubr.msk.bf16.mxu0 %vm732_vm2, %v3533_v45  ;;  %3349 = vmatprep.mubr.msk.bf16.mxu1 %vm732_vm2, %v3534_v46 }
  0x69   : > { %3286 = vmatmul.mubr.msk.bf16.gmra.mrb[36].mxu0 %vm732_vm2, %v3535_v47  ;;  %3350 = vmatmul.mubr.msk.bf16.gmra.mrb[36].mxu1 %vm732_vm2, %v3536_v48 }
  0x6a   : > { %3289 = vmatprep.mubr.msk.bf16.mxu0 %vm732_vm2, %v3537_v49  ;;  %3353 = vmatprep.mubr.msk.bf16.mxu1 %vm732_vm2, %v3538_v50 }
  0x71   : > { %3290 = vmatmul.mubr.msk.bf16.gmra.mrb[40].mxu0 %vm732_vm2, %v3539_v51  ;;  %3354 = vmatmul.mubr.msk.bf16.gmra.mrb[40].mxu1 %vm732_vm2, %v3540_v52 }
  0x72   : > { %3293 = vmatprep.mubr.msk.bf16.mxu0 %vm732_vm2, %v3541_v53  ;;  %3357 = vmatprep.mubr.msk.bf16.mxu1 %vm732_vm2, %v3542_v54 }
  0x79   : > { %3294 = vmatmul.mubr.msk.bf16.gmra.mrb[44].mxu0 %vm732_vm2, %v3543_v55  ;;  %3358 = vmatmul.mubr.msk.bf16.gmra.mrb[44].mxu1 %vm732_vm2, %v3544_v56 }
  0x7a   : > { %3297 = vmatprep.mubr.msk.bf16.mxu0 %vm732_vm2, %v3545_v57  ;;  %3361 = vmatprep.mubr.msk.bf16.mxu1 %vm732_vm2, %v3546_v58 }
  0x81   : > { %3298 = vmatmul.mubr.msk.bf16.gmra.mrb[48].mxu0 %vm732_vm2, %v3547_v59  ;;  %3362 = vmatmul.mubr.msk.bf16.gmra.mrb[48].mxu1 %vm732_vm2, %v3548_v60 }
  0x82   : > { %3301 = vmatprep.mubr.msk.bf16.mxu0 %vm732_vm2, %v3549_v61  ;;  %3365 = vmatprep.mubr.msk.bf16.mxu1 %vm732_vm2, %v3550_v62 }
  0x89   : > { %3302 = vmatmul.mubr.msk.bf16.gmra.mrb[52].mxu0 %vm732_vm2, %v3551_v63  ;;  %3366 = vmatmul.mubr.msk.bf16.gmra.mrb[52].mxu1 %vm732_vm2, %v3552_v0 }
  0x8a   : > { %3305 = vmatprep.mubr.msk.bf16.mxu0 %vm732_vm2, %v3553_v1  ;;  %3369 = vmatprep.mubr.msk.bf16.mxu1 %vm732_vm2, %v3554_v2 }
  0x91   : > { %3306 = vmatmul.mubr.msk.bf16.gmra.mrb[56].mxu0 %vm732_vm2, %v3555_v3  ;;  %3370 = vmatmul.mubr.msk.bf16.gmra.mrb[56].mxu1 %vm732_vm2, %v3556_v4 }
  0x92   : > { %3309 = vmatprep.mubr.msk.bf16.mxu0 %vm732_vm2, %v3557_v5  ;;  %3373 = vmatprep.mubr.msk.bf16.mxu1 %vm732_vm2, %v3558_v6 }
  0x99   : > { %3310 = vmatmul.mubr.msk.bf16.gmra.mrb[60].mxu0 %vm732_vm2, %v3559_v7  ;;  %3374 = vmatmul.mubr.msk.bf16.gmra.mrb[60].mxu1 %vm732_vm2, %v3560_v8 }
  0xf4   : > { %v3251_v10 = vpop.f32.mrb[0].mxu0  ;;  %v3315_v11 = vpop.f32.mrb[0].mxu1 }
  0xf5   : > { %v975_v12 = vadd.f32 %v3251_v10, %v3887_v9  ;;  %v1231_v13 = vadd.f32 %v3315_v11, %v3887_v9  ;;  %v966_v14 = vpop.f32.mrb[1].mxu0  ;;  %v1222_v15 = vpop.f32.mrb[1].mxu1 }
  0xf6   : > { %v967_v16 = vadd.f32 %v3887_v9, %v966_v14  ;;  %v1223_v17 = vadd.f32 %v3887_v9, %v1222_v15  ;;  %v3252_v18 = vpop.f32.mrb[2].mxu0  ;;  %v3316_v19 = vpop.f32.mrb[2].mxu1 }
  0xf7   : > { %v1479_v20 = vmax.f32 %v975_v12, 0.0  ;;  %v1543_v21 = vmax.f32 %v1231_v13, 0.0  ;;  %v978_v22 = vadd.f32 %v3252_v18, %v3887_v9  ;;  %v1234_v23 = vadd.f32 %v3316_v19, %v3887_v9  ;;  %v969_v24 = vpop.f32.mrb[3].mxu0  ;;  %v1225_v25 = vpop.f32.mrb[3].mxu1 }
  0xf8   : > { %v1477_v26 = vmax.f32 %v967_v16, 0.0  ;;  %v1541_v27 = vmax.f32 %v1223_v17, 0.0  ;;  %v970_v28 = vadd.f32 %v3887_v9, %v969_v24  ;;  %v1226_v29 = vadd.f32 %v3887_v9, %v1225_v25 }
  0xf9   : > { %v3041_v30 = vpack.c.bf16 %v1479_v20, %v1479_v20  ;;  %v3105_v31 = vpack.c.bf16 %v1543_v21, %v1543_v21  ;;  %v1480_v32 = vmax.f32 %v978_v22, 0.0  ;;  %v1544_v33 = vmax.f32 %v1234_v23, 0.0 }
  0xfa   : > { %v3039_v34 = vpack.c.bf16 %v1477_v26, %v1477_v26  ;;  %v3103_v35 = vpack.c.bf16 %v1541_v27, %v1541_v27  ;;  %v1478_v36 = vmax.f32 %v970_v28, 0.0  ;;  %v1542_v37 = vmax.f32 %v1226_v29, 0.0 }
  0xfb   : > { %2120 = vst.msk [vmem:[%s3897_s12 + $0x8] sm:$0xf] %vm2117_vm3, %v3041_v30  ;;  %2184 = vst.msk [vmem:[%s3897_s12 + $0x108] sm:$0xf] %vm2117_vm3, %v3105_v31  ;;  %v3042_v38 = vpack.c.bf16 %v1480_v32, %v1480_v32  ;;  %v3106_v39 = vpack.c.bf16 %v1544_v33, %v1544_v33 }
  0xfc   : > { %2118 = vst.msk [vmem:[%s3897_s12] sm:$0xf] %vm2117_vm3, %v3039_v34  ;;  %2182 = vst.msk [vmem:[%s3897_s12 + $0x100] sm:$0xf] %vm2117_vm3, %v3103_v35  ;;  %v3040_v40 = vpack.c.bf16 %v1478_v36, %v1478_v36  ;;  %v3104_v41 = vpack.c.bf16 %v1542_v37, %v1542_v37  ;;  %v3255_v42 = vpop.f32.mrb[4].mxu0  ;;  %v3319_v43 = vpop.f32.mrb[4].mxu1 }
  0xfd   : > { %2121 = vst.msk [vmem:[%s3897_s12 + $0xc] sm:$0xf] %vm2117_vm3, %v3042_v38  ;;  %2185 = vst.msk [vmem:[%s3897_s12 + $0x10c] sm:$0xf] %vm2117_vm3, %v3106_v39  ;;  %v991_v44 = vadd.f32 %v3255_v42, %v3887_v9  ;;  %v1247_v45 = vadd.f32 %v3319_v43, %v3887_v9  ;;  %v982_v46 = vpop.f32.mrb[5].mxu0  ;;  %v1238_v47 = vpop.f32.mrb[5].mxu1 }
  0xfe   : > { %2119 = vst.msk [vmem:[%s3897_s12 + $0x4] sm:$0xf] %vm2117_vm3, %v3040_v40  ;;  %2183 = vst.msk [vmem:[%s3897_s12 + $0x104] sm:$0xf] %vm2117_vm3, %v3104_v41  ;;  %v983_v48 = vadd.f32 %v3887_v9, %v982_v46  ;;  %v1239_v49 = vadd.f32 %v3887_v9, %v1238_v47  ;;  %v3256_v50 = vpop.f32.mrb[6].mxu0  ;;  %v3320_v51 = vpop.f32.mrb[6].mxu1 }
  0xff   : > { %v1483_v52 = vmax.f32 %v991_v44, 0.0  ;;  %v1547_v53 = vmax.f32 %v1247_v45, 0.0  ;;  %v994_v54 = vadd.f32 %v3256_v50, %v3887_v9  ;;  %v1250_v55 = vadd.f32 %v3320_v51, %v3887_v9  ;;  %v985_v56 = vpop.f32.mrb[7].mxu0  ;;  %v1241_v57 = vpop.f32.mrb[7].mxu1 }
 0x100   : > { %v1481_v58 = vmax.f32 %v983_v48, 0.0  ;;  %v1545_v59 = vmax.f32 %v1239_v49, 0.0  ;;  %v986_v60 = vadd.f32 %v3887_v9, %v985_v56  ;;  %v1242_v61 = vadd.f32 %v3887_v9, %v1241_v57 }
 0x101   : > { %v3045_v62 = vpack.c.bf16 %v1483_v52, %v1483_v52  ;;  %v3109_v63 = vpack.c.bf16 %v1547_v53, %v1547_v53  ;;  %v1484_v0 = vmax.f32 %v994_v54, 0.0  ;;  %v1548_v1 = vmax.f32 %v1250_v55, 0.0 }
 0x102   : > { %v3043_v2 = vpack.c.bf16 %v1481_v58, %v1481_v58  ;;  %v3107_v3 = vpack.c.bf16 %v1545_v59, %v1545_v59  ;;  %v1482_v4 = vmax.f32 %v986_v60, 0.0  ;;  %v1546_v5 = vmax.f32 %v1242_v61, 0.0 }
 0x103   : > { %2124 = vst.msk [vmem:[%s3897_s12 + $0x18] sm:$0xf] %vm2117_vm3, %v3045_v62  ;;  %2188 = vst.msk [vmem:[%s3897_s12 + $0x118] sm:$0xf] %vm2117_vm3, %v3109_v63  ;;  %v3046_v6 = vpack.c.bf16 %v1484_v0, %v1484_v0  ;;  %v3110_v7 = vpack.c.bf16 %v1548_v1, %v1548_v1 }
 0x104   : > { %2122 = vst.msk [vmem:[%s3897_s12 + $0x10] sm:$0xf] %vm2117_vm3, %v3043_v2  ;;  %2186 = vst.msk [vmem:[%s3897_s12 + $0x110] sm:$0xf] %vm2117_vm3, %v3107_v3  ;;  %v3044_v8 = vpack.c.bf16 %v1482_v4, %v1482_v4  ;;  %v3108_v10 = vpack.c.bf16 %v1546_v5, %v1546_v5  ;;  %v3259_v11 = vpop.f32.mrb[8].mxu0  ;;  %v3323_v12 = vpop.f32.mrb[8].mxu1 }
 0x105   : > { %2125 = vst.msk [vmem:[%s3897_s12 + $0x1c] sm:$0xf] %vm2117_vm3, %v3046_v6  ;;  %2189 = vst.msk [vmem:[%s3897_s12 + $0x11c] sm:$0xf] %vm2117_vm3, %v3110_v7  ;;  %v1007_v13 = vadd.f32 %v3259_v11, %v3887_v9  ;;  %v1263_v14 = vadd.f32 %v3323_v12, %v3887_v9  ;;  %v998_v15 = vpop.f32.mrb[9].mxu0  ;;  %v1254_v16 = vpop.f32.mrb[9].mxu1 }
 0x106   : > { %2123 = vst.msk [vmem:[%s3897_s12 + $0x14] sm:$0xf] %vm2117_vm3, %v3044_v8  ;;  %2187 = vst.msk [vmem:[%s3897_s12 + $0x114] sm:$0xf] %vm2117_vm3, %v3108_v10  ;;  %v999_v17 = vadd.f32 %v3887_v9, %v998_v15  ;;  %v1255_v18 = vadd.f32 %v3887_v9, %v1254_v16  ;;  %v3260_v19 = vpop.f32.mrb[10].mxu0  ;;  %v3324_v20 = vpop.f32.mrb[10].mxu1 }
 0x107   : > { %v1487_v21 = vmax.f32 %v1007_v13, 0.0  ;;  %v1551_v22 = vmax.f32 %v1263_v14, 0.0  ;;  %v1010_v23 = vadd.f32 %v3260_v19, %v3887_v9  ;;  %v1266_v24 = vadd.f32 %v3324_v20, %v3887_v9  ;;  %v1001_v25 = vpop.f32.mrb[11].mxu0  ;;  %v1257_v26 = vpop.f32.mrb[11].mxu1 }
 0x108   : > { %v1485_v27 = vmax.f32 %v999_v17, 0.0  ;;  %v1549_v28 = vmax.f32 %v1255_v18, 0.0  ;;  %v1002_v29 = vadd.f32 %v3887_v9, %v1001_v25  ;;  %v1258_v30 = vadd.f32 %v3887_v9, %v1257_v26 }
 0x109   : > { %v3049_v31 = vpack.c.bf16 %v1487_v21, %v1487_v21  ;;  %v3113_v32 = vpack.c.bf16 %v1551_v22, %v1551_v22  ;;  %v1488_v33 = vmax.f32 %v1010_v23, 0.0  ;;  %v1552_v34 = vmax.f32 %v1266_v24, 0.0 }
 0x10a   : > { %v3047_v35 = vpack.c.bf16 %v1485_v27, %v1485_v27  ;;  %v3111_v36 = vpack.c.bf16 %v1549_v28, %v1549_v28  ;;  %v1486_v37 = vmax.f32 %v1002_v29, 0.0  ;;  %v1550_v38 = vmax.f32 %v1258_v30, 0.0 }
 0x10b   : > { %2128 = vst.msk [vmem:[%s3897_s12 + $0x28] sm:$0xf] %vm2117_vm3, %v3049_v31  ;;  %2192 = vst.msk [vmem:[%s3897_s12 + $0x128] sm:$0xf] %vm2117_vm3, %v3113_v32  ;;  %v3050_v39 = vpack.c.bf16 %v1488_v33, %v1488_v33  ;;  %v3114_v40 = vpack.c.bf16 %v1552_v34, %v1552_v34 }
 0x10c   : > { %2126 = vst.msk [vmem:[%s3897_s12 + $0x20] sm:$0xf] %vm2117_vm3, %v3047_v35  ;;  %2190 = vst.msk [vmem:[%s3897_s12 + $0x120] sm:$0xf] %vm2117_vm3, %v3111_v36  ;;  %v3048_v41 = vpack.c.bf16 %v1486_v37, %v1486_v37  ;;  %v3112_v42 = vpack.c.bf16 %v1550_v38, %v1550_v38  ;;  %v3263_v43 = vpop.f32.mrb[12].mxu0  ;;  %v3327_v44 = vpop.f32.mrb[12].mxu1 }
 0x10d   : > { %2129 = vst.msk [vmem:[%s3897_s12 + $0x2c] sm:$0xf] %vm2117_vm3, %v3050_v39  ;;  %2193 = vst.msk [vmem:[%s3897_s12 + $0x12c] sm:$0xf] %vm2117_vm3, %v3114_v40  ;;  %v1023_v45 = vadd.f32 %v3263_v43, %v3887_v9  ;;  %v1279_v46 = vadd.f32 %v3327_v44, %v3887_v9  ;;  %v1014_v47 = vpop.f32.mrb[13].mxu0  ;;  %v1270_v48 = vpop.f32.mrb[13].mxu1 }
 0x10e   : > { %2127 = vst.msk [vmem:[%s3897_s12 + $0x24] sm:$0xf] %vm2117_vm3, %v3048_v41  ;;  %2191 = vst.msk [vmem:[%s3897_s12 + $0x124] sm:$0xf] %vm2117_vm3, %v3112_v42  ;;  %v1015_v49 = vadd.f32 %v3887_v9, %v1014_v47  ;;  %v1271_v50 = vadd.f32 %v3887_v9, %v1270_v48  ;;  %v3264_v51 = vpop.f32.mrb[14].mxu0  ;;  %v3328_v52 = vpop.f32.mrb[14].mxu1 }
 0x10f   : > { %v1491_v53 = vmax.f32 %v1023_v45, 0.0  ;;  %v1555_v54 = vmax.f32 %v1279_v46, 0.0  ;;  %v1026_v55 = vadd.f32 %v3264_v51, %v3887_v9  ;;  %v1282_v56 = vadd.f32 %v3328_v52, %v3887_v9  ;;  %v1017_v57 = vpop.f32.mrb[15].mxu0  ;;  %v1273_v58 = vpop.f32.mrb[15].mxu1 }
 0x110   : > { %v1489_v59 = vmax.f32 %v1015_v49, 0.0  ;;  %v1553_v60 = vmax.f32 %v1271_v50, 0.0  ;;  %v1018_v61 = vadd.f32 %v3887_v9, %v1017_v57  ;;  %v1274_v62 = vadd.f32 %v3887_v9, %v1273_v58 }
 0x111   : > { %v3053_v63 = vpack.c.bf16 %v1491_v53, %v1491_v53  ;;  %v3117_v0 = vpack.c.bf16 %v1555_v54, %v1555_v54  ;;  %v1492_v1 = vmax.f32 %v1026_v55, 0.0  ;;  %v1556_v2 = vmax.f32 %v1282_v56, 0.0 }
 0x112   : > { %v3051_v3 = vpack.c.bf16 %v1489_v59, %v1489_v59  ;;  %v3115_v4 = vpack.c.bf16 %v1553_v60, %v1553_v60  ;;  %v1490_v5 = vmax.f32 %v1018_v61, 0.0  ;;  %v1554_v6 = vmax.f32 %v1274_v62, 0.0 }
 0x113   : > { %2132 = vst.msk [vmem:[%s3897_s12 + $0x38] sm:$0xf] %vm2117_vm3, %v3053_v63  ;;  %2196 = vst.msk [vmem:[%s3897_s12 + $0x138] sm:$0xf] %vm2117_vm3, %v3117_v0  ;;  %v3054_v7 = vpack.c.bf16 %v1492_v1, %v1492_v1  ;;  %v3118_v8 = vpack.c.bf16 %v1556_v2, %v1556_v2 }
 0x114   : > { %2130 = vst.msk [vmem:[%s3897_s12 + $0x30] sm:$0xf] %vm2117_vm3, %v3051_v3  ;;  %2194 = vst.msk [vmem:[%s3897_s12 + $0x130] sm:$0xf] %vm2117_vm3, %v3115_v4  ;;  %v3052_v10 = vpack.c.bf16 %v1490_v5, %v1490_v5  ;;  %v3116_v11 = vpack.c.bf16 %v1554_v6, %v1554_v6  ;;  %v3267_v12 = vpop.f32.mrb[16].mxu0  ;;  %v3331_v13 = vpop.f32.mrb[16].mxu1 }
 0x115   : > { %2133 = vst.msk [vmem:[%s3897_s12 + $0x3c] sm:$0xf] %vm2117_vm3, %v3054_v7  ;;  %2197 = vst.msk [vmem:[%s3897_s12 + $0x13c] sm:$0xf] %vm2117_vm3, %v3118_v8  ;;  %v1039_v14 = vadd.f32 %v3267_v12, %v3887_v9  ;;  %v1295_v15 = vadd.f32 %v3331_v13, %v3887_v9  ;;  %v1030_v16 = vpop.f32.mrb[17].mxu0  ;;  %v1286_v17 = vpop.f32.mrb[17].mxu1 }
 0x116   : > { %2131 = vst.msk [vmem:[%s3897_s12 + $0x34] sm:$0xf] %vm2117_vm3, %v3052_v10  ;;  %2195 = vst.msk [vmem:[%s3897_s12 + $0x134] sm:$0xf] %vm2117_vm3, %v3116_v11  ;;  %v1031_v18 = vadd.f32 %v3887_v9, %v1030_v16  ;;  %v1287_v19 = vadd.f32 %v3887_v9, %v1286_v17  ;;  %v3268_v20 = vpop.f32.mrb[18].mxu0  ;;  %v3332_v21 = vpop.f32.mrb[18].mxu1 }
 0x117   : > { %v1495_v22 = vmax.f32 %v1039_v14, 0.0  ;;  %v1559_v23 = vmax.f32 %v1295_v15, 0.0  ;;  %v1042_v24 = vadd.f32 %v3268_v20, %v3887_v9  ;;  %v1298_v25 = vadd.f32 %v3332_v21, %v3887_v9  ;;  %v1033_v26 = vpop.f32.mrb[19].mxu0  ;;  %v1289_v27 = vpop.f32.mrb[19].mxu1 }
 0x118   : > { %v1493_v28 = vmax.f32 %v1031_v18, 0.0  ;;  %v1557_v29 = vmax.f32 %v1287_v19, 0.0  ;;  %v1034_v30 = vadd.f32 %v3887_v9, %v1033_v26  ;;  %v1290_v31 = vadd.f32 %v3887_v9, %v1289_v27 }
 0x119   : > { %v3057_v32 = vpack.c.bf16 %v1495_v22, %v1495_v22  ;;  %v3121_v33 = vpack.c.bf16 %v1559_v23, %v1559_v23  ;;  %v1496_v34 = vmax.f32 %v1042_v24, 0.0  ;;  %v1560_v35 = vmax.f32 %v1298_v25, 0.0 }
 0x11a   : > { %v3055_v36 = vpack.c.bf16 %v1493_v28, %v1493_v28  ;;  %v3119_v37 = vpack.c.bf16 %v1557_v29, %v1557_v29  ;;  %v1494_v38 = vmax.f32 %v1034_v30, 0.0  ;;  %v1558_v39 = vmax.f32 %v1290_v31, 0.0 }
 0x11b   : > { %2136 = vst.msk [vmem:[%s3897_s12 + $0x48] sm:$0xf] %vm2117_vm3, %v3057_v32  ;;  %2200 = vst.msk [vmem:[%s3897_s12 + $0x148] sm:$0xf] %vm2117_vm3, %v3121_v33  ;;  %v3058_v40 = vpack.c.bf16 %v1496_v34, %v1496_v34  ;;  %v3122_v41 = vpack.c.bf16 %v1560_v35, %v1560_v35 }
 0x11c   : > { %2134 = vst.msk [vmem:[%s3897_s12 + $0x40] sm:$0xf] %vm2117_vm3, %v3055_v36  ;;  %2198 = vst.msk [vmem:[%s3897_s12 + $0x140] sm:$0xf] %vm2117_vm3, %v3119_v37  ;;  %v3056_v42 = vpack.c.bf16 %v1494_v38, %v1494_v38  ;;  %v3120_v43 = vpack.c.bf16 %v1558_v39, %v1558_v39  ;;  %v3271_v44 = vpop.f32.mrb[20].mxu0  ;;  %v3335_v45 = vpop.f32.mrb[20].mxu1 }
 0x11d   : > { %2137 = vst.msk [vmem:[%s3897_s12 + $0x4c] sm:$0xf] %vm2117_vm3, %v3058_v40  ;;  %2201 = vst.msk [vmem:[%s3897_s12 + $0x14c] sm:$0xf] %vm2117_vm3, %v3122_v41  ;;  %v1055_v46 = vadd.f32 %v3271_v44, %v3887_v9  ;;  %v1311_v47 = vadd.f32 %v3335_v45, %v3887_v9  ;;  %v1046_v48 = vpop.f32.mrb[21].mxu0  ;;  %v1302_v49 = vpop.f32.mrb[21].mxu1 }
 0x11e   : > { %2135 = vst.msk [vmem:[%s3897_s12 + $0x44] sm:$0xf] %vm2117_vm3, %v3056_v42  ;;  %2199 = vst.msk [vmem:[%s3897_s12 + $0x144] sm:$0xf] %vm2117_vm3, %v3120_v43  ;;  %v1047_v50 = vadd.f32 %v3887_v9, %v1046_v48  ;;  %v1303_v51 = vadd.f32 %v3887_v9, %v1302_v49  ;;  %v3272_v52 = vpop.f32.mrb[22].mxu0  ;;  %v3336_v53 = vpop.f32.mrb[22].mxu1 }
 0x11f   : > { %v1499_v54 = vmax.f32 %v1055_v46, 0.0  ;;  %v1563_v55 = vmax.f32 %v1311_v47, 0.0  ;;  %v1058_v56 = vadd.f32 %v3272_v52, %v3887_v9  ;;  %v1314_v57 = vadd.f32 %v3336_v53, %v3887_v9  ;;  %v1049_v58 = vpop.f32.mrb[23].mxu0  ;;  %v1305_v59 = vpop.f32.mrb[23].mxu1 }
 0x120   : > { %v1497_v60 = vmax.f32 %v1047_v50, 0.0  ;;  %v1561_v61 = vmax.f32 %v1303_v51, 0.0  ;;  %v1050_v62 = vadd.f32 %v3887_v9, %v1049_v58  ;;  %v1306_v63 = vadd.f32 %v3887_v9, %v1305_v59 }
 0x121   : > { %v3061_v0 = vpack.c.bf16 %v1499_v54, %v1499_v54  ;;  %v3125_v1 = vpack.c.bf16 %v1563_v55, %v1563_v55  ;;  %v1500_v2 = vmax.f32 %v1058_v56, 0.0  ;;  %v1564_v3 = vmax.f32 %v1314_v57, 0.0 }
 0x122   : > { %v3059_v4 = vpack.c.bf16 %v1497_v60, %v1497_v60  ;;  %v3123_v5 = vpack.c.bf16 %v1561_v61, %v1561_v61  ;;  %v1498_v6 = vmax.f32 %v1050_v62, 0.0  ;;  %v1562_v7 = vmax.f32 %v1306_v63, 0.0 }
 0x123   : > { %2140 = vst.msk [vmem:[%s3897_s12 + $0x58] sm:$0xf] %vm2117_vm3, %v3061_v0  ;;  %2204 = vst.msk [vmem:[%s3897_s12 + $0x158] sm:$0xf] %vm2117_vm3, %v3125_v1  ;;  %v3062_v8 = vpack.c.bf16 %v1500_v2, %v1500_v2  ;;  %v3126_v10 = vpack.c.bf16 %v1564_v3, %v1564_v3 }
 0x124   : > { %2138 = vst.msk [vmem:[%s3897_s12 + $0x50] sm:$0xf] %vm2117_vm3, %v3059_v4  ;;  %2202 = vst.msk [vmem:[%s3897_s12 + $0x150] sm:$0xf] %vm2117_vm3, %v3123_v5  ;;  %v3060_v11 = vpack.c.bf16 %v1498_v6, %v1498_v6  ;;  %v3124_v12 = vpack.c.bf16 %v1562_v7, %v1562_v7  ;;  %v3275_v13 = vpop.f32.mrb[24].mxu0  ;;  %v3339_v14 = vpop.f32.mrb[24].mxu1 }
 0x125   : > { %2141 = vst.msk [vmem:[%s3897_s12 + $0x5c] sm:$0xf] %vm2117_vm3, %v3062_v8  ;;  %2205 = vst.msk [vmem:[%s3897_s12 + $0x15c] sm:$0xf] %vm2117_vm3, %v3126_v10  ;;  %v1071_v15 = vadd.f32 %v3275_v13, %v3887_v9  ;;  %v1327_v16 = vadd.f32 %v3339_v14, %v3887_v9  ;;  %v1062_v17 = vpop.f32.mrb[25].mxu0  ;;  %v1318_v18 = vpop.f32.mrb[25].mxu1 }
 0x126   : > { %2139 = vst.msk [vmem:[%s3897_s12 + $0x54] sm:$0xf] %vm2117_vm3, %v3060_v11  ;;  %2203 = vst.msk [vmem:[%s3897_s12 + $0x154] sm:$0xf] %vm2117_vm3, %v3124_v12  ;;  %v1063_v19 = vadd.f32 %v3887_v9, %v1062_v17  ;;  %v1319_v20 = vadd.f32 %v3887_v9, %v1318_v18  ;;  %v3276_v21 = vpop.f32.mrb[26].mxu0  ;;  %v3340_v22 = vpop.f32.mrb[26].mxu1 }
 0x127   : > { %v1503_v23 = vmax.f32 %v1071_v15, 0.0  ;;  %v1567_v24 = vmax.f32 %v1327_v16, 0.0  ;;  %v1074_v25 = vadd.f32 %v3276_v21, %v3887_v9  ;;  %v1330_v26 = vadd.f32 %v3340_v22, %v3887_v9  ;;  %v1065_v27 = vpop.f32.mrb[27].mxu0  ;;  %v1321_v28 = vpop.f32.mrb[27].mxu1 }
 0x128   : > { %v1501_v29 = vmax.f32 %v1063_v19, 0.0  ;;  %v1565_v30 = vmax.f32 %v1319_v20, 0.0  ;;  %v1066_v31 = vadd.f32 %v3887_v9, %v1065_v27  ;;  %v1322_v32 = vadd.f32 %v3887_v9, %v1321_v28 }
 0x129   : > { %v3065_v33 = vpack.c.bf16 %v1503_v23, %v1503_v23  ;;  %v3129_v34 = vpack.c.bf16 %v1567_v24, %v1567_v24  ;;  %v1504_v35 = vmax.f32 %v1074_v25, 0.0  ;;  %v1568_v36 = vmax.f32 %v1330_v26, 0.0 }
 0x12a   : > { %v3063_v37 = vpack.c.bf16 %v1501_v29, %v1501_v29  ;;  %v3127_v38 = vpack.c.bf16 %v1565_v30, %v1565_v30  ;;  %v1502_v39 = vmax.f32 %v1066_v31, 0.0  ;;  %v1566_v40 = vmax.f32 %v1322_v32, 0.0 }
 0x12b   : > { %2144 = vst.msk [vmem:[%s3897_s12 + $0x68] sm:$0xf] %vm2117_vm3, %v3065_v33  ;;  %2208 = vst.msk [vmem:[%s3897_s12 + $0x168] sm:$0xf] %vm2117_vm3, %v3129_v34  ;;  %v3066_v41 = vpack.c.bf16 %v1504_v35, %v1504_v35  ;;  %v3130_v42 = vpack.c.bf16 %v1568_v36, %v1568_v36 }
 0x12c   : > { %2142 = vst.msk [vmem:[%s3897_s12 + $0x60] sm:$0xf] %vm2117_vm3, %v3063_v37  ;;  %2206 = vst.msk [vmem:[%s3897_s12 + $0x160] sm:$0xf] %vm2117_vm3, %v3127_v38  ;;  %v3064_v43 = vpack.c.bf16 %v1502_v39, %v1502_v39  ;;  %v3128_v44 = vpack.c.bf16 %v1566_v40, %v1566_v40  ;;  %v3279_v45 = vpop.f32.mrb[28].mxu0  ;;  %v3343_v46 = vpop.f32.mrb[28].mxu1 }
 0x12d   : > { %2145 = vst.msk [vmem:[%s3897_s12 + $0x6c] sm:$0xf] %vm2117_vm3, %v3066_v41  ;;  %2209 = vst.msk [vmem:[%s3897_s12 + $0x16c] sm:$0xf] %vm2117_vm3, %v3130_v42  ;;  %v1087_v47 = vadd.f32 %v3279_v45, %v3887_v9  ;;  %v1343_v48 = vadd.f32 %v3343_v46, %v3887_v9  ;;  %v1078_v49 = vpop.f32.mrb[29].mxu0  ;;  %v1334_v50 = vpop.f32.mrb[29].mxu1 }
 0x12e   : > { %2143 = vst.msk [vmem:[%s3897_s12 + $0x64] sm:$0xf] %vm2117_vm3, %v3064_v43  ;;  %2207 = vst.msk [vmem:[%s3897_s12 + $0x164] sm:$0xf] %vm2117_vm3, %v3128_v44  ;;  %v1079_v51 = vadd.f32 %v3887_v9, %v1078_v49  ;;  %v1335_v52 = vadd.f32 %v3887_v9, %v1334_v50  ;;  %v3280_v53 = vpop.f32.mrb[30].mxu0  ;;  %v3344_v54 = vpop.f32.mrb[30].mxu1 }
 0x12f   : > { %v1507_v55 = vmax.f32 %v1087_v47, 0.0  ;;  %v1571_v56 = vmax.f32 %v1343_v48, 0.0  ;;  %v1090_v57 = vadd.f32 %v3280_v53, %v3887_v9  ;;  %v1346_v58 = vadd.f32 %v3344_v54, %v3887_v9  ;;  %v1081_v59 = vpop.f32.mrb[31].mxu0  ;;  %v1337_v60 = vpop.f32.mrb[31].mxu1 }
 0x130   : > { %v1505_v61 = vmax.f32 %v1079_v51, 0.0  ;;  %v1569_v62 = vmax.f32 %v1335_v52, 0.0  ;;  %v1082_v63 = vadd.f32 %v3887_v9, %v1081_v59  ;;  %v1338_v0 = vadd.f32 %v3887_v9, %v1337_v60 }
 0x131   : > { %v3069_v1 = vpack.c.bf16 %v1507_v55, %v1507_v55  ;;  %v3133_v2 = vpack.c.bf16 %v1571_v56, %v1571_v56  ;;  %v1508_v3 = vmax.f32 %v1090_v57, 0.0  ;;  %v1572_v4 = vmax.f32 %v1346_v58, 0.0 }
 0x132   : > { %v3067_v5 = vpack.c.bf16 %v1505_v61, %v1505_v61  ;;  %v3131_v6 = vpack.c.bf16 %v1569_v62, %v1569_v62  ;;  %v1506_v7 = vmax.f32 %v1082_v63, 0.0  ;;  %v1570_v8 = vmax.f32 %v1338_v0, 0.0 }
 0x133   : > { %2148 = vst.msk [vmem:[%s3897_s12 + $0x78] sm:$0xf] %vm2117_vm3, %v3069_v1  ;;  %2212 = vst.msk [vmem:[%s3897_s12 + $0x178] sm:$0xf] %vm2117_vm3, %v3133_v2  ;;  %v3070_v10 = vpack.c.bf16 %v1508_v3, %v1508_v3  ;;  %v3134_v11 = vpack.c.bf16 %v1572_v4, %v1572_v4 }
 0x134   : > { %2146 = vst.msk [vmem:[%s3897_s12 + $0x70] sm:$0xf] %vm2117_vm3, %v3067_v5  ;;  %2210 = vst.msk [vmem:[%s3897_s12 + $0x170] sm:$0xf] %vm2117_vm3, %v3131_v6  ;;  %v3068_v12 = vpack.c.bf16 %v1506_v7, %v1506_v7  ;;  %v3132_v13 = vpack.c.bf16 %v1570_v8, %v1570_v8  ;;  %v3283_v14 = vpop.f32.mrb[32].mxu0  ;;  %v3347_v15 = vpop.f32.mrb[32].mxu1 }
 0x135   : > { %2149 = vst.msk [vmem:[%s3897_s12 + $0x7c] sm:$0xf] %vm2117_vm3, %v3070_v10  ;;  %2213 = vst.msk [vmem:[%s3897_s12 + $0x17c] sm:$0xf] %vm2117_vm3, %v3134_v11  ;;  %v1103_v16 = vadd.f32 %v3283_v14, %v3887_v9  ;;  %v1359_v17 = vadd.f32 %v3347_v15, %v3887_v9  ;;  %v1094_v18 = vpop.f32.mrb[33].mxu0  ;;  %v1350_v19 = vpop.f32.mrb[33].mxu1 }
 0x136   : > { %2147 = vst.msk [vmem:[%s3897_s12 + $0x74] sm:$0xf] %vm2117_vm3, %v3068_v12  ;;  %2211 = vst.msk [vmem:[%s3897_s12 + $0x174] sm:$0xf] %vm2117_vm3, %v3132_v13  ;;  %v1095_v20 = vadd.f32 %v3887_v9, %v1094_v18  ;;  %v1351_v21 = vadd.f32 %v3887_v9, %v1350_v19  ;;  %v3284_v22 = vpop.f32.mrb[34].mxu0  ;;  %v3348_v23 = vpop.f32.mrb[34].mxu1 }
 0x137   : > { %v1511_v24 = vmax.f32 %v1103_v16, 0.0  ;;  %v1575_v25 = vmax.f32 %v1359_v17, 0.0  ;;  %v1106_v26 = vadd.f32 %v3284_v22, %v3887_v9  ;;  %v1362_v27 = vadd.f32 %v3348_v23, %v3887_v9  ;;  %v1097_v28 = vpop.f32.mrb[35].mxu0  ;;  %v1353_v29 = vpop.f32.mrb[35].mxu1 }
 0x138   : > { %v1509_v30 = vmax.f32 %v1095_v20, 0.0  ;;  %v1573_v31 = vmax.f32 %v1351_v21, 0.0  ;;  %v1098_v32 = vadd.f32 %v3887_v9, %v1097_v28  ;;  %v1354_v33 = vadd.f32 %v3887_v9, %v1353_v29 }
 0x139   : > { %v3073_v34 = vpack.c.bf16 %v1511_v24, %v1511_v24  ;;  %v3137_v35 = vpack.c.bf16 %v1575_v25, %v1575_v25  ;;  %v1512_v36 = vmax.f32 %v1106_v26, 0.0  ;;  %v1576_v37 = vmax.f32 %v1362_v27, 0.0 }
 0x13a   : > { %v3071_v38 = vpack.c.bf16 %v1509_v30, %v1509_v30  ;;  %v3135_v39 = vpack.c.bf16 %v1573_v31, %v1573_v31  ;;  %v1510_v40 = vmax.f32 %v1098_v32, 0.0  ;;  %v1574_v41 = vmax.f32 %v1354_v33, 0.0 }
 0x13b   : > { %2152 = vst.msk [vmem:[%s3897_s12 + $0x88] sm:$0xf] %vm2117_vm3, %v3073_v34  ;;  %2216 = vst.msk [vmem:[%s3897_s12 + $0x188] sm:$0xf] %vm2117_vm3, %v3137_v35  ;;  %v3074_v42 = vpack.c.bf16 %v1512_v36, %v1512_v36  ;;  %v3138_v43 = vpack.c.bf16 %v1576_v37, %v1576_v37 }
 0x13c   : > { %2150 = vst.msk [vmem:[%s3897_s12 + $0x80] sm:$0xf] %vm2117_vm3, %v3071_v38  ;;  %2214 = vst.msk [vmem:[%s3897_s12 + $0x180] sm:$0xf] %vm2117_vm3, %v3135_v39  ;;  %v3072_v44 = vpack.c.bf16 %v1510_v40, %v1510_v40  ;;  %v3136_v45 = vpack.c.bf16 %v1574_v41, %v1574_v41  ;;  %v3287_v46 = vpop.f32.mrb[36].mxu0  ;;  %v3351_v47 = vpop.f32.mrb[36].mxu1 }
 0x13d   : > { %2153 = vst.msk [vmem:[%s3897_s12 + $0x8c] sm:$0xf] %vm2117_vm3, %v3074_v42  ;;  %2217 = vst.msk [vmem:[%s3897_s12 + $0x18c] sm:$0xf] %vm2117_vm3, %v3138_v43  ;;  %v1119_v48 = vadd.f32 %v3287_v46, %v3887_v9  ;;  %v1375_v49 = vadd.f32 %v3351_v47, %v3887_v9  ;;  %v1110_v50 = vpop.f32.mrb[37].mxu0  ;;  %v1366_v51 = vpop.f32.mrb[37].mxu1 }
 0x13e   : > { %2151 = vst.msk [vmem:[%s3897_s12 + $0x84] sm:$0xf] %vm2117_vm3, %v3072_v44  ;;  %2215 = vst.msk [vmem:[%s3897_s12 + $0x184] sm:$0xf] %vm2117_vm3, %v3136_v45  ;;  %v1111_v52 = vadd.f32 %v3887_v9, %v1110_v50  ;;  %v1367_v53 = vadd.f32 %v3887_v9, %v1366_v51  ;;  %v3288_v54 = vpop.f32.mrb[38].mxu0  ;;  %v3352_v55 = vpop.f32.mrb[38].mxu1 }
 0x13f   : > { %v1515_v56 = vmax.f32 %v1119_v48, 0.0  ;;  %v1579_v57 = vmax.f32 %v1375_v49, 0.0  ;;  %v1122_v58 = vadd.f32 %v3288_v54, %v3887_v9  ;;  %v1378_v59 = vadd.f32 %v3352_v55, %v3887_v9  ;;  %v1113_v60 = vpop.f32.mrb[39].mxu0  ;;  %v1369_v61 = vpop.f32.mrb[39].mxu1 }
 0x140   : > { %v1513_v62 = vmax.f32 %v1111_v52, 0.0  ;;  %v1577_v63 = vmax.f32 %v1367_v53, 0.0  ;;  %v1114_v0 = vadd.f32 %v3887_v9, %v1113_v60  ;;  %v1370_v1 = vadd.f32 %v3887_v9, %v1369_v61 }
 0x141   : > { %v3077_v2 = vpack.c.bf16 %v1515_v56, %v1515_v56  ;;  %v3141_v3 = vpack.c.bf16 %v1579_v57, %v1579_v57  ;;  %v1516_v4 = vmax.f32 %v1122_v58, 0.0  ;;  %v1580_v5 = vmax.f32 %v1378_v59, 0.0 }
 0x142   : > { %v3075_v6 = vpack.c.bf16 %v1513_v62, %v1513_v62  ;;  %v3139_v7 = vpack.c.bf16 %v1577_v63, %v1577_v63  ;;  %v1514_v8 = vmax.f32 %v1114_v0, 0.0  ;;  %v1578_v10 = vmax.f32 %v1370_v1, 0.0 }
 0x143   : > { %2156 = vst.msk [vmem:[%s3897_s12 + $0x98] sm:$0xf] %vm2117_vm3, %v3077_v2  ;;  %2220 = vst.msk [vmem:[%s3897_s12 + $0x198] sm:$0xf] %vm2117_vm3, %v3141_v3  ;;  %v3078_v11 = vpack.c.bf16 %v1516_v4, %v1516_v4  ;;  %v3142_v12 = vpack.c.bf16 %v1580_v5, %v1580_v5 }
 0x144   : > { %2154 = vst.msk [vmem:[%s3897_s12 + $0x90] sm:$0xf] %vm2117_vm3, %v3075_v6  ;;  %2218 = vst.msk [vmem:[%s3897_s12 + $0x190] sm:$0xf] %vm2117_vm3, %v3139_v7  ;;  %v3076_v13 = vpack.c.bf16 %v1514_v8, %v1514_v8  ;;  %v3140_v14 = vpack.c.bf16 %v1578_v10, %v1578_v10  ;;  %v3291_v15 = vpop.f32.mrb[40].mxu0  ;;  %v3355_v16 = vpop.f32.mrb[40].mxu1 }
 0x145   : > { %2157 = vst.msk [vmem:[%s3897_s12 + $0x9c] sm:$0xf] %vm2117_vm3, %v3078_v11  ;;  %2221 = vst.msk [vmem:[%s3897_s12 + $0x19c] sm:$0xf] %vm2117_vm3, %v3142_v12  ;;  %v1135_v17 = vadd.f32 %v3291_v15, %v3887_v9  ;;  %v1391_v18 = vadd.f32 %v3355_v16, %v3887_v9  ;;  %v1126_v19 = vpop.f32.mrb[41].mxu0  ;;  %v1382_v20 = vpop.f32.mrb[41].mxu1 }
 0x146   : > { %2155 = vst.msk [vmem:[%s3897_s12 + $0x94] sm:$0xf] %vm2117_vm3, %v3076_v13  ;;  %2219 = vst.msk [vmem:[%s3897_s12 + $0x194] sm:$0xf] %vm2117_vm3, %v3140_v14  ;;  %v1127_v21 = vadd.f32 %v3887_v9, %v1126_v19  ;;  %v1383_v22 = vadd.f32 %v3887_v9, %v1382_v20  ;;  %v3292_v23 = vpop.f32.mrb[42].mxu0  ;;  %v3356_v24 = vpop.f32.mrb[42].mxu1 }
 0x147   : > { %v1519_v25 = vmax.f32 %v1135_v17, 0.0  ;;  %v1583_v26 = vmax.f32 %v1391_v18, 0.0  ;;  %v1138_v27 = vadd.f32 %v3292_v23, %v3887_v9  ;;  %v1394_v28 = vadd.f32 %v3356_v24, %v3887_v9  ;;  %v1129_v29 = vpop.f32.mrb[43].mxu0  ;;  %v1385_v30 = vpop.f32.mrb[43].mxu1 }
 0x148   : > { %v1517_v31 = vmax.f32 %v1127_v21, 0.0  ;;  %v1581_v32 = vmax.f32 %v1383_v22, 0.0  ;;  %v1130_v33 = vadd.f32 %v3887_v9, %v1129_v29  ;;  %v1386_v34 = vadd.f32 %v3887_v9, %v1385_v30 }
 0x149   : > { %v3081_v35 = vpack.c.bf16 %v1519_v25, %v1519_v25  ;;  %v3145_v36 = vpack.c.bf16 %v1583_v26, %v1583_v26  ;;  %v1520_v37 = vmax.f32 %v1138_v27, 0.0  ;;  %v1584_v38 = vmax.f32 %v1394_v28, 0.0 }
 0x14a   : > { %v3079_v39 = vpack.c.bf16 %v1517_v31, %v1517_v31  ;;  %v3143_v40 = vpack.c.bf16 %v1581_v32, %v1581_v32  ;;  %v1518_v41 = vmax.f32 %v1130_v33, 0.0  ;;  %v1582_v42 = vmax.f32 %v1386_v34, 0.0 }
 0x14b   : > { %2160 = vst.msk [vmem:[%s3897_s12 + $0xa8] sm:$0xf] %vm2117_vm3, %v3081_v35  ;;  %2224 = vst.msk [vmem:[%s3897_s12 + $0x1a8] sm:$0xf] %vm2117_vm3, %v3145_v36  ;;  %v3082_v43 = vpack.c.bf16 %v1520_v37, %v1520_v37  ;;  %v3146_v44 = vpack.c.bf16 %v1584_v38, %v1584_v38 }
 0x14c   : > { %2158 = vst.msk [vmem:[%s3897_s12 + $0xa0] sm:$0xf] %vm2117_vm3, %v3079_v39  ;;  %2222 = vst.msk [vmem:[%s3897_s12 + $0x1a0] sm:$0xf] %vm2117_vm3, %v3143_v40  ;;  %v3080_v45 = vpack.c.bf16 %v1518_v41, %v1518_v41  ;;  %v3144_v46 = vpack.c.bf16 %v1582_v42, %v1582_v42  ;;  %v3295_v47 = vpop.f32.mrb[44].mxu0  ;;  %v3359_v48 = vpop.f32.mrb[44].mxu1 }
 0x14d   : > { %2161 = vst.msk [vmem:[%s3897_s12 + $0xac] sm:$0xf] %vm2117_vm3, %v3082_v43  ;;  %2225 = vst.msk [vmem:[%s3897_s12 + $0x1ac] sm:$0xf] %vm2117_vm3, %v3146_v44  ;;  %v1151_v49 = vadd.f32 %v3295_v47, %v3887_v9  ;;  %v1407_v50 = vadd.f32 %v3359_v48, %v3887_v9  ;;  %v1142_v51 = vpop.f32.mrb[45].mxu0  ;;  %v1398_v52 = vpop.f32.mrb[45].mxu1 }
 0x14e   : > { %2159 = vst.msk [vmem:[%s3897_s12 + $0xa4] sm:$0xf] %vm2117_vm3, %v3080_v45  ;;  %2223 = vst.msk [vmem:[%s3897_s12 + $0x1a4] sm:$0xf] %vm2117_vm3, %v3144_v46  ;;  %v1143_v53 = vadd.f32 %v3887_v9, %v1142_v51  ;;  %v1399_v54 = vadd.f32 %v3887_v9, %v1398_v52  ;;  %v3296_v55 = vpop.f32.mrb[46].mxu0  ;;  %v3360_v56 = vpop.f32.mrb[46].mxu1 }
 0x14f   : > { %v1523_v57 = vmax.f32 %v1151_v49, 0.0  ;;  %v1587_v58 = vmax.f32 %v1407_v50, 0.0  ;;  %v1154_v59 = vadd.f32 %v3296_v55, %v3887_v9  ;;  %v1410_v60 = vadd.f32 %v3360_v56, %v3887_v9  ;;  %v1145_v61 = vpop.f32.mrb[47].mxu0  ;;  %v1401_v62 = vpop.f32.mrb[47].mxu1  ;;  %v4202_v49 = vld [vmem:[%s4486_s2] ss:$0 sm:$0xff] }
 0x150   : > { %v1521_v63 = vmax.f32 %v1143_v53, 0.0  ;;  %v1585_v0 = vmax.f32 %v1399_v54, 0.0  ;;  %v1146_v1 = vadd.f32 %v3887_v9, %v1145_v61  ;;  %v1402_v2 = vadd.f32 %v3887_v9, %v1401_v62 }
 0x151   : > { %v3085_v3 = vpack.c.bf16 %v1523_v57, %v1523_v57  ;;  %v3149_v4 = vpack.c.bf16 %v1587_v58, %v1587_v58  ;;  %v1524_v5 = vmax.f32 %v1154_v59, 0.0  ;;  %v1588_v6 = vmax.f32 %v1410_v60, 0.0 }
 0x152   : > { %v3083_v7 = vpack.c.bf16 %v1521_v63, %v1521_v63  ;;  %v3147_v8 = vpack.c.bf16 %v1585_v0, %v1585_v0  ;;  %v1522_v10 = vmax.f32 %v1146_v1, 0.0  ;;  %v1586_v11 = vmax.f32 %v1402_v2, 0.0 }
 0x153   : > { %2164 = vst.msk [vmem:[%s3897_s12 + $0xb8] sm:$0xf] %vm2117_vm3, %v3085_v3  ;;  %2228 = vst.msk [vmem:[%s3897_s12 + $0x1b8] sm:$0xf] %vm2117_vm3, %v3149_v4  ;;  %v3086_v12 = vpack.c.bf16 %v1524_v5, %v1524_v5  ;;  %v3150_v13 = vpack.c.bf16 %v1588_v6, %v1588_v6 }
 0x154   : > { %2162 = vst.msk [vmem:[%s3897_s12 + $0xb0] sm:$0xf] %vm2117_vm3, %v3083_v7  ;;  %2226 = vst.msk [vmem:[%s3897_s12 + $0x1b0] sm:$0xf] %vm2117_vm3, %v3147_v8  ;;  %v3084_v14 = vpack.c.bf16 %v1522_v10, %v1522_v10  ;;  %v3148_v15 = vpack.c.bf16 %v1586_v11, %v1586_v11  ;;  %v3299_v16 = vpop.f32.mrb[48].mxu0  ;;  %v3363_v17 = vpop.f32.mrb[48].mxu1 }
 0x155   : > { %2165 = vst.msk [vmem:[%s3897_s12 + $0xbc] sm:$0xf] %vm2117_vm3, %v3086_v12  ;;  %2229 = vst.msk [vmem:[%s3897_s12 + $0x1bc] sm:$0xf] %vm2117_vm3, %v3150_v13  ;;  %v1167_v18 = vadd.f32 %v3299_v16, %v3887_v9  ;;  %v1423_v19 = vadd.f32 %v3363_v17, %v3887_v9  ;;  %v1158_v20 = vpop.f32.mrb[49].mxu0  ;;  %v1414_v21 = vpop.f32.mrb[49].mxu1 }
 0x156   : > { %2163 = vst.msk [vmem:[%s3897_s12 + $0xb4] sm:$0xf] %vm2117_vm3, %v3084_v14  ;;  %2227 = vst.msk [vmem:[%s3897_s12 + $0x1b4] sm:$0xf] %vm2117_vm3, %v3148_v15  ;;  %v1159_v22 = vadd.f32 %v3887_v9, %v1158_v20  ;;  %v1415_v23 = vadd.f32 %v3887_v9, %v1414_v21  ;;  %v3300_v24 = vpop.f32.mrb[50].mxu0  ;;  %v3364_v25 = vpop.f32.mrb[50].mxu1 }
 0x157   : > { %v1527_v26 = vmax.f32 %v1167_v18, 0.0  ;;  %v1591_v27 = vmax.f32 %v1423_v19, 0.0  ;;  %v1170_v28 = vadd.f32 %v3300_v24, %v3887_v9  ;;  %v1426_v29 = vadd.f32 %v3364_v25, %v3887_v9  ;;  %v1161_v30 = vpop.f32.mrb[51].mxu0  ;;  %v1417_v31 = vpop.f32.mrb[51].mxu1 }
 0x158   : > { %v1525_v32 = vmax.f32 %v1159_v22, 0.0  ;;  %v1589_v33 = vmax.f32 %v1415_v23, 0.0  ;;  %v1162_v34 = vadd.f32 %v3887_v9, %v1161_v30  ;;  %v1418_v35 = vadd.f32 %v3887_v9, %v1417_v31 }
 0x159   : > { %v3089_v36 = vpack.c.bf16 %v1527_v26, %v1527_v26  ;;  %v3153_v37 = vpack.c.bf16 %v1591_v27, %v1591_v27  ;;  %v1528_v38 = vmax.f32 %v1170_v28, 0.0  ;;  %v1592_v39 = vmax.f32 %v1426_v29, 0.0 }
 0x15a   : > { %v3087_v40 = vpack.c.bf16 %v1525_v32, %v1525_v32  ;;  %v3151_v41 = vpack.c.bf16 %v1589_v33, %v1589_v33  ;;  %v1526_v42 = vmax.f32 %v1162_v34, 0.0  ;;  %v1590_v43 = vmax.f32 %v1418_v35, 0.0 }
 0x15b   : > { %2168 = vst.msk [vmem:[%s3897_s12 + $0xc8] sm:$0xf] %vm2117_vm3, %v3089_v36  ;;  %2232 = vst.msk [vmem:[%s3897_s12 + $0x1c8] sm:$0xf] %vm2117_vm3, %v3153_v37  ;;  %v3090_v44 = vpack.c.bf16 %v1528_v38, %v1528_v38  ;;  %v3154_v45 = vpack.c.bf16 %v1592_v39, %v1592_v39 }
 0x15c   : > { %2166 = vst.msk [vmem:[%s3897_s12 + $0xc0] sm:$0xf] %vm2117_vm3, %v3087_v40  ;;  %2230 = vst.msk [vmem:[%s3897_s12 + $0x1c0] sm:$0xf] %vm2117_vm3, %v3151_v41  ;;  %v3088_v9 = vpack.c.bf16 %v1526_v42, %v1526_v42  ;;  %v3152_v46 = vpack.c.bf16 %v1590_v43, %v1590_v43  ;;  %v3303_v47 = vpop.f32.mrb[52].mxu0  ;;  %v3367_v48 = vpop.f32.mrb[52].mxu1 }
 0x15d   : > { %2169 = vst.msk [vmem:[%s3897_s12 + $0xcc] sm:$0xf] %vm2117_vm3, %v3090_v44  ;;  %2233 = vst.msk [vmem:[%s3897_s12 + $0x1cc] sm:$0xf] %vm2117_vm3, %v3154_v45  ;;  %v1183_v50 = vadd.f32 %v4202_v49, %v3303_v47  ;;  %v1439_v51 = vadd.f32 %v4202_v49, %v3367_v48  ;;  %v1174_v52 = vpop.f32.mrb[53].mxu0  ;;  %v1430_v53 = vpop.f32.mrb[53].mxu1 }
 0x15e   : > { %2167 = vst.msk [vmem:[%s3897_s12 + $0xc4] sm:$0xf] %vm2117_vm3, %v3088_v9  ;;  %2231 = vst.msk [vmem:[%s3897_s12 + $0x1c4] sm:$0xf] %vm2117_vm3, %v3152_v46  ;;  %v1175_v54 = vadd.f32 %v4202_v49, %v1174_v52  ;;  %v1431_v55 = vadd.f32 %v4202_v49, %v1430_v53  ;;  %v3304_v56 = vpop.f32.mrb[54].mxu0  ;;  %v3368_v57 = vpop.f32.mrb[54].mxu1 }
 0x15f   : > { %v1531_v58 = vmax.f32 %v1183_v50, 0.0  ;;  %v1595_v59 = vmax.f32 %v1439_v51, 0.0  ;;  %v1186_v60 = vadd.f32 %v4202_v49, %v3304_v56  ;;  %v1442_v61 = vadd.f32 %v4202_v49, %v3368_v57  ;;  %v1177_v62 = vpop.f32.mrb[55].mxu0  ;;  %v1433_v63 = vpop.f32.mrb[55].mxu1 }
 0x160   : > { %v1529_v0 = vmax.f32 %v1175_v54, 0.0  ;;  %v1593_v1 = vmax.f32 %v1431_v55, 0.0  ;;  %v1178_v2 = vadd.f32 %v4202_v49, %v1177_v62  ;;  %v1434_v3 = vadd.f32 %v4202_v49, %v1433_v63 }
 0x161   : > { %v3093_v4 = vpack.c.bf16 %v1531_v58, %v1531_v58  ;;  %v3157_v5 = vpack.c.bf16 %v1595_v59, %v1595_v59  ;;  %v1532_v6 = vmax.f32 %v1186_v60, 0.0  ;;  %v1596_v7 = vmax.f32 %v1442_v61, 0.0 }
 0x162   : > { %v3091_v8 = vpack.c.bf16 %v1529_v0, %v1529_v0  ;;  %v3155_v10 = vpack.c.bf16 %v1593_v1, %v1593_v1  ;;  %v1530_v11 = vmax.f32 %v1178_v2, 0.0  ;;  %v1594_v12 = vmax.f32 %v1434_v3, 0.0 }
 0x163   : > { %2172 = vst.msk [vmem:[%s3897_s12 + $0xd8] sm:$0xf] %vm2117_vm3, %v3093_v4  ;;  %2236 = vst.msk [vmem:[%s3897_s12 + $0x1d8] sm:$0xf] %vm2117_vm3, %v3157_v5  ;;  %v3094_v13 = vpack.c.bf16 %v1532_v6, %v1532_v6  ;;  %v3158_v14 = vpack.c.bf16 %v1596_v7, %v1596_v7 }
 0x164   : > { %2170 = vst.msk [vmem:[%s3897_s12 + $0xd0] sm:$0xf] %vm2117_vm3, %v3091_v8  ;;  %2234 = vst.msk [vmem:[%s3897_s12 + $0x1d0] sm:$0xf] %vm2117_vm3, %v3155_v10  ;;  %v3092_v15 = vpack.c.bf16 %v1530_v11, %v1530_v11  ;;  %v3156_v16 = vpack.c.bf16 %v1594_v12, %v1594_v12  ;;  %v3307_v17 = vpop.f32.mrb[56].mxu0  ;;  %v3371_v18 = vpop.f32.mrb[56].mxu1 }
 0x165   : > { %2173 = vst.msk [vmem:[%s3897_s12 + $0xdc] sm:$0xf] %vm2117_vm3, %v3094_v13  ;;  %2237 = vst.msk [vmem:[%s3897_s12 + $0x1dc] sm:$0xf] %vm2117_vm3, %v3158_v14  ;;  %v1199_v19 = vadd.f32 %v4202_v49, %v3307_v17  ;;  %v1455_v20 = vadd.f32 %v4202_v49, %v3371_v18  ;;  %v1190_v21 = vpop.f32.mrb[57].mxu0  ;;  %v1446_v22 = vpop.f32.mrb[57].mxu1 }
 0x166   : > { %2171 = vst.msk [vmem:[%s3897_s12 + $0xd4] sm:$0xf] %vm2117_vm3, %v3092_v15  ;;  %2235 = vst.msk [vmem:[%s3897_s12 + $0x1d4] sm:$0xf] %vm2117_vm3, %v3156_v16  ;;  %v1191_v23 = vadd.f32 %v4202_v49, %v1190_v21  ;;  %v1447_v24 = vadd.f32 %v4202_v49, %v1446_v22  ;;  %v3308_v25 = vpop.f32.mrb[58].mxu0  ;;  %v3372_v26 = vpop.f32.mrb[58].mxu1 }
 0x167   : > { %v1535_v27 = vmax.f32 %v1199_v19, 0.0  ;;  %v1599_v28 = vmax.f32 %v1455_v20, 0.0  ;;  %v1202_v29 = vadd.f32 %v4202_v49, %v3308_v25  ;;  %v1458_v30 = vadd.f32 %v4202_v49, %v3372_v26  ;;  %v1193_v31 = vpop.f32.mrb[59].mxu0  ;;  %v1449_v32 = vpop.f32.mrb[59].mxu1 }
 0x168   : > { %v1533_v33 = vmax.f32 %v1191_v23, 0.0  ;;  %v1597_v34 = vmax.f32 %v1447_v24, 0.0  ;;  %v1194_v35 = vadd.f32 %v4202_v49, %v1193_v31  ;;  %v1450_v36 = vadd.f32 %v4202_v49, %v1449_v32 }
 0x169   : > { %v3097_v37 = vpack.c.bf16 %v1535_v27, %v1535_v27  ;;  %v3161_v38 = vpack.c.bf16 %v1599_v28, %v1599_v28  ;;  %v1536_v39 = vmax.f32 %v1202_v29, 0.0  ;;  %v1600_v40 = vmax.f32 %v1458_v30, 0.0 }
 0x16a   : > { %v3095_v41 = vpack.c.bf16 %v1533_v33, %v1533_v33  ;;  %v3159_v42 = vpack.c.bf16 %v1597_v34, %v1597_v34  ;;  %v1534_v43 = vmax.f32 %v1194_v35, 0.0  ;;  %v1598_v44 = vmax.f32 %v1450_v36, 0.0 }
 0x16b   : > { %2176 = vst.msk [vmem:[%s3897_s12 + $0xe8] sm:$0xf] %vm2117_vm3, %v3097_v37  ;;  %2240 = vst.msk [vmem:[%s3897_s12 + $0x1e8] sm:$0xf] %vm2117_vm3, %v3161_v38  ;;  %v3098_v45 = vpack.c.bf16 %v1536_v39, %v1536_v39  ;;  %v3162_v9 = vpack.c.bf16 %v1600_v40, %v1600_v40 }
 0x16c   : > { %2174 = vst.msk [vmem:[%s3897_s12 + $0xe0] sm:$0xf] %vm2117_vm3, %v3095_v41  ;;  %2238 = vst.msk [vmem:[%s3897_s12 + $0x1e0] sm:$0xf] %vm2117_vm3, %v3159_v42  ;;  %v3096_v46 = vpack.c.bf16 %v1534_v43, %v1534_v43  ;;  %v3160_v47 = vpack.c.bf16 %v1598_v44, %v1598_v44  ;;  %v3311_v48 = vpop.f32.mrb[60].mxu0  ;;  %v3375_v50 = vpop.f32.mrb[60].mxu1 }
 0x16d   : > { %2177 = vst.msk [vmem:[%s3897_s12 + $0xec] sm:$0xf] %vm2117_vm3, %v3098_v45  ;;  %2241 = vst.msk [vmem:[%s3897_s12 + $0x1ec] sm:$0xf] %vm2117_vm3, %v3162_v9  ;;  %v1215_v51 = vadd.f32 %v4202_v49, %v3311_v48  ;;  %v1471_v52 = vadd.f32 %v4202_v49, %v3375_v50  ;;  %v1206_v53 = vpop.f32.mrb[61].mxu0  ;;  %v1462_v54 = vpop.f32.mrb[61].mxu1 }
 0x16e   : > { %2175 = vst.msk [vmem:[%s3897_s12 + $0xe4] sm:$0xf] %vm2117_vm3, %v3096_v46  ;;  %2239 = vst.msk [vmem:[%s3897_s12 + $0x1e4] sm:$0xf] %vm2117_vm3, %v3160_v47  ;;  %v1207_v55 = vadd.f32 %v4202_v49, %v1206_v53  ;;  %v1463_v56 = vadd.f32 %v4202_v49, %v1462_v54  ;;  %v3312_v57 = vpop.f32.mrb[62].mxu0  ;;  %v3376_v58 = vpop.f32.mrb[62].mxu1 }
 0x16f   : > { %v1539_v59 = vmax.f32 %v1215_v51, 0.0  ;;  %v1603_v60 = vmax.f32 %v1471_v52, 0.0  ;;  %v1218_v61 = vadd.f32 %v4202_v49, %v3312_v57  ;;  %v1474_v62 = vadd.f32 %v4202_v49, %v3376_v58  ;;  %v1209_v63 = vpop.f32.mrb[63].mxu0  ;;  %v1465_v0 = vpop.f32.mrb[63].mxu1 }
 0x170   : > { %v1537_v1 = vmax.f32 %v1207_v55, 0.0  ;;  %v1601_v2 = vmax.f32 %v1463_v56, 0.0  ;;  %v1210_v3 = vadd.f32 %v4202_v49, %v1209_v63  ;;  %v1466_v4 = vadd.f32 %v4202_v49, %v1465_v0  ;;  %2252 = sbr.rel (!%p3719_p3) target bundleno = 466 (0x1d2), region = 36 }
 0x171   : > { %v3101_v5 = vpack.c.bf16 %v1539_v59, %v1539_v59  ;;  %v3165_v6 = vpack.c.bf16 %v1603_v60, %v1603_v60  ;;  %v1540_v7 = vmax.f32 %v1218_v61, 0.0  ;;  %v1604_v8 = vmax.f32 %v1474_v62, 0.0 }
 0x172   : > { %v3099_v10 = vpack.c.bf16 %v1537_v1, %v1537_v1  ;;  %v3163_v11 = vpack.c.bf16 %v1601_v2, %v1601_v2  ;;  %v1538_v12 = vmax.f32 %v1210_v3, 0.0  ;;  %v1602_v13 = vmax.f32 %v1466_v4, 0.0 }
 0x173   : > { %2180 = vst.msk [vmem:[%s3897_s12 + $0xf8] sm:$0xf] %vm2117_vm3, %v3101_v5  ;;  %2244 = vst.msk [vmem:[%s3897_s12 + $0x1f8] sm:$0xf] %vm2117_vm3, %v3165_v6  ;;  %v3102_v14 = vpack.c.bf16 %v1540_v7, %v1540_v7  ;;  %v3166_v15 = vpack.c.bf16 %v1604_v8, %v1604_v8 }
 0x174   : > { %2178 = vst.msk [vmem:[%s3897_s12 + $0xf0] sm:$0xf] %vm2117_vm3, %v3099_v10  ;;  %2242 = vst.msk [vmem:[%s3897_s12 + $0x1f0] sm:$0xf] %vm2117_vm3, %v3163_v11  ;;  %v3100_v49 = vpack.c.bf16 %v1538_v12, %v1538_v12  ;;  %v3164_v16 = vpack.c.bf16 %v1602_v13, %v1602_v13 }
 0x175   : > { %2181 = vst.msk [vmem:[%s3897_s12 + $0xfc] sm:$0xf] %vm2117_vm3, %v3102_v14  ;;  %2245 = vst.msk [vmem:[%s3897_s12 + $0x1fc] sm:$0xf] %vm2117_vm3, %v3166_v15 }
 0x176   : > { %2179 = vst.msk [vmem:[%s3897_s12 + $0xf4] sm:$0xf] %vm2117_vm3, %v3100_v49  ;;  %2243 = vst.msk [vmem:[%s3897_s12 + $0x1f4] sm:$0xf] %vm2117_vm3, %v3164_v16 }
 0x177   : > { %s4499_s26 = smov (!%p2255_p9, %s2254_s26), 128 }
 0x178   : > { %s3024_s5 = sshll.u32 %s4499_s26, 6 }
 0x179   : > { %p3027_p10 = scmp.eq.s32.totalorder %s3024_s5, 0 }
 0x17a   : > { %s4293_s6 = sshrl.u32 (!%p3027_p10), %s4499_s26, 6 }
 0x17b   : > { %2264 = sbr.rel (%p3027_p10) target bundleno = 466 (0x1d2), region = 40  ;;  %p3028_p11 = scmp.le.s32.totalorder (!%p3027_p10), %s4293_s6, 0 }
 0x182   : > { %2680 = sbr.rel (%p3028_p11) target bundleno = 445 (0x1bd), region = 118  ;;  %s4489_s14 = smov (!%p3028_p11), %s4287_s4 }
 0x183   : > { %s4490_s20 = smov (!%p3028_p11), %s3897_s12  ;;  %s4302_s29 = smov (!%p3028_p11), 0  }
 0x184   : > { %s4304_s7 = smov (!%p3028_p11), 0  }
 0x189 LB: >> { %v2280_v17 = vld [vmem:[%s3640_s20] sm:$0xf]  ;;  %v2282_v18 = vld [vmem:[%s3640_s20 + $0x4] sm:$0xf]  ;;  %v2284_v19 = vld [vmem:[%s3640_s20 + $0x8] sm:$0xf]  ;;  %s3648_s7 = sphi %s4304_s7, %s2274_s7   ;;  %s3644_s29 = sphi %s4302_s29, %s4491_s29   ;;  %s3640_s20 = sphi %s4490_s20, %s2413_s20   ;;  %s3636_s14 = sphi %s4489_s14, %s2414_s14  }
 0x18a   : >> { %2281 = vst [vmem:[%s3636_s14] sm:$0xf] %v2280_v17  ;;  %2283 = vst [vmem:[%s3636_s14 + $0x4] sm:$0xf] %v2282_v18  ;;  %v2286_v20 = vld [vmem:[%s3640_s20 + $0xc] sm:$0xf]  ;;  %s2408_s8 = sadd.s32 1, %s3644_s29 }
 0x18b   : >> { %2285 = vst [vmem:[%s3636_s14 + $0x8] sm:$0xf] %v2284_v19  ;;  %v2288_v21 = vld [vmem:[%s3640_s20 + $0x10] sm:$0xf]  ;;  %v2290_v22 = vld [vmem:[%s3640_s20 + $0x14] sm:$0xf]  ;;  %p2409_p12 = scmp.ge.s32.totalorder %s2408_s8, %s4293_s6 }
 0x18c   : >> { %2287 = vst [vmem:[%s3636_s14 + $0xc] sm:$0xf] %v2286_v20  ;;  %2289 = vst [vmem:[%s3636_s14 + $0x10] sm:$0xf] %v2288_v21  ;;  %v2292_v23 = vld [vmem:[%s3640_s20 + $0x18] sm:$0xf] }
 0x18d   : >> { %2291 = vst [vmem:[%s3636_s14 + $0x14] sm:$0xf] %v2290_v22  ;;  %v2294_v24 = vld [vmem:[%s3640_s20 + $0x1c] sm:$0xf]  ;;  %v2296_v25 = vld [vmem:[%s3640_s20 + $0x20] sm:$0xf] }
 0x18e   : >> { %2293 = vst [vmem:[%s3636_s14 + $0x18] sm:$0xf] %v2292_v23  ;;  %2295 = vst [vmem:[%s3636_s14 + $0x1c] sm:$0xf] %v2294_v24  ;;  %v2298_v26 = vld [vmem:[%s3640_s20 + $0x24] sm:$0xf] }
 0x18f   : >> { %2297 = vst [vmem:[%s3636_s14 + $0x20] sm:$0xf] %v2296_v25  ;;  %v2300_v27 = vld [vmem:[%s3640_s20 + $0x28] sm:$0xf]  ;;  %v2302_v28 = vld [vmem:[%s3640_s20 + $0x2c] sm:$0xf] }
 0x190   : >> { %2299 = vst [vmem:[%s3636_s14 + $0x24] sm:$0xf] %v2298_v26  ;;  %2301 = vst [vmem:[%s3636_s14 + $0x28] sm:$0xf] %v2300_v27  ;;  %v2304_v29 = vld [vmem:[%s3640_s20 + $0x30] sm:$0xf] }
 0x191   : >> { %2303 = vst [vmem:[%s3636_s14 + $0x2c] sm:$0xf] %v2302_v28  ;;  %v2306_v30 = vld [vmem:[%s3640_s20 + $0x34] sm:$0xf]  ;;  %v2308_v31 = vld [vmem:[%s3640_s20 + $0x38] sm:$0xf] }
 0x192   : >> { %2305 = vst [vmem:[%s3636_s14 + $0x30] sm:$0xf] %v2304_v29  ;;  %2307 = vst [vmem:[%s3636_s14 + $0x34] sm:$0xf] %v2306_v30  ;;  %v2310_v32 = vld [vmem:[%s3640_s20 + $0x3c] sm:$0xf] }
 0x193   : >> { %2309 = vst [vmem:[%s3636_s14 + $0x38] sm:$0xf] %v2308_v31  ;;  %v2312_v33 = vld [vmem:[%s3640_s20 + $0x40] sm:$0xf]  ;;  %v2314_v34 = vld [vmem:[%s3640_s20 + $0x44] sm:$0xf] }
 0x194   : >> { %2311 = vst [vmem:[%s3636_s14 + $0x3c] sm:$0xf] %v2310_v32  ;;  %2313 = vst [vmem:[%s3636_s14 + $0x40] sm:$0xf] %v2312_v33  ;;  %v2316_v35 = vld [vmem:[%s3640_s20 + $0x48] sm:$0xf] }
 0x195   : >> { %2315 = vst [vmem:[%s3636_s14 + $0x44] sm:$0xf] %v2314_v34  ;;  %v2318_v36 = vld [vmem:[%s3640_s20 + $0x4c] sm:$0xf]  ;;  %v2320_v37 = vld [vmem:[%s3640_s20 + $0x50] sm:$0xf] }
 0x196   : >> { %2317 = vst [vmem:[%s3636_s14 + $0x48] sm:$0xf] %v2316_v35  ;;  %2319 = vst [vmem:[%s3636_s14 + $0x4c] sm:$0xf] %v2318_v36  ;;  %v2322_v38 = vld [vmem:[%s3640_s20 + $0x54] sm:$0xf] }
 0x197   : >> { %2321 = vst [vmem:[%s3636_s14 + $0x50] sm:$0xf] %v2320_v37  ;;  %v2324_v39 = vld [vmem:[%s3640_s20 + $0x58] sm:$0xf]  ;;  %v2326_v40 = vld [vmem:[%s3640_s20 + $0x5c] sm:$0xf] }
 0x198   : >> { %2323 = vst [vmem:[%s3636_s14 + $0x54] sm:$0xf] %v2322_v38  ;;  %2325 = vst [vmem:[%s3636_s14 + $0x58] sm:$0xf] %v2324_v39  ;;  %v2328_v41 = vld [vmem:[%s3640_s20 + $0x60] sm:$0xf] }
 0x199   : >> { %2327 = vst [vmem:[%s3636_s14 + $0x5c] sm:$0xf] %v2326_v40  ;;  %v2330_v42 = vld [vmem:[%s3640_s20 + $0x64] sm:$0xf]  ;;  %v2332_v43 = vld [vmem:[%s3640_s20 + $0x68] sm:$0xf] }
 0x19a   : >> { %2329 = vst [vmem:[%s3636_s14 + $0x60] sm:$0xf] %v2328_v41  ;;  %2331 = vst [vmem:[%s3636_s14 + $0x64] sm:$0xf] %v2330_v42  ;;  %v2334_v44 = vld [vmem:[%s3640_s20 + $0x6c] sm:$0xf] }
 0x19b   : >> { %2333 = vst [vmem:[%s3636_s14 + $0x68] sm:$0xf] %v2332_v43  ;;  %v2336_v45 = vld [vmem:[%s3640_s20 + $0x70] sm:$0xf]  ;;  %v2338_v9 = vld [vmem:[%s3640_s20 + $0x74] sm:$0xf] }
 0x19c   : >> { %2335 = vst [vmem:[%s3636_s14 + $0x6c] sm:$0xf] %v2334_v44  ;;  %2337 = vst [vmem:[%s3636_s14 + $0x70] sm:$0xf] %v2336_v45  ;;  %v2340_v46 = vld [vmem:[%s3640_s20 + $0x78] sm:$0xf] }
 0x19d   : >> { %2339 = vst [vmem:[%s3636_s14 + $0x74] sm:$0xf] %v2338_v9  ;;  %v2342_v47 = vld [vmem:[%s3640_s20 + $0x7c] sm:$0xf]  ;;  %v2344_v48 = vld [vmem:[%s3640_s20 + $0x80] sm:$0xf] }
 0x19e   : >> { %2341 = vst [vmem:[%s3636_s14 + $0x78] sm:$0xf] %v2340_v46  ;;  %2343 = vst [vmem:[%s3636_s14 + $0x7c] sm:$0xf] %v2342_v47  ;;  %v2346_v50 = vld [vmem:[%s3640_s20 + $0x84] sm:$0xf] }
 0x19f   : >> { %2345 = vst [vmem:[%s3636_s14 + $0x80] sm:$0xf] %v2344_v48  ;;  %v2348_v51 = vld [vmem:[%s3640_s20 + $0x88] sm:$0xf]  ;;  %v2350_v52 = vld [vmem:[%s3640_s20 + $0x8c] sm:$0xf] }
 0x1a0   : >> { %2347 = vst [vmem:[%s3636_s14 + $0x84] sm:$0xf] %v2346_v50  ;;  %2349 = vst [vmem:[%s3636_s14 + $0x88] sm:$0xf] %v2348_v51  ;;  %v2352_v53 = vld [vmem:[%s3640_s20 + $0x90] sm:$0xf] }
 0x1a1   : >> { %2351 = vst [vmem:[%s3636_s14 + $0x8c] sm:$0xf] %v2350_v52  ;;  %v2354_v54 = vld [vmem:[%s3640_s20 + $0x94] sm:$0xf]  ;;  %v2356_v55 = vld [vmem:[%s3640_s20 + $0x98] sm:$0xf] }
 0x1a2   : >> { %2353 = vst [vmem:[%s3636_s14 + $0x90] sm:$0xf] %v2352_v53  ;;  %2355 = vst [vmem:[%s3636_s14 + $0x94] sm:$0xf] %v2354_v54  ;;  %v2358_v56 = vld [vmem:[%s3640_s20 + $0x9c] sm:$0xf] }
 0x1a3   : >> { %2357 = vst [vmem:[%s3636_s14 + $0x98] sm:$0xf] %v2356_v55  ;;  %v2360_v57 = vld [vmem:[%s3640_s20 + $0xa0] sm:$0xf]  ;;  %v2362_v58 = vld [vmem:[%s3640_s20 + $0xa4] sm:$0xf] }
 0x1a4   : >> { %2359 = vst [vmem:[%s3636_s14 + $0x9c] sm:$0xf] %v2358_v56  ;;  %2361 = vst [vmem:[%s3636_s14 + $0xa0] sm:$0xf] %v2360_v57  ;;  %v2364_v59 = vld [vmem:[%s3640_s20 + $0xa8] sm:$0xf] }
 0x1a5   : >> { %2363 = vst [vmem:[%s3636_s14 + $0xa4] sm:$0xf] %v2362_v58  ;;  %v2366_v60 = vld [vmem:[%s3640_s20 + $0xac] sm:$0xf]  ;;  %v2368_v61 = vld [vmem:[%s3640_s20 + $0xb0] sm:$0xf] }
 0x1a6   : >> { %2365 = vst [vmem:[%s3636_s14 + $0xa8] sm:$0xf] %v2364_v59  ;;  %2367 = vst [vmem:[%s3636_s14 + $0xac] sm:$0xf] %v2366_v60  ;;  %v2370_v62 = vld [vmem:[%s3640_s20 + $0xb4] sm:$0xf] }
 0x1a7   : >> { %2369 = vst [vmem:[%s3636_s14 + $0xb0] sm:$0xf] %v2368_v61  ;;  %v2372_v63 = vld [vmem:[%s3640_s20 + $0xb8] sm:$0xf]  ;;  %v2374_v0 = vld [vmem:[%s3640_s20 + $0xbc] sm:$0xf] }
 0x1a8   : >> { %2371 = vst [vmem:[%s3636_s14 + $0xb4] sm:$0xf] %v2370_v62  ;;  %2373 = vst [vmem:[%s3636_s14 + $0xb8] sm:$0xf] %v2372_v63  ;;  %v2376_v1 = vld [vmem:[%s3640_s20 + $0xc0] sm:$0xf] }
 0x1a9   : >> { %2375 = vst [vmem:[%s3636_s14 + $0xbc] sm:$0xf] %v2374_v0  ;;  %v2378_v2 = vld [vmem:[%s3640_s20 + $0xc4] sm:$0xf]  ;;  %v2380_v3 = vld [vmem:[%s3640_s20 + $0xc8] sm:$0xf] }
 0x1aa   : >> { %2377 = vst [vmem:[%s3636_s14 + $0xc0] sm:$0xf] %v2376_v1  ;;  %2379 = vst [vmem:[%s3636_s14 + $0xc4] sm:$0xf] %v2378_v2  ;;  %v2382_v4 = vld [vmem:[%s3640_s20 + $0xcc] sm:$0xf] }
 0x1ab   : >> { %2381 = vst [vmem:[%s3636_s14 + $0xc8] sm:$0xf] %v2380_v3  ;;  %v2384_v5 = vld [vmem:[%s3640_s20 + $0xd0] sm:$0xf]  ;;  %v2386_v6 = vld [vmem:[%s3640_s20 + $0xd4] sm:$0xf] }
 0x1ac   : >> { %2383 = vst [vmem:[%s3636_s14 + $0xcc] sm:$0xf] %v2382_v4  ;;  %2385 = vst [vmem:[%s3636_s14 + $0xd0] sm:$0xf] %v2384_v5  ;;  %v2388_v7 = vld [vmem:[%s3640_s20 + $0xd8] sm:$0xf] }
 0x1ad   : >> { %2387 = vst [vmem:[%s3636_s14 + $0xd4] sm:$0xf] %v2386_v6  ;;  %v2390_v8 = vld [vmem:[%s3640_s20 + $0xdc] sm:$0xf]  ;;  %v2392_v10 = vld [vmem:[%s3640_s20 + $0xe0] sm:$0xf] }
 0x1ae   : >> { %2389 = vst [vmem:[%s3636_s14 + $0xd8] sm:$0xf] %v2388_v7  ;;  %2391 = vst [vmem:[%s3636_s14 + $0xdc] sm:$0xf] %v2390_v8  ;;  %v2394_v11 = vld [vmem:[%s3640_s20 + $0xe4] sm:$0xf] }
 0x1af   : >> { %2393 = vst [vmem:[%s3636_s14 + $0xe0] sm:$0xf] %v2392_v10  ;;  %v2396_v12 = vld [vmem:[%s3640_s20 + $0xe8] sm:$0xf]  ;;  %v2398_v13 = vld [vmem:[%s3640_s20 + $0xec] sm:$0xf] }
 0x1b0   : >> { %2395 = vst [vmem:[%s3636_s14 + $0xe4] sm:$0xf] %v2394_v11  ;;  %2397 = vst [vmem:[%s3636_s14 + $0xe8] sm:$0xf] %v2396_v12  ;;  %v2400_v14 = vld [vmem:[%s3640_s20 + $0xf0] sm:$0xf] }
 0x1b1   : >> { %2399 = vst [vmem:[%s3636_s14 + $0xec] sm:$0xf] %v2398_v13  ;;  %v2402_v15 = vld [vmem:[%s3640_s20 + $0xf4] sm:$0xf]  ;;  %v2404_v49 = vld [vmem:[%s3640_s20 + $0xf8] sm:$0xf] }
 0x1b2   : >> { %2401 = vst [vmem:[%s3636_s14 + $0xf0] sm:$0xf] %v2400_v14  ;;  %2403 = vst [vmem:[%s3636_s14 + $0xf4] sm:$0xf] %v2402_v15  ;;  %v2406_v16 = vld [vmem:[%s3640_s20 + $0xfc] sm:$0xf] }
 0x1b3   : >> { %2405 = vst [vmem:[%s3636_s14 + $0xf8] sm:$0xf] %v2404_v49  ;;  %2407 = vst [vmem:[%s3636_s14 + $0xfc] sm:$0xf] %v2406_v16  ;;  %s4501_s8 = smov (%p2409_p12, %s2408_s8), 0  ;;  %s2274_s7 = sadd.s32 1, %s3648_s7  }
 0x1b4   : >> { %s3029_s9 = sshll.u32 %s4501_s8, 8  ;;  %p2273_p13 = scmp.ge.s32.totalorder %s2274_s7, %s4293_s6 }
 0x1b5   : >> { %s2413_s20 = scalar_lea.vmem %s3897_s12, %s3029_s9 [#allocation2]   ;;  %s2414_s14 = scalar_lea.vmem %s4287_s4, %s3029_s9  }
 0x1b6   : >> { %s4491_s29 = smov %s4501_s8  ;;  %2276 = sbr.rel (!%p2273_p13) target bundleno = 393 (0x189), region = 124 }
 0x1bd PF: > { %s4461_s10 = sand.u32 63, %s4499_s26   ;;  %s3168_s11 = sshll.u32 %s4293_s6, 8 }
 0x1be   : > { %s2419_s17 = scalar_lea.vmem %s3897_s12, %s3168_s11 [#allocation2]   ;;  %s2421_s19 = scalar_lea.vmem %s4287_s4, %s3168_s11  }
 0x1bf   : > { %p3034_p0 = scmp.le.s32.totalorder %s4461_s10, 0 }
 0x1c0   : > { %s3650_s21 = smov (!%p3034_p0), %s2421_s19   ;;  %s3654_s23 = smov (!%p3034_p0), %s2419_s17  }
 0x1c1   : > { %2694 = sbr.rel (%p3034_p0) target bundleno = 466 (0x1d2), region = 129  ;;  %s3658_s24 = smov (!%p3034_p0), 0  }
 0x1c2   : > { %s3662_s25 = smov (!%p3034_p0), 0  }
 0x1c8 LB: >> { %v2431_v17 = vld [vmem:[%s3656_s23] sm:$0xf]  ;;  %s2433_s26 = sadd.s32 1, %s3660_s24  ;;  %s2425_s25 = sadd.s32 1, %s3664_s25   ;;  %s3664_s25 = sphi %s3662_s25, %s2425_s25   ;;  %s3660_s24 = sphi %s3658_s24, %s3659_s24   ;;  %s3656_s23 = sphi %s3654_s23, %s2438_s23   ;;  %s3652_s21 = sphi %s3650_s21, %s2439_s21  }
 0x1c9   : >> { %2432 = vst [vmem:[%s3652_s21] sm:$0xf] %v2431_v17  ;;  %p2434_p1 = scmp.ge.s32.totalorder %s2433_s26, %s4461_s10  ;;  %p2424_p2 = scmp.ge.s32.totalorder %s2425_s25, %s4461_s10 }
 0x1cb   : >> { %s4503_s26 = smov (%p2434_p1, %s2433_s26), 0  ;;  %2427 = sbr.rel (!%p2424_p2) target bundleno = 456 (0x1c8), region = 135 }
 0x1cc   : >> { %s3035_s12 = sshll.u32 %s4503_s26, 2  ;;  %s3659_s24 = smov %s4503_s26  }
 0x1cd   : >> { %s2438_s23 = scalar_lea.vmem %s2419_s17, %s3035_s12 [#allocation2]   ;;  %s2439_s21 = scalar_lea.vmem %s2421_s19, %s3035_s12  }
 0x1d2 PF: > { %s13_s16 = sadd.s32 1, %s3632_s16   ;;  %s4492_s12 = smov %s3620_s13 }
 0x1d3   : > { %p10_p3 = scmp.ge.s32.totalorder %s13_s16, 7   ;;  %s4493_s13 = smov %s3728_s22 }
 0x1d4   : > { %s4494_s14 = smov %s3628_s15  ;;  %s4495_s15 = smov %s4497_s18 }
 0x1d5   :  { %12 = sbr.rel (!%p10_p3) target bundleno = 3 (0x3), region = 146 }

// kernel: pilotnet_forward.8
= control target key start
LH: loop header
LB: loop body
LE: loop exit
PB: predicated region body
PF: predicated region fallthrough
CT: control target
= control target key end

     0   :  { %v5827_v0 = vmov 0   ;;  %vm2216_vm0 = vcmask 1043456   ;;  %vm2047_vm1 = vcmask 719872   ;;  %vm4216_vm2 = vcmask 289792   ;;  %s8020_s1 = inlined_call_operand.vmem [shape: bf16[600,36], index: 1, kind: input, shape index: {}]   ;;  %s8021_s0 = inlined_call_operand.vmem [shape: bf16[882,600], index: 0, kind: input, shape index: {}]   ;;  %s8022_s2 = inlined_call_operand.vmem [shape: f32[1,36], index: 2, kind: input, shape index: {}]   ;;  %s8023_s3 = inlined_call_operand.vmem [shape: bf16[882,36], index: 3, kind: output, shape index: {}]  }
   0x1   :  { %2220 = vmatprep.subr.bf16.mxu0 %v5827_v0  ;;  %5115 = vmatprep.subr.bf16.mxu1 %v5827_v0  ;;  %v5397_v1 = vld [vmem:[%s8020_s1] sm:$0xff]   ;;  %v5398_v2 = vld [vmem:[%s8020_s1 + $0x8] sm:$0xff]   ;;  %v5399_v3 = vld [vmem:[%s8020_s1 + $0x10] sm:$0xff]  }
   0x2   :  { %2221 = vmatpush1.bf16.msra.mxu0 %v5397_v1  ;;  %5131 = vmatpush1.bf16.msra.mxu1 %v5397_v1  ;;  %v5400_v4 = vld [vmem:[%s8020_s1 + $0x18] sm:$0xff]   ;;  %v5401_v5 = vld [vmem:[%s8020_s1 + $0x20] sm:$0xff]   ;;  %v5402_v7 = vld [vmem:[%s8020_s1 + $0x28] sm:$0xff]  }
   0x3   :  { %2222 = vmatprep.subr.bf16.mxu0 %v5827_v0  ;;  %5116 = vmatprep.subr.bf16.mxu1 %v5827_v0  ;;  %v5415_v6 = vld [vmem:[%s8021_s0 + $0x4] ss:$20 sps:$4 sm:$0xff]   ;;  %v5418_v8 = vld [vmem:[%s8021_s0 + $0x234] ss:$20 sps:$4 sm:$0xff]   ;;  %v5421_v23 = vld [vmem:[%s8021_s0 + $0x2c] ss:$20 sps:$4 sm:$0xff]  }
   0x4   :  { %2252 = vmatprep.mubr.bf16.mxu0 %v5415_v6  ;;  %2364 = vmatprep.mubr.bf16.mxu1 %v5418_v8  ;;  %v5403_v9 = vld [vmem:[%s8020_s1 + $0x30] sm:$0xff]   ;;  %v5404_v10 = vld [vmem:[%s8020_s1 + $0x38] sm:$0xff]   ;;  %v5405_v11 = vld [vmem:[%s8020_s1 + $0x40] sm:$0xff]  }
   0x5   :  { %v5406_v12 = vld [vmem:[%s8020_s1 + $0x48] sm:$0xff]   ;;  %v5407_v13 = vld [vmem:[%s8020_s1 + $0x50] sm:$0xff]   ;;  %v5408_v14 = vld [vmem:[%s8020_s1 + $0x58] sm:$0xff]  }
   0x6   :  { %2223 = vmatpush1.bf16.msra.mxu0 %v5398_v2  ;;  %5132 = vmatpush1.bf16.msra.mxu1 %v5398_v2  ;;  %v5409_v15 = vld [vmem:[%s8020_s1 + $0x60] sm:$0xff]   ;;  %v5410_v16 = vld [vmem:[%s8020_s1 + $0x68] sm:$0xff]   ;;  %v5411_v17 = vld [vmem:[%s8020_s1 + $0x70] sm:$0xff]  }
   0x7   :  { %2224 = vmatprep.subr.bf16.mxu0 %v5827_v0  ;;  %5117 = vmatprep.subr.bf16.mxu1 %v5827_v0  ;;  %v5412_v18 = vld [vmem:[%s8020_s1 + $0x78] sm:$0xff]   ;;  %v5419_v19 = vld [vmem:[%s8020_s1 + $0x100] sm:$0xff]   ;;  %v5470_v25 = vld [vmem:[%s8020_s1 + $0x108] sm:$0xff]  }
   0x8   :  { %v5413_v20 = vld [vmem:[%s8021_s0] ss:$20 sps:$4 sm:$0xff]   ;;  %v5416_v21 = vld [vmem:[%s8021_s0 + $0x230] ss:$20 sps:$4 sm:$0xff]   ;;  %v5427_v26 = vld [vmem:[%s8020_s1 + $0x88] sm:$0xff]  }
   0x9   :  { %v5420_v22 = vld [vmem:[%s8020_s1 + $0x80] sm:$0xff]   ;;  %v5423_v24 = vld [vmem:[%s8021_s0 + $0x25c] ss:$20 sps:$4 sm:$0xff]   ;;  %v5426_v28 = vld [vmem:[%s8021_s0 + $0x258] ss:$20 sps:$4 sm:$0xff]  }
   0xa   :  { %2225 = vmatpush1.bf16.msra.mxu0 %v5399_v3  ;;  %5133 = vmatpush1.bf16.msra.mxu1 %v5399_v3  ;;  %v5425_v27 = vld [vmem:[%s8021_s0 + $0x28] ss:$20 sps:$4 sm:$0xff]   ;;  %v5430_v30 = vld [vmem:[%s8021_s0 + $0x284] ss:$20 sps:$4 sm:$0xff]   ;;  %v5434_v31 = vld [vmem:[%s8020_s1 + $0x90] sm:$0xff]  }
   0xb   :  { %2226 = vmatprep.subr.bf16.mxu0 %v5827_v0  ;;  %5118 = vmatprep.subr.bf16.mxu1 %v5827_v0  ;;  %v5428_v29 = vld [vmem:[%s8021_s0 + $0x54] ss:$20 sps:$4 sm:$0xff]   ;;  %v5439_v33 = vld [vmem:[%s8020_s1 + $0x98] sm:$0xff]   ;;  %v5432_v34 = vld [vmem:[%s8021_s0 + $0x50] ss:$20 sps:$4 sm:$0xff]  }
   0xc   :  { %v5521_v32 = vld [vmem:[%s8020_s1 + $0x110] sm:$0xff]   ;;  %v5437_v37 = vld [vmem:[%s8021_s0 + $0x2ac] ss:$20 sps:$4 sm:$0xff]   ;;  %v5441_v41 = vld [vmem:[%s8021_s0 + $0x2a8] ss:$20 sps:$4 sm:$0xff]  }
   0xd   :  { %v5433_v35 = vld [vmem:[%s8021_s0 + $0x280] ss:$20 sps:$4 sm:$0xff]   ;;  %v5435_v36 = vld [vmem:[%s8021_s0 + $0x7c] ss:$20 sps:$4 sm:$0xff]   ;;  %v5449_v39 = vld [vmem:[%s8020_s1 + $0xa8] sm:$0xff]  }
   0xe   :  { %2227 = vmatpush1.bf16.msra.mxu0 %v5400_v4  ;;  %5134 = vmatpush1.bf16.msra.mxu1 %v5400_v4  ;;  %v5442_v38 = vld [vmem:[%s8020_s1 + $0xa0] sm:$0xff]   ;;  %v5440_v40 = vld [vmem:[%s8021_s0 + $0x78] ss:$20 sps:$4 sm:$0xff]   ;;  %v5445_v43 = vld [vmem:[%s8021_s0 + $0x2d4] ss:$20 sps:$4 sm:$0xff]  }
   0xf   :  { %2228 = vmatprep.subr.bf16.mxu0 %v5827_v0  ;;  %5119 = vmatprep.subr.bf16.mxu1 %v5827_v0  ;;  %v5443_v42 = vld [vmem:[%s8021_s0 + $0xa4] ss:$20 sps:$4 sm:$0xff]   ;;  %v5456_v44 = vld [vmem:[%s8020_s1 + $0xb0] sm:$0xff]   ;;  %v5450_v48 = vld [vmem:[%s8021_s0 + $0xcc] ss:$20 sps:$4 sm:$0xff]  }
  0x10   :  { %v5463_v45 = vld [vmem:[%s8020_s1 + $0xb8] sm:$0xff]   ;;  %v5447_v46 = vld [vmem:[%s8021_s0 + $0xa0] ss:$20 sps:$4 sm:$0xff]   ;;  %v5448_v47 = vld [vmem:[%s8021_s0 + $0x2d0] ss:$20 sps:$4 sm:$0xff]  }
  0x11   :  { %v5452_v49 = vld [vmem:[%s8021_s0 + $0x2fc] ss:$20 sps:$4 sm:$0xff]   ;;  %v5471_v50 = vld [vmem:[%s8020_s1 + $0xc0] sm:$0xff]   ;;  %v5478_v51 = vld [vmem:[%s8020_s1 + $0xc8] sm:$0xff]  }
  0x12   :  { %2229 = vmatpush1.bf16.msra.mxu0 %v5401_v5  ;;  %5135 = vmatpush1.bf16.msra.mxu1 %v5401_v5  ;;  %v5454_v52 = vld [vmem:[%s8021_s0 + $0xc8] ss:$20 sps:$4 sm:$0xff]   ;;  %v5455_v53 = vld [vmem:[%s8021_s0 + $0x2f8] ss:$20 sps:$4 sm:$0xff]   ;;  %v5485_v56 = vld [vmem:[%s8020_s1 + $0xd0] sm:$0xff]  }
  0x13   :  { %2230 = vmatprep.subr.bf16.mxu0 %v5827_v0  ;;  %5120 = vmatprep.subr.bf16.mxu1 %v5827_v0  ;;  %v5457_v54 = vld [vmem:[%s8021_s0 + $0xf4] ss:$20 sps:$4 sm:$0xff]   ;;  %v5459_v55 = vld [vmem:[%s8021_s0 + $0x324] ss:$20 sps:$4 sm:$0xff]   ;;  %v5464_v61 = vld [vmem:[%s8021_s0 + $0x11c] ss:$20 sps:$4 sm:$0xff]  }
  0x14   :  { %v5564_v57 = vld [vmem:[%s8020_s1 + $0x118] sm:$0xff]   ;;  %v5461_v59 = vld [vmem:[%s8021_s0 + $0xf0] ss:$20 sps:$4 sm:$0xff]   ;;  %v5462_v60 = vld [vmem:[%s8021_s0 + $0x320] ss:$20 sps:$4 sm:$0xff]  }
  0x15   :  { %v5490_v58 = vld [vmem:[%s8020_s1 + $0xd8] sm:$0xff]   ;;  %v5466_v62 = vld [vmem:[%s8021_s0 + $0x34c] ss:$20 sps:$4 sm:$0xff]   ;;  %v5474_v5 = vld [vmem:[%s8021_s0 + $0x374] ss:$20 sps:$4 sm:$0xff]  }
  0x16   :  { %2231 = vmatpush1.bf16.msra.mxu0 %v5402_v7  ;;  %5136 = vmatpush1.bf16.msra.mxu1 %v5402_v7  ;;  %v5493_v63 = vld [vmem:[%s8020_s1 + $0xe0] sm:$0xff]   ;;  %v5500_v1 = vld [vmem:[%s8020_s1 + $0xe8] sm:$0xff]   ;;  %v5507_v6 = vld [vmem:[%s8020_s1 + $0xf0] sm:$0xff]  }
  0x17   :  { %2232 = vmatprep.subr.bf16.mxu0 %v5827_v0  ;;  %5121 = vmatprep.subr.bf16.mxu1 %v5827_v0  ;;  %v5468_v2 = vld [vmem:[%s8021_s0 + $0x118] ss:$20 sps:$4 sm:$0xff]   ;;  %v5469_v3 = vld [vmem:[%s8021_s0 + $0x348] ss:$20 sps:$4 sm:$0xff]   ;;  %v5476_v8 = vld [vmem:[%s8021_s0 + $0x140] ss:$20 sps:$4 sm:$0xff]  }
  0x18   :  { %v5472_v4 = vld [vmem:[%s8021_s0 + $0x144] ss:$20 sps:$4 sm:$0xff]  }
  0x19   :  { %v5514_v7 = vld [vmem:[%s8020_s1 + $0xf8] sm:$0xff]  }
  0x1a   :  { %2233 = vmatpush1.bf16.msra.mxu0 %v5403_v9  ;;  %5137 = vmatpush1.bf16.msra.mxu1 %v5403_v9  ;;  %v5477_v9 = vld [vmem:[%s8021_s0 + $0x370] ss:$20 sps:$4 sm:$0xff]  }
  0x1b   :  { %2234 = vmatprep.subr.bf16.mxu0 %v5827_v0  ;;  %5122 = vmatprep.subr.bf16.mxu1 %v5827_v0 }
  0x1e   :  { %2235 = vmatpush1.bf16.msra.mxu0 %v5404_v10  ;;  %5138 = vmatpush1.bf16.msra.mxu1 %v5404_v10  ;;  %v5479_v10 = vld [vmem:[%s8021_s0 + $0x16c] ss:$20 sps:$4 sm:$0xff]  }
  0x1f   :  { %2236 = vmatprep.subr.bf16.mxu0 %v5827_v0  ;;  %5123 = vmatprep.subr.bf16.mxu1 %v5827_v0 }
  0x22   :  { %2237 = vmatpush1.bf16.msra.mxu0 %v5405_v11  ;;  %5139 = vmatpush1.bf16.msra.mxu1 %v5405_v11  ;;  %v5481_v11 = vld [vmem:[%s8021_s0 + $0x39c] ss:$20 sps:$4 sm:$0xff]  }
  0x23   :  { %2238 = vmatprep.subr.bf16.mxu0 %v5827_v0  ;;  %5124 = vmatprep.subr.bf16.mxu1 %v5827_v0 }
  0x26   :  { %2239 = vmatpush1.bf16.msra.mxu0 %v5406_v12  ;;  %5140 = vmatpush1.bf16.msra.mxu1 %v5406_v12  ;;  %v5483_v12 = vld [vmem:[%s8021_s0 + $0x168] ss:$20 sps:$4 sm:$0xff]  }
  0x27   :  { %2240 = vmatprep.subr.bf16.mxu0 %v5827_v0  ;;  %5125 = vmatprep.subr.bf16.mxu1 %v5827_v0 }
  0x2a   :  { %2241 = vmatpush1.bf16.msra.mxu0 %v5407_v13  ;;  %5141 = vmatpush1.bf16.msra.mxu1 %v5407_v13  ;;  %v5484_v13 = vld [vmem:[%s8021_s0 + $0x398] ss:$20 sps:$4 sm:$0xff]  }
  0x2b   :  { %2242 = vmatprep.subr.bf16.mxu0 %v5827_v0  ;;  %5126 = vmatprep.subr.bf16.mxu1 %v5827_v0 }
  0x2e   :  { %2243 = vmatpush1.bf16.msra.mxu0 %v5408_v14  ;;  %5142 = vmatpush1.bf16.msra.mxu1 %v5408_v14  ;;  %v5486_v14 = vld [vmem:[%s8021_s0 + $0x194] ss:$20 sps:$4 sm:$0xff]  }
  0x2f   :  { %2244 = vmatprep.subr.bf16.mxu0 %v5827_v0  ;;  %5127 = vmatprep.subr.bf16.mxu1 %v5827_v0 }
  0x32   :  { %2245 = vmatpush1.bf16.msra.mxu0 %v5409_v15  ;;  %5143 = vmatpush1.bf16.msra.mxu1 %v5409_v15  ;;  %v5491_v15 = vld [vmem:[%s8021_s0 + $0x190] ss:$20 sps:$4 sm:$0xff]  }
  0x33   :  { %2246 = vmatprep.subr.bf16.mxu0 %v5827_v0  ;;  %5128 = vmatprep.subr.bf16.mxu1 %v5827_v0 }
  0x36   :  { %2247 = vmatpush1.bf16.msra.mxu0 %v5410_v16  ;;  %5144 = vmatpush1.bf16.msra.mxu1 %v5410_v16  ;;  %v5492_v16 = vld [vmem:[%s8021_s0 + $0x3c0] ss:$20 sps:$4 sm:$0xff]  }
  0x37   :  { %2248 = vmatprep.subr.bf16.mxu0 %v5827_v0  ;;  %5129 = vmatprep.subr.bf16.mxu1 %v5827_v0 }
  0x3a   :  { %2249 = vmatpush1.bf16.msra.mxu0 %v5411_v17  ;;  %5145 = vmatpush1.bf16.msra.mxu1 %v5411_v17  ;;  %v5494_v17 = vld [vmem:[%s8021_s0 + $0x1bc] ss:$20 sps:$4 sm:$0xff]  }
  0x3b   :  { %2250 = vmatprep.subr.bf16.mxu0 %v5827_v0  ;;  %5130 = vmatprep.subr.bf16.mxu1 %v5827_v0 }
  0x3e   :  { %2251 = vmatpush1.bf16.msra.mxu0 %v5412_v18  ;;  %5146 = vmatpush1.bf16.msra.mxu1 %v5412_v18  ;;  %v5496_v18 = vld [vmem:[%s8021_s0 + $0x3ec] ss:$20 sps:$4 sm:$0xff]  }
  0x3f   :  { %4991 = vmatprep.subr.bf16.mxu1 %v5419_v19  ;;  %2700 = vmatprep.subr.bf16.mxu0 %v5827_v0 }
  0x41   :  { %2253 = vmatmul.mubr.bf16.vlgmr.msra.gmra.mrb[0].mxu0 %v5413_v20  ;;  %2365 = vmatmul.mubr.bf16.vlgmr.msra.gmra.mrb[0].mxu1 %v5416_v21  ;;  %v5499_v20 = vld [vmem:[%s8021_s0 + $0x3e8] ss:$20 sps:$4 sm:$0xff]   ;;  %v5501_v21 = vld [vmem:[%s8021_s0 + $0x1e4] ss:$20 sps:$4 sm:$0xff]  }
  0x42   :  { %4992 = vmatpush3.bf16.msra.mxu1 %v5419_v19  ;;  %2701 = vmatpush1.bf16.msra.mxu0 %v5420_v22  ;;  %v5498_v19 = vld [vmem:[%s8021_s0 + $0x1b8] ss:$20 sps:$4 sm:$0xff]   ;;  %v5503_v22 = vld [vmem:[%s8021_s0 + $0x414] ss:$20 sps:$4 sm:$0xff]  }
  0x43   :  { %2260 = vmatprep.mubr.bf16.mxu0 %v5421_v23  ;;  %2372 = vmatprep.mubr.bf16.mxu1 %v5423_v24  ;;  %v5505_v23 = vld [vmem:[%s8021_s0 + $0x1e0] ss:$20 sps:$4 sm:$0xff]   ;;  %v5506_v24 = vld [vmem:[%s8021_s0 + $0x410] ss:$20 sps:$4 sm:$0xff]  }
  0x44   :  { %2702 = vmatprep.subr.bf16.mxu0 %v5827_v0  ;;  %4993 = vmatprep.subr.bf16.mxu1 %v5470_v25 }
  0x46   :  { %2703 = vmatpush1.bf16.msra.mxu0 %v5427_v26  ;;  %4994 = vmatpush3.bf16.msra.mxu1 %v5470_v25  ;;  %v5508_v25 = vld [vmem:[%s8021_s0 + $0x20c] ss:$20 sps:$4 sm:$0xff]   ;;  %v5510_v26 = vld [vmem:[%s8021_s0 + $0x43c] ss:$20 sps:$4 sm:$0xff]  }
  0x47   :  { %2704 = vmatprep.subr.bf16.mxu0 %v5827_v0  ;;  %4995 = vmatprep.subr.bf16.mxu1 %v5521_v32 }
  0x49   :  { %2261 = vmatmul.mubr.bf16.gmra.mrb[4].mxu0 %v5425_v27  ;;  %2373 = vmatmul.mubr.bf16.gmra.mrb[4].mxu1 %v5426_v28  ;;  %v5607_v27 = vld [vmem:[%s8020_s1 + $0x120] sm:$0xff]   ;;  %v5512_v28 = vld [vmem:[%s8021_s0 + $0x208] ss:$20 sps:$4 sm:$0xff]  }
  0x4a   :  { %2268 = vmatprep.mubr.bf16.mxu0 %v5428_v29  ;;  %2380 = vmatprep.mubr.bf16.mxu1 %v5430_v30  ;;  %v5513_v29 = vld [vmem:[%s8021_s0 + $0x438] ss:$20 sps:$4 sm:$0xff]  }
  0x4b   :  { %2705 = vmatpush1.bf16.msra.mxu0 %v5434_v31  ;;  %4996 = vmatpush3.bf16.msra.mxu1 %v5521_v32  ;;  %v5515_v30 = vld [vmem:[%s8021_s0 + $0x464] ss:$20 sps:$4 sm:$0xff]   ;;  %v5519_v31 = vld [vmem:[%s8021_s0 + $0xc] ss:$20 sps:$4 sm:$0xff]   ;;  %v5517_v32 = vld [vmem:[%s8021_s0 + $0x8] ss:$20 sps:$4 sm:$0xff]  }
  0x4c   :  { %2706 = vmatprep.subr.bf16.mxu0 %v5827_v0  ;;  %4997 = vmatprep.subr.bf16.mxu1 %v5564_v57 }
  0x4f   :  { %2707 = vmatpush1.bf16.msra.mxu0 %v5439_v33  ;;  %4998 = vmatpush3.bf16.msra.mxu1 %v5564_v57  ;;  %v5520_v33 = vld [vmem:[%s8021_s0 + $0x460] ss:$20 sps:$4 sm:$0xff]  }
  0x50   :  { %2708 = vmatprep.subr.bf16.mxu0 %v5827_v0  ;;  %4999 = vmatprep.subr.bf16.mxu1 %v5607_v27 }
  0x51   :  { %2269 = vmatmul.mubr.bf16.gmra.mrb[8].mxu0 %v5432_v34  ;;  %2381 = vmatmul.mubr.bf16.gmra.mrb[8].mxu1 %v5433_v35  ;;  %v5522_v34 = vld [vmem:[%s8021_s0 + $0x48c] ss:$20 sps:$4 sm:$0xff]   ;;  %v5524_v35 = vld [vmem:[%s8021_s0 + $0x34] ss:$20 sps:$4 sm:$0xff]  }
  0x52   :  { %2276 = vmatprep.mubr.bf16.mxu0 %v5435_v36  ;;  %2388 = vmatprep.mubr.bf16.mxu1 %v5437_v37  ;;  %v5526_v36 = vld [vmem:[%s8021_s0 + $0x488] ss:$20 sps:$4 sm:$0xff]   ;;  %v5527_v37 = vld [vmem:[%s8021_s0 + $0x30] ss:$20 sps:$4 sm:$0xff]  }
  0x53   :  { %2709 = vmatpush1.bf16.msra.mxu0 %v5442_v38  ;;  %5000 = vmatpush3.bf16.msra.mxu1 %v5607_v27  ;;  %v5528_v38 = vld [vmem:[%s8021_s0 + $0x4b4] ss:$20 sps:$4 sm:$0xff]  }
  0x54   :  { %2710 = vmatprep.subr.bf16.mxu0 %v5827_v0  ;;  %v5601_v27 = vld [vmem:[%s8021_s0 + $0x694] ss:$20 sps:$4 sm:$0xff]  }
  0x57   :  { %2711 = vmatpush1.bf16.msra.mxu0 %v5449_v39  ;;  %v5530_v39 = vld [vmem:[%s8021_s0 + $0x5c] ss:$20 sps:$4 sm:$0xff]  }
  0x58   :  { %2712 = vmatprep.subr.bf16.mxu0 %v5827_v0 }
  0x59   :  { %2277 = vmatmul.mubr.bf16.gmra.mrb[12].mxu0 %v5440_v40  ;;  %2389 = vmatmul.mubr.bf16.gmra.mrb[12].mxu1 %v5441_v41  ;;  %v5532_v40 = vld [vmem:[%s8021_s0 + $0x4b0] ss:$20 sps:$4 sm:$0xff]   ;;  %v5533_v41 = vld [vmem:[%s8021_s0 + $0x58] ss:$20 sps:$4 sm:$0xff]  }
  0x5a   :  { %2284 = vmatprep.mubr.bf16.mxu0 %v5443_v42  ;;  %2396 = vmatprep.mubr.bf16.mxu1 %v5445_v43  ;;  %v5534_v42 = vld [vmem:[%s8021_s0 + $0x4dc] ss:$20 sps:$4 sm:$0xff]   ;;  %v5536_v43 = vld [vmem:[%s8021_s0 + $0x84] ss:$20 sps:$4 sm:$0xff]  }
  0x5b   :  { %2713 = vmatpush1.bf16.msra.mxu0 %v5456_v44  ;;  %v5538_v44 = vld [vmem:[%s8021_s0 + $0x4d8] ss:$20 sps:$4 sm:$0xff]  }
  0x5c   :  { %2714 = vmatprep.subr.bf16.mxu0 %v5827_v0 }
  0x5f   :  { %2715 = vmatpush1.bf16.msra.mxu0 %v5463_v45  ;;  %v5539_v45 = vld [vmem:[%s8021_s0 + $0x80] ss:$20 sps:$4 sm:$0xff]  }
  0x60   :  { %2716 = vmatprep.subr.bf16.mxu0 %v5827_v0 }
  0x61   :  { %2285 = vmatmul.mubr.bf16.gmra.mrb[16].mxu0 %v5447_v46  ;;  %2397 = vmatmul.mubr.bf16.gmra.mrb[16].mxu1 %v5448_v47  ;;  %v5540_v46 = vld [vmem:[%s8021_s0 + $0x504] ss:$20 sps:$4 sm:$0xff]   ;;  %v5542_v47 = vld [vmem:[%s8021_s0 + $0xac] ss:$20 sps:$4 sm:$0xff]  }
  0x62   :  { %2292 = vmatprep.mubr.bf16.mxu0 %v5450_v48  ;;  %2404 = vmatprep.mubr.bf16.mxu1 %v5452_v49  ;;  %v5544_v48 = vld [vmem:[%s8021_s0 + $0x500] ss:$20 sps:$4 sm:$0xff]   ;;  %v5545_v49 = vld [vmem:[%s8021_s0 + $0xa8] ss:$20 sps:$4 sm:$0xff]  }
  0x63   :  { %2717 = vmatpush1.bf16.msra.mxu0 %v5471_v50  ;;  %v5546_v50 = vld [vmem:[%s8021_s0 + $0x52c] ss:$20 sps:$4 sm:$0xff]  }
  0x64   :  { %2718 = vmatprep.subr.bf16.mxu0 %v5827_v0 }
  0x67   :  { %2719 = vmatpush1.bf16.msra.mxu0 %v5478_v51  ;;  %v5548_v51 = vld [vmem:[%s8021_s0 + $0xd4] ss:$20 sps:$4 sm:$0xff]  }
  0x68   :  { %2720 = vmatprep.subr.bf16.mxu0 %v5827_v0 }
  0x69   :  { %2293 = vmatmul.mubr.bf16.gmra.mrb[20].mxu0 %v5454_v52  ;;  %2405 = vmatmul.mubr.bf16.gmra.mrb[20].mxu1 %v5455_v53  ;;  %v5550_v52 = vld [vmem:[%s8021_s0 + $0x528] ss:$20 sps:$4 sm:$0xff]   ;;  %v5551_v53 = vld [vmem:[%s8021_s0 + $0xd0] ss:$20 sps:$4 sm:$0xff]  }
  0x6a   :  { %2300 = vmatprep.mubr.bf16.mxu0 %v5457_v54  ;;  %2412 = vmatprep.mubr.bf16.mxu1 %v5459_v55  ;;  %v5552_v54 = vld [vmem:[%s8021_s0 + $0x554] ss:$20 sps:$4 sm:$0xff]   ;;  %v5554_v55 = vld [vmem:[%s8021_s0 + $0xfc] ss:$20 sps:$4 sm:$0xff]  }
  0x6b   :  { %2721 = vmatpush1.bf16.msra.mxu0 %v5485_v56  ;;  %v5650_v56 = vld [vmem:[%s8020_s1 + $0x128] ss:$0 sps:$4 sm:$0xff]  }
  0x6c   :  { %2722 = vmatprep.subr.bf16.mxu0 %v5827_v0  ;;  %5395 = vmatprep.subr.msk.bf16.mxu1 %vm2216_vm0, %v5650_v56  ;;  %v2218_v57 = vsel %vm2216_vm0, %v5650_v56, 0  ;;  %v5624_v56 = vld [vmem:[%s8021_s0 + $0x708] ss:$20 sps:$4 sm:$0xff]  }
  0x6d   :  { %5002 = vmatpush3.bf16.msra.mxu1 %v2218_v57  ;;  %v5625_v57 = vld [vmem:[%s8021_s0 + $0x2b0] ss:$20 sps:$4 sm:$0xff]  }
  0x6f   :  { %2723 = vmatpush1.bf16.msra.mxu0 %v5490_v58  ;;  %v5556_v58 = vld [vmem:[%s8021_s0 + $0x550] ss:$20 sps:$4 sm:$0xff]  }
  0x70   :  { %2724 = vmatprep.subr.bf16.mxu0 %v5827_v0 }
  0x71   :  { %2301 = vmatmul.mubr.bf16.gmra.mrb[24].mxu0 %v5461_v59  ;;  %2413 = vmatmul.mubr.bf16.gmra.mrb[24].mxu1 %v5462_v60  ;;  %v5557_v59 = vld [vmem:[%s8021_s0 + $0xf8] ss:$20 sps:$4 sm:$0xff]   ;;  %v5558_v60 = vld [vmem:[%s8021_s0 + $0x57c] ss:$20 sps:$4 sm:$0xff]  }
  0x72   :  { %2308 = vmatprep.mubr.bf16.mxu0 %v5464_v61  ;;  %2420 = vmatprep.mubr.bf16.mxu1 %v5466_v62  ;;  %v5560_v61 = vld [vmem:[%s8021_s0 + $0x124] ss:$20 sps:$4 sm:$0xff]  }
  0x73   :  { %2725 = vmatpush1.bf16.msra.mxu0 %v5493_v63  ;;  %v5562_v62 = vld [vmem:[%s8021_s0 + $0x578] ss:$20 sps:$4 sm:$0xff]   ;;  %v5563_v63 = vld [vmem:[%s8021_s0 + $0x120] ss:$20 sps:$4 sm:$0xff]  }
  0x74   :  { %2726 = vmatprep.subr.bf16.mxu0 %v5827_v0 }
  0x77   :  { %2727 = vmatpush1.bf16.msra.mxu0 %v5500_v1  ;;  %v5565_v1 = vld [vmem:[%s8021_s0 + $0x5a4] ss:$20 sps:$4 sm:$0xff]  }
  0x78   :  { %2728 = vmatprep.subr.bf16.mxu0 %v5827_v0 }
  0x79   :  { %2309 = vmatmul.mubr.bf16.gmra.mrb[28].mxu0 %v5468_v2  ;;  %2421 = vmatmul.mubr.bf16.gmra.mrb[28].mxu1 %v5469_v3  ;;  %v5567_v2 = vld [vmem:[%s8021_s0 + $0x14c] ss:$20 sps:$4 sm:$0xff]  }
  0x7a   :  { %2316 = vmatprep.mubr.bf16.mxu0 %v5472_v4  ;;  %2428 = vmatprep.mubr.bf16.mxu1 %v5474_v5  ;;  %v5569_v3 = vld [vmem:[%s8021_s0 + $0x5a0] ss:$20 sps:$4 sm:$0xff]   ;;  %v5570_v4 = vld [vmem:[%s8021_s0 + $0x148] ss:$20 sps:$4 sm:$0xff]  }
  0x7b   :  { %2729 = vmatpush1.bf16.msra.mxu0 %v5507_v6  ;;  %v5571_v5 = vld [vmem:[%s8021_s0 + $0x5cc] ss:$20 sps:$4 sm:$0xff]   ;;  %v5573_v6 = vld [vmem:[%s8021_s0 + $0x174] ss:$20 sps:$4 sm:$0xff]  }
  0x7c   :  { %2730 = vmatprep.subr.bf16.mxu0 %v5827_v0  ;;  %v5488_v0 = vld [vmem:[%s8021_s0 + $0x3c4] ss:$20 sps:$4 sm:$0xff]  }
  0x7f   :  { %2731 = vmatpush1.bf16.msra.mxu0 %v5514_v7  ;;  %v5575_v7 = vld [vmem:[%s8021_s0 + $0x5c8] ss:$20 sps:$4 sm:$0xff]  }
  0x81   :  { %2317 = vmatmul.mubr.bf16.gmra.mrb[32].mxu0 %v5476_v8  ;;  %2429 = vmatmul.mubr.bf16.gmra.mrb[32].mxu1 %v5477_v9  ;;  %v5576_v8 = vld [vmem:[%s8021_s0 + $0x170] ss:$20 sps:$4 sm:$0xff]   ;;  %v5577_v9 = vld [vmem:[%s8021_s0 + $0x5f4] ss:$20 sps:$4 sm:$0xff]  }
  0x82   :  { %2324 = vmatprep.mubr.bf16.mxu0 %v5479_v10  ;;  %2436 = vmatprep.mubr.bf16.mxu1 %v5481_v11  ;;  %v5579_v10 = vld [vmem:[%s8021_s0 + $0x19c] ss:$20 sps:$4 sm:$0xff]  }
  0x83   :  { %v5581_v11 = vld [vmem:[%s8021_s0 + $0x5f0] ss:$20 sps:$4 sm:$0xff]  }
  0x89   :  { %2325 = vmatmul.mubr.bf16.gmra.mrb[36].mxu0 %v5483_v12  ;;  %2437 = vmatmul.mubr.bf16.gmra.mrb[36].mxu1 %v5484_v13  ;;  %v5582_v12 = vld [vmem:[%s8021_s0 + $0x198] ss:$20 sps:$4 sm:$0xff]   ;;  %v5583_v13 = vld [vmem:[%s8021_s0 + $0x61c] ss:$20 sps:$4 sm:$0xff]  }
  0x8a   :  { %2332 = vmatprep.mubr.bf16.mxu0 %v5486_v14  ;;  %2444 = vmatprep.mubr.bf16.mxu1 %v5488_v0  ;;  %v5585_v14 = vld [vmem:[%s8021_s0 + $0x1c4] ss:$20 sps:$4 sm:$0xff]  }
  0x8b   :  { %v5587_v0 = vld [vmem:[%s8021_s0 + $0x618] ss:$20 sps:$4 sm:$0xff]  }
  0x91   :  { %2333 = vmatmul.mubr.bf16.gmra.mrb[40].mxu0 %v5491_v15  ;;  %2445 = vmatmul.mubr.bf16.gmra.mrb[40].mxu1 %v5492_v16  ;;  %v5588_v15 = vld [vmem:[%s8021_s0 + $0x1c0] ss:$20 sps:$4 sm:$0xff]   ;;  %v5589_v16 = vld [vmem:[%s8021_s0 + $0x644] ss:$20 sps:$4 sm:$0xff]  }
  0x92   :  { %2340 = vmatprep.mubr.bf16.mxu0 %v5494_v17  ;;  %2452 = vmatprep.mubr.bf16.mxu1 %v5496_v18  ;;  %v5591_v17 = vld [vmem:[%s8021_s0 + $0x1ec] ss:$20 sps:$4 sm:$0xff]  }
  0x93   :  { %v5593_v18 = vld [vmem:[%s8021_s0 + $0x640] ss:$20 sps:$4 sm:$0xff]  }
  0x99   :  { %2341 = vmatmul.mubr.bf16.gmra.mrb[44].mxu0 %v5498_v19  ;;  %2453 = vmatmul.mubr.bf16.gmra.mrb[44].mxu1 %v5499_v20  ;;  %v5594_v19 = vld [vmem:[%s8021_s0 + $0x1e8] ss:$20 sps:$4 sm:$0xff]   ;;  %v5595_v20 = vld [vmem:[%s8021_s0 + $0x66c] ss:$20 sps:$4 sm:$0xff]  }
  0x9a   :  { %2348 = vmatprep.mubr.bf16.mxu0 %v5501_v21  ;;  %2460 = vmatprep.mubr.bf16.mxu1 %v5503_v22  ;;  %v5597_v21 = vld [vmem:[%s8021_s0 + $0x214] ss:$20 sps:$4 sm:$0xff]  }
  0xa1   :  { %2349 = vmatmul.mubr.bf16.gmra.mrb[48].mxu0 %v5505_v23  ;;  %2461 = vmatmul.mubr.bf16.gmra.mrb[48].mxu1 %v5506_v24  ;;  %v5599_v24 = vld [vmem:[%s8021_s0 + $0x668] ss:$20 sps:$4 sm:$0xff]  }
  0xa2   :  { %2356 = vmatprep.mubr.bf16.mxu0 %v5508_v25  ;;  %2468 = vmatprep.mubr.bf16.mxu1 %v5510_v26  ;;  %v5600_v25 = vld [vmem:[%s8021_s0 + $0x210] ss:$20 sps:$4 sm:$0xff]  }
  0xa9   :  { %2357 = vmatmul.mubr.bf16.gmra.mrb[52].mxu0 %v5512_v28  ;;  %2469 = vmatmul.mubr.bf16.gmra.mrb[52].mxu1 %v5513_v29  ;;  %v5603_v28 = vld [vmem:[%s8021_s0 + $0x23c] ss:$20 sps:$4 sm:$0xff]  }
  0xaa   :  { %2476 = vmatprep.mubr.bf16.mxu1 %v5515_v30  ;;  %2732 = vmatprep.mubr.bf16.mxu0 %v5519_v31 }
  0xb1   :  { %2477 = vmatmul.mubr.bf16.gmra.mrb[56].mxu1 %v5520_v33  ;;  %2733 = vmatmul.mubr.bf16.vlgmr.msra.gmra.mrb[0].mxu0 %v5517_v32  ;;  %v5605_v32 = vld [vmem:[%s8021_s0 + $0x690] ss:$20 sps:$4 sm:$0xff]   ;;  %v5606_v33 = vld [vmem:[%s8021_s0 + $0x238] ss:$20 sps:$4 sm:$0xff]  }
  0xb2   :  { %2484 = vmatprep.mubr.bf16.mxu1 %v5522_v34  ;;  %2740 = vmatprep.mubr.bf16.mxu0 %v5524_v35  ;;  %v5608_v35 = vld [vmem:[%s8021_s0 + $0x6bc] ss:$20 sps:$4 sm:$0xff]  }
  0xb9   :  { %2485 = vmatmul.mubr.bf16.gmra.mrb[60].mxu1 %v5526_v36  ;;  %2741 = vmatmul.mubr.bf16.gmra.mrb[4].mxu0 %v5527_v37  ;;  %v5610_v36 = vld [vmem:[%s8021_s0 + $0x264] ss:$20 sps:$4 sm:$0xff]  }
  0xba   :  { %2492 = vmatprep.mubr.bf16.mxu1 %v5528_v38  ;;  %2748 = vmatprep.mubr.bf16.mxu0 %v5530_v39 }
  0xc1   :  { %2493 = vmatmul.mubr.bf16.gmra.mrb[64].mxu1 %v5532_v40  ;;  %2749 = vmatmul.mubr.bf16.gmra.mrb[8].mxu0 %v5533_v41  ;;  %v5612_v40 = vld [vmem:[%s8021_s0 + $0x6b8] ss:$20 sps:$4 sm:$0xff]   ;;  %v5613_v41 = vld [vmem:[%s8021_s0 + $0x260] ss:$20 sps:$4 sm:$0xff]  }
  0xc2   :  { %2500 = vmatprep.mubr.bf16.mxu1 %v5534_v42  ;;  %2756 = vmatprep.mubr.bf16.mxu0 %v5536_v43  ;;  %v5614_v43 = vld [vmem:[%s8021_s0 + $0x6e4] ss:$20 sps:$4 sm:$0xff]  }
  0xc9   :  { %2501 = vmatmul.mubr.bf16.gmra.mrb[68].mxu1 %v5538_v44  ;;  %2757 = vmatmul.mubr.bf16.gmra.mrb[12].mxu0 %v5539_v45  ;;  %v5616_v44 = vld [vmem:[%s8021_s0 + $0x28c] ss:$20 sps:$4 sm:$0xff]  }
  0xca   :  { %2508 = vmatprep.mubr.bf16.mxu1 %v5540_v46  ;;  %2764 = vmatprep.mubr.bf16.mxu0 %v5542_v47 }
  0xd1   :  { %2509 = vmatmul.mubr.bf16.gmra.mrb[72].mxu1 %v5544_v48  ;;  %2765 = vmatmul.mubr.bf16.gmra.mrb[16].mxu0 %v5545_v49  ;;  %v5618_v48 = vld [vmem:[%s8021_s0 + $0x6e0] ss:$20 sps:$4 sm:$0xff]   ;;  %v5619_v49 = vld [vmem:[%s8021_s0 + $0x288] ss:$20 sps:$4 sm:$0xff]  }
  0xd2   :  { %2516 = vmatprep.mubr.bf16.mxu1 %v5546_v50  ;;  %2772 = vmatprep.mubr.bf16.mxu0 %v5548_v51  ;;  %v5620_v51 = vld [vmem:[%s8021_s0 + $0x70c] ss:$20 sps:$4 sm:$0xff]  }
  0xd9   :  { %2517 = vmatmul.mubr.bf16.gmra.mrb[76].mxu1 %v5550_v52  ;;  %2773 = vmatmul.mubr.bf16.gmra.mrb[20].mxu0 %v5551_v53  ;;  %v5622_v52 = vld [vmem:[%s8021_s0 + $0x2b4] ss:$20 sps:$4 sm:$0xff]  }
  0xda   :  { %2524 = vmatprep.mubr.bf16.mxu1 %v5552_v54  ;;  %2780 = vmatprep.mubr.bf16.mxu0 %v5554_v55 }
  0xe1   :  { %2525 = vmatmul.mubr.bf16.gmra.mrb[80].mxu1 %v5556_v58  ;;  %2781 = vmatmul.mubr.bf16.gmra.mrb[24].mxu0 %v5557_v59  ;;  %v5626_v59 = vld [vmem:[%s8021_s0 + $0x734] ss:$20 sps:$4 sm:$0xff]  }
  0xe2   :  { %2532 = vmatprep.mubr.bf16.mxu1 %v5558_v60  ;;  %2788 = vmatprep.mubr.bf16.mxu0 %v5560_v61  ;;  %v5628_v60 = vld [vmem:[%s8021_s0 + $0x2dc] ss:$20 sps:$4 sm:$0xff]  }
  0xe9   :  { %2533 = vmatmul.mubr.bf16.gmra.mrb[84].mxu1 %v5562_v62  ;;  %2789 = vmatmul.mubr.bf16.gmra.mrb[28].mxu0 %v5563_v63 }
  0xea   :  { %2540 = vmatprep.mubr.bf16.mxu1 %v5565_v1  ;;  %2796 = vmatprep.mubr.bf16.mxu0 %v5567_v2  ;;  %v5630_v1 = vld [vmem:[%s8021_s0 + $0x730] ss:$20 sps:$4 sm:$0xff]   ;;  %v5631_v2 = vld [vmem:[%s8021_s0 + $0x2d8] ss:$20 sps:$4 sm:$0xff]  }
  0xf1   :  { %2541 = vmatmul.mubr.bf16.gmra.mrb[88].mxu1 %v5569_v3  ;;  %2797 = vmatmul.mubr.bf16.gmra.mrb[32].mxu0 %v5570_v4  ;;  %v5632_v4 = vld [vmem:[%s8021_s0 + $0x75c] ss:$20 sps:$4 sm:$0xff]  }
  0xf2   :  { %2548 = vmatprep.mubr.bf16.mxu1 %v5571_v5  ;;  %2804 = vmatprep.mubr.bf16.mxu0 %v5573_v6  ;;  %v5634_v5 = vld [vmem:[%s8021_s0 + $0x304] ss:$20 sps:$4 sm:$0xff]  }
  0xf9   :  { %2549 = vmatmul.mubr.bf16.gmra.mrb[92].mxu1 %v5575_v7  ;;  %2805 = vmatmul.mubr.bf16.gmra.mrb[36].mxu0 %v5576_v8 }
  0xfa   :  { %2556 = vmatprep.mubr.bf16.mxu1 %v5577_v9  ;;  %2812 = vmatprep.mubr.bf16.mxu0 %v5579_v10  ;;  %v5636_v9 = vld [vmem:[%s8021_s0 + $0x758] ss:$20 sps:$4 sm:$0xff]   ;;  %v5637_v10 = vld [vmem:[%s8021_s0 + $0x300] ss:$20 sps:$4 sm:$0xff]  }
 0x101   :  { %2557 = vmatmul.mubr.bf16.gmra.mrb[96].mxu1 %v5581_v11  ;;  %2813 = vmatmul.mubr.bf16.gmra.mrb[40].mxu0 %v5582_v12  ;;  %v5638_v12 = vld [vmem:[%s8021_s0 + $0x784] ss:$20 sps:$4 sm:$0xff]  }
 0x102   :  { %2564 = vmatprep.mubr.bf16.mxu1 %v5583_v13  ;;  %2820 = vmatprep.mubr.bf16.mxu0 %v5585_v14  ;;  %v5640_v13 = vld [vmem:[%s8021_s0 + $0x32c] ss:$20 sps:$4 sm:$0xff]  }
 0x109   :  { %2565 = vmatmul.mubr.bf16.gmra.mrb[100].mxu1 %v5587_v0  ;;  %2821 = vmatmul.mubr.bf16.gmra.mrb[44].mxu0 %v5588_v15 }
 0x10a   :  { %2572 = vmatprep.mubr.bf16.mxu1 %v5589_v16  ;;  %2828 = vmatprep.mubr.bf16.mxu0 %v5591_v17  ;;  %v5642_v16 = vld [vmem:[%s8021_s0 + $0x780] ss:$20 sps:$4 sm:$0xff]   ;;  %v5643_v17 = vld [vmem:[%s8021_s0 + $0x328] ss:$20 sps:$4 sm:$0xff]  }
 0x111   :  { %2573 = vmatmul.mubr.bf16.gmra.mrb[104].mxu1 %v5593_v18  ;;  %2829 = vmatmul.mubr.bf16.gmra.mrb[48].mxu0 %v5594_v19  ;;  %v5644_v19 = vld [vmem:[%s8021_s0 + $0x7ac] ss:$20 sps:$4 sm:$0xff]  }
 0x112   :  { %2580 = vmatprep.mubr.bf16.mxu1 %v5595_v20  ;;  %2836 = vmatprep.mubr.bf16.mxu0 %v5597_v21  ;;  %v5646_v20 = vld [vmem:[%s8021_s0 + $0x354] ss:$20 sps:$4 sm:$0xff]  }
 0x114   :  { %v6340_v22 = vpop.f32.mrb[0].mxu1 }
 0x115   :  { %v2368_v23 = vpop.f32.mrb[1].mxu1 }
 0x116   :  { %v6348_v26 = vpop.f32.mrb[2].mxu1 }
 0x117   :  { %v2371_v29 = vpop.f32.mrb[3].mxu1 }
 0x118   :  { %v5651_v29 = vld [vmem:[%s8021_s0 + $0x7d4] ss:$20 sps:$4 sm:$0xff]  }
 0x119   :  { %2581 = vmatmul.mubr.bf16.gmra.mrb[108].mxu1 %v5599_v24  ;;  %2837 = vmatmul.mubr.bf16.gmra.mrb[52].mxu0 %v5600_v25  ;;  %v5648_v25 = vld [vmem:[%s8021_s0 + $0x7a8] ss:$20 sps:$4 sm:$0xff]  }
 0x11a   :  { %2588 = vmatprep.mubr.bf16.mxu1 %v5601_v27  ;;  %2844 = vmatprep.mubr.bf16.mxu0 %v5603_v28  ;;  %v5649_v27 = vld [vmem:[%s8021_s0 + $0x350] ss:$20 sps:$4 sm:$0xff]  }
 0x11c   :  { %v6356_v30 = vpop.f32.mrb[4].mxu1 }
 0x11d   :  { %v2376_v31 = vpop.f32.mrb[5].mxu1 }
 0x11e   :  { %v6364_v34 = vpop.f32.mrb[6].mxu1  ;;  %v5653_v31 = vld [vmem:[%s8021_s0 + $0x37c] ss:$20 sps:$4 sm:$0xff]  }
 0x11f   :  { %v2379_v37 = vpop.f32.mrb[7].mxu1 }
 0x120   :  { %v5656_v37 = vld [vmem:[%s8021_s0 + $0x378] ss:$20 sps:$4 sm:$0xff]  }
 0x121   :  { %2589 = vmatmul.mubr.bf16.gmra.mrb[112].mxu1 %v5605_v32  ;;  %2845 = vmatmul.mubr.bf16.gmra.mrb[56].mxu0 %v5606_v33 }
 0x122   :  { %2596 = vmatprep.mubr.bf16.mxu1 %v5608_v35  ;;  %2852 = vmatprep.mubr.bf16.mxu0 %v5610_v36  ;;  %v5655_v36 = vld [vmem:[%s8021_s0 + $0x7d0] ss:$20 sps:$4 sm:$0xff]  }
 0x124   :  { %v6372_v38 = vpop.f32.mrb[8].mxu1 }
 0x125   :  { %v2384_v39 = vpop.f32.mrb[9].mxu1 }
 0x126   :  { %v6380_v42 = vpop.f32.mrb[10].mxu1 }
 0x127   :  { %v2387_v45 = vpop.f32.mrb[11].mxu1 }
 0x129   :  { %2597 = vmatmul.mubr.bf16.gmra.mrb[116].mxu1 %v5612_v40  ;;  %2853 = vmatmul.mubr.bf16.gmra.mrb[60].mxu0 %v5613_v41  ;;  %v5657_v40 = vld [vmem:[%s8021_s0 + $0x7fc] ss:$20 sps:$4 sm:$0xff]   ;;  %v5659_v41 = vld [vmem:[%s8021_s0 + $0x3a4] ss:$20 sps:$4 sm:$0xff]  }
 0x12a   :  { %2604 = vmatprep.mubr.bf16.mxu1 %v5614_v43  ;;  %2860 = vmatprep.mubr.bf16.mxu0 %v5616_v44 }
 0x12c   :  { %v6388_v46 = vpop.f32.mrb[12].mxu1 }
 0x12d   :  { %v2392_v47 = vpop.f32.mrb[13].mxu1 }
 0x12e   :  { %v6396_v50 = vpop.f32.mrb[14].mxu1  ;;  %v5661_v47 = vld [vmem:[%s8021_s0 + $0x7f8] ss:$20 sps:$4 sm:$0xff]  }
 0x12f   :  { %v2395_v53 = vpop.f32.mrb[15].mxu1 }
 0x131   :  { %2605 = vmatmul.mubr.bf16.gmra.mrb[120].mxu1 %v5618_v48  ;;  %2861 = vmatmul.mubr.bf16.gmra.mrb[64].mxu0 %v5619_v49  ;;  %v5662_v48 = vld [vmem:[%s8021_s0 + $0x3a0] ss:$20 sps:$4 sm:$0xff]  }
 0x132   :  { %2612 = vmatprep.mubr.bf16.mxu1 %v5620_v51  ;;  %2868 = vmatprep.mubr.bf16.mxu0 %v5622_v52  ;;  %v5663_v51 = vld [vmem:[%s8021_s0 + $0x824] ss:$20 sps:$4 sm:$0xff]   ;;  %v5665_v52 = vld [vmem:[%s8021_s0 + $0x3cc] ss:$20 sps:$4 sm:$0xff]  }
 0x134   :  { %v6404_v54 = vpop.f32.mrb[16].mxu1 }
 0x135   :  { %v2400_v55 = vpop.f32.mrb[17].mxu1 }
 0x136   :  { %v6412_v58 = vpop.f32.mrb[18].mxu1 }
 0x137   :  { %v2403_v61 = vpop.f32.mrb[19].mxu1 }
 0x138   :  { %v5669_v61 = vld [vmem:[%s8021_s0 + $0x84c] ss:$20 sps:$4 sm:$0xff]  }
 0x139   :  { %2613 = vmatmul.mubr.bf16.gmra.mrb[124].mxu1 %v5624_v56  ;;  %2869 = vmatmul.mubr.bf16.gmra.mrb[68].mxu0 %v5625_v57  ;;  %v5667_v57 = vld [vmem:[%s8021_s0 + $0x820] ss:$20 sps:$4 sm:$0xff]  }
 0x13a   :  { %2620 = vmatprep.mubr.bf16.mxu1 %v5626_v59  ;;  %2876 = vmatprep.mubr.bf16.mxu0 %v5628_v60  ;;  %v5668_v59 = vld [vmem:[%s8021_s0 + $0x3c8] ss:$20 sps:$4 sm:$0xff]  }
 0x13c   :  { %v6420_v62 = vpop.f32.mrb[20].mxu1 }
 0x13d   :  { %v2408_v63 = vpop.f32.mrb[21].mxu1 }
 0x13e   :  { %v6428_v3 = vpop.f32.mrb[22].mxu1  ;;  %v5671_v63 = vld [vmem:[%s8021_s0 + $0x3f4] ss:$20 sps:$4 sm:$0xff]  }
 0x13f   :  { %v2411_v6 = vpop.f32.mrb[23].mxu1 }
 0x140   :  { %v5674_v6 = vld [vmem:[%s8021_s0 + $0x3f0] ss:$20 sps:$4 sm:$0xff]  }
 0x141   :  { %2621 = vmatmul.mubr.bf16.gmra.mrb[128].mxu1 %v5630_v1  ;;  %2877 = vmatmul.mubr.bf16.gmra.mrb[72].mxu0 %v5631_v2 }
 0x142   :  { %2628 = vmatprep.mubr.bf16.mxu1 %v5632_v4  ;;  %2884 = vmatprep.mubr.bf16.mxu0 %v5634_v5  ;;  %v5673_v5 = vld [vmem:[%s8021_s0 + $0x848] ss:$20 sps:$4 sm:$0xff]  }
 0x144   :  { %v6436_v7 = vpop.f32.mrb[24].mxu1 }
 0x145   :  { %v2416_v8 = vpop.f32.mrb[25].mxu1 }
 0x146   :  { %v6444_v11 = vpop.f32.mrb[26].mxu1 }
 0x147   :  { %v2419_v14 = vpop.f32.mrb[27].mxu1 }
 0x149   :  { %2629 = vmatmul.mubr.bf16.gmra.mrb[132].mxu1 %v5636_v9  ;;  %2885 = vmatmul.mubr.bf16.gmra.mrb[76].mxu0 %v5637_v10  ;;  %v5675_v9 = vld [vmem:[%s8021_s0 + $0x874] ss:$20 sps:$4 sm:$0xff]   ;;  %v5677_v10 = vld [vmem:[%s8021_s0 + $0x41c] ss:$20 sps:$4 sm:$0xff]  }
 0x14a   :  { %2636 = vmatprep.mubr.bf16.mxu1 %v5638_v12  ;;  %2892 = vmatprep.mubr.bf16.mxu0 %v5640_v13  ;;  %v345_v13 = vld [vmem:[%s8021_s0 + $0x898] sm:$0xff] }
 0x14c   :  { %v6452_v0 = vpop.f32.mrb[28].mxu1 }
 0x14d   :  { %v2424_v15 = vpop.f32.mrb[29].mxu1 }
 0x14e   :  { %v6460_v18 = vpop.f32.mrb[30].mxu1 }
 0x14f   :  { %v2427_v21 = vpop.f32.mrb[31].mxu1 }
 0x150   :  { %v5682_v21 = vld [vmem:[%s8021_s0 + $0x444] ss:$20 sps:$4 sm:$0xff]  }
 0x151   :  { %2637 = vmatmul.mubr.bf16.gmra.mrb[136].mxu1 %v5642_v16  ;;  %2893 = vmatmul.mubr.bf16.gmra.mrb[80].mxu0 %v5643_v17  ;;  %v5679_v16 = vld [vmem:[%s8021_s0 + $0x870] ss:$20 sps:$4 sm:$0xff]   ;;  %v5680_v17 = vld [vmem:[%s8021_s0 + $0x418] ss:$20 sps:$4 sm:$0xff]  }
 0x152   :  { %2644 = vmatprep.mubr.bf16.mxu1 %v5644_v19  ;;  %2900 = vmatprep.mubr.bf16.mxu0 %v5646_v20  ;;  %v4609_v20 = vcombine.high %v345_v13, %v345_v13 }
 0x154   :  { %v6468_v23 = vpop.f32.mrb[32].mxu1 }
 0x155   :  { %v2432_v24 = vpop.f32.mrb[33].mxu1 }
 0x156   :  { %v6476_v28 = vpop.f32.mrb[34].mxu1 }
 0x157   :  { %v2435_v32 = vpop.f32.mrb[35].mxu1 }
 0x158   :  { %v4608_v32 = vcombine.low %v345_v13, %v345_v13  ;;  %v5695_v13 = vld [vmem:[%s8021_s0 + $0x88] ss:$20 sps:$4 sm:$0xff]  }
 0x159   :  { %2645 = vmatmul.mubr.bf16.gmra.mrb[140].mxu1 %v5648_v25  ;;  %2901 = vmatmul.mubr.bf16.gmra.mrb[84].mxu0 %v5649_v27 }
 0x15a   :  { %2652 = vmatprep.mubr.bf16.mxu1 %v5651_v29  ;;  %2908 = vmatprep.mubr.bf16.mxu0 %v5653_v31 }
 0x15c   :  { %v6484_v33 = vpop.f32.mrb[36].mxu1 }
 0x15d   :  { %v2440_v35 = vpop.f32.mrb[37].mxu1 }
 0x15e   :  { %v6492_v39 = vpop.f32.mrb[38].mxu1  ;;  %v5685_v35 = vld [vmem:[%s8021_s0 + $0x440] ss:$20 sps:$4 sm:$0xff]  }
 0x15f   :  { %v2443_v43 = vpop.f32.mrb[39].mxu1 }
 0x161   :  { %2653 = vmatmul.mubr.bf16.gmra.mrb[144].mxu1 %v5655_v36  ;;  %2909 = vmatmul.mubr.bf16.gmra.mrb[88].mxu0 %v5656_v37 }
 0x162   :  { %2660 = vmatprep.mubr.bf16.mxu1 %v5657_v40  ;;  %2916 = vmatprep.mubr.bf16.mxu0 %v5659_v41  ;;  %v5686_v40 = vld [vmem:[%s8021_s0 + $0x46c] ss:$20 sps:$4 sm:$0xff]   ;;  %v5688_v41 = vld [vmem:[%s8021_s0 + $0x10] ss:$20 sps:$4 sm:$0xff]  }
 0x164   :  { %v6500_v44 = vpop.f32.mrb[40].mxu1 }
 0x165   :  { %v2448_v45 = vpop.f32.mrb[41].mxu1 }
 0x166   :  { %v6508_v49 = vpop.f32.mrb[42].mxu1 }
 0x167   :  { %v2451_v53 = vpop.f32.mrb[43].mxu1 }
 0x168   :  { %v5689_v53 = vld [vmem:[%s8021_s0 + $0x468] ss:$20 sps:$4 sm:$0xff]  }
 0x169   :  { %2661 = vmatmul.mubr.bf16.gmra.mrb[148].mxu1 %v5661_v47  ;;  %2917 = vmatmul.mubr.bf16.gmra.mrb[92].mxu0 %v5662_v48 }
 0x16a   :  { %2668 = vmatprep.mubr.bf16.mxu1 %v5663_v51  ;;  %2924 = vmatprep.mubr.bf16.mxu0 %v5665_v52 }
 0x16c   :  { %v6516_v55 = vpop.f32.mrb[44].mxu1 }
 0x16d   :  { %v2456_v56 = vpop.f32.mrb[45].mxu1 }
 0x16e   :  { %v6524_v60 = vpop.f32.mrb[46].mxu1  ;;  %v5690_v56 = vld [vmem:[%s8021_s0 + $0x38] ss:$20 sps:$4 sm:$0xff]  }
 0x16f   :  { %v2459_v1 = vpop.f32.mrb[47].mxu1 }
 0x171   :  { %2669 = vmatmul.mubr.bf16.gmra.mrb[152].mxu1 %v5667_v57  ;;  %2925 = vmatmul.mubr.bf16.gmra.mrb[96].mxu0 %v5668_v59 }
 0x172   :  { %2676 = vmatprep.mubr.bf16.mxu1 %v5669_v61  ;;  %2932 = vmatprep.mubr.bf16.mxu0 %v5671_v63  ;;  %v5691_v61 = vld [vmem:[%s8021_s0 + $0x494] ss:$20 sps:$4 sm:$0xff]  }
 0x173   :  { %v5693_v63 = vld [vmem:[%s8021_s0 + $0x60] ss:$20 sps:$4 sm:$0xff]  }
 0x174   :  { %v6532_v2 = vpop.f32.mrb[48].mxu1 }
 0x175   :  { %v2464_v4 = vpop.f32.mrb[49].mxu1 }
 0x176   :  { %v6540_v8 = vpop.f32.mrb[50].mxu1 }
 0x177   :  { %v2467_v12 = vpop.f32.mrb[51].mxu1 }
 0x178   :  { %v5694_v12 = vld [vmem:[%s8021_s0 + $0x490] ss:$20 sps:$4 sm:$0xff]  }
 0x179   :  { %2677 = vmatmul.mubr.bf16.gmra.mrb[156].mxu1 %v5673_v5  ;;  %2933 = vmatmul.mubr.bf16.gmra.mrb[100].mxu0 %v5674_v6 }
 0x17a   :  { %2684 = vmatprep.mubr.bf16.mxu1 %v5675_v9  ;;  %2940 = vmatprep.mubr.bf16.mxu0 %v5677_v10 }
 0x17c   :  { %v6551_v14 = vpop.f32.mrb[52].mxu1 }
 0x17d   :  { %v2472_v15 = vpop.f32.mrb[53].mxu1 }
 0x17e   :  { %v6559_v19 = vpop.f32.mrb[54].mxu1 }
 0x17f   :  { %v2475_v24 = vpop.f32.mrb[55].mxu1 }
 0x181   :  { %2685 = vmatmul.mubr.bf16.gmra.mrb[160].mxu1 %v5679_v16  ;;  %2941 = vmatmul.mubr.bf16.gmra.mrb[104].mxu0 %v5680_v17  ;;  %v5696_v17 = vld [vmem:[%s8021_s0 + $0x4bc] ss:$20 sps:$4 sm:$0xff]  }
 0x182   :  { %2692 = vmatprep.mubr.bf16.mxu1 %v4609_v20  ;;  %2948 = vmatprep.mubr.bf16.mxu0 %v5682_v21  ;;  %v5698_v20 = vld [vmem:[%s8021_s0 + $0xb0] ss:$20 sps:$4 sm:$0xff]  }
 0x184   :  { %v6564_v25 = vpop.f32.mrb[56].mxu1  ;;  %v6566_v27 = vpop.f32.mrb[0].mxu0 }
 0x185   :  { %v2480_v29 = vpop.f32.mrb[57].mxu1  ;;  %v2736_v31 = vpop.f32.mrb[1].mxu0 }
 0x186   :  { %v6571_v36 = vpop.f32.mrb[58].mxu1  ;;  %v6573_v37 = vpop.f32.mrb[2].mxu0 }
 0x187   :  { %v2483_v43 = vpop.f32.mrb[59].mxu1  ;;  %v2739_v45 = vpop.f32.mrb[3].mxu0 }
 0x189   :  { %2693 = vmatmul.mubr.bf16.gmra.mrb[164].mxu1 %v4608_v32  ;;  %2949 = vmatmul.mubr.bf16.gmra.mrb[108].mxu0 %v5685_v35 }
 0x18a   :  { %2956 = vmatprep.mubr.bf16.mxu0 %v5686_v40  ;;  %5003 = vmatprep.mubr.msk.bf16.mxu1 %vm2047_vm1, %v5688_v41  ;;  %v5699_v40 = vld [vmem:[%s8021_s0 + $0x4b8] ss:$20 sps:$4 sm:$0xff]  }
 0x18b   :  { %v5700_v41 = vld [vmem:[%s8021_s0 + $0xd8] ss:$20 sps:$4 sm:$0xff]  }
 0x18c   :  { %v6582_v47 = vpop.f32.mrb[60].mxu1  ;;  %v6584_v48 = vpop.f32.mrb[4].mxu0 }
 0x18d   :  { %v2488_v51 = vpop.f32.mrb[61].mxu1  ;;  %v2744_v52 = vpop.f32.mrb[5].mxu0 }
 0x18e   :  { %v6592_v57 = vpop.f32.mrb[62].mxu1  ;;  %v6594_v59 = vpop.f32.mrb[6].mxu0  ;;  %v5701_v51 = vld [vmem:[%s8021_s0 + $0x4e4] ss:$20 sps:$4 sm:$0xff]   ;;  %v5703_v52 = vld [vmem:[%s8021_s0 + $0x100] ss:$20 sps:$4 sm:$0xff]  }
 0x18f   :  { %v2491_v1 = vpop.f32.mrb[63].mxu1  ;;  %v2747_v4 = vpop.f32.mrb[7].mxu0 }
 0x191   :  { %2957 = vmatmul.mubr.bf16.gmra.mrb[112].mxu0 %v5689_v53  ;;  %5004 = vmatmul.mubr.msk.bf16.vlgmr.msra.gmra.mrb[168].mxu1 %vm2047_vm1, %v5690_v56 }
 0x192   :  { %2964 = vmatprep.mubr.bf16.mxu0 %v5691_v61  ;;  %5007 = vmatprep.mubr.msk.bf16.mxu1 %vm2047_vm1, %v5693_v63 }
 0x194   :  { %v6604_v5 = vpop.f32.mrb[64].mxu1  ;;  %v6606_v6 = vpop.f32.mrb[8].mxu0 }
 0x195   :  { %v2496_v9 = vpop.f32.mrb[65].mxu1  ;;  %v2752_v10 = vpop.f32.mrb[9].mxu0 }
 0x196   :  { %v6614_v15 = vpop.f32.mrb[66].mxu1  ;;  %v6616_v16 = vpop.f32.mrb[10].mxu0  ;;  %v5704_v9 = vld [vmem:[%s8021_s0 + $0x4e0] ss:$20 sps:$4 sm:$0xff]   ;;  %v5705_v10 = vld [vmem:[%s8021_s0 + $0x128] ss:$20 sps:$4 sm:$0xff]  }
 0x197   :  { %v2499_v21 = vpop.f32.mrb[67].mxu1  ;;  %v2755_v24 = vpop.f32.mrb[11].mxu0 }
 0x199   :  { %2965 = vmatmul.mubr.bf16.gmra.mrb[116].mxu0 %v5694_v12  ;;  %5008 = vmatmul.mubr.msk.bf16.gmra.mrb[172].mxu1 %vm2047_vm1, %v5695_v13 }
 0x19a   :  { %2972 = vmatprep.mubr.bf16.mxu0 %v5696_v17  ;;  %5011 = vmatprep.mubr.msk.bf16.mxu1 %vm2047_vm1, %v5698_v20  ;;  %v5706_v17 = vld [vmem:[%s8021_s0 + $0x50c] ss:$20 sps:$4 sm:$0xff]   ;;  %v5708_v20 = vld [vmem:[%s8021_s0 + $0x150] ss:$20 sps:$4 sm:$0xff]  }
 0x19c   :  { %v6626_v29 = vpop.f32.mrb[68].mxu1  ;;  %v6628_v31 = vpop.f32.mrb[12].mxu0 }
 0x19d   :  { %v2504_v32 = vpop.f32.mrb[69].mxu1  ;;  %v2760_v35 = vpop.f32.mrb[13].mxu0 }
 0x19e   :  { %v6636_v43 = vpop.f32.mrb[70].mxu1  ;;  %v6638_v45 = vpop.f32.mrb[14].mxu0 }
 0x19f   :  { %v2507_v53 = vpop.f32.mrb[71].mxu1  ;;  %v2763_v56 = vpop.f32.mrb[15].mxu0 }
 0x1a1   :  { %2973 = vmatmul.mubr.bf16.gmra.mrb[120].mxu0 %v5699_v40  ;;  %5012 = vmatmul.mubr.msk.bf16.gmra.mrb[176].mxu1 %vm2047_vm1, %v5700_v41 }
 0x1a2   :  { %2980 = vmatprep.mubr.bf16.mxu0 %v5701_v51  ;;  %5015 = vmatprep.mubr.msk.bf16.mxu1 %vm2047_vm1, %v5703_v52  ;;  %v5709_v51 = vld [vmem:[%s8021_s0 + $0x508] ss:$20 sps:$4 sm:$0xff]   ;;  %v5710_v52 = vld [vmem:[%s8021_s0 + $0x178] ss:$20 sps:$4 sm:$0xff]  }
 0x1a4   :  { %v6648_v61 = vpop.f32.mrb[72].mxu1  ;;  %v6650_v63 = vpop.f32.mrb[16].mxu0 }
 0x1a5   :  { %8024 = vst [vmem:[#allocation2_spill] sm:$0xff] %v6648_v61  ;;  %v2512_v1 = vpop.f32.mrb[73].mxu1  ;;  %v2768_v4 = vpop.f32.mrb[17].mxu0 }
 0x1a6   :  { %v6658_v12 = vpop.f32.mrb[74].mxu1  ;;  %v6660_v13 = vpop.f32.mrb[18].mxu0  ;;  %v5711_v1 = vld [vmem:[%s8021_s0 + $0x534] ss:$20 sps:$4 sm:$0xff]  }
 0x1a7   :  { %8025 = vst [vmem:[#allocation3_spill] sm:$0xff] %v6658_v12  ;;  %v2515_v21 = vpop.f32.mrb[75].mxu1  ;;  %v2771_v24 = vpop.f32.mrb[19].mxu0  ;;  %v5713_v4 = vld [vmem:[%s8021_s0 + $0x1a0] ss:$20 sps:$4 sm:$0xff]  }
 0x1a8   :  { %v5724_v12 = vld [vmem:[%s8021_s0 + $0x580] ss:$20 sps:$4 sm:$0xff]  }
 0x1a9   :  { %2981 = vmatmul.mubr.bf16.gmra.mrb[124].mxu0 %v5704_v9  ;;  %5016 = vmatmul.mubr.msk.bf16.gmra.mrb[180].mxu1 %vm2047_vm1, %v5705_v10 }
 0x1aa   :  { %2988 = vmatprep.mubr.bf16.mxu0 %v5706_v17  ;;  %5019 = vmatprep.mubr.msk.bf16.mxu1 %vm2047_vm1, %v5708_v20 }
 0x1ac   :  { %v6670_v32 = vpop.f32.mrb[76].mxu1  ;;  %v6672_v35 = vpop.f32.mrb[20].mxu0 }
 0x1ad   :  { %8026 = vst [vmem:[#allocation4_spill] sm:$0xff] %v6670_v32  ;;  %v2520_v40 = vpop.f32.mrb[77].mxu1  ;;  %v2776_v41 = vpop.f32.mrb[21].mxu0 }
 0x1ae   :  { %v6680_v53 = vpop.f32.mrb[78].mxu1  ;;  %v6682_v56 = vpop.f32.mrb[22].mxu0  ;;  %v5714_v40 = vld [vmem:[%s8021_s0 + $0x530] ss:$20 sps:$4 sm:$0xff]   ;;  %v5715_v41 = vld [vmem:[%s8021_s0 + $0x1c8] ss:$20 sps:$4 sm:$0xff]  }
 0x1af   :  { %8027 = vst [vmem:[#allocation5_spill] sm:$0xff] %v6680_v53  ;;  %v2523_v9 = vpop.f32.mrb[79].mxu1  ;;  %v2779_v10 = vpop.f32.mrb[23].mxu0  ;;  %v5719_v53 = vld [vmem:[%s8021_s0 + $0x558] ss:$20 sps:$4 sm:$0xff]  }
 0x1b1   :  { %2989 = vmatmul.mubr.bf16.gmra.mrb[128].mxu0 %v5709_v51  ;;  %5020 = vmatmul.mubr.msk.bf16.gmra.mrb[184].mxu1 %vm2047_vm1, %v5710_v52 }
 0x1b2   :  { %2996 = vmatprep.mubr.bf16.mxu0 %v5711_v1  ;;  %5023 = vmatprep.mubr.msk.bf16.mxu1 %vm2047_vm1, %v5713_v4  ;;  %v5716_v1 = vld [vmem:[%s8021_s0 + $0x55c] ss:$20 sps:$4 sm:$0xff]  }
 0x1b3   :  { %v5718_v4 = vld [vmem:[%s8021_s0 + $0x1f0] ss:$20 sps:$4 sm:$0xff]  }
 0x1b4   :  { %v6692_v17 = vpop.f32.mrb[80].mxu1  ;;  %v6694_v20 = vpop.f32.mrb[24].mxu0 }
 0x1b5   :  { %8028 = vst [vmem:[#allocation6_spill] sm:$0xff] %v6692_v17  ;;  %v2528_v21 = vpop.f32.mrb[81].mxu1  ;;  %v2784_v24 = vpop.f32.mrb[25].mxu0 }
 0x1b6   :  { %v6702_v51 = vpop.f32.mrb[82].mxu1  ;;  %v6704_v52 = vpop.f32.mrb[26].mxu0 }
 0x1b7   :  { %8029 = vst [vmem:[#allocation7_spill] sm:$0xff] %v6702_v51  ;;  %8030 = vst [vmem:[#allocation8_spill] sm:$0xff] %v6704_v52  ;;  %v2531_v9 = vpop.f32.mrb[83].mxu1  ;;  %v2787_v10 = vpop.f32.mrb[27].mxu0 }
 0x1b8   :  { %v5720_v9 = vld [vmem:[%s8021_s0 + $0x218] ss:$20 sps:$4 sm:$0xff]  }
 0x1b9   :  { %2997 = vmatmul.mubr.bf16.gmra.mrb[132].mxu0 %v5714_v40  ;;  %5024 = vmatmul.mubr.msk.bf16.gmra.mrb[188].mxu1 %vm2047_vm1, %v5715_v41 }
 0x1ba   :  { %3004 = vmatprep.mubr.bf16.mxu0 %v5716_v1  ;;  %5027 = vmatprep.mubr.msk.bf16.mxu1 %vm2047_vm1, %v5718_v4  ;;  %v5721_v1 = vld [vmem:[%s8021_s0 + $0x584] ss:$20 sps:$4 sm:$0xff]  }
 0x1bc   :  { %v6714_v21 = vpop.f32.mrb[84].mxu1  ;;  %v6716_v24 = vpop.f32.mrb[28].mxu0 }
 0x1bd   :  { %8031 = vst [vmem:[#allocation9_spill] sm:$0xff] %v6714_v21  ;;  %v2536_v51 = vpop.f32.mrb[85].mxu1  ;;  %v2792_v17 = vpop.f32.mrb[29].mxu0 }
 0x1be   :  { %v6724_v40 = vpop.f32.mrb[86].mxu1  ;;  %v6726_v41 = vpop.f32.mrb[30].mxu0  ;;  %v5723_v17 = vld [vmem:[%s8021_s0 + $0x240] ss:$20 sps:$4 sm:$0xff]  }
 0x1bf   :  { %8032 = vst [vmem:[#allocation10_spill] sm:$0xff] %v6724_v40  ;;  %8033 = vst [vmem:[#allocation11_spill] sm:$0xff] %v6726_v41  ;;  %v2539_v51 = vpop.f32.mrb[87].mxu1  ;;  %v2795_v4 = vpop.f32.mrb[31].mxu0 }
 0x1c0   :  { %v5725_v51 = vld [vmem:[%s8021_s0 + $0x268] ss:$20 sps:$4 sm:$0xff]  }
 0x1c1   :  { %3005 = vmatmul.mubr.bf16.gmra.mrb[136].mxu0 %v5719_v53  ;;  %5028 = vmatmul.mubr.msk.bf16.gmra.mrb[192].mxu1 %vm2047_vm1, %v5720_v9 }
 0x1c2   :  { %3012 = vmatprep.mubr.bf16.mxu0 %v5721_v1  ;;  %5031 = vmatprep.mubr.msk.bf16.mxu1 %vm2047_vm1, %v5723_v17  ;;  %v5726_v1 = vld [vmem:[%s8021_s0 + $0x5ac] ss:$20 sps:$4 sm:$0xff]  }
 0x1c4   :  { %v6736_v10 = vpop.f32.mrb[88].mxu1  ;;  %v6738_v40 = vpop.f32.mrb[32].mxu0 }
 0x1c5   :  { %8034 = vst [vmem:[#allocation12_spill] sm:$0xff] %v6736_v10  ;;  %8035 = vst [vmem:[#allocation13_spill] sm:$0xff] %v6738_v40  ;;  %v2544_v21 = vpop.f32.mrb[89].mxu1  ;;  %v2800_v32 = vpop.f32.mrb[33].mxu0  ;;  %v5729_v40 = vld [vmem:[%s8021_s0 + $0x5a8] ss:$20 sps:$4 sm:$0xff]  }
 0x1c6   :  { %v6746_v53 = vpop.f32.mrb[90].mxu1  ;;  %v6748_v9 = vpop.f32.mrb[34].mxu0  ;;  %v5728_v32 = vld [vmem:[%s8021_s0 + $0x290] ss:$20 sps:$4 sm:$0xff]  }
 0x1c7   :  { %8036 = vst [vmem:[#allocation14_spill] sm:$0xff] %v6746_v53  ;;  %8037 = vst [vmem:[#allocation15_spill] sm:$0xff] %v6748_v9  ;;  %v2547_v21 = vpop.f32.mrb[91].mxu1  ;;  %v2803_v17 = vpop.f32.mrb[35].mxu0 }
 0x1c8   :  { %v5730_v21 = vld [vmem:[%s8021_s0 + $0x2b8] ss:$20 sps:$4 sm:$0xff]  }
 0x1c9   :  { %3013 = vmatmul.mubr.bf16.gmra.mrb[140].mxu0 %v5724_v12  ;;  %5032 = vmatmul.mubr.msk.bf16.gmra.mrb[196].mxu1 %vm2047_vm1, %v5725_v51 }
 0x1ca   :  { %3020 = vmatprep.mubr.bf16.mxu0 %v5726_v1  ;;  %5035 = vmatprep.mubr.msk.bf16.mxu1 %vm2047_vm1, %v5728_v32  ;;  %v5731_v1 = vld [vmem:[%s8021_s0 + $0x5d4] ss:$20 sps:$4 sm:$0xff]  }
 0x1cc   :  { %v6758_v4 = vpop.f32.mrb[92].mxu1  ;;  %v6760_v53 = vpop.f32.mrb[36].mxu0 }
 0x1cd   :  { %8038 = vst [vmem:[#allocation16_spill] sm:$0xff] %v6758_v4  ;;  %8039 = vst [vmem:[#allocation17_spill] sm:$0xff] %v6760_v53  ;;  %v2552_v10 = vpop.f32.mrb[93].mxu1  ;;  %v2808_v9 = vpop.f32.mrb[37].mxu0  ;;  %v5734_v53 = vld [vmem:[%s8021_s0 + $0x5d0] ss:$20 sps:$4 sm:$0xff]  }
 0x1ce   :  { %v6768_v12 = vpop.f32.mrb[94].mxu1  ;;  %v6770_v51 = vpop.f32.mrb[38].mxu0  ;;  %v5733_v10 = vld [vmem:[%s8021_s0 + $0x2e0] ss:$20 sps:$4 sm:$0xff]  }
 0x1cf   :  { %8040 = vst [vmem:[#allocation18_spill] sm:$0xff] %v6768_v12  ;;  %8041 = vst [vmem:[#allocation19_spill] sm:$0xff] %v6770_v51  ;;  %v2555_v9 = vpop.f32.mrb[95].mxu1  ;;  %v2811_v32 = vpop.f32.mrb[39].mxu0 }
 0x1d0   :  { %v5735_v9 = vld [vmem:[%s8021_s0 + $0x308] ss:$20 sps:$4 sm:$0xff]  }
 0x1d1   :  { %3021 = vmatmul.mubr.bf16.gmra.mrb[144].mxu0 %v5729_v40  ;;  %5036 = vmatmul.mubr.msk.bf16.gmra.mrb[200].mxu1 %vm2047_vm1, %v5730_v21 }
 0x1d2   :  { %3028 = vmatprep.mubr.bf16.mxu0 %v5731_v1  ;;  %5039 = vmatprep.mubr.msk.bf16.mxu1 %vm2047_vm1, %v5733_v10  ;;  %v5736_v1 = vld [vmem:[%s8021_s0 + $0x5fc] ss:$20 sps:$4 sm:$0xff]  }
 0x1d4   :  { %v6780_v17 = vpop.f32.mrb[96].mxu1  ;;  %v6782_v12 = vpop.f32.mrb[40].mxu0 }
 0x1d5   :  { %8042 = vst [vmem:[#allocation20_spill] sm:$0xff] %v6780_v17  ;;  %8043 = vst [vmem:[#allocation21_spill] sm:$0xff] %v6782_v12  ;;  %v2560_v4 = vpop.f32.mrb[97].mxu1  ;;  %v2816_v51 = vpop.f32.mrb[41].mxu0  ;;  %v5739_v12 = vld [vmem:[%s8021_s0 + $0x5f8] ss:$20 sps:$4 sm:$0xff]  }
 0x1d6   :  { %v6790_v40 = vpop.f32.mrb[98].mxu1  ;;  %v6792_v21 = vpop.f32.mrb[42].mxu0  ;;  %v5738_v4 = vld [vmem:[%s8021_s0 + $0x330] ss:$20 sps:$4 sm:$0xff]  }
 0x1d7   :  { %8044 = vst [vmem:[#allocation22_spill] sm:$0xff] %v6790_v40  ;;  %8045 = vst [vmem:[#allocation23_spill] sm:$0xff] %v6792_v21  ;;  %v2563_v51 = vpop.f32.mrb[99].mxu1  ;;  %v2819_v10 = vpop.f32.mrb[43].mxu0 }
 0x1d8   :  { %v5740_v51 = vld [vmem:[%s8021_s0 + $0x358] ss:$20 sps:$4 sm:$0xff]  }
 0x1d9   :  { %3029 = vmatmul.mubr.bf16.gmra.mrb[148].mxu0 %v5734_v53  ;;  %5040 = vmatmul.mubr.msk.bf16.gmra.mrb[204].mxu1 %vm2047_vm1, %v5735_v9 }
 0x1da   :  { %3036 = vmatprep.mubr.bf16.mxu0 %v5736_v1  ;;  %5043 = vmatprep.mubr.msk.bf16.mxu1 %vm2047_vm1, %v5738_v4  ;;  %v5741_v1 = vld [vmem:[%s8021_s0 + $0x624] ss:$20 sps:$4 sm:$0xff]  }
 0x1dc   :  { %v6802_v32 = vpop.f32.mrb[100].mxu1  ;;  %v6804_v40 = vpop.f32.mrb[44].mxu0 }
 0x1dd   :  { %8046 = vst [vmem:[#allocation24_spill] sm:$0xff] %v6802_v32  ;;  %8047 = vst [vmem:[#allocation25_spill] sm:$0xff] %v6804_v40  ;;  %v2568_v17 = vpop.f32.mrb[101].mxu1  ;;  %v2824_v21 = vpop.f32.mrb[45].mxu0  ;;  %v5744_v40 = vld [vmem:[%s8021_s0 + $0x620] ss:$20 sps:$4 sm:$0xff]  }
 0x1de   :  { %v6812_v53 = vpop.f32.mrb[102].mxu1  ;;  %v6814_v9 = vpop.f32.mrb[46].mxu0  ;;  %v5743_v17 = vld [vmem:[%s8021_s0 + $0x380] ss:$20 sps:$4 sm:$0xff]  }
 0x1df   :  { %8048 = vst [vmem:[#allocation26_spill] sm:$0xff] %v6812_v53  ;;  %8049 = vst [vmem:[#allocation27_spill] sm:$0xff] %v6814_v9  ;;  %v2571_v21 = vpop.f32.mrb[103].mxu1  ;;  %v2827_v4 = vpop.f32.mrb[47].mxu0 }
 0x1e0   :  { %v5745_v21 = vld [vmem:[%s8021_s0 + $0x3a8] ss:$20 sps:$4 sm:$0xff]  }
 0x1e1   :  { %3037 = vmatmul.mubr.bf16.gmra.mrb[152].mxu0 %v5739_v12  ;;  %5044 = vmatmul.mubr.msk.bf16.gmra.mrb[208].mxu1 %vm2047_vm1, %v5740_v51 }
 0x1e2   :  { %3044 = vmatprep.mubr.bf16.mxu0 %v5741_v1  ;;  %5047 = vmatprep.mubr.msk.bf16.mxu1 %vm2047_vm1, %v5743_v17  ;;  %v5746_v1 = vld [vmem:[%s8021_s0 + $0x64c] ss:$20 sps:$4 sm:$0xff]  }
 0x1e4   :  { %v6824_v10 = vpop.f32.mrb[104].mxu1  ;;  %v6826_v53 = vpop.f32.mrb[48].mxu0 }
 0x1e5   :  { %8050 = vst [vmem:[#allocation28_spill] sm:$0xff] %v6824_v10  ;;  %8051 = vst [vmem:[#allocation29_spill] sm:$0xff] %v6826_v53  ;;  %v2576_v32 = vpop.f32.mrb[105].mxu1  ;;  %v2832_v9 = vpop.f32.mrb[49].mxu0  ;;  %v5749_v53 = vld [vmem:[%s8021_s0 + $0x648] ss:$20 sps:$4 sm:$0xff]  }
 0x1e6   :  { %v6834_v12 = vpop.f32.mrb[106].mxu1  ;;  %v6836_v51 = vpop.f32.mrb[50].mxu0  ;;  %v5748_v32 = vld [vmem:[%s8021_s0 + $0x3d0] ss:$20 sps:$4 sm:$0xff]  }
 0x1e7   :  { %8052 = vst [vmem:[#allocation30_spill] sm:$0xff] %v6834_v12  ;;  %8053 = vst [vmem:[#allocation31_spill] sm:$0xff] %v6836_v51  ;;  %v2579_v9 = vpop.f32.mrb[107].mxu1  ;;  %v2835_v17 = vpop.f32.mrb[51].mxu0 }
 0x1e8   :  { %v5750_v9 = vld [vmem:[%s8021_s0 + $0x3f8] ss:$20 sps:$4 sm:$0xff]   ;;  %v6869_v17 = vld [vmem:[%s8022_s2] ss:$0 sm:$0xff] }
 0x1e9   :  { %3045 = vmatmul.mubr.bf16.gmra.mrb[156].mxu0 %v5744_v40  ;;  %5048 = vmatmul.mubr.msk.bf16.gmra.mrb[212].mxu1 %vm2047_vm1, %v5745_v21  ;;  %v2370_v61 = vadd.f32 %v6869_v17, %v6348_v26 }
 0x1ea   :  { %3052 = vmatprep.mubr.bf16.mxu0 %v5746_v1  ;;  %5051 = vmatprep.mubr.msk.bf16.mxu1 %vm2047_vm1, %v5748_v32  ;;  %v5751_v1 = vld [vmem:[%s8021_s0 + $0x674] ss:$20 sps:$4 sm:$0xff]  }
 0x1ec   :  { %v6846_v4 = vpop.f32.mrb[108].mxu1  ;;  %v6848_v12 = vpop.f32.mrb[52].mxu0 }
 0x1ed   :  { %8054 = vst [vmem:[#allocation32_spill] sm:$0xff] %v6846_v4  ;;  %8055 = vst [vmem:[#allocation33_spill] sm:$0xff] %v6848_v12  ;;  %v2584_v10 = vpop.f32.mrb[109].mxu1  ;;  %v2840_v51 = vpop.f32.mrb[53].mxu0 }
 0x1ee   :  { %v6856_v40 = vpop.f32.mrb[110].mxu1  ;;  %v6858_v21 = vpop.f32.mrb[54].mxu0  ;;  %v5753_v10 = vld [vmem:[%s8021_s0 + $0x420] ss:$20 sps:$4 sm:$0xff]  }
 0x1ef   :  { %8056 = vst [vmem:[#allocation34_spill] sm:$0xff] %v6856_v40  ;;  %8057 = vst [vmem:[#allocation35_spill] sm:$0xff] %v6858_v21  ;;  %v2587_v51 = vpop.f32.mrb[111].mxu1  ;;  %v2843_v32 = vpop.f32.mrb[55].mxu0  ;;  %v2367_v40 = vadd.f32 %v6869_v17, %v6340_v22 }
 0x1f1   :  { %3053 = vmatmul.mubr.bf16.gmra.mrb[160].mxu0 %v5749_v53  ;;  %5052 = vmatmul.mubr.msk.bf16.gmra.mrb[216].mxu1 %vm2047_vm1, %v5750_v9  ;;  %v5754_v53 = vld [vmem:[%s8021_s0 + $0x670] ss:$20 sps:$4 sm:$0xff]   ;;  %v5755_v9 = vld [vmem:[%s8021_s0 + $0x448] ss:$20 sps:$4 sm:$0xff]  }
 0x1f2   :  { %3060 = vmatprep.mubr.bf16.mxu0 %v5751_v1  ;;  %5055 = vmatprep.mubr.msk.bf16.mxu1 %vm2047_vm1, %v5753_v10 }
 0x1f4   :  { %v6875_v4 = vpop.f32.mrb[112].mxu1  ;;  %v2846_v21 = vpop.f32.mrb[56].mxu0 }
 0x1f5   :  { %8058 = vst [vmem:[#allocation36_spill] sm:$0xff] %v6875_v4  ;;  %v6877_v12 = vadd.f32 %v2846_v21, %v2367_v40  ;;  %v2592_v51 = vpop.f32.mrb[113].mxu1  ;;  %v2848_v32 = vpop.f32.mrb[57].mxu0  ;;  %v5756_v40 = vld [vmem:[%s8021_s0 + $0x69c] ss:$20 sps:$4 sm:$0xff]  }
 0x1f6   :  { %v6887_v1 = vpop.f32.mrb[114].mxu1  ;;  %v2849_v22 = vpop.f32.mrb[58].mxu0  ;;  %v5758_v21 = vld [vmem:[%s8021_s0 + $0x470] ss:$20 sps:$4 sm:$0xff]   ;;  %v2375_v32 = vadd.f32 %v6869_v17, %v6356_v30 }
 0x1f7   :  { %8059 = vst [vmem:[#allocation37_spill] sm:$0xff] %v6877_v12  ;;  %8060 = vst [vmem:[#allocation38_spill] sm:$0xff] %v6887_v1  ;;  %v6895_v26 = vadd.f32 %v2849_v22, %v2370_v61  ;;  %v2595_v10 = vpop.f32.mrb[115].mxu1  ;;  %v2851_v51 = vpop.f32.mrb[59].mxu0  ;;  %v2378_v61 = vadd.f32 %v6869_v17, %v6364_v34 }
 0x1f9   :  { %3061 = vmatmul.mubr.bf16.gmra.mrb[164].mxu0 %v5754_v53  ;;  %5056 = vmatmul.mubr.msk.bf16.gmra.mrb[220].mxu1 %vm2047_vm1, %v5755_v9  ;;  %v5759_v53 = vld [vmem:[%s8021_s0 + $0x698] ss:$20 sps:$4 sm:$0xff]  }
 0x1fa   :  { %3068 = vmatprep.mubr.bf16.mxu0 %v5756_v40  ;;  %5059 = vmatprep.mubr.msk.bf16.mxu1 %vm2047_vm1, %v5758_v21  ;;  %v5760_v9 = vld [vmem:[%s8021_s0 + $0x498] ss:$20 sps:$4 sm:$0xff]   ;;  %v2383_v21 = vadd.f32 %v6869_v17, %v6372_v38 }
 0x1fc   :  { %v6901_v1 = vpop.f32.mrb[116].mxu1  ;;  %v2854_v4 = vpop.f32.mrb[60].mxu0 }
 0x1fd   :  { %8061 = vst [vmem:[#allocation39_spill] sm:$0xff] %v6901_v1  ;;  %v6903_v12 = vadd.f32 %v2854_v4, %v2375_v32  ;;  %v2600_v52 = vpop.f32.mrb[117].mxu1  ;;  %v2856_v41 = vpop.f32.mrb[61].mxu0  ;;  %v5761_v4 = vld [vmem:[%s8021_s0 + $0x6c4] ss:$20 sps:$4 sm:$0xff]  }
 0x1fe   :  { %v6913_v22 = vpop.f32.mrb[118].mxu1  ;;  %v2857_v30 = vpop.f32.mrb[62].mxu0  ;;  %v5763_v52 = vld [vmem:[%s8021_s0 + $0x4c0] ss:$20 sps:$4 sm:$0xff]  }
 0x1ff   :  { %8062 = vst [vmem:[#allocation40_spill] sm:$0xff] %v6913_v22  ;;  %v6921_v34 = vadd.f32 %v2857_v30, %v2378_v61  ;;  %v2603_v41 = vpop.f32.mrb[119].mxu1  ;;  %v2859_v40 = vpop.f32.mrb[63].mxu0  ;;  %v2386_v61 = vadd.f32 %v6869_v17, %v6380_v42 }
 0x200   :  { %v2391_v41 = vadd.f32 %v6869_v17, %v6388_v46 }
 0x201   :  { %3069 = vmatmul.mubr.bf16.gmra.mrb[168].mxu0 %v5759_v53  ;;  %5060 = vmatmul.mubr.msk.bf16.gmra.mrb[224].mxu1 %vm2047_vm1, %v5760_v9  ;;  %v5764_v53 = vld [vmem:[%s8021_s0 + $0x6c0] ss:$20 sps:$4 sm:$0xff]   ;;  %v5765_v9 = vld [vmem:[%s8021_s0 + $0x4e8] ss:$20 sps:$4 sm:$0xff]  }
 0x202   :  { %3076 = vmatprep.mubr.bf16.mxu0 %v5761_v4  ;;  %5063 = vmatprep.mubr.msk.bf16.mxu1 %vm2047_vm1, %v5763_v52  ;;  %v5766_v4 = vld [vmem:[%s8021_s0 + $0x6ec] ss:$20 sps:$4 sm:$0xff]  }
 0x204   :  { %v6927_v10 = vpop.f32.mrb[120].mxu1  ;;  %v2862_v51 = vpop.f32.mrb[64].mxu0 }
 0x205   :  { %8063 = vst [vmem:[#allocation41_spill] sm:$0xff] %v6927_v10  ;;  %v6929_v32 = vadd.f32 %v2862_v51, %v2383_v21  ;;  %v2608_v22 = vpop.f32.mrb[121].mxu1  ;;  %v2864_v1 = vpop.f32.mrb[65].mxu0 }
 0x206   :  { %v6939_v30 = vpop.f32.mrb[122].mxu1  ;;  %v2865_v38 = vpop.f32.mrb[66].mxu0  ;;  %v5768_v1 = vld [vmem:[%s8021_s0 + $0x510] ss:$20 sps:$4 sm:$0xff]  }
 0x207   :  { %8064 = vst [vmem:[#allocation42_spill] sm:$0xff] %v6939_v30  ;;  %v6947_v42 = vadd.f32 %v2865_v38, %v2386_v61  ;;  %v2611_v22 = vpop.f32.mrb[123].mxu1  ;;  %v2867_v52 = vpop.f32.mrb[67].mxu0  ;;  %v2394_v61 = vadd.f32 %v6869_v17, %v6396_v50 }
 0x208   :  { %v2399_v22 = vadd.f32 %v6869_v17, %v6404_v54 }
 0x209   :  { %3077 = vmatmul.mubr.bf16.gmra.mrb[172].mxu0 %v5764_v53  ;;  %5064 = vmatmul.mubr.msk.bf16.gmra.mrb[228].mxu1 %vm2047_vm1, %v5765_v9  ;;  %v5769_v53 = vld [vmem:[%s8021_s0 + $0x6e8] ss:$20 sps:$4 sm:$0xff]   ;;  %v5770_v9 = vld [vmem:[%s8021_s0 + $0x538] ss:$20 sps:$4 sm:$0xff]  }
 0x20a   :  { %3084 = vmatprep.mubr.bf16.mxu0 %v5766_v4  ;;  %5067 = vmatprep.mubr.msk.bf16.mxu1 %vm2047_vm1, %v5768_v1  ;;  %v5771_v4 = vld [vmem:[%s8021_s0 + $0x714] ss:$20 sps:$4 sm:$0xff]  }
 0x20c   :  { %v6953_v40 = vpop.f32.mrb[124].mxu1  ;;  %v2870_v21 = vpop.f32.mrb[68].mxu0 }
 0x20d   :  { %8065 = vst [vmem:[#allocation43_spill] sm:$0xff] %v6953_v40  ;;  %v6955_v51 = vadd.f32 %v2870_v21, %v2391_v41  ;;  %v2616_v30 = vpop.f32.mrb[125].mxu1  ;;  %v2872_v10 = vpop.f32.mrb[69].mxu0 }
 0x20e   :  { %v6965_v38 = vpop.f32.mrb[126].mxu1  ;;  %v2873_v46 = vpop.f32.mrb[70].mxu0  ;;  %v5773_v10 = vld [vmem:[%s8021_s0 + $0x560] ss:$20 sps:$4 sm:$0xff]  }
 0x20f   :  { %8066 = vst [vmem:[#allocation44_spill] sm:$0xff] %v6965_v38  ;;  %v6973_v50 = vadd.f32 %v2873_v46, %v2394_v61  ;;  %v2619_v30 = vpop.f32.mrb[127].mxu1  ;;  %v2875_v1 = vpop.f32.mrb[71].mxu0  ;;  %v2402_v61 = vadd.f32 %v6869_v17, %v6412_v58 }
 0x210   :  { %v2407_v30 = vadd.f32 %v6869_v17, %v6420_v62 }
 0x211   :  { %3085 = vmatmul.mubr.bf16.gmra.mrb[176].mxu0 %v5769_v53  ;;  %5068 = vmatmul.mubr.msk.bf16.gmra.mrb[232].mxu1 %vm2047_vm1, %v5770_v9  ;;  %v5774_v53 = vld [vmem:[%s8021_s0 + $0x710] ss:$20 sps:$4 sm:$0xff]   ;;  %v5775_v9 = vld [vmem:[%s8021_s0 + $0x588] ss:$20 sps:$4 sm:$0xff]  }
 0x212   :  { %3092 = vmatprep.mubr.bf16.mxu0 %v5771_v4  ;;  %5071 = vmatprep.mubr.msk.bf16.mxu1 %vm2047_vm1, %v5773_v10  ;;  %v5776_v4 = vld [vmem:[%s8021_s0 + $0x73c] ss:$20 sps:$4 sm:$0xff]  }
 0x214   :  { %v6979_v52 = vpop.f32.mrb[128].mxu1  ;;  %v2878_v41 = vpop.f32.mrb[72].mxu0 }
 0x215   :  { %8067 = vst [vmem:[#allocation45_spill] sm:$0xff] %v6979_v52  ;;  %v6981_v21 = vadd.f32 %v2878_v41, %v2399_v22  ;;  %v2624_v38 = vpop.f32.mrb[129].mxu1  ;;  %v2880_v40 = vpop.f32.mrb[73].mxu0  ;;  %v2410_v41 = vadd.f32 %v6869_v17, %v6428_v3  ;;  %v5783_v3 = vld [vmem:[%s8021_s0 + $0x600] ss:$20 sps:$4 sm:$0xff]  }
 0x216   :  { %v6991_v46 = vpop.f32.mrb[130].mxu1  ;;  %v2881_v54 = vpop.f32.mrb[74].mxu0  ;;  %v5778_v40 = vld [vmem:[%s8021_s0 + $0x5b0] ss:$20 sps:$4 sm:$0xff]  }
 0x217   :  { %8068 = vst [vmem:[#allocation46_spill] sm:$0xff] %v6991_v46  ;;  %v6999_v58 = vadd.f32 %v2881_v54, %v2402_v61  ;;  %v2627_v38 = vpop.f32.mrb[131].mxu1  ;;  %v2883_v10 = vpop.f32.mrb[75].mxu0 }
 0x219   :  { %3093 = vmatmul.mubr.bf16.gmra.mrb[180].mxu0 %v5774_v53  ;;  %5072 = vmatmul.mubr.msk.bf16.gmra.mrb[236].mxu1 %vm2047_vm1, %v5775_v9  ;;  %v5779_v53 = vld [vmem:[%s8021_s0 + $0x738] ss:$20 sps:$4 sm:$0xff]  }
 0x21a   :  { %3100 = vmatprep.mubr.bf16.mxu0 %v5776_v4  ;;  %5075 = vmatprep.mubr.msk.bf16.mxu1 %vm2047_vm1, %v5778_v40  ;;  %v5780_v9 = vld [vmem:[%s8021_s0 + $0x5d8] ss:$20 sps:$4 sm:$0xff]  }
 0x21b   :  { %v5781_v40 = vld [vmem:[%s8021_s0 + $0x764] ss:$20 sps:$4 sm:$0xff]  }
 0x21c   :  { %v7005_v1 = vpop.f32.mrb[132].mxu1  ;;  %v2886_v22 = vpop.f32.mrb[76].mxu0 }
 0x21d   :  { %8069 = vst [vmem:[#allocation47_spill] sm:$0xff] %v7005_v1  ;;  %v7009_v46 = vadd.f32 %v2886_v22, %v2407_v30  ;;  %v2632_v61 = vpop.f32.mrb[133].mxu1  ;;  %v2888_v54 = vpop.f32.mrb[77].mxu0  ;;  %v2415_v22 = vadd.f32 %v6869_v17, %v6436_v7 }
 0x21e   :  { %v7017_v4 = vpop.f32.mrb[134].mxu1  ;;  %v2889_v62 = vpop.f32.mrb[78].mxu0 }
 0x21f   :  { %8070 = vst [vmem:[#allocation48_spill] sm:$0xff] %v7017_v4  ;;  %v7025_v38 = vadd.f32 %v2889_v62, %v2410_v41  ;;  %v2635_v10 = vpop.f32.mrb[135].mxu1  ;;  %v2891_v30 = vpop.f32.mrb[79].mxu0  ;;  %v2418_v4 = vadd.f32 %v6869_v17, %v6444_v11  ;;  %v5788_v11 = vld [vmem:[%s8021_s0 + $0x650] ss:$20 sps:$4 sm:$0xff]  }
 0x221   :  { %3101 = vmatmul.mubr.bf16.gmra.mrb[184].mxu0 %v5779_v53  ;;  %5076 = vmatmul.mubr.msk.bf16.gmra.mrb[240].mxu1 %vm2047_vm1, %v5780_v9  ;;  %v5784_v53 = vld [vmem:[%s8021_s0 + $0x760] ss:$20 sps:$4 sm:$0xff]   ;;  %v5785_v9 = vld [vmem:[%s8021_s0 + $0x628] ss:$20 sps:$4 sm:$0xff]  }
 0x222   :  { %3108 = vmatprep.mubr.bf16.mxu0 %v5781_v40  ;;  %5079 = vmatprep.mubr.msk.bf16.mxu1 %vm2047_vm1, %v5783_v3  ;;  %v5786_v3 = vld [vmem:[%s8021_s0 + $0x78c] ss:$20 sps:$4 sm:$0xff]  }
 0x224   :  { %v7031_v61 = vpop.f32.mrb[136].mxu1  ;;  %v2894_v54 = vpop.f32.mrb[80].mxu0 }
 0x225   :  { %8071 = vst [vmem:[#allocation49_spill] sm:$0xff] %v7031_v61  ;;  %v7035_v1 = vadd.f32 %v2894_v54, %v2415_v22  ;;  %v2640_v41 = vpop.f32.mrb[137].mxu1  ;;  %v2896_v62 = vpop.f32.mrb[81].mxu0  ;;  %v2423_v54 = vadd.f32 %v6869_v17, %v6452_v0 }
 0x226   :  { %v7043_v40 = vpop.f32.mrb[138].mxu1  ;;  %v2897_v7 = vpop.f32.mrb[82].mxu0 }
 0x227   :  { %8072 = vst [vmem:[#allocation50_spill] sm:$0xff] %v7043_v40  ;;  %v7051_v10 = vadd.f32 %v2897_v7, %v2418_v4  ;;  %v2643_v30 = vpop.f32.mrb[139].mxu1  ;;  %v2899_v22 = vpop.f32.mrb[83].mxu0  ;;  %v2426_v40 = vadd.f32 %v6869_v17, %v6460_v18  ;;  %v5793_v18 = vld [vmem:[%s8021_s0 + $0x6a0] ss:$20 sps:$4 sm:$0xff]  }
 0x229   :  { %3109 = vmatmul.mubr.bf16.gmra.mrb[188].mxu0 %v5784_v53  ;;  %5080 = vmatmul.mubr.msk.bf16.gmra.mrb[244].mxu1 %vm2047_vm1, %v5785_v9  ;;  %v5789_v53 = vld [vmem:[%s8021_s0 + $0x788] ss:$20 sps:$4 sm:$0xff]   ;;  %v5790_v9 = vld [vmem:[%s8021_s0 + $0x678] ss:$20 sps:$4 sm:$0xff]  }
 0x22a   :  { %3116 = vmatprep.mubr.bf16.mxu0 %v5786_v3  ;;  %5083 = vmatprep.mubr.msk.bf16.mxu1 %vm2047_vm1, %v5788_v11  ;;  %v5791_v11 = vld [vmem:[%s8021_s0 + $0x7b4] ss:$20 sps:$4 sm:$0xff]  }
 0x22c   :  { %v7057_v41 = vpop.f32.mrb[140].mxu1  ;;  %v2902_v62 = vpop.f32.mrb[84].mxu0 }
 0x22d   :  { %8073 = vst [vmem:[#allocation51_spill] sm:$0xff] %v7057_v41  ;;  %v7061_v61 = vadd.f32 %v2902_v62, %v2423_v54  ;;  %v2648_v4 = vpop.f32.mrb[141].mxu1  ;;  %v2904_v7 = vpop.f32.mrb[85].mxu0  ;;  %v2431_v62 = vadd.f32 %v6869_v17, %v6468_v23 }
 0x22e   :  { %v7069_v3 = vpop.f32.mrb[142].mxu1  ;;  %v2905_v0 = vpop.f32.mrb[86].mxu0 }
 0x22f   :  { %8074 = vst [vmem:[#allocation52_spill] sm:$0xff] %v7069_v3  ;;  %v7077_v30 = vadd.f32 %v2905_v0, %v2426_v40  ;;  %v2651_v22 = vpop.f32.mrb[143].mxu1  ;;  %v2907_v54 = vpop.f32.mrb[87].mxu0  ;;  %v2434_v3 = vadd.f32 %v6869_v17, %v6476_v28  ;;  %v5798_v28 = vld [vmem:[%s8021_s0 + $0x6f0] ss:$20 sps:$4 sm:$0xff]  }
 0x231   :  { %3117 = vmatmul.mubr.bf16.gmra.mrb[192].mxu0 %v5789_v53  ;;  %5084 = vmatmul.mubr.msk.bf16.gmra.mrb[248].mxu1 %vm2047_vm1, %v5790_v9  ;;  %v5794_v53 = vld [vmem:[%s8021_s0 + $0x7b0] ss:$20 sps:$4 sm:$0xff]   ;;  %v5795_v9 = vld [vmem:[%s8021_s0 + $0x6c8] ss:$20 sps:$4 sm:$0xff]  }
 0x232   :  { %3124 = vmatprep.mubr.bf16.mxu0 %v5791_v11  ;;  %5087 = vmatprep.mubr.msk.bf16.mxu1 %vm2047_vm1, %v5793_v18  ;;  %v5796_v18 = vld [vmem:[%s8021_s0 + $0x7dc] ss:$20 sps:$4 sm:$0xff]  }
 0x234   :  { %v7083_v4 = vpop.f32.mrb[144].mxu1  ;;  %v2910_v7 = vpop.f32.mrb[88].mxu0 }
 0x235   :  { %8075 = vst [vmem:[#allocation53_spill] sm:$0xff] %v7083_v4  ;;  %v7087_v41 = vadd.f32 %v2910_v7, %v2431_v62  ;;  %v2656_v40 = vpop.f32.mrb[145].mxu1  ;;  %v2912_v0 = vpop.f32.mrb[89].mxu0  ;;  %v2439_v7 = vadd.f32 %v6869_v17, %v6484_v33 }
 0x236   :  { %v7095_v11 = vpop.f32.mrb[146].mxu1  ;;  %v2913_v23 = vpop.f32.mrb[90].mxu0 }
 0x237   :  { %8076 = vst [vmem:[#allocation54_spill] sm:$0xff] %v7095_v11  ;;  %v7103_v22 = vadd.f32 %v2913_v23, %v2434_v3  ;;  %v2659_v54 = vpop.f32.mrb[147].mxu1  ;;  %v2915_v62 = vpop.f32.mrb[91].mxu0  ;;  %v2442_v11 = vadd.f32 %v6869_v17, %v6492_v39  ;;  %v5803_v39 = vld [vmem:[%s8021_s0 + $0x740] ss:$20 sps:$4 sm:$0xff]  }
 0x239   :  { %3125 = vmatmul.mubr.bf16.gmra.mrb[196].mxu0 %v5794_v53  ;;  %5088 = vmatmul.mubr.msk.bf16.gmra.mrb[252].mxu1 %vm2047_vm1, %v5795_v9  ;;  %v5799_v53 = vld [vmem:[%s8021_s0 + $0x7d8] ss:$20 sps:$4 sm:$0xff]  }
 0x23a   :  { %3132 = vmatprep.mubr.bf16.mxu0 %v5796_v18  ;;  %5091 = vmatprep.mubr.msk.bf16.mxu1 %vm2047_vm1, %v5798_v28  ;;  %v5800_v9 = vld [vmem:[%s8021_s0 + $0x718] ss:$20 sps:$4 sm:$0xff]  }
 0x23b   :  { %v5801_v28 = vld [vmem:[%s8021_s0 + $0x804] ss:$20 sps:$4 sm:$0xff]  }
 0x23c   :  { %v7109_v40 = vpop.f32.mrb[148].mxu1  ;;  %v2918_v0 = vpop.f32.mrb[92].mxu0 }
 0x23d   :  { %8077 = vst [vmem:[#allocation55_spill] sm:$0xff] %v7109_v40  ;;  %v7113_v4 = vadd.f32 %v2918_v0, %v2439_v7  ;;  %v2664_v3 = vpop.f32.mrb[149].mxu1  ;;  %v2920_v23 = vpop.f32.mrb[93].mxu0  ;;  %v2447_v0 = vadd.f32 %v6869_v17, %v6500_v44 }
 0x23e   :  { %v7121_v18 = vpop.f32.mrb[150].mxu1  ;;  %v2921_v33 = vpop.f32.mrb[94].mxu0 }
 0x23f   :  { %8078 = vst [vmem:[#allocation56_spill] sm:$0xff] %v7121_v18  ;;  %v7129_v54 = vadd.f32 %v2921_v33, %v2442_v11  ;;  %v2667_v62 = vpop.f32.mrb[151].mxu1  ;;  %v2923_v7 = vpop.f32.mrb[95].mxu0  ;;  %v2450_v18 = vadd.f32 %v6869_v17, %v6508_v49  ;;  %v5808_v49 = vld [vmem:[%s8021_s0 + $0x790] ss:$20 sps:$4 sm:$0xff]  }
 0x241   :  { %3133 = vmatmul.mubr.bf16.gmra.mrb[200].mxu0 %v5799_v53  ;;  %5092 = vmatmul.mubr.msk.bf16.gmra.mrb[0].mxu1 %vm2047_vm1, %v5800_v9  ;;  %v5804_v53 = vld [vmem:[%s8021_s0 + $0x800] ss:$20 sps:$4 sm:$0xff]   ;;  %v5805_v9 = vld [vmem:[%s8021_s0 + $0x768] ss:$20 sps:$4 sm:$0xff]  }
 0x242   :  { %3140 = vmatprep.mubr.bf16.mxu0 %v5801_v28  ;;  %5095 = vmatprep.mubr.msk.bf16.mxu1 %vm2047_vm1, %v5803_v39  ;;  %v5806_v39 = vld [vmem:[%s8021_s0 + $0x82c] ss:$20 sps:$4 sm:$0xff]  }
 0x244   :  { %v7135_v3 = vpop.f32.mrb[152].mxu1  ;;  %v2926_v23 = vpop.f32.mrb[96].mxu0 }
 0x245   :  { %8079 = vst [vmem:[#allocation57_spill] sm:$0xff] %v7135_v3  ;;  %v7139_v40 = vadd.f32 %v2926_v23, %v2447_v0  ;;  %v2672_v11 = vpop.f32.mrb[153].mxu1  ;;  %v2928_v33 = vpop.f32.mrb[97].mxu0  ;;  %v2455_v23 = vadd.f32 %v6869_v17, %v6516_v55 }
 0x246   :  { %v7147_v28 = vpop.f32.mrb[154].mxu1  ;;  %v2929_v44 = vpop.f32.mrb[98].mxu0 }
 0x247   :  { %8080 = vst [vmem:[#allocation58_spill] sm:$0xff] %v7147_v28  ;;  %v7155_v62 = vadd.f32 %v2929_v44, %v2450_v18  ;;  %v2675_v7 = vpop.f32.mrb[155].mxu1  ;;  %v2931_v0 = vpop.f32.mrb[99].mxu0  ;;  %v2458_v28 = vadd.f32 %v6869_v17, %v6524_v60  ;;  %v5813_v60 = vld [vmem:[%s8021_s0 + $0x7e0] ss:$20 sps:$4 sm:$0xff]  }
 0x249   :  { %3141 = vmatmul.mubr.bf16.gmra.mrb[204].mxu0 %v5804_v53  ;;  %5096 = vmatmul.mubr.msk.bf16.gmra.mrb[4].mxu1 %vm2047_vm1, %v5805_v9  ;;  %v5809_v53 = vld [vmem:[%s8021_s0 + $0x828] ss:$20 sps:$4 sm:$0xff]   ;;  %v5810_v9 = vld [vmem:[%s8021_s0 + $0x7b8] ss:$20 sps:$4 sm:$0xff]  }
 0x24a   :  { %3148 = vmatprep.mubr.bf16.mxu0 %v5806_v39  ;;  %5099 = vmatprep.mubr.msk.bf16.mxu1 %vm2047_vm1, %v5808_v49  ;;  %v5811_v49 = vld [vmem:[%s8021_s0 + $0x854] ss:$20 sps:$4 sm:$0xff]  }
 0x24c   :  { %v7161_v11 = vpop.f32.mrb[156].mxu1  ;;  %v2934_v33 = vpop.f32.mrb[100].mxu0 }
 0x24d   :  { %8081 = vst [vmem:[#allocation59_spill] sm:$0xff] %v7161_v11  ;;  %v7165_v3 = vadd.f32 %v2934_v33, %v2455_v23  ;;  %v2680_v18 = vpop.f32.mrb[157].mxu1  ;;  %v2936_v44 = vpop.f32.mrb[101].mxu0  ;;  %v2463_v33 = vadd.f32 %v6869_v17, %v6532_v2 }
 0x24e   :  { %v7173_v39 = vpop.f32.mrb[158].mxu1  ;;  %v2937_v55 = vpop.f32.mrb[102].mxu0 }
 0x24f   :  { %8082 = vst [vmem:[#allocation60_spill] sm:$0xff] %v7173_v39  ;;  %v7181_v7 = vadd.f32 %v2937_v55, %v2458_v28  ;;  %v2683_v0 = vpop.f32.mrb[159].mxu1  ;;  %v2939_v23 = vpop.f32.mrb[103].mxu0  ;;  %v2466_v39 = vadd.f32 %v6869_v17, %v6540_v8  ;;  %v5818_v8 = vld [vmem:[%s8021_s0 + $0x830] ss:$20 sps:$4 sm:$0xff]  }
 0x251   :  { %3149 = vmatmul.mubr.bf16.gmra.mrb[208].mxu0 %v5809_v53  ;;  %5100 = vmatmul.mubr.msk.bf16.gmra.mrb[8].mxu1 %vm2047_vm1, %v5810_v9  ;;  %v5814_v53 = vld [vmem:[%s8021_s0 + $0x850] ss:$20 sps:$4 sm:$0xff]   ;;  %v5815_v9 = vld [vmem:[%s8021_s0 + $0x808] ss:$20 sps:$4 sm:$0xff]  }
 0x252   :  { %3156 = vmatprep.mubr.bf16.mxu0 %v5811_v49  ;;  %5103 = vmatprep.mubr.msk.bf16.mxu1 %vm2047_vm1, %v5813_v60  ;;  %v5816_v60 = vld [vmem:[%s8021_s0 + $0x87c] ss:$20 sps:$4 sm:$0xff]  }
 0x254   :  { %v7187_v18 = vpop.f32.mrb[160].mxu1  ;;  %v2942_v44 = vpop.f32.mrb[104].mxu0 }
 0x255   :  { %8083 = vst [vmem:[#allocation61_spill] sm:$0xff] %v7187_v18  ;;  %v7191_v11 = vadd.f32 %v2942_v44, %v2463_v33  ;;  %v2688_v28 = vpop.f32.mrb[161].mxu1  ;;  %v2944_v55 = vpop.f32.mrb[105].mxu0  ;;  %v2471_v44 = vadd.f32 %v6869_v17, %v6551_v14  ;;  %v5820_v14 = vld [vmem:[%s8021_s0 + $0x858] ss:$20 sps:$4 sm:$0xff]  }
 0x256   :  { %v7199_v49 = vpop.f32.mrb[162].mxu1  ;;  %v2945_v2 = vpop.f32.mrb[106].mxu0  ;;  %v346_v28 = vld [vmem:[%s8021_s0 + $0x8a0] sm:$0xff] }
 0x257   :  { %8084 = vst [vmem:[#allocation62_spill] sm:$0xff] %v7191_v11  ;;  %8085 = vst [vmem:[#allocation63_spill] sm:$0xff] %v7199_v49  ;;  %v7207_v0 = vadd.f32 %v2945_v2, %v2466_v39  ;;  %v2691_v23 = vpop.f32.mrb[163].mxu1  ;;  %v2947_v33 = vpop.f32.mrb[107].mxu0  ;;  %v2474_v39 = vadd.f32 %v6869_v17, %v6559_v19 }
 0x258   :  { %v4611_v33 = vcombine.high %v346_v28, %v346_v28 }
 0x259   :  { %8086 = vst [vmem:[#allocation64_spill] sm:$0xff] %v7207_v0  ;;  %3157 = vmatmul.mubr.bf16.gmra.mrb[212].mxu0 %v5814_v53  ;;  %5104 = vmatmul.mubr.msk.bf16.gmra.mrb[12].mxu1 %vm2047_vm1, %v5815_v9 }
 0x25a   :  { %3164 = vmatprep.mubr.bf16.mxu0 %v5816_v60  ;;  %5107 = vmatprep.mubr.msk.bf16.mxu1 %vm2047_vm1, %v5818_v8  ;;  %v5819_v60 = vld [vmem:[%s8021_s0 + $0x878] ss:$20 sps:$4 sm:$0xff]  }
 0x25c   :  { %v7216_v55 = vpop.f32.mrb[164].mxu1  ;;  %v2950_v49 = vpop.f32.mrb[108].mxu0 }
 0x25d   :  { %8087 = vst [vmem:[#allocation65_spill] sm:$0xff] %v7216_v55  ;;  %v7220_v2 = vadd.f32 %v2950_v49, %v2471_v44  ;;  %v2696_v53 = vpop.f32.mrb[165].mxu1  ;;  %v2952_v9 = vpop.f32.mrb[109].mxu0  ;;  %v5822_v55 = vld [vmem:[%s8021_s0 + $0x880] ss:$20 sps:$4 sm:$0xff]  }
 0x25e   :  { %v2697_v8 = vpop.f32.mrb[166].mxu1  ;;  %v2953_v23 = vpop.f32.mrb[110].mxu0  ;;  %v2479_v53 = vadd.f32 %v6869_v17, %v6564_v25  ;;  %v5149_v9 = vadd.f32 %v6869_v17, %v6584_v48  ;;  %v4610_v25 = vcombine.low %v346_v28, %v346_v28  ;;  %v5824_v48 = vld [vmem:[%s8021_s0 + $0x8a8] ss:$0 sps:$4 sm:$0xff]  }
 0x25f   :  { %v7231_v19 = vadd.f32 %v2953_v23, %v2474_v39  ;;  %v2698_v49 = vpop.f32.mrb[167].mxu1  ;;  %v2955_v44 = vpop.f32.mrb[111].mxu0  ;;  %v5147_v8 = vadd.f32 %v6869_v17, %v6566_v27  ;;  %v2482_v39 = vadd.f32 %v6869_v17, %v6571_v36  ;;  %v5148_v27 = vadd.f32 %v6869_v17, %v6573_v37 }
 0x260   :  { %v2487_v37 = vadd.f32 %v6869_v17, %v6582_v47 }
 0x261   :  { %8088 = vst [vmem:[#allocation66_spill] sm:$0xff] %v7231_v19  ;;  %3165 = vmatmul.mubr.bf16.gmra.mrb[216].mxu0 %v5819_v60  ;;  %5108 = vmatmul.mubr.msk.bf16.gmra.mrb[164].mxu1 %vm2047_vm1, %v5820_v14  ;;  %v5150_v60 = vadd.f32 %v6869_v17, %v6594_v59 }
 0x262   :  { %3172 = vmatprep.mubr.bf16.mxu0 %v4611_v33  ;;  %5111 = vmatprep.mubr.msk.bf16.mxu1 %vm2047_vm1, %v5822_v55 }
 0x264   :  { %v2958_v23 = vpop.f32.mrb[112].mxu0  ;;  %v5005_v49 = vpop.f32.mrb[168].mxu1 }
 0x265   :  { %v7245_v14 = vadd.f32 %v2958_v23, %v2479_v53  ;;  %v3223_v55 = vadd.f32 %v5149_v9, %v5005_v49  ;;  %v2960_v33 = vpop.f32.mrb[113].mxu0  ;;  %v3214_v44 = vpop.f32.mrb[169].mxu1 }
 0x266   :  { %v3215_v18 = vadd.f32 %v5147_v8, %v3214_v44  ;;  %v2961_v36 = vpop.f32.mrb[114].mxu0  ;;  %v5006_v52 = vpop.f32.mrb[170].mxu1  ;;  %v5153_v8 = vadd.f32 %v6869_v17, %v6628_v31  ;;  %v2490_v31 = vadd.f32 %v6869_v17, %v6592_v57 }
 0x267   :  { %8089 = vst [vmem:[#allocation67_spill] sm:$0xff] %v7245_v14  ;;  %v3662_v0 = vmax.f32 %v3223_v55, 0.0  ;;  %v7252_v19 = vadd.f32 %v2961_v36, %v2482_v39  ;;  %v3226_v59 = vadd.f32 %v5150_v60, %v5006_v52  ;;  %v2963_v53 = vpop.f32.mrb[115].mxu0  ;;  %v3217_v23 = vpop.f32.mrb[171].mxu1  ;;  %v5154_v60 = vadd.f32 %v6869_v17, %v6638_v45 }
 0x268   :  { %v3660_v9 = vmax.f32 %v3215_v18, 0.0  ;;  %v3218_v49 = vadd.f32 %v5148_v27, %v3217_v23  ;;  %v5151_v18 = vadd.f32 %v6869_v17, %v6606_v6 }
 0x269   :  { %v4820_v28 = vpack.c.bf16 %v3662_v0, %v3662_v0  ;;  %v3663_v33 = vmax.f32 %v3226_v59, 0.0  ;;  %3173 = vmatmul.mubr.bf16.gmra.mrb[220].mxu0 %v4610_v25  ;;  %5112 = vmatmul.mubr.msk.bf16.gmra.mrb[16].mxu1 %vm2047_vm1, %v5824_v48 }
 0x26a   :  { %v4818_v14 = vpack.c.bf16 %v3660_v9, %v3660_v9  ;;  %v3661_v11 = vmax.f32 %v3218_v49, 0.0 }
 0x26b   :  { %4219 = vst.msk [vmem:[%s8023_s3 + $0x8] sm:$0xf] %vm4216_vm2, %v4820_v28  ;;  %v4821_v52 = vpack.c.bf16 %v3663_v33, %v3663_v33 }
 0x26c   :  { %4217 = vst.msk [vmem:[%s8023_s3] sm:$0xf] %vm4216_vm2, %v4818_v14  ;;  %v4819_v0 = vpack.c.bf16 %v3661_v11, %v3661_v11  ;;  %v2966_v39 = vpop.f32.mrb[116].mxu0  ;;  %v5009_v47 = vpop.f32.mrb[172].mxu1  ;;  %v5152_v11 = vadd.f32 %v6869_v17, %v6616_v16 }
 0x26d   :  { %4220 = vst.msk [vmem:[%s8023_s3 + $0xc] sm:$0xf] %vm4216_vm2, %v4821_v52  ;;  %v7277_v6 = vadd.f32 %v2966_v39, %v2487_v37  ;;  %v3239_v55 = vadd.f32 %v5153_v8, %v5009_v47  ;;  %v2968_v44 = vpop.f32.mrb[117].mxu0  ;;  %v3230_v25 = vpop.f32.mrb[173].mxu1  ;;  %v2495_v37 = vadd.f32 %v6869_v17, %v6604_v5  ;;  %v5157_v8 = vadd.f32 %v6869_v17, %v6672_v35 }
 0x26e   :  { %4218 = vst.msk [vmem:[%s8023_s3 + $0x4] sm:$0xf] %vm4216_vm2, %v4819_v0  ;;  %v3231_v57 = vadd.f32 %v5151_v18, %v3230_v25  ;;  %v2969_v45 = vpop.f32.mrb[118].mxu0  ;;  %v5010_v14 = vpop.f32.mrb[174].mxu1  ;;  %v5155_v18 = vadd.f32 %v6869_v17, %v6650_v63  ;;  %v2498_v35 = vadd.f32 %v6869_v17, %v6614_v15  ;;  %v5158_v47 = vadd.f32 %v6869_v17, %v6682_v56 }
 0x26f   :  { %v3666_v48 = vmax.f32 %v3239_v55, 0.0  ;;  %v7285_v27 = vadd.f32 %v2969_v45, %v2490_v31  ;;  %v3242_v36 = vadd.f32 %v5154_v60, %v5010_v14  ;;  %v2971_v59 = vpop.f32.mrb[119].mxu0  ;;  %v3233_v53 = vpop.f32.mrb[175].mxu1  ;;  %v5156_v44 = vadd.f32 %v6869_v17, %v6660_v13 }
 0x270   :  { %v3664_v23 = vmax.f32 %v3231_v57, 0.0  ;;  %v3234_v9 = vadd.f32 %v5152_v11, %v3233_v53 }
 0x271   :  { %v4824_v49 = vpack.c.bf16 %v3666_v48, %v3666_v48  ;;  %v3667_v28 = vmax.f32 %v3242_v36, 0.0 }
 0x272   :  { %v4822_v33 = vpack.c.bf16 %v3664_v23, %v3664_v23  ;;  %v3665_v16 = vmax.f32 %v3234_v9, 0.0 }
 0x273   :  { %4223 = vst.msk [vmem:[%s8023_s3 + $0x18] sm:$0xf] %vm4216_vm2, %v4824_v49  ;;  %v4825_v52 = vpack.c.bf16 %v3667_v28, %v3667_v28  ;;  %v2503_v49 = vadd.f32 %v6869_v17, %v6626_v29  ;;  %v5161_v28 = vadd.f32 %v6869_v17, %v6716_v24  ;;  %v2506_v24 = vadd.f32 %v6869_v17, %v6636_v43 }
 0x274   :  { %4221 = vst.msk [vmem:[%s8023_s3 + $0x10] sm:$0xf] %vm4216_vm2, %v4822_v33  ;;  %v4823_v0 = vpack.c.bf16 %v3665_v16, %v3665_v16  ;;  %v2974_v39 = vpop.f32.mrb[120].mxu0  ;;  %v5013_v5 = vpop.f32.mrb[176].mxu1  ;;  %v5159_v16 = vadd.f32 %v6869_v17, %v6694_v20 }
 0x275   :  { %4224 = vst.msk [vmem:[%s8023_s3 + $0x1c] sm:$0xf] %vm4216_vm2, %v4825_v52  ;;  %v7309_v63 = vadd.f32 %v2974_v39, %v2495_v37  ;;  %v3255_v31 = vadd.f32 %v5157_v8, %v5013_v5  ;;  %v2976_v60 = vpop.f32.mrb[121].mxu0  ;;  %v3246_v55 = vpop.f32.mrb[177].mxu1  ;;  %v8090_v52 = vld [vmem:[#allocation11_spill] sm:$0xff] }
 0x276   :  { %4222 = vst.msk [vmem:[%s8023_s3 + $0x14] sm:$0xf] %vm4216_vm2, %v4823_v0  ;;  %v3247_v15 = vadd.f32 %v5155_v18, %v3246_v55  ;;  %v2977_v56 = vpop.f32.mrb[122].mxu0  ;;  %v5014_v25 = vpop.f32.mrb[178].mxu1  ;;  %v5162_v18 = vadd.f32 %v6869_v17, %v8090_v52  ;;  %v8096_v52 = vld [vmem:[#allocation19_spill] sm:$0xff] }
 0x277   :  { %v3670_v11 = vmax.f32 %v3255_v31, 0.0  ;;  %v7317_v57 = vadd.f32 %v2977_v56, %v2498_v35  ;;  %v3258_v45 = vadd.f32 %v5158_v47, %v5014_v25  ;;  %v2979_v14 = vpop.f32.mrb[123].mxu0  ;;  %v3249_v48 = vpop.f32.mrb[179].mxu1  ;;  %v8091_v35 = vld [vmem:[#allocation8_spill] sm:$0xff] }
 0x278   :  { %v3668_v36 = vmax.f32 %v3247_v15, 0.0  ;;  %v3250_v59 = vadd.f32 %v5156_v44, %v3249_v48  ;;  %v5160_v47 = vadd.f32 %v6869_v17, %v8091_v35 }
 0x279   :  { %v4828_v53 = vpack.c.bf16 %v3670_v11, %v3670_v11  ;;  %v3671_v23 = vmax.f32 %v3258_v45, 0.0 }
 0x27a   :  { %v4826_v9 = vpack.c.bf16 %v3668_v36, %v3668_v36  ;;  %v3669_v13 = vmax.f32 %v3250_v59, 0.0 }
 0x27b   :  { %4227 = vst.msk [vmem:[%s8023_s3 + $0x28] sm:$0xf] %vm4216_vm2, %v4828_v53  ;;  %v4829_v33 = vpack.c.bf16 %v3671_v23, %v3671_v23  ;;  %v8092_v53 = vld [vmem:[#allocation2_spill] sm:$0xff] }
 0x27c   :  { %4225 = vst.msk [vmem:[%s8023_s3 + $0x20] sm:$0xf] %vm4216_vm2, %v4826_v9  ;;  %v4827_v37 = vpack.c.bf16 %v3669_v13, %v3669_v13  ;;  %v2982_v8 = vpop.f32.mrb[124].mxu0  ;;  %v5017_v29 = vpop.f32.mrb[180].mxu1  ;;  %v2511_v23 = vadd.f32 %v6869_v17, %v8092_v53  ;;  %v8093_v9 = vld [vmem:[#allocation17_spill] sm:$0xff] }
 0x27d   :  { %4228 = vst.msk [vmem:[%s8023_s3 + $0x2c] sm:$0xf] %vm4216_vm2, %v4829_v33  ;;  %v7341_v20 = vadd.f32 %v2982_v8, %v2503_v49  ;;  %v3271_v0 = vadd.f32 %v5161_v28, %v5017_v29  ;;  %v2984_v39 = vpop.f32.mrb[125].mxu0  ;;  %v3262_v5 = vpop.f32.mrb[181].mxu1  ;;  %v5165_v13 = vadd.f32 %v6869_v17, %v8093_v9  ;;  %v8094_v28 = vld [vmem:[#allocation13_spill] sm:$0xff]  ;;  %v8095_v29 = vld [vmem:[#allocation3_spill] sm:$0xff] }
 0x27e   :  { %4226 = vst.msk [vmem:[%s8023_s3 + $0x24] sm:$0xf] %vm4216_vm2, %v4827_v37  ;;  %v3263_v43 = vadd.f32 %v5159_v16, %v3262_v5  ;;  %v2985_v31 = vpop.f32.mrb[126].mxu0  ;;  %v5018_v60 = vpop.f32.mrb[182].mxu1  ;;  %v5163_v33 = vadd.f32 %v6869_v17, %v8094_v28  ;;  %v8098_v9 = vld [vmem:[#allocation4_spill] sm:$0xff] }
 0x27f   :  { %v3674_v55 = vmax.f32 %v3271_v0, 0.0  ;;  %v7349_v44 = vadd.f32 %v2985_v31, %v2506_v24  ;;  %v3274_v15 = vadd.f32 %v5162_v18, %v5018_v60  ;;  %v2987_v56 = vpop.f32.mrb[127].mxu0  ;;  %v3265_v25 = vpop.f32.mrb[183].mxu1  ;;  %v2514_v24 = vadd.f32 %v6869_v17, %v8095_v29 }
 0x280   :  { %v3672_v11 = vmax.f32 %v3263_v43, 0.0  ;;  %v3266_v45 = vadd.f32 %v5160_v47, %v3265_v25  ;;  %v5166_v18 = vadd.f32 %v6869_v17, %v8096_v52  ;;  %v8097_v47 = vld [vmem:[#allocation15_spill] sm:$0xff]  ;;  %v8101_v52 = vld [vmem:[#allocation5_spill] sm:$0xff] }
 0x281   :  { %v4832_v14 = vpack.c.bf16 %v3674_v55, %v3674_v55  ;;  %v3675_v48 = vmax.f32 %v3274_v15, 0.0  ;;  %v5164_v43 = vadd.f32 %v6869_v17, %v8097_v47 }
 0x282   :  { %v4830_v36 = vpack.c.bf16 %v3672_v11, %v3672_v11  ;;  %v3673_v59 = vmax.f32 %v3266_v45, 0.0 }
 0x283   :  { %4231 = vst.msk [vmem:[%s8023_s3 + $0x38] sm:$0xf] %vm4216_vm2, %v4832_v14  ;;  %v4833_v49 = vpack.c.bf16 %v3675_v48, %v3675_v48 }
 0x284   :  { %4229 = vst.msk [vmem:[%s8023_s3 + $0x30] sm:$0xf] %vm4216_vm2, %v4830_v36  ;;  %v4831_v16 = vpack.c.bf16 %v3673_v59, %v3673_v59  ;;  %v2990_v37 = vpop.f32.mrb[128].mxu0  ;;  %v5021_v8 = vpop.f32.mrb[184].mxu1 }
 0x285   :  { %4232 = vst.msk [vmem:[%s8023_s3 + $0x3c] sm:$0xf] %vm4216_vm2, %v4833_v49  ;;  %v7373_v0 = vadd.f32 %v2990_v37, %v2511_v23  ;;  %v3287_v39 = vadd.f32 %v5165_v13, %v5021_v8  ;;  %v2992_v5 = vpop.f32.mrb[129].mxu0  ;;  %v3278_v35 = vpop.f32.mrb[185].mxu1  ;;  %v2519_v13 = vadd.f32 %v6869_v17, %v8098_v9  ;;  %v8099_v49 = vld [vmem:[#allocation25_spill] sm:$0xff] }
 0x286   :  { %4230 = vst.msk [vmem:[%s8023_s3 + $0x34] sm:$0xf] %vm4216_vm2, %v4831_v16  ;;  %v3279_v31 = vadd.f32 %v5163_v33, %v3278_v35  ;;  %v2993_v60 = vpop.f32.mrb[130].mxu0  ;;  %v5022_v55 = vpop.f32.mrb[186].mxu1  ;;  %v5169_v28 = vadd.f32 %v6869_v17, %v8099_v49  ;;  %v8100_v16 = vld [vmem:[#allocation21_spill] sm:$0xff] }
 0x287   :  { %v3678_v15 = vmax.f32 %v3287_v39, 0.0  ;;  %v7381_v56 = vadd.f32 %v2993_v60, %v2514_v24  ;;  %v3290_v25 = vadd.f32 %v5166_v18, %v5022_v55  ;;  %v2995_v11 = vpop.f32.mrb[131].mxu0  ;;  %v3281_v45 = vpop.f32.mrb[187].mxu1  ;;  %v5167_v37 = vadd.f32 %v6869_v17, %v8100_v16  ;;  %v8102_v39 = vld [vmem:[#allocation27_spill] sm:$0xff] }
 0x288   :  { %v3676_v14 = vmax.f32 %v3279_v31, 0.0  ;;  %v3282_v48 = vadd.f32 %v5164_v43, %v3281_v45  ;;  %v2522_v18 = vadd.f32 %v6869_v17, %v8101_v52  ;;  %v5170_v5 = vadd.f32 %v6869_v17, %v8102_v39  ;;  %v8103_v60 = vld [vmem:[#allocation23_spill] sm:$0xff] }
 0x289   :  { %v4836_v36 = vpack.c.bf16 %v3678_v15, %v3678_v15  ;;  %v3679_v59 = vmax.f32 %v3290_v25, 0.0  ;;  %v5168_v55 = vadd.f32 %v6869_v17, %v8103_v60 }
 0x28a   :  { %v4834_v53 = vpack.c.bf16 %v3676_v14, %v3676_v14  ;;  %v3677_v23 = vmax.f32 %v3282_v48, 0.0 }
 0x28b   :  { %4235 = vst.msk [vmem:[%s8023_s3 + $0x48] sm:$0xf] %vm4216_vm2, %v4836_v36  ;;  %v4837_v33 = vpack.c.bf16 %v3679_v59, %v3679_v59 }
 0x28c   :  { %4233 = vst.msk [vmem:[%s8023_s3 + $0x40] sm:$0xf] %vm4216_vm2, %v4834_v53  ;;  %v4835_v8 = vpack.c.bf16 %v3677_v23, %v3677_v23  ;;  %v2998_v29 = vpop.f32.mrb[132].mxu0  ;;  %v5025_v24 = vpop.f32.mrb[188].mxu1 }
 0x28d   :  { %4236 = vst.msk [vmem:[%s8023_s3 + $0x4c] sm:$0xf] %vm4216_vm2, %v4837_v33  ;;  %v7405_v35 = vadd.f32 %v2998_v29, %v2519_v13  ;;  %v3303_v47 = vadd.f32 %v5169_v28, %v5025_v24  ;;  %v3000_v43 = vpop.f32.mrb[133].mxu0  ;;  %v3294_v31 = vpop.f32.mrb[189].mxu1  ;;  %v8104_v33 = vld [vmem:[#allocation6_spill] sm:$0xff]  ;;  %v8105_v29 = vld [vmem:[#allocation33_spill] sm:$0xff] }
 0x28e   :  { %4234 = vst.msk [vmem:[%s8023_s3 + $0x44] sm:$0xf] %vm4216_vm2, %v4835_v8  ;;  %v3295_v15 = vadd.f32 %v5167_v37, %v3294_v31  ;;  %v3001_v25 = vpop.f32.mrb[134].mxu0  ;;  %v5026_v11 = vpop.f32.mrb[190].mxu1  ;;  %v2527_v16 = vadd.f32 %v6869_v17, %v8104_v33  ;;  %v5173_v37 = vadd.f32 %v6869_v17, %v8105_v29  ;;  %v8106_v24 = vld [vmem:[#allocation29_spill] sm:$0xff]  ;;  %v8108_v31 = vld [vmem:[#allocation35_spill] sm:$0xff] }
 0x28f   :  { %v3682_v45 = vmax.f32 %v3303_v47, 0.0  ;;  %v7413_v14 = vadd.f32 %v3001_v25, %v2522_v18  ;;  %v3306_v48 = vadd.f32 %v5170_v5, %v5026_v11  ;;  %v3003_v36 = vpop.f32.mrb[135].mxu0  ;;  %v3297_v59 = vpop.f32.mrb[191].mxu1  ;;  %v5171_v52 = vadd.f32 %v6869_v17, %v8106_v24  ;;  %v8107_v47 = vld [vmem:[#allocation7_spill] sm:$0xff] }
 0x290   :  { %v3680_v53 = vmax.f32 %v3295_v15, 0.0  ;;  %v3298_v23 = vadd.f32 %v5168_v55, %v3297_v59  ;;  %v2530_v43 = vadd.f32 %v6869_v17, %v8107_v47  ;;  %v5174_v60 = vadd.f32 %v6869_v17, %v8108_v31  ;;  %v7460_v31 = vld [vmem:[%s8022_s2] ss:$0 sm:$0xff] }
 0x291   :  { %v4840_v9 = vpack.c.bf16 %v3682_v45, %v3682_v45  ;;  %v3683_v13 = vmax.f32 %v3306_v48, 0.0  ;;  %v8109_v45 = vld [vmem:[#allocation31_spill] sm:$0xff] }
 0x292   :  { %v4838_v49 = vpack.c.bf16 %v3680_v53, %v3680_v53  ;;  %v3681_v28 = vmax.f32 %v3298_v23, 0.0  ;;  %v5172_v48 = vadd.f32 %v6869_v17, %v8109_v45 }
 0x293   :  { %4239 = vst.msk [vmem:[%s8023_s3 + $0x58] sm:$0xf] %vm4216_vm2, %v4840_v9  ;;  %v4841_v8 = vpack.c.bf16 %v3683_v13, %v3683_v13 }
 0x294   :  { %4237 = vst.msk [vmem:[%s8023_s3 + $0x50] sm:$0xf] %vm4216_vm2, %v4838_v49  ;;  %v4839_v18 = vpack.c.bf16 %v3681_v28, %v3681_v28  ;;  %v3006_v39 = vpop.f32.mrb[136].mxu0  ;;  %v5029_v5 = vpop.f32.mrb[192].mxu1 }
 0x295   :  { %4240 = vst.msk [vmem:[%s8023_s3 + $0x5c] sm:$0xf] %vm4216_vm2, %v4841_v8  ;;  %v7437_v55 = vadd.f32 %v3006_v39, %v2527_v16  ;;  %v3319_v15 = vadd.f32 %v5173_v37, %v5029_v5  ;;  %v3008_v25 = vpop.f32.mrb[137].mxu0  ;;  %v3310_v11 = vpop.f32.mrb[193].mxu1  ;;  %v8110_v39 = vld [vmem:[#allocation9_spill] sm:$0xff] }
 0x296   :  { %4238 = vst.msk [vmem:[%s8023_s3 + $0x54] sm:$0xf] %vm4216_vm2, %v4839_v18  ;;  %v3311_v36 = vadd.f32 %v5171_v52, %v3310_v11  ;;  %v3009_v59 = vpop.f32.mrb[138].mxu0  ;;  %v5030_v53 = vpop.f32.mrb[194].mxu1  ;;  %v2535_v5 = vadd.f32 %v6869_v17, %v8110_v39  ;;  %v8111_v17 = vld [vmem:[#allocation10_spill] sm:$0xff]  ;;  %v8113_v39 = vld [vmem:[#allocation12_spill] sm:$0xff] }
 0x297   :  { %v3686_v23 = vmax.f32 %v3319_v15, 0.0  ;;  %v7445_v9 = vadd.f32 %v3009_v59, %v2530_v43  ;;  %v3322_v13 = vadd.f32 %v5174_v60, %v5030_v53  ;;  %v3011_v49 = vpop.f32.mrb[139].mxu0  ;;  %v3313_v28 = vpop.f32.mrb[195].mxu1  ;;  %v2538_v60 = vadd.f32 %v7460_v31, %v8111_v17 }
 0x298   :  { %v3684_v33 = vmax.f32 %v3311_v36, 0.0  ;;  %v3314_v16 = vadd.f32 %v5172_v48, %v3313_v28  ;;  %v8112_v48 = vld [vmem:[#allocation37_spill] sm:$0xff] }
 0x299   :  { %v4844_v29 = vpack.c.bf16 %v3686_v23, %v3686_v23  ;;  %v3687_v37 = vmax.f32 %v3322_v13, 0.0 }
 0x29a   :  { %v4842_v8 = vpack.c.bf16 %v3684_v33, %v3684_v33  ;;  %v3685_v24 = vmax.f32 %v3314_v16, 0.0 }
 0x29b   :  { %4243 = vst.msk [vmem:[%s8023_s3 + $0x68] sm:$0xf] %vm4216_vm2, %v4844_v29  ;;  %v4845_v52 = vpack.c.bf16 %v3687_v37, %v3687_v37 }
 0x29c   :  { %4241 = vst.msk [vmem:[%s8023_s3 + $0x60] sm:$0xf] %vm4216_vm2, %v4842_v8  ;;  %v4843_v18 = vpack.c.bf16 %v3685_v24, %v3685_v24  ;;  %v3014_v47 = vpop.f32.mrb[140].mxu0  ;;  %v5033_v43 = vpop.f32.mrb[196].mxu1 }
 0x29d   :  { %4244 = vst.msk [vmem:[%s8023_s3 + $0x6c] sm:$0xf] %vm4216_vm2, %v4845_v52  ;;  %v7468_v15 = vadd.f32 %v3014_v47, %v2535_v5  ;;  %v3335_v25 = vadd.f32 %v5033_v43, %v6903_v12  ;;  %v3016_v11 = vpop.f32.mrb[141].mxu0  ;;  %v3326_v45 = vpop.f32.mrb[197].mxu1  ;;  %v2543_v5 = vadd.f32 %v7460_v31, %v8113_v39  ;;  %v8114_v47 = vld [vmem:[#allocation14_spill] sm:$0xff] }
 0x29e   :  { %4242 = vst.msk [vmem:[%s8023_s3 + $0x64] sm:$0xf] %vm4216_vm2, %v4843_v18  ;;  %v3327_v36 = vadd.f32 %v3326_v45, %v8112_v48  ;;  %v3017_v59 = vpop.f32.mrb[142].mxu0  ;;  %v5034_v53 = vpop.f32.mrb[198].mxu1  ;;  %v2546_v43 = vadd.f32 %v7460_v31, %v8114_v47 }
 0x29f   :  { %v3690_v23 = vmax.f32 %v3335_v25, 0.0  ;;  %v7476_v13 = vadd.f32 %v3017_v59, %v2538_v60  ;;  %v3338_v49 = vadd.f32 %v5034_v53, %v6921_v34  ;;  %v3019_v28 = vpop.f32.mrb[143].mxu0  ;;  %v3329_v33 = vpop.f32.mrb[199].mxu1 }
 0x2a0   :  { %v3688_v16 = vmax.f32 %v3327_v36, 0.0  ;;  %v3330_v12 = vadd.f32 %v3329_v33, %v6895_v26 }
 0x2a1   :  { %v4848_v29 = vpack.c.bf16 %v3690_v23, %v3690_v23  ;;  %v3691_v37 = vmax.f32 %v3338_v49, 0.0 }
 0x2a2   :  { %v4846_v8 = vpack.c.bf16 %v3688_v16, %v3688_v16  ;;  %v3689_v24 = vmax.f32 %v3330_v12, 0.0 }
 0x2a3   :  { %4247 = vst.msk [vmem:[%s8023_s3 + $0x78] sm:$0xf] %vm4216_vm2, %v4848_v29  ;;  %v4849_v52 = vpack.c.bf16 %v3691_v37, %v3691_v37 }
 0x2a4   :  { %4245 = vst.msk [vmem:[%s8023_s3 + $0x70] sm:$0xf] %vm4216_vm2, %v4846_v8  ;;  %v4847_v34 = vpack.c.bf16 %v3689_v24, %v3689_v24  ;;  %v3022_v26 = vpop.f32.mrb[144].mxu0  ;;  %v5037_v18 = vpop.f32.mrb[200].mxu1  ;;  %v8115_v8 = vld [vmem:[#allocation16_spill] sm:$0xff] }
 0x2a5   :  { %4248 = vst.msk [vmem:[%s8023_s3 + $0x7c] sm:$0xf] %vm4216_vm2, %v4849_v52  ;;  %v7496_v17 = vadd.f32 %v3022_v26, %v2543_v5  ;;  %v3351_v60 = vadd.f32 %v5037_v18, %v6955_v51  ;;  %v3024_v25 = vpop.f32.mrb[145].mxu0  ;;  %v3342_v11 = vpop.f32.mrb[201].mxu1  ;;  %v2551_v24 = vadd.f32 %v7460_v31, %v8115_v8  ;;  %v8116_v5 = vld [vmem:[#allocation18_spill] sm:$0xff] }
 0x2a6   :  { %4246 = vst.msk [vmem:[%s8023_s3 + $0x74] sm:$0xf] %vm4216_vm2, %v4847_v34  ;;  %v3343_v45 = vadd.f32 %v3342_v11, %v6929_v32  ;;  %v3025_v48 = vpop.f32.mrb[146].mxu0  ;;  %v5038_v36 = vpop.f32.mrb[202].mxu1  ;;  %v2554_v52 = vadd.f32 %v7460_v31, %v8116_v5 }
 0x2a7   :  { %v3694_v59 = vmax.f32 %v3351_v60, 0.0  ;;  %v7504_v53 = vadd.f32 %v3025_v48, %v2546_v43  ;;  %v3354_v23 = vadd.f32 %v5038_v36, %v6973_v50  ;;  %v3027_v49 = vpop.f32.mrb[147].mxu0  ;;  %v3345_v28 = vpop.f32.mrb[203].mxu1 }
 0x2a8   :  { %v3692_v33 = vmax.f32 %v3343_v45, 0.0  ;;  %v3346_v51 = vadd.f32 %v3345_v28, %v6947_v42 }
 0x2a9   :  { %v4852_v16 = vpack.c.bf16 %v3694_v59, %v3694_v59  ;;  %v3695_v12 = vmax.f32 %v3354_v23, 0.0 }
 0x2aa   :  { %v4850_v29 = vpack.c.bf16 %v3692_v33, %v3692_v33  ;;  %v3693_v37 = vmax.f32 %v3346_v51, 0.0 }
 0x2ab   :  { %4251 = vst.msk [vmem:[%s8023_s3 + $0x88] sm:$0xf] %vm4216_vm2, %v4852_v16  ;;  %v4853_v32 = vpack.c.bf16 %v3695_v12, %v3695_v12  ;;  %v8117_v16 = vld [vmem:[#allocation20_spill] sm:$0xff] }
 0x2ac   :  { %4249 = vst.msk [vmem:[%s8023_s3 + $0x80] sm:$0xf] %vm4216_vm2, %v4850_v29  ;;  %v4851_v50 = vpack.c.bf16 %v3693_v37, %v3693_v37  ;;  %v3030_v42 = vpop.f32.mrb[148].mxu0  ;;  %v5041_v39 = vpop.f32.mrb[204].mxu1  ;;  %v2559_v12 = vadd.f32 %v7460_v31, %v8117_v16  ;;  %v8118_v37 = vld [vmem:[#allocation22_spill] sm:$0xff] }
 0x2ad   :  { %4252 = vst.msk [vmem:[%s8023_s3 + $0x8c] sm:$0xf] %vm4216_vm2, %v4853_v32  ;;  %v7524_v34 = vadd.f32 %v3030_v42, %v2551_v24  ;;  %v3367_v26 = vadd.f32 %v5041_v39, %v7009_v46  ;;  %v3032_v18 = vpop.f32.mrb[149].mxu0  ;;  %v3358_v47 = vpop.f32.mrb[205].mxu1  ;;  %v2562_v8 = vadd.f32 %v7460_v31, %v8118_v37 }
 0x2ae   :  { %4250 = vst.msk [vmem:[%s8023_s3 + $0x84] sm:$0xf] %vm4216_vm2, %v4851_v50  ;;  %v3359_v43 = vadd.f32 %v3358_v47, %v6981_v21  ;;  %v3033_v60 = vpop.f32.mrb[150].mxu0  ;;  %v5042_v25 = vpop.f32.mrb[206].mxu1 }
 0x2af   :  { %v3698_v11 = vmax.f32 %v3367_v26, 0.0  ;;  %v7532_v45 = vadd.f32 %v3033_v60, %v2554_v52  ;;  %v3370_v48 = vadd.f32 %v5042_v25, %v7025_v38  ;;  %v3035_v36 = vpop.f32.mrb[151].mxu0  ;;  %v3361_v59 = vpop.f32.mrb[207].mxu1 }
 0x2b0   :  { %v3696_v23 = vmax.f32 %v3359_v43, 0.0  ;;  %v3362_v46 = vadd.f32 %v3361_v59, %v6999_v58 }
 0x2b1   :  { %v4856_v49 = vpack.c.bf16 %v3698_v11, %v3698_v11  ;;  %v3699_v28 = vmax.f32 %v3370_v48, 0.0 }
 0x2b2   :  { %v4854_v33 = vpack.c.bf16 %v3696_v23, %v3696_v23  ;;  %v3697_v51 = vmax.f32 %v3362_v46, 0.0  ;;  %v8119_v23 = vld [vmem:[#allocation24_spill] sm:$0xff] }
 0x2b3   :  { %4255 = vst.msk [vmem:[%s8023_s3 + $0x98] sm:$0xf] %vm4216_vm2, %v4856_v49  ;;  %v4857_v21 = vpack.c.bf16 %v3699_v28, %v3699_v28  ;;  %v2567_v46 = vadd.f32 %v7460_v31, %v8119_v23  ;;  %v8120_v28 = vld [vmem:[#allocation26_spill] sm:$0xff] }
 0x2b4   :  { %4253 = vst.msk [vmem:[%s8023_s3 + $0x90] sm:$0xf] %vm4216_vm2, %v4854_v33  ;;  %v4855_v38 = vpack.c.bf16 %v3697_v51, %v3697_v51  ;;  %v3038_v58 = vpop.f32.mrb[152].mxu0  ;;  %v5045_v29 = vpop.f32.mrb[208].mxu1  ;;  %v2570_v33 = vadd.f32 %v7460_v31, %v8120_v28 }
 0x2b5   :  { %4256 = vst.msk [vmem:[%s8023_s3 + $0x9c] sm:$0xf] %vm4216_vm2, %v4857_v21  ;;  %v7552_v24 = vadd.f32 %v3038_v58, %v2559_v12  ;;  %v3383_v32 = vadd.f32 %v5045_v29, %v7061_v61  ;;  %v3040_v50 = vpop.f32.mrb[153].mxu0  ;;  %v3374_v42 = vpop.f32.mrb[209].mxu1 }
 0x2b6   :  { %4254 = vst.msk [vmem:[%s8023_s3 + $0x94] sm:$0xf] %vm4216_vm2, %v4855_v38  ;;  %v3375_v39 = vadd.f32 %v3374_v42, %v7035_v1  ;;  %v3041_v5 = vpop.f32.mrb[154].mxu0  ;;  %v5046_v52 = vpop.f32.mrb[210].mxu1 }
 0x2b7   :  { %v3702_v26 = vmax.f32 %v3383_v32, 0.0  ;;  %v7560_v18 = vadd.f32 %v3041_v5, %v2562_v8  ;;  %v3386_v47 = vadd.f32 %v5046_v52, %v7077_v30  ;;  %v3043_v43 = vpop.f32.mrb[155].mxu0  ;;  %v3377_v60 = vpop.f32.mrb[211].mxu1 }
 0x2b8   :  { %v3700_v25 = vmax.f32 %v3375_v39, 0.0  ;;  %v3378_v61 = vadd.f32 %v3377_v60, %v7051_v10  ;;  %v8121_v43 = vld [vmem:[#allocation28_spill] sm:$0xff] }
 0x2b9   :  { %v4860_v11 = vpack.c.bf16 %v3702_v26, %v3702_v26  ;;  %v3703_v48 = vmax.f32 %v3386_v47, 0.0  ;;  %v2575_v60 = vadd.f32 %v7460_v31, %v8121_v43 }
 0x2ba   :  { %v4858_v36 = vpack.c.bf16 %v3700_v25, %v3700_v25  ;;  %v3701_v59 = vmax.f32 %v3378_v61, 0.0  ;;  %v8122_v61 = vld [vmem:[#allocation30_spill] sm:$0xff] }
 0x2bb   :  { %4259 = vst.msk [vmem:[%s8023_s3 + $0xa8] sm:$0xf] %vm4216_vm2, %v4860_v11  ;;  %v4861_v1 = vpack.c.bf16 %v3703_v48, %v3703_v48  ;;  %v2578_v11 = vadd.f32 %v7460_v31, %v8122_v61 }
 0x2bc   :  { %4257 = vst.msk [vmem:[%s8023_s3 + $0xa0] sm:$0xf] %vm4216_vm2, %v4858_v36  ;;  %v4859_v30 = vpack.c.bf16 %v3701_v59, %v3701_v59  ;;  %v3046_v10 = vpop.f32.mrb[156].mxu0  ;;  %v5049_v49 = vpop.f32.mrb[212].mxu1 }
 0x2bd   :  { %4260 = vst.msk [vmem:[%s8023_s3 + $0xac] sm:$0xf] %vm4216_vm2, %v4861_v1  ;;  %v7580_v51 = vadd.f32 %v3046_v10, %v2567_v46  ;;  %v3399_v16 = vadd.f32 %v5049_v49, %v7113_v4  ;;  %v3048_v12 = vpop.f32.mrb[157].mxu0  ;;  %v3390_v21 = vpop.f32.mrb[213].mxu1 }
 0x2be   :  { %4258 = vst.msk [vmem:[%s8023_s3 + $0xa4] sm:$0xf] %vm4216_vm2, %v4859_v30  ;;  %v3391_v38 = vadd.f32 %v3390_v21, %v7087_v41  ;;  %v3049_v58 = vpop.f32.mrb[158].mxu0  ;;  %v5050_v29 = vpop.f32.mrb[214].mxu1 }
 0x2bf   :  { %v3706_v37 = vmax.f32 %v3399_v16, 0.0  ;;  %v7588_v8 = vadd.f32 %v3049_v58, %v2570_v33  ;;  %v3402_v32 = vadd.f32 %v5050_v29, %v7129_v54  ;;  %v3051_v50 = vpop.f32.mrb[159].mxu0  ;;  %v3393_v42 = vpop.f32.mrb[215].mxu1 }
 0x2c0   :  { %v3704_v39 = vmax.f32 %v3391_v38, 0.0  ;;  %v3394_v4 = vadd.f32 %v3393_v42, %v7103_v22  ;;  %v8124_v42 = vld [vmem:[#allocation34_spill] sm:$0xff] }
 0x2c1   :  { %v4864_v5 = vpack.c.bf16 %v3706_v37, %v3706_v37  ;;  %v3707_v52 = vmax.f32 %v3402_v32, 0.0  ;;  %v8123_v37 = vld [vmem:[#allocation32_spill] sm:$0xff] }
 0x2c2   :  { %v4862_v26 = vpack.c.bf16 %v3704_v39, %v3704_v39  ;;  %v3705_v47 = vmax.f32 %v3394_v4, 0.0  ;;  %v2583_v32 = vadd.f32 %v7460_v31, %v8123_v37  ;;  %v2586_v39 = vadd.f32 %v7460_v31, %v8124_v42 }
 0x2c3   :  { %4263 = vst.msk [vmem:[%s8023_s3 + $0xb8] sm:$0xf] %vm4216_vm2, %v4864_v5  ;;  %v4865_v41 = vpack.c.bf16 %v3707_v52, %v3707_v52 }
 0x2c4   :  { %4261 = vst.msk [vmem:[%s8023_s3 + $0xb0] sm:$0xf] %vm4216_vm2, %v4862_v26  ;;  %v4863_v54 = vpack.c.bf16 %v3705_v47, %v3705_v47  ;;  %v3054_v22 = vpop.f32.mrb[160].mxu0  ;;  %v5053_v25 = vpop.f32.mrb[216].mxu1  ;;  %v8125_v47 = vld [vmem:[#allocation62_spill] sm:$0xff] }
 0x2c5   :  { %4264 = vst.msk [vmem:[%s8023_s3 + $0xbc] sm:$0xf] %vm4216_vm2, %v4865_v41  ;;  %v7608_v48 = vadd.f32 %v3054_v22, %v2575_v60  ;;  %v3415_v36 = vadd.f32 %v5053_v25, %v7165_v3  ;;  %v3056_v59 = vpop.f32.mrb[161].mxu0  ;;  %v3406_v23 = vpop.f32.mrb[217].mxu1  ;;  %v8126_v25 = vld [vmem:[#allocation66_spill] sm:$0xff] }
 0x2c6   :  { %4262 = vst.msk [vmem:[%s8023_s3 + $0xb4] sm:$0xf] %vm4216_vm2, %v4863_v54  ;;  %v3407_v46 = vadd.f32 %v3406_v23, %v7139_v40  ;;  %v3057_v1 = vpop.f32.mrb[162].mxu0  ;;  %v5054_v30 = vpop.f32.mrb[218].mxu1 }
 0x2c7   :  { %v3710_v10 = vmax.f32 %v3415_v36, 0.0  ;;  %v7616_v49 = vadd.f32 %v3057_v1, %v2578_v11  ;;  %v3418_v28 = vadd.f32 %v5054_v30, %v7181_v7  ;;  %v3059_v33 = vpop.f32.mrb[163].mxu0  ;;  %v3409_v16 = vpop.f32.mrb[219].mxu1 }
 0x2c8   :  { %v3708_v12 = vmax.f32 %v3407_v46, 0.0  ;;  %v3410_v3 = vadd.f32 %v3409_v16, %v7155_v62 }
 0x2c9   :  { %v4868_v21 = vpack.c.bf16 %v3710_v10, %v3710_v10  ;;  %v3711_v38 = vmax.f32 %v3418_v28, 0.0  ;;  %v8128_v28 = vld [vmem:[#allocation36_spill] sm:$0xff] }
 0x2ca   :  { %v4866_v58 = vpack.c.bf16 %v3708_v12, %v3708_v12  ;;  %v3709_v29 = vmax.f32 %v3410_v3, 0.0  ;;  %v2591_v33 = vadd.f32 %v7460_v31, %v8128_v28 }
 0x2cb   :  { %4267 = vst.msk [vmem:[%s8023_s3 + $0xc8] sm:$0xf] %vm4216_vm2, %v4868_v21  ;;  %v4869_v40 = vpack.c.bf16 %v3711_v38, %v3711_v38  ;;  %v8129_v38 = vld [vmem:[#allocation38_spill] sm:$0xff] }
 0x2cc   :  { %4265 = vst.msk [vmem:[%s8023_s3 + $0xc0] sm:$0xf] %vm4216_vm2, %v4866_v58  ;;  %v4867_v7 = vpack.c.bf16 %v3709_v29, %v3709_v29  ;;  %v3062_v62 = vpop.f32.mrb[164].mxu0  ;;  %v5057_v50 = vpop.f32.mrb[220].mxu1  ;;  %v2594_v58 = vadd.f32 %v7460_v31, %v8129_v38 }
 0x2cd   :  { %4268 = vst.msk [vmem:[%s8023_s3 + $0xcc] sm:$0xf] %vm4216_vm2, %v4869_v40  ;;  %v7636_v4 = vadd.f32 %v3062_v62, %v2583_v32  ;;  %v3431_v5 = vadd.f32 %v5057_v50, %v7220_v2  ;;  %v3064_v52 = vpop.f32.mrb[165].mxu0  ;;  %v3422_v26 = vpop.f32.mrb[221].mxu1  ;;  %v8127_v2 = vld [vmem:[#allocation64_spill] sm:$0xff] }
 0x2ce   :  { %4266 = vst.msk [vmem:[%s8023_s3 + $0xc4] sm:$0xf] %vm4216_vm2, %v4867_v7  ;;  %v3423_v43 = vadd.f32 %v3422_v26, %v8125_v47  ;;  %v3065_v60 = vpop.f32.mrb[166].mxu0  ;;  %v5058_v41 = vpop.f32.mrb[222].mxu1  ;;  %v8130_v7 = vld [vmem:[#allocation67_spill] sm:$0xff] }
 0x2cf   :  { %v3714_v54 = vmax.f32 %v3431_v5, 0.0  ;;  %v7644_v22 = vadd.f32 %v3065_v60, %v2586_v39  ;;  %v3434_v61 = vadd.f32 %v5058_v41, %v8126_v25  ;;  %v3067_v11 = vpop.f32.mrb[167].mxu0  ;;  %v3425_v36 = vpop.f32.mrb[223].mxu1 }
 0x2d0   :  { %v3712_v59 = vmax.f32 %v3423_v43, 0.0  ;;  %v3426_v23 = vadd.f32 %v3425_v36, %v8127_v2  ;;  %v8132_v2 = vld [vmem:[#allocation40_spill] sm:$0xff] }
 0x2d1   :  { %v4872_v46 = vpack.c.bf16 %v3714_v54, %v3714_v54  ;;  %v3715_v1 = vmax.f32 %v3434_v61, 0.0  ;;  %v8131_v61 = vld [vmem:[#allocation39_spill] sm:$0xff] }
 0x2d2   :  { %v4870_v30 = vpack.c.bf16 %v3712_v59, %v3712_v59  ;;  %v3713_v10 = vmax.f32 %v3426_v23, 0.0  ;;  %v2599_v11 = vadd.f32 %v7460_v31, %v8131_v61  ;;  %v2602_v23 = vadd.f32 %v7460_v31, %v8132_v2 }
 0x2d3   :  { %4271 = vst.msk [vmem:[%s8023_s3 + $0xd8] sm:$0xf] %vm4216_vm2, %v4872_v46  ;;  %v4873_v16 = vpack.c.bf16 %v3715_v1, %v3715_v1 }
 0x2d4   :  { %4269 = vst.msk [vmem:[%s8023_s3 + $0xd0] sm:$0xf] %vm4216_vm2, %v4870_v30  ;;  %v4871_v12 = vpack.c.bf16 %v3713_v10, %v3713_v10  ;;  %v3070_v3 = vpop.f32.mrb[168].mxu0  ;;  %v5061_v21 = vpop.f32.mrb[224].mxu1 }
 0x2d5   :  { %4272 = vst.msk [vmem:[%s8023_s3 + $0xdc] sm:$0xf] %vm4216_vm2, %v4873_v16  ;;  %v7664_v29 = vadd.f32 %v3070_v3, %v2591_v33  ;;  %v3447_v37 = vadd.f32 %v5061_v21, %v7277_v6  ;;  %v3072_v32 = vpop.f32.mrb[169].mxu0  ;;  %v3438_v40 = vpop.f32.mrb[225].mxu1 }
 0x2d6   :  { %4270 = vst.msk [vmem:[%s8023_s3 + $0xd4] sm:$0xf] %vm4216_vm2, %v4871_v12  ;;  %v3439_v62 = vadd.f32 %v3438_v40, %v8130_v7  ;;  %v3073_v50 = vpop.f32.mrb[170].mxu0  ;;  %v5062_v42 = vpop.f32.mrb[226].mxu1 }
 0x2d7   :  { %v3718_v39 = vmax.f32 %v3447_v37, 0.0  ;;  %v7672_v5 = vadd.f32 %v3073_v50, %v2594_v58  ;;  %v3450_v52 = vadd.f32 %v5062_v42, %v7285_v27  ;;  %v3075_v26 = vpop.f32.mrb[171].mxu0  ;;  %v3441_v47 = vpop.f32.mrb[227].mxu1  ;;  %v8133_v50 = vld [vmem:[#allocation41_spill] sm:$0xff] }
 0x2d8   :  { %v3716_v43 = vmax.f32 %v3439_v62, 0.0  ;;  %v3442_v6 = vadd.f32 %v3441_v47, %v7252_v19  ;;  %v2607_v42 = vadd.f32 %v7460_v31, %v8133_v50 }
 0x2d9   :  { %v4876_v60 = vpack.c.bf16 %v3718_v39, %v3718_v39  ;;  %v3719_v41 = vmax.f32 %v3450_v52, 0.0  ;;  %v8134_v52 = vld [vmem:[#allocation42_spill] sm:$0xff] }
 0x2da   :  { %v4874_v54 = vpack.c.bf16 %v3716_v43, %v3716_v43  ;;  %v3717_v25 = vmax.f32 %v3442_v6, 0.0  ;;  %v2610_v26 = vadd.f32 %v7460_v31, %v8134_v52 }
 0x2db   :  { %4275 = vst.msk [vmem:[%s8023_s3 + $0xe8] sm:$0xf] %vm4216_vm2, %v4876_v60  ;;  %v4877_v36 = vpack.c.bf16 %v3719_v41, %v3719_v41 }
 0x2dc   :  { %4273 = vst.msk [vmem:[%s8023_s3 + $0xe0] sm:$0xf] %vm4216_vm2, %v4874_v54  ;;  %v4875_v27 = vpack.c.bf16 %v3717_v25, %v3717_v25  ;;  %v3078_v19 = vpop.f32.mrb[172].mxu0  ;;  %v5065_v59 = vpop.f32.mrb[228].mxu1 }
 0x2dd   :  { %4276 = vst.msk [vmem:[%s8023_s3 + $0xec] sm:$0xf] %vm4216_vm2, %v4877_v36  ;;  %v7692_v46 = vadd.f32 %v3078_v19, %v2599_v11  ;;  %v3463_v1 = vadd.f32 %v5065_v59, %v7341_v20  ;;  %v3080_v30 = vpop.f32.mrb[173].mxu0  ;;  %v3454_v10 = vpop.f32.mrb[229].mxu1 }
 0x2de   :  { %4274 = vst.msk [vmem:[%s8023_s3 + $0xe4] sm:$0xf] %vm4216_vm2, %v4875_v27  ;;  %v3455_v28 = vadd.f32 %v3454_v10, %v7309_v63  ;;  %v3081_v33 = vpop.f32.mrb[174].mxu0  ;;  %v5066_v16 = vpop.f32.mrb[230].mxu1  ;;  %v8135_v10 = vld [vmem:[#allocation43_spill] sm:$0xff] }
 0x2df   :  { %v3722_v12 = vmax.f32 %v3463_v1, 0.0  ;;  %v7700_v3 = vadd.f32 %v3081_v33, %v2602_v23  ;;  %v3466_v21 = vadd.f32 %v5066_v16, %v7349_v44  ;;  %v3083_v38 = vpop.f32.mrb[175].mxu0  ;;  %v3457_v58 = vpop.f32.mrb[231].mxu1  ;;  %v8136_v16 = vld [vmem:[#allocation44_spill] sm:$0xff] }
 0x2e0   :  { %v3720_v37 = vmax.f32 %v3455_v28, 0.0  ;;  %v3458_v20 = vadd.f32 %v3457_v58, %v7317_v57  ;;  %v2615_v28 = vadd.f32 %v7460_v31, %v8135_v10 }
 0x2e1   :  { %v4880_v32 = vpack.c.bf16 %v3722_v12, %v3722_v12  ;;  %v3723_v40 = vmax.f32 %v3466_v21, 0.0  ;;  %v2618_v12 = vadd.f32 %v7460_v31, %v8136_v16  ;;  %v8139_v16 = vld [vmem:[#allocation47_spill] sm:$0xff] }
 0x2e2   :  { %v4878_v7 = vpack.c.bf16 %v3720_v37, %v3720_v37  ;;  %v3721_v62 = vmax.f32 %v3458_v20, 0.0 }
 0x2e3   :  { %4279 = vst.msk [vmem:[%s8023_s3 + $0xf8] sm:$0xf] %vm4216_vm2, %v4880_v32  ;;  %v4881_v63 = vpack.c.bf16 %v3723_v40, %v3723_v40 }
 0x2e4   :  { %4277 = vst.msk [vmem:[%s8023_s3 + $0xf0] sm:$0xf] %vm4216_vm2, %v4878_v7  ;;  %v4879_v44 = vpack.c.bf16 %v3721_v62, %v3721_v62  ;;  %v3086_v57 = vpop.f32.mrb[176].mxu0  ;;  %v5069_v39 = vpop.f32.mrb[232].mxu1 }
 0x2e5   :  { %4280 = vst.msk [vmem:[%s8023_s3 + $0xfc] sm:$0xf] %vm4216_vm2, %v4881_v63  ;;  %v7720_v47 = vadd.f32 %v3086_v57, %v2607_v42  ;;  %v3479_v43 = vadd.f32 %v5069_v39, %v7405_v35  ;;  %v3088_v6 = vpop.f32.mrb[177].mxu0  ;;  %v3470_v60 = vpop.f32.mrb[233].mxu1 }
 0x2e6   :  { %4278 = vst.msk [vmem:[%s8023_s3 + $0xf4] sm:$0xf] %vm4216_vm2, %v4879_v44  ;;  %v3471_v41 = vadd.f32 %v3470_v60, %v7373_v0  ;;  %v3089_v54 = vpop.f32.mrb[178].mxu0  ;;  %v5070_v25 = vpop.f32.mrb[234].mxu1 }
 0x2e7   :  { %v3726_v61 = vmax.f32 %v3479_v43, 0.0  ;;  %v7728_v11 = vadd.f32 %v3089_v54, %v2610_v26  ;;  %v3482_v36 = vadd.f32 %v5070_v25, %v7413_v14  ;;  %v3091_v27 = vpop.f32.mrb[179].mxu0  ;;  %v3473_v19 = vpop.f32.mrb[235].mxu1  ;;  %v8137_v43 = vld [vmem:[#allocation45_spill] sm:$0xff] }
 0x2e8   :  { %v3724_v59 = vmax.f32 %v3471_v41, 0.0  ;;  %v3474_v35 = vadd.f32 %v3473_v19, %v7381_v56  ;;  %v2623_v6 = vadd.f32 %v7460_v31, %v8137_v43  ;;  %v8138_v41 = vld [vmem:[#allocation46_spill] sm:$0xff] }
 0x2e9   :  { %v4884_v2 = vpack.c.bf16 %v3726_v61, %v3726_v61  ;;  %v3727_v23 = vmax.f32 %v3482_v36, 0.0  ;;  %v2626_v54 = vadd.f32 %v7460_v31, %v8138_v41 }
 0x2ea   :  { %v4882_v1 = vpack.c.bf16 %v3724_v59, %v3724_v59  ;;  %v3725_v30 = vmax.f32 %v3474_v35, 0.0 }
 0x2eb   :  { %4283 = vst.msk [vmem:[%s8023_s3 + $0x108] sm:$0xf] %vm4216_vm2, %v4884_v2  ;;  %v4885_v0 = vpack.c.bf16 %v3727_v23, %v3727_v23 }
 0x2ec   :  { %4281 = vst.msk [vmem:[%s8023_s3 + $0x100] sm:$0xf] %vm4216_vm2, %v4882_v1  ;;  %v4883_v14 = vpack.c.bf16 %v3725_v30, %v3725_v30  ;;  %v3094_v56 = vpop.f32.mrb[180].mxu0  ;;  %v5073_v33 = vpop.f32.mrb[236].mxu1 }
 0x2ed   :  { %4284 = vst.msk [vmem:[%s8023_s3 + $0x10c] sm:$0xf] %vm4216_vm2, %v4885_v0  ;;  %v7748_v21 = vadd.f32 %v3094_v56, %v2615_v28  ;;  %v3495_v38 = vadd.f32 %v5073_v33, %v7468_v15  ;;  %v3096_v58 = vpop.f32.mrb[181].mxu0  ;;  %v3486_v37 = vpop.f32.mrb[237].mxu1 }
 0x2ee   :  { %4282 = vst.msk [vmem:[%s8023_s3 + $0x104] sm:$0xf] %vm4216_vm2, %v4883_v14  ;;  %v3487_v20 = vadd.f32 %v3486_v37, %v7437_v55  ;;  %v3097_v32 = vpop.f32.mrb[182].mxu0  ;;  %v5074_v40 = vpop.f32.mrb[238].mxu1  ;;  %v8140_v58 = vld [vmem:[#allocation48_spill] sm:$0xff] }
 0x2ef   :  { %v3730_v7 = vmax.f32 %v3495_v38, 0.0  ;;  %v7756_v62 = vadd.f32 %v3097_v32, %v2618_v12  ;;  %v3498_v50 = vadd.f32 %v5074_v40, %v7476_v13  ;;  %v3099_v42 = vpop.f32.mrb[183].mxu0  ;;  %v3489_v63 = vpop.f32.mrb[239].mxu1  ;;  %v2631_v12 = vadd.f32 %v7460_v31, %v8139_v16 }
 0x2f0   :  { %v3728_v44 = vmax.f32 %v3487_v20, 0.0  ;;  %v3490_v15 = vadd.f32 %v3489_v63, %v7445_v9  ;;  %v2634_v37 = vadd.f32 %v7460_v31, %v8140_v58 }
 0x2f1   :  { %v4888_v57 = vpack.c.bf16 %v3730_v7, %v3730_v7  ;;  %v3731_v39 = vmax.f32 %v3498_v50, 0.0 }
 0x2f2   :  { %v4886_v52 = vpack.c.bf16 %v3728_v44, %v3728_v44  ;;  %v3729_v26 = vmax.f32 %v3490_v15, 0.0 }
 0x2f3   :  { %4287 = vst.msk [vmem:[%s8023_s3 + $0x118] sm:$0xf] %vm4216_vm2, %v4888_v57  ;;  %v4889_v55 = vpack.c.bf16 %v3731_v39, %v3731_v39 }
 0x2f4   :  { %4285 = vst.msk [vmem:[%s8023_s3 + $0x110] sm:$0xf] %vm4216_vm2, %v4886_v52  ;;  %v4887_v13 = vpack.c.bf16 %v3729_v26, %v3729_v26  ;;  %v3102_v9 = vpop.f32.mrb[184].mxu0  ;;  %v5077_v60 = vpop.f32.mrb[240].mxu1 }
 0x2f5   :  { %4288 = vst.msk [vmem:[%s8023_s3 + $0x11c] sm:$0xf] %vm4216_vm2, %v4889_v55  ;;  %v7776_v25 = vadd.f32 %v3102_v9, %v2623_v6  ;;  %v3511_v61 = vadd.f32 %v5077_v60, %v7524_v34  ;;  %v3104_v36 = vpop.f32.mrb[185].mxu0  ;;  %v3502_v27 = vpop.f32.mrb[241].mxu1  ;;  %v8141_v9 = vld [vmem:[#allocation49_spill] sm:$0xff] }
 0x2f6   :  { %4286 = vst.msk [vmem:[%s8023_s3 + $0x114] sm:$0xf] %vm4216_vm2, %v4887_v13  ;;  %v3503_v19 = vadd.f32 %v3502_v27, %v7496_v17  ;;  %v3105_v59 = vpop.f32.mrb[186].mxu0  ;;  %v5078_v35 = vpop.f32.mrb[242].mxu1  ;;  %v2639_v60 = vadd.f32 %v7460_v31, %v8141_v9  ;;  %v8145_v9 = vld [vmem:[#allocation53_spill] sm:$0xff] }
 0x2f7   :  { %v3734_v2 = vmax.f32 %v3511_v61, 0.0  ;;  %v7784_v23 = vadd.f32 %v3105_v59, %v2626_v54  ;;  %v3514_v1 = vadd.f32 %v5078_v35, %v7532_v45  ;;  %v3107_v30 = vpop.f32.mrb[187].mxu0  ;;  %v3505_v10 = vpop.f32.mrb[243].mxu1  ;;  %v8142_v54 = vld [vmem:[#allocation50_spill] sm:$0xff] }
 0x2f8   :  { %v3732_v28 = vmax.f32 %v3503_v19, 0.0  ;;  %v3506_v34 = vadd.f32 %v3505_v10, %v7504_v53  ;;  %v2642_v61 = vadd.f32 %v7460_v31, %v8142_v54 }
 0x2f9   :  { %v4892_v0 = vpack.c.bf16 %v3734_v2, %v3734_v2  ;;  %v3735_v14 = vmax.f32 %v3514_v1, 0.0 }
 0x2fa   :  { %v4890_v56 = vpack.c.bf16 %v3732_v28, %v3732_v28  ;;  %v3733_v33 = vmax.f32 %v3506_v34, 0.0 }
 0x2fb   :  { %4291 = vst.msk [vmem:[%s8023_s3 + $0x128] sm:$0xf] %vm4216_vm2, %v4892_v0  ;;  %v4893_v17 = vpack.c.bf16 %v3735_v14, %v3735_v14 }
 0x2fc   :  { %4289 = vst.msk [vmem:[%s8023_s3 + $0x120] sm:$0xf] %vm4216_vm2, %v4890_v56  ;;  %v4891_v45 = vpack.c.bf16 %v3733_v33, %v3733_v33  ;;  %v3110_v53 = vpop.f32.mrb[188].mxu0  ;;  %v5081_v38 = vpop.f32.mrb[244].mxu1 }
 0x2fd   :  { %4292 = vst.msk [vmem:[%s8023_s3 + $0x12c] sm:$0xf] %vm4216_vm2, %v4893_v17  ;;  %v7804_v20 = vadd.f32 %v3110_v53, %v2631_v12  ;;  %v3527_v32 = vadd.f32 %v5081_v38, %v7580_v51  ;;  %v3112_v40 = vpop.f32.mrb[189].mxu0  ;;  %v3518_v7 = vpop.f32.mrb[245].mxu1  ;;  %v8143_v17 = vld [vmem:[#allocation51_spill] sm:$0xff]  ;;  %v8144_v38 = vld [vmem:[#allocation52_spill] sm:$0xff] }
 0x2fe   :  { %4290 = vst.msk [vmem:[%s8023_s3 + $0x124] sm:$0xf] %vm4216_vm2, %v4891_v45  ;;  %v3519_v50 = vadd.f32 %v3518_v7, %v7552_v24  ;;  %v3113_v42 = vpop.f32.mrb[190].mxu0  ;;  %v5082_v63 = vpop.f32.mrb[246].mxu1  ;;  %v2647_v45 = vadd.f32 %v7460_v31, %v8143_v17  ;;  %v2650_v58 = vadd.f32 %v7460_v31, %v8144_v38 }
 0x2ff   :  { %v3738_v44 = vmax.f32 %v3527_v32, 0.0  ;;  %v7812_v15 = vadd.f32 %v3113_v42, %v2634_v37  ;;  %v3530_v57 = vadd.f32 %v5082_v63, %v7588_v8  ;;  %v3115_v39 = vpop.f32.mrb[191].mxu0  ;;  %v3521_v52 = vpop.f32.mrb[247].mxu1 }
 0x300   :  { %v3736_v26 = vmax.f32 %v3519_v50, 0.0  ;;  %v3522_v51 = vadd.f32 %v3521_v52, %v7560_v18 }
 0x301   :  { %v4896_v43 = vpack.c.bf16 %v3738_v44, %v3738_v44  ;;  %v3739_v6 = vmax.f32 %v3530_v57, 0.0 }
 0x302   :  { %v4894_v55 = vpack.c.bf16 %v3736_v26, %v3736_v26  ;;  %v3737_v13 = vmax.f32 %v3522_v51, 0.0 }
 0x303   :  { %4295 = vst.msk [vmem:[%s8023_s3 + $0x138] sm:$0xf] %vm4216_vm2, %v4896_v43  ;;  %v4897_v24 = vpack.c.bf16 %v3739_v6, %v3739_v6 }
 0x304   :  { %4293 = vst.msk [vmem:[%s8023_s3 + $0x130] sm:$0xf] %vm4216_vm2, %v4894_v55  ;;  %v4895_v8 = vpack.c.bf16 %v3737_v13, %v3737_v13  ;;  %v3118_v18 = vpop.f32.mrb[192].mxu0  ;;  %v5085_v41 = vpop.f32.mrb[248].mxu1 }
 0x305   :  { %4296 = vst.msk [vmem:[%s8023_s3 + $0x13c] sm:$0xf] %vm4216_vm2, %v4897_v24  ;;  %v7832_v36 = vadd.f32 %v3118_v18, %v2639_v60  ;;  %v3543_v27 = vadd.f32 %v5085_v41, %v7636_v4  ;;  %v3120_v19 = vpop.f32.mrb[193].mxu0  ;;  %v3534_v59 = vpop.f32.mrb[249].mxu1  ;;  %v2655_v60 = vadd.f32 %v7460_v31, %v8145_v9 }
 0x306   :  { %4294 = vst.msk [vmem:[%s8023_s3 + $0x134] sm:$0xf] %vm4216_vm2, %v4895_v8  ;;  %v3535_v35 = vadd.f32 %v3534_v59, %v7608_v48  ;;  %v3121_v2 = vpop.f32.mrb[194].mxu0  ;;  %v5086_v1 = vpop.f32.mrb[250].mxu1  ;;  %v8146_v8 = vld [vmem:[#allocation54_spill] sm:$0xff] }
 0x307   :  { %v3742_v30 = vmax.f32 %v3543_v27, 0.0  ;;  %v7840_v10 = vadd.f32 %v3121_v2, %v2642_v61  ;;  %v3546_v28 = vadd.f32 %v5086_v1, %v7644_v22  ;;  %v3123_v34 = vpop.f32.mrb[195].mxu0  ;;  %v3537_v0 = vpop.f32.mrb[251].mxu1  ;;  %v2658_v18 = vadd.f32 %v7460_v31, %v8146_v8 }
 0x308   :  { %v3740_v14 = vmax.f32 %v3535_v35, 0.0  ;;  %v3538_v4 = vadd.f32 %v3537_v0, %v7616_v49 }
 0x309   :  { %v4900_v56 = vpack.c.bf16 %v3742_v30, %v3742_v30  ;;  %v3743_v33 = vmax.f32 %v3546_v28, 0.0 }
 0x30a   :  { %v4898_v16 = vpack.c.bf16 %v3740_v14, %v3740_v14  ;;  %v3741_v12 = vmax.f32 %v3538_v4, 0.0 }
 0x30b   :  { %4299 = vst.msk [vmem:[%s8023_s3 + $0x148] sm:$0xf] %vm4216_vm2, %v4900_v56  ;;  %v4901_v48 = vpack.c.bf16 %v3743_v33, %v3743_v33 }
 0x30c   :  { %4297 = vst.msk [vmem:[%s8023_s3 + $0x140] sm:$0xf] %vm4216_vm2, %v4898_v16  ;;  %v4899_v22 = vpack.c.bf16 %v3741_v12, %v3741_v12  ;;  %v3126_v49 = vpop.f32.mrb[196].mxu0  ;;  %v5089_v53 = vpop.f32.mrb[252].mxu1  ;;  %v8147_v16 = vld [vmem:[#allocation55_spill] sm:$0xff] }
 0x30d   :  { %4300 = vst.msk [vmem:[%s8023_s3 + $0x14c] sm:$0xf] %vm4216_vm2, %v4901_v48  ;;  %v7860_v37 = vadd.f32 %v3126_v49, %v2647_v45  ;;  %v3559_v32 = vadd.f32 %v5089_v53, %v7692_v46  ;;  %v3128_v40 = vpop.f32.mrb[197].mxu0  ;;  %v3550_v7 = vpop.f32.mrb[253].mxu1  ;;  %v2663_v12 = vadd.f32 %v7460_v31, %v8147_v16  ;;  %v8148_v45 = vld [vmem:[#allocation56_spill] sm:$0xff] }
 0x30e   :  { %4298 = vst.msk [vmem:[%s8023_s3 + $0x144] sm:$0xf] %vm4216_vm2, %v4899_v22  ;;  %v3551_v50 = vadd.f32 %v3550_v7, %v7664_v29  ;;  %v3129_v42 = vpop.f32.mrb[198].mxu0  ;;  %v5090_v63 = vpop.f32.mrb[254].mxu1  ;;  %v2666_v48 = vadd.f32 %v7460_v31, %v8148_v45 }
 0x30f   :  { %v3746_v44 = vmax.f32 %v3559_v32, 0.0  ;;  %v7868_v57 = vadd.f32 %v3129_v42, %v2650_v58  ;;  %v3562_v39 = vadd.f32 %v5090_v63, %v7700_v3  ;;  %v3131_v52 = vpop.f32.mrb[199].mxu0  ;;  %v3553_v26 = vpop.f32.mrb[255].mxu1 }
 0x310   :  { %v3744_v51 = vmax.f32 %v3551_v50, 0.0  ;;  %v3554_v46 = vadd.f32 %v3553_v26, %v7672_v5 }
 0x311   :  { %v4904_v43 = vpack.c.bf16 %v3746_v44, %v3746_v44  ;;  %v3747_v6 = vmax.f32 %v3562_v39, 0.0 }
 0x312   :  { %v4902_v55 = vpack.c.bf16 %v3744_v51, %v3744_v51  ;;  %v3745_v13 = vmax.f32 %v3554_v46, 0.0 }
 0x313   :  { %4303 = vst.msk [vmem:[%s8023_s3 + $0x158] sm:$0xf] %vm4216_vm2, %v4904_v43  ;;  %v4905_v29 = vpack.c.bf16 %v3747_v6, %v3747_v6  ;;  %v8149_v43 = vld [vmem:[#allocation57_spill] sm:$0xff] }
 0x314   :  { %4301 = vst.msk [vmem:[%s8023_s3 + $0x150] sm:$0xf] %vm4216_vm2, %v4902_v55  ;;  %v4903_v3 = vpack.c.bf16 %v3745_v13, %v3745_v13  ;;  %v3134_v5 = vpop.f32.mrb[200].mxu0  ;;  %v5093_v24 = vpop.f32.mrb[0].mxu1  ;;  %v2671_v6 = vadd.f32 %v7460_v31, %v8149_v43  ;;  %v8150_v13 = vld [vmem:[#allocation58_spill] sm:$0xff] }
 0x315   :  { %4304 = vst.msk [vmem:[%s8023_s3 + $0x15c] sm:$0xf] %vm4216_vm2, %v4905_v29  ;;  %v7888_v41 = vadd.f32 %v3134_v5, %v2655_v60  ;;  %v3575_v54 = vadd.f32 %v5093_v24, %v7748_v21  ;;  %v3136_v61 = vpop.f32.mrb[201].mxu0  ;;  %v3566_v27 = vpop.f32.mrb[1].mxu1  ;;  %v2674_v9 = vadd.f32 %v7460_v31, %v8150_v13 }
 0x316   :  { %4302 = vst.msk [vmem:[%s8023_s3 + $0x154] sm:$0xf] %vm4216_vm2, %v4903_v3  ;;  %v3567_v19 = vadd.f32 %v3566_v27, %v7720_v47  ;;  %v3137_v59 = vpop.f32.mrb[202].mxu0  ;;  %v5094_v35 = vpop.f32.mrb[2].mxu1 }
 0x317   :  { %v3750_v2 = vmax.f32 %v3575_v54, 0.0  ;;  %v7896_v1 = vadd.f32 %v3137_v59, %v2658_v18  ;;  %v3578_v30 = vadd.f32 %v5094_v35, %v7756_v62  ;;  %v3139_v28 = vpop.f32.mrb[203].mxu0  ;;  %v3569_v34 = vpop.f32.mrb[3].mxu1 }
 0x318   :  { %v3748_v0 = vmax.f32 %v3567_v19, 0.0  ;;  %v3570_v21 = vadd.f32 %v3569_v34, %v7728_v11 }
 0x319   :  { %v4908_v14 = vpack.c.bf16 %v3750_v2, %v3750_v2  ;;  %v3751_v4 = vmax.f32 %v3578_v30, 0.0 }
 0x31a   :  { %v4906_v56 = vpack.c.bf16 %v3748_v0, %v3748_v0  ;;  %v3749_v33 = vmax.f32 %v3570_v21, 0.0  ;;  %v8151_v0 = vld [vmem:[#allocation59_spill] sm:$0xff] }
 0x31b   :  { %4307 = vst.msk [vmem:[%s8023_s3 + $0x168] sm:$0xf] %vm4216_vm2, %v4908_v14  ;;  %v4909_v47 = vpack.c.bf16 %v3751_v4, %v3751_v4  ;;  %v2679_v21 = vadd.f32 %v7460_v31, %v8151_v0  ;;  %v8152_v4 = vld [vmem:[#allocation60_spill] sm:$0xff] }
 0x31c   :  { %4305 = vst.msk [vmem:[%s8023_s3 + $0x160] sm:$0xf] %vm4216_vm2, %v4906_v56  ;;  %v4907_v62 = vpack.c.bf16 %v3749_v33, %v3749_v33  ;;  %v3142_v11 = vpop.f32.mrb[204].mxu0  ;;  %v5097_v17 = vpop.f32.mrb[4].mxu1  ;;  %v2682_v56 = vadd.f32 %v7460_v31, %v8152_v4 }
 0x31d   :  { %4308 = vst.msk [vmem:[%s8023_s3 + $0x16c] sm:$0xf] %vm4216_vm2, %v4909_v47  ;;  %v3143_v22 = vadd.f32 %v3142_v11, %v2663_v12  ;;  %v3591_v49 = vadd.f32 %v5097_v17, %v7804_v20  ;;  %v3144_v53 = vpop.f32.mrb[205].mxu0  ;;  %v3582_v38 = vpop.f32.mrb[5].mxu1 }
 0x31e   :  { %4306 = vst.msk [vmem:[%s8023_s3 + $0x164] sm:$0xf] %vm4216_vm2, %v4907_v62  ;;  %v3583_v58 = vadd.f32 %v3582_v38, %v7776_v25  ;;  %v3145_v32 = vpop.f32.mrb[206].mxu0  ;;  %v5098_v40 = vpop.f32.mrb[6].mxu1 }
 0x31f   :  { %v3754_v7 = vmax.f32 %v3591_v49, 0.0  ;;  %v3146_v50 = vadd.f32 %v3145_v32, %v2666_v48  ;;  %v3594_v42 = vadd.f32 %v5098_v40, %v7812_v15  ;;  %v3147_v63 = vpop.f32.mrb[207].mxu0  ;;  %v3585_v44 = vpop.f32.mrb[7].mxu1 }
 0x320   :  { %v3752_v39 = vmax.f32 %v3583_v58, 0.0  ;;  %v3586_v20 = vadd.f32 %v3585_v44, %v7784_v23  ;;  %v8153_v63 = vld [vmem:[#allocation61_spill] sm:$0xff] }
 0x321   :  { %v4912_v52 = vpack.c.bf16 %v3754_v7, %v3754_v7  ;;  %v3755_v26 = vmax.f32 %v3594_v42, 0.0  ;;  %v5826_v42 = vld [vmem:[%s8022_s2] ss:$0 sm:$0xff] }
 0x322   :  { %v4910_v51 = vpack.c.bf16 %v3752_v39, %v3752_v39  ;;  %v3753_v46 = vmax.f32 %v3586_v20, 0.0  ;;  %v8154_v20 = vld [vmem:[#allocation63_spill] sm:$0xff] }
 0x323   :  { %4311 = vst.msk [vmem:[%s8023_s3 + $0x178] sm:$0xf] %vm4216_vm2, %v4912_v52  ;;  %v4913_v25 = vpack.c.bf16 %v3755_v26, %v3755_v26  ;;  %v2690_v52 = vadd.f32 %v5826_v42, %v8154_v20 }
 0x324   :  { %4309 = vst.msk [vmem:[%s8023_s3 + $0x170] sm:$0xf] %vm4216_vm2, %v4910_v51  ;;  %v4911_v15 = vpack.c.bf16 %v3753_v46, %v3753_v46  ;;  %v3150_v23 = vpop.f32.mrb[208].mxu0  ;;  %v5101_v55 = vpop.f32.mrb[8].mxu1 }
 0x325   :  { %4312 = vst.msk [vmem:[%s8023_s3 + $0x17c] sm:$0xf] %vm4216_vm2, %v4913_v25  ;;  %v3151_v60 = vadd.f32 %v3150_v23, %v2671_v6  ;;  %v3607_v29 = vadd.f32 %v5101_v55, %v7860_v37  ;;  %v3152_v3 = vpop.f32.mrb[209].mxu0  ;;  %v3598_v5 = vpop.f32.mrb[9].mxu1 }
 0x326   :  { %4310 = vst.msk [vmem:[%s8023_s3 + $0x174] sm:$0xf] %vm4216_vm2, %v4911_v15  ;;  %v3599_v24 = vadd.f32 %v3598_v5, %v7832_v36  ;;  %v3153_v8 = vpop.f32.mrb[210].mxu0  ;;  %v5102_v18 = vpop.f32.mrb[10].mxu1 }
 0x327   :  { %v3758_v54 = vmax.f32 %v3607_v29, 0.0  ;;  %v3154_v61 = vadd.f32 %v3153_v8, %v2674_v9  ;;  %v3610_v27 = vadd.f32 %v5102_v18, %v7868_v57  ;;  %v3155_v19 = vpop.f32.mrb[211].mxu0  ;;  %v3601_v59 = vpop.f32.mrb[11].mxu1 }
 0x328   :  { %v3756_v35 = vmax.f32 %v3599_v24, 0.0  ;;  %v3602_v37 = vadd.f32 %v3601_v59, %v7840_v10 }
 0x329   :  { %v4916_v2 = vpack.c.bf16 %v3758_v54, %v3758_v54  ;;  %v3759_v30 = vmax.f32 %v3610_v27, 0.0 }
 0x32a   :  { %v4914_v28 = vpack.c.bf16 %v3756_v35, %v3756_v35  ;;  %v3757_v34 = vmax.f32 %v3602_v37, 0.0 }
 0x32b   :  { %4315 = vst.msk [vmem:[%s8023_s3 + $0x188] sm:$0xf] %vm4216_vm2, %v4916_v2  ;;  %v4917_v36 = vpack.c.bf16 %v3759_v30, %v3759_v30 }
 0x32c   :  { %4313 = vst.msk [vmem:[%s8023_s3 + $0x180] sm:$0xf] %vm4216_vm2, %v4914_v28  ;;  %v4915_v57 = vpack.c.bf16 %v3757_v34, %v3757_v34  ;;  %v3158_v10 = vpop.f32.mrb[212].mxu0  ;;  %v5105_v14 = vpop.f32.mrb[12].mxu1 }
 0x32d   :  { %4316 = vst.msk [vmem:[%s8023_s3 + $0x18c] sm:$0xf] %vm4216_vm2, %v4917_v36  ;;  %v3159_v33 = vadd.f32 %v3158_v10, %v2679_v21  ;;  %v3623_v16 = vadd.f32 %v5105_v14, %v3143_v22  ;;  %v3160_v12 = vpop.f32.mrb[213].mxu0  ;;  %v3614_v47 = vpop.f32.mrb[13].mxu1 }
 0x32e   :  { %4314 = vst.msk [vmem:[%s8023_s3 + $0x184] sm:$0xf] %vm4216_vm2, %v4915_v57  ;;  %v3615_v62 = vadd.f32 %v3614_v47, %v7888_v41  ;;  %v3161_v11 = vpop.f32.mrb[214].mxu0  ;;  %v5106_v17 = vpop.f32.mrb[14].mxu1  ;;  %v2687_v41 = vadd.f32 %v5826_v42, %v8153_v63 }
 0x32f   :  { %v3762_v45 = vmax.f32 %v3623_v16, 0.0  ;;  %v3162_v31 = vadd.f32 %v3161_v11, %v2682_v56  ;;  %v3626_v48 = vadd.f32 %v5106_v17, %v3146_v50  ;;  %v3163_v49 = vpop.f32.mrb[215].mxu0  ;;  %v3617_v53 = vpop.f32.mrb[15].mxu1 }
 0x330   :  { %v3760_v38 = vmax.f32 %v3615_v62, 0.0  ;;  %v3618_v58 = vadd.f32 %v3617_v53, %v7896_v1 }
 0x331   :  { %v4920_v22 = vpack.c.bf16 %v3762_v45, %v3762_v45  ;;  %v3763_v32 = vmax.f32 %v3626_v48, 0.0 }
 0x332   :  { %v4918_v40 = vpack.c.bf16 %v3760_v38, %v3760_v38  ;;  %v3761_v7 = vmax.f32 %v3618_v58, 0.0 }
 0x333   :  { %4319 = vst.msk [vmem:[%s8023_s3 + $0x198] sm:$0xf] %vm4216_vm2, %v4920_v22  ;;  %v4921_v50 = vpack.c.bf16 %v3763_v32, %v3763_v32 }
 0x334   :  { %4317 = vst.msk [vmem:[%s8023_s3 + $0x190] sm:$0xf] %vm4216_vm2, %v4918_v40  ;;  %v4919_v1 = vpack.c.bf16 %v3761_v7, %v3761_v7  ;;  %v3166_v44 = vpop.f32.mrb[216].mxu0  ;;  %v5109_v39 = vpop.f32.mrb[164].mxu1 }
 0x335   :  { %4320 = vst.msk [vmem:[%s8023_s3 + $0x19c] sm:$0xf] %vm4216_vm2, %v4921_v50  ;;  %v3167_v26 = vadd.f32 %v3166_v44, %v2687_v41  ;;  %v3639_v51 = vadd.f32 %v5109_v39, %v3159_v33  ;;  %v3168_v46 = vpop.f32.mrb[217].mxu0  ;;  %v3630_v43 = vpop.f32.mrb[165].mxu1 }
 0x336   :  { %4318 = vst.msk [vmem:[%s8023_s3 + $0x194] sm:$0xf] %vm4216_vm2, %v4919_v1  ;;  %v3631_v6 = vadd.f32 %v3630_v43, %v3151_v60  ;;  %v3169_v25 = vpop.f32.mrb[218].mxu0  ;;  %v5110_v15 = vpop.f32.mrb[166].mxu1  ;;  %v8155_v60 = vld [vmem:[#allocation65_spill] sm:$0xff] }
 0x337   :  { %v3766_v23 = vmax.f32 %v3639_v51, 0.0  ;;  %v3170_v55 = vadd.f32 %v3169_v25, %v2690_v52  ;;  %v3642_v13 = vadd.f32 %v5110_v15, %v3162_v31  ;;  %v3171_v9 = vpop.f32.mrb[219].mxu0  ;;  %v3633_v29 = vpop.f32.mrb[167].mxu1  ;;  %v2695_v19 = vadd.f32 %v5826_v42, %v8155_v60 }
 0x338   :  { %v3764_v3 = vmax.f32 %v3631_v6, 0.0  ;;  %v3634_v5 = vadd.f32 %v3633_v29, %v3154_v61 }
 0x339   :  { %v4924_v24 = vpack.c.bf16 %v3766_v23, %v3766_v23  ;;  %v3767_v8 = vmax.f32 %v3642_v13, 0.0 }
 0x33a   :  { %v4922_v18 = vpack.c.bf16 %v3764_v3, %v3764_v3  ;;  %v3765_v54 = vmax.f32 %v3634_v5, 0.0 }
 0x33b   :  { %4323 = vst.msk [vmem:[%s8023_s3 + $0x1a8] sm:$0xf] %vm4216_vm2, %v4924_v24  ;;  %v4925_v27 = vpack.c.bf16 %v3767_v8, %v3767_v8 }
 0x33c   :  { %4321 = vst.msk [vmem:[%s8023_s3 + $0x1a0] sm:$0xf] %vm4216_vm2, %v4922_v18  ;;  %v4923_v59 = vpack.c.bf16 %v3765_v54, %v3765_v54  ;;  %v3174_v35 = vpop.f32.mrb[220].mxu0  ;;  %v5113_v61 = vpop.f32.mrb[16].mxu1 }
 0x33d   :  { %4324 = vst.msk [vmem:[%s8023_s3 + $0x1ac] sm:$0xf] %vm4216_vm2, %v4925_v27  ;;  %v3175_v37 = vadd.f32 %v3174_v35, %v2695_v19  ;;  %v3176_v2 = vpop.f32.mrb[221].mxu0  ;;  %v3646_v30 = vpop.f32.mrb[17].mxu1 }
 0x33e   :  { %4322 = vst.msk [vmem:[%s8023_s3 + $0x1a4] sm:$0xf] %vm4216_vm2, %v4923_v59  ;;  %v3647_v28 = vadd.f32 %v3646_v30, %v3167_v26  ;;  %v3177_v34 = vpop.f32.mrb[222].mxu0  ;;  %v5114_v0 = vpop.f32.mrb[18].mxu1 }
 0x33f   :  { %v3655_v21 = vadd.f32 %v5113_v61, %v3175_v37  ;;  %v3178_v36 = vpop.f32.mrb[223].mxu0  ;;  %v3649_v57 = vpop.f32.mrb[19].mxu1 }
 0x340   :  { %v3768_v10 = vmax.f32 %v3647_v28, 0.0  ;;  %v3650_v14 = vadd.f32 %v3649_v57, %v3170_v55 }
 0x341   :  { %v3770_v4 = vmax.f32 %v3655_v21, 0.0 }
 0x342   :  { %v4926_v56 = vpack.c.bf16 %v3768_v10, %v3768_v10  ;;  %v3769_v33 = vmax.f32 %v3650_v14, 0.0 }
 0x343   :  { %v4928_v16 = vpack.c.bf16 %v3770_v4, %v3770_v4 }
 0x344   :  { %4325 = vst.msk [vmem:[%s8023_s3 + $0x1b0] sm:$0xf] %vm4216_vm2, %v4926_v56  ;;  %v4927_v12 = vpack.c.bf16 %v3769_v33, %v3769_v33 }
 0x345   :  { %4327 = vst.msk [vmem:[%s8023_s3 + $0x1b8] sm:$0xf] %vm4216_vm2, %v4928_v16 }
 0x346   :  { %4326 = vst.msk [vmem:[%s8023_s3 + $0x1b4] sm:$0xf] %vm4216_vm2, %v4927_v12 }

// kernel: pilotnet_forward.9
= control target key start
LH: loop header
LB: loop body
LE: loop exit
PB: predicated region body
PF: predicated region fallthrough
CT: control target
= control target key end

     0   :  { %v2136_v42 = vmov 0   ;;  %vm1009_vm0 = vcmask 1041408   ;;  %vm975_vm1 = vcmask 31744   ;;  %vm1599_vm2 = vcmask 388096   ;;  %s2773_s1 = inlined_call_operand.vmem [shape: bf16[900,48], index: 1, kind: input, shape index: {}]   ;;  %s2774_s0 = inlined_call_operand.vmem [shape: bf16[162,900], index: 0, kind: input, shape index: {}]   ;;  %s2775_s2 = inlined_call_operand.vmem [shape: f32[1,48], index: 2, kind: input, shape index: {}]   ;;  %s2776_s3 = inlined_call_operand.vmem [shape: bf16[162,48], index: 3, kind: output, shape index: {}]  }
   0x1   :  { %v2071_v0 = vld [vmem:[%s2773_s1 + $0x40] sm:$0xff]   ;;  %v2075_v4 = vld [vmem:[%s2773_s1 + $0x48] sm:$0xff]   ;;  %v2079_v8 = vld [vmem:[%s2773_s1 + $0x50] sm:$0xff]  }
   0x2   :  { %v2072_v1 = vld [vmem:[%s2773_s1] sm:$0xff]   ;;  %1824 = vmatprep.subr.bf16.mxu0 %v2071_v0  ;;  %v2076_v5 = vld [vmem:[%s2773_s1 + $0x8] sm:$0xff]   ;;  %v2080_v9 = vld [vmem:[%s2773_s1 + $0x10] sm:$0xff]  }
   0x3   :  { %v2073_v2 = vld [vmem:[%s2773_s1 + $0xc0] sm:$0xff]   ;;  %1825 = vmatpush3.bf16.msra.mxu0 %v2072_v1  ;;  %v2077_v6 = vld [vmem:[%s2773_s1 + $0xc8] sm:$0xff]   ;;  %v2081_v10 = vld [vmem:[%s2773_s1 + $0xd0] sm:$0xff]  }
   0x4   :  { %v2074_v3 = vld [vmem:[%s2773_s1 + $0x80] sm:$0xff]   ;;  %1906 = vmatprep.subr.bf16.mxu1 %v2073_v2  ;;  %1826 = vmatprep.subr.bf16.mxu0 %v2075_v4  ;;  %v2078_v7 = vld [vmem:[%s2773_s1 + $0x88] sm:$0xff]   ;;  %v2082_v11 = vld [vmem:[%s2773_s1 + $0x90] sm:$0xff]  }
   0x5   :  { %1907 = vmatpush3.bf16.msra.mxu1 %v2074_v3  ;;  %v2083_v12 = vld [vmem:[%s2773_s1 + $0x58] sm:$0xff]   ;;  %v2087_v16 = vld [vmem:[%s2773_s1 + $0x60] sm:$0xff]   ;;  %v2091_v20 = vld [vmem:[%s2773_s1 + $0x68] sm:$0xff]  }
   0x6   :  { %1908 = vmatprep.subr.bf16.mxu1 %v2077_v6  ;;  %v2084_v13 = vld [vmem:[%s2773_s1 + $0x18] sm:$0xff]   ;;  %v2088_v17 = vld [vmem:[%s2773_s1 + $0x20] sm:$0xff]   ;;  %v2092_v21 = vld [vmem:[%s2773_s1 + $0x28] sm:$0xff]  }
   0x7   :  { %1827 = vmatpush3.bf16.msra.mxu0 %v2076_v5  ;;  %v2085_v14 = vld [vmem:[%s2773_s1 + $0xd8] sm:$0xff]   ;;  %v2089_v18 = vld [vmem:[%s2773_s1 + $0xe0] sm:$0xff]   ;;  %v2093_v22 = vld [vmem:[%s2773_s1 + $0xe8] sm:$0xff]  }
   0x8   :  { %1828 = vmatprep.subr.bf16.mxu0 %v2079_v8  ;;  %v2086_v15 = vld [vmem:[%s2773_s1 + $0x98] sm:$0xff]   ;;  %v2090_v19 = vld [vmem:[%s2773_s1 + $0xa0] sm:$0xff]   ;;  %v2094_v23 = vld [vmem:[%s2773_s1 + $0xa8] sm:$0xff]  }
   0x9   :  { %1909 = vmatpush3.bf16.msra.mxu1 %v2078_v7  ;;  %v2095_v24 = vld [vmem:[%s2773_s1 + $0x70] sm:$0xff]   ;;  %v2099_v28 = vld [vmem:[%s2773_s1 + $0x78] sm:$0xff]   ;;  %v15_v31 = vld [vmem:[%s2774_s0] sm:$0xff] }
   0xa   :  { %1910 = vmatprep.subr.bf16.mxu1 %v2081_v10  ;;  %v2096_v25 = vld [vmem:[%s2773_s1 + $0x30] sm:$0xff]   ;;  %v2100_v29 = vld [vmem:[%s2773_s1 + $0x38] sm:$0xff]   ;;  %v19_v32 = vld [vmem:[%s2774_s0 + $0x20] sm:$0xff] }
   0xb   :  { %1829 = vmatpush3.bf16.msra.mxu0 %v2080_v9  ;;  %v2097_v26 = vld [vmem:[%s2773_s1 + $0xf0] sm:$0xff]   ;;  %v2101_v30 = vld [vmem:[%s2773_s1 + $0xf8] sm:$0xff]   ;;  %v1626_v33 = vcombine.low %v15_v31, %v19_v32  ;;  %v1627_v34 = vcombine.high %v15_v31, %v19_v32  ;;  %v2103_v36 = vld [vmem:[%s2773_s1 + $0x140] sm:$0xff]  }
   0xc   :  { %1830 = vmatprep.subr.bf16.mxu0 %v2083_v12  ;;  %v2098_v27 = vld [vmem:[%s2773_s1 + $0xb0] sm:$0xff]   ;;  %v2102_v35 = vld [vmem:[%s2773_s1 + $0xb8] sm:$0xff]   ;;  %v16_v37 = vld [vmem:[%s2774_s0 + $0x8] sm:$0xff] }
   0xd   :  { %1911 = vmatpush3.bf16.msra.mxu1 %v2082_v11  ;;  %1045 = vmatprep.mubr.bf16.mxu0 %v1627_v34  ;;  %v20_v38 = vld [vmem:[%s2774_s0 + $0x28] sm:$0xff]  ;;  %v2104_v41 = vld [vmem:[%s2773_s1 + $0x100] sm:$0xff]   ;;  %v2109_v60 = vld [vmem:[%s2773_s1 + $0x150] sm:$0xff]  }
   0xe   :  { %1912 = vmatprep.subr.bf16.mxu1 %v2085_v14  ;;  %v1628_v39 = vcombine.low %v16_v37, %v20_v38  ;;  %v1629_v40 = vcombine.high %v16_v37, %v20_v38  ;;  %v2105_v43 = vld [vmem:[%s2773_s1 + $0x180] sm:$0xff]   ;;  %v24_v47 = vld [vmem:[%s2774_s0 + $0x48] sm:$0xff]  ;;  %v2110_v63 = vld [vmem:[%s2773_s1 + $0x110] sm:$0xff]  }
   0xf   :  { %1831 = vmatpush3.bf16.msra.mxu0 %v2084_v13  ;;  %v23_v44 = vld [vmem:[%s2774_s0 + $0x40] sm:$0xff]  ;;  %v28_v48 = vld [vmem:[%s2774_s0 + $0x68] sm:$0xff]  ;;  %v2111_v1 = vld [vmem:[%s2773_s1 + $0x190] sm:$0xff]  }
  0x10   :  { %1832 = vmatprep.subr.bf16.mxu0 %v2087_v16  ;;  %v27_v45 = vld [vmem:[%s2774_s0 + $0x60] sm:$0xff]  ;;  %1165 = vmatprep.mubr.bf16.mxu1 %v1629_v40  ;;  %v1637_v49 = vcombine.high %v24_v47, %v28_v48  ;;  %v2106_v50 = vld [vmem:[%s2773_s1 + $0x148] sm:$0xff]   ;;  %v1636_v59 = vcombine.low %v24_v47, %v28_v48  ;;  %v2112_v6 = vld [vmem:[%s2773_s1 + $0x158] sm:$0xff]  }
  0x11   :  { %1913 = vmatpush3.bf16.msra.mxu1 %v2086_v15  ;;  %v1635_v46 = vcombine.high %v23_v44, %v27_v45  ;;  %v1634_v51 = vcombine.low %v23_v44, %v27_v45  ;;  %v2107_v52 = vld [vmem:[%s2773_s1 + $0x108] sm:$0xff]   ;;  %v31_v53 = vld [vmem:[%s2774_s0 + $0x80] sm:$0xff]  ;;  %v2113_v7 = vld [vmem:[%s2773_s1 + $0x118] sm:$0xff]  }
  0x12   :  { %1914 = vmatprep.subr.bf16.mxu1 %v2089_v18  ;;  %v35_v54 = vld [vmem:[%s2774_s0 + $0xa0] sm:$0xff]  ;;  %v2108_v56 = vld [vmem:[%s2773_s1 + $0x188] sm:$0xff]   ;;  %v2114_v9 = vld [vmem:[%s2773_s1 + $0x198] sm:$0xff]  }
  0x13   :  { %1833 = vmatpush3.bf16.msra.mxu0 %v2088_v17  ;;  %v1643_v55 = vcombine.high %v31_v53, %v35_v54  ;;  %v32_v57 = vld [vmem:[%s2774_s0 + $0x88] sm:$0xff]  ;;  %v39_v62 = vld [vmem:[%s2774_s0 + $0xc0] sm:$0xff]  ;;  %v1642_v2 = vcombine.low %v31_v53, %v35_v54  ;;  %v2122_v31 = vld [vmem:[%s2773_s1 + $0x170] sm:$0xff]  }
  0x14   :  { %1834 = vmatprep.subr.bf16.mxu0 %v2091_v20  ;;  %v36_v58 = vld [vmem:[%s2774_s0 + $0xa8] sm:$0xff]  ;;  %v43_v0 = vld [vmem:[%s2774_s0 + $0xe0] sm:$0xff]  ;;  %v2125_v37 = vld [vmem:[%s2773_s1 + $0x178] sm:$0xff]  }
  0x15   :  { %1915 = vmatpush3.bf16.msra.mxu1 %v2090_v19  ;;  %v1645_v61 = vcombine.high %v32_v57, %v36_v58  ;;  %v40_v3 = vld [vmem:[%s2774_s0 + $0xc8] sm:$0xff]  ;;  %v1651_v5 = vcombine.high %v39_v62, %v43_v0  ;;  %v1644_v8 = vcombine.low %v32_v57, %v36_v58  ;;  %v47_v11 = vld [vmem:[%s2774_s0 + $0x100] sm:$0xff]  ;;  %v1650_v16 = vcombine.low %v39_v62, %v43_v0  ;;  %v2126_v40 = vld [vmem:[%s2773_s1 + $0x138] sm:$0xff]  }
  0x16   :  { %1916 = vmatprep.subr.bf16.mxu1 %v2093_v22  ;;  %v44_v4 = vld [vmem:[%s2774_s0 + $0xe8] sm:$0xff]  ;;  %v51_v12 = vld [vmem:[%s2774_s0 + $0x120] sm:$0xff] }
  0x17   :  { %1835 = vmatpush3.bf16.msra.mxu0 %v2092_v21  ;;  %v1653_v10 = vcombine.high %v40_v3, %v44_v4  ;;  %v2115_v13 = vld [vmem:[%s2773_s1 + $0x160] sm:$0xff]   ;;  %v1659_v17 = vcombine.high %v47_v11, %v51_v12  ;;  %v48_v18 = vld [vmem:[%s2774_s0 + $0x108] sm:$0xff]  ;;  %v1652_v21 = vcombine.low %v40_v3, %v44_v4 }
  0x18   :  { %1836 = vmatprep.subr.bf16.mxu0 %v2095_v24  ;;  %v2116_v14 = vld [vmem:[%s2773_s1 + $0x120] sm:$0xff]   ;;  %v52_v19 = vld [vmem:[%s2774_s0 + $0x128] sm:$0xff] }
  0x19   :  { %1917 = vmatpush3.bf16.msra.mxu1 %v2094_v23  ;;  %v2117_v15 = vld [vmem:[%s2773_s1 + $0x1a0] sm:$0xff]   ;;  %v2118_v20 = vld [vmem:[%s2773_s1 + $0x168] sm:$0xff]   ;;  %v1661_v23 = vcombine.high %v48_v18, %v52_v19  ;;  %v1660_v34 = vcombine.low %v48_v18, %v52_v19  ;;  %v18_v19 = vld [vmem:[%s2774_s0 + $0x18] sm:$0xff] }
  0x1a   :  { %1918 = vmatprep.subr.bf16.mxu1 %v2097_v26  ;;  %v2119_v22 = vld [vmem:[%s2773_s1 + $0x1a8] sm:$0xff]   ;;  %v59_v26 = vld [vmem:[%s2774_s0 + $0x160] sm:$0xff] }
  0x1b   :  { %1837 = vmatpush3.bf16.msra.mxu0 %v2096_v25  ;;  %v2120_v24 = vld [vmem:[%s2773_s1 + $0x128] sm:$0xff]   ;;  %v55_v25 = vld [vmem:[%s2774_s0 + $0x140] sm:$0xff] }
  0x1c   :  { %1838 = vmatprep.subr.bf16.mxu0 %v2099_v28  ;;  %v60_v28 = vld [vmem:[%s2774_s0 + $0x168] sm:$0xff]  ;;  %v1667_v32 = vcombine.high %v55_v25, %v59_v26  ;;  %v63_v38 = vld [vmem:[%s2774_s0 + $0x180] sm:$0xff] }
  0x1d   :  { %1919 = vmatpush3.bf16.msra.mxu1 %v2098_v27  ;;  %v56_v27 = vld [vmem:[%s2774_s0 + $0x148] sm:$0xff]  ;;  %v79_v57 = vld [vmem:[%s2774_s0 + $0x200] sm:$0xff] }
  0x1e   :  { %1920 = vmatprep.subr.bf16.mxu1 %v2101_v30  ;;  %v1658_v30 = vcombine.low %v47_v11, %v51_v12  ;;  %v64_v45 = vld [vmem:[%s2774_s0 + $0x188] sm:$0xff]  ;;  %v1668_v48 = vcombine.low %v56_v27, %v60_v28  ;;  %v83_v58 = vld [vmem:[%s2774_s0 + $0x220] sm:$0xff] }
  0x1f   :  { %1839 = vmatpush3.bf16.msra.mxu0 %v2100_v29  ;;  %v2121_v29 = vld [vmem:[%s2773_s1 + $0x1b0] sm:$0xff]   ;;  %v76_v54 = vld [vmem:[%s2774_s0 + $0x1e8] sm:$0xff]  ;;  %v1690_v3 = vcombine.low %v79_v57, %v83_v58 }
  0x20   :  { %1988 = vmatprep.subr.bf16.mxu0 %v2103_v36  ;;  %v2124_v36 = vld [vmem:[%s2773_s1 + $0x1b8] sm:$0xff]   ;;  %v84_v62 = vld [vmem:[%s2774_s0 + $0x228] sm:$0xff] }
  0x21   :  { %1921 = vmatpush3.bf16.msra.mxu1 %v2102_v35  ;;  %v1669_v35 = vcombine.high %v56_v27, %v60_v28  ;;  %v96_v12 = vld [vmem:[%s2774_s0 + $0x288] sm:$0xff]  ;;  %v26_v27 = vld [vmem:[%s2774_s0 + $0x58] sm:$0xff] }
  0x22   :  { %1046 = vmatmul.mubr.bf16.vlgmr.msra.gmra.mrb[0].mxu0 %v1626_v33  ;;  %1373 = vmatprep.subr.bf16.mxu1 %v2136_v42  ;;  %v2123_v33 = vld [vmem:[%s2773_s1 + $0x130] sm:$0xff]   ;;  %v30_v28 = vld [vmem:[%s2774_s0 + $0x78] sm:$0xff] }
  0x23   :  { %1989 = vmatpush3.bf16.msra.mxu0 %v2104_v41  ;;  %1053 = vmatprep.mubr.bf16.mxu0 %v1635_v46  ;;  %v2131_v41 = vld [vmem:[%s2773_s1 + $0x1c0] ss:$0 sps:$4 sm:$0x33]   ;;  %v68_v46 = vld [vmem:[%s2774_s0 + $0x1a8] sm:$0xff] }
  0x24   :  { %1166 = vmatmul.mubr.bf16.vlgmr.msra.gmra.mrb[0].mxu1 %v1628_v39  ;;  %1990 = vmatprep.subr.bf16.mxu0 %v2106_v50  ;;  %v67_v39 = vld [vmem:[%s2774_s0 + $0x1a0] sm:$0xff]  ;;  %v1011_v47 = vsel %vm1009_vm0, %v2131_v41, 0 }
  0x25   :  { %1374 = vmatpush1.bf16.msra.mxu1 %v2105_v43  ;;  %1173 = vmatprep.mubr.bf16.mxu1 %v1637_v49  ;;  %v1666_v43 = vcombine.low %v55_v25, %v59_v26  ;;  %v1675_v44 = vcombine.high %v63_v38, %v67_v39  ;;  %v1677_v49 = vcombine.high %v64_v45, %v68_v46  ;;  %v71_v50 = vld [vmem:[%s2774_s0 + $0x1c0] sm:$0xff] }
  0x26   :  { %1375 = vmatprep.subr.bf16.mxu1 %v2136_v42 }
  0x27   :  { %1991 = vmatpush3.bf16.msra.mxu0 %v2107_v52  ;;  %v1674_v52 = vcombine.low %v63_v38, %v67_v39  ;;  %v41_v39 = vld [vmem:[%s2774_s0 + $0xd0] sm:$0xff] }
  0x28   :  { %1992 = vmatprep.subr.bf16.mxu0 %v2109_v60  ;;  %v1691_v60 = vcombine.high %v79_v57, %v83_v58 }
  0x29   :  { %1376 = vmatpush1.bf16.msra.mxu1 %v2108_v56 }
  0x2a   :  { %1054 = vmatmul.mubr.bf16.gmra.mrb[4].mxu0 %v1634_v51  ;;  %1377 = vmatprep.subr.bf16.mxu1 %v2136_v42  ;;  %v75_v51 = vld [vmem:[%s2774_s0 + $0x1e0] sm:$0xff] }
  0x2b   :  { %1061 = vmatprep.mubr.bf16.mxu0 %v1643_v55  ;;  %1993 = vmatpush3.bf16.msra.mxu0 %v2110_v63  ;;  %v1683_v53 = vcombine.high %v71_v50, %v75_v51  ;;  %v1676_v55 = vcombine.low %v64_v45, %v68_v46  ;;  %v46_v45 = vld [vmem:[%s2774_s0 + $0xf8] sm:$0xff] }
  0x2c   :  { %1174 = vmatmul.mubr.bf16.gmra.mrb[4].mxu1 %v1636_v59  ;;  %1994 = vmatprep.subr.bf16.mxu0 %v2112_v6  ;;  %v1682_v59 = vcombine.low %v71_v50, %v75_v51  ;;  %v92_v6 = vld [vmem:[%s2774_s0 + $0x268] sm:$0xff] }
  0x2d   :  { %1181 = vmatprep.mubr.bf16.mxu1 %v1645_v61  ;;  %1378 = vmatpush1.bf16.msra.mxu1 %v2111_v1  ;;  %v80_v61 = vld [vmem:[%s2774_s0 + $0x208] sm:$0xff]  ;;  %v87_v1 = vld [vmem:[%s2774_s0 + $0x240] sm:$0xff] }
  0x2e   :  { %1379 = vmatprep.subr.bf16.mxu1 %v2136_v42  ;;  %v1693_v0 = vcombine.high %v80_v61, %v84_v62 }
  0x2f   :  { %1995 = vmatpush3.bf16.msra.mxu0 %v2113_v7  ;;  %v1692_v7 = vcombine.low %v80_v61, %v84_v62 }
  0x30   :  { %1996 = vmatprep.subr.bf16.mxu0 %v2115_v13 }
  0x31   :  { %1380 = vmatpush1.bf16.msra.mxu1 %v2114_v9  ;;  %v95_v9 = vld [vmem:[%s2774_s0 + $0x280] sm:$0xff] }
  0x32   :  { %1062 = vmatmul.mubr.bf16.gmra.mrb[8].mxu0 %v1642_v2  ;;  %1381 = vmatprep.subr.bf16.mxu1 %v2136_v42  ;;  %v91_v2 = vld [vmem:[%s2774_s0 + $0x260] sm:$0xff]  ;;  %v1707_v11 = vcombine.high %v95_v9, %v95_v9 }
  0x33   :  { %1069 = vmatprep.mubr.bf16.mxu0 %v1651_v5  ;;  %1997 = vmatpush3.bf16.msra.mxu0 %v2116_v14  ;;  %v1699_v4 = vcombine.high %v87_v1, %v91_v2  ;;  %v88_v5 = vld [vmem:[%s2774_s0 + $0x248] sm:$0xff]  ;;  %v1709_v14 = vcombine.high %v96_v12, %v96_v12 }
  0x34   :  { %1182 = vmatmul.mubr.bf16.gmra.mrb[8].mxu1 %v1644_v8  ;;  %1998 = vmatprep.subr.bf16.mxu0 %v2118_v20  ;;  %v1701_v8 = vcombine.high %v88_v5, %v92_v6  ;;  %v1700_v13 = vcombine.low %v88_v5, %v92_v6  ;;  %v22_v20 = vld [vmem:[%s2774_s0 + $0x38] sm:$0xff] }
  0x35   :  { %1189 = vmatprep.mubr.bf16.mxu1 %v1653_v10  ;;  %1382 = vmatpush1.bf16.msra.mxu1 %v2117_v15  ;;  %v1698_v10 = vcombine.low %v87_v1, %v91_v2  ;;  %v17_v15 = vld [vmem:[%s2774_s0 + $0x10] sm:$0xff] }
  0x36   :  { %1383 = vmatprep.subr.bf16.mxu1 %v2136_v42 }
  0x37   :  { %1999 = vmatpush3.bf16.msra.mxu0 %v2120_v24  ;;  %v29_v24 = vld [vmem:[%s2774_s0 + $0x70] sm:$0xff] }
  0x38   :  { %2000 = vmatprep.subr.bf16.mxu0 %v2122_v31  ;;  %v33_v31 = vld [vmem:[%s2774_s0 + $0x90] sm:$0xff] }
  0x39   :  { %1384 = vmatpush1.bf16.msra.mxu1 %v2119_v22  ;;  %v1633_v22 = vcombine.high %v18_v19, %v22_v20 }
  0x3a   :  { %1070 = vmatmul.mubr.bf16.gmra.mrb[12].mxu0 %v1650_v16  ;;  %1385 = vmatprep.subr.bf16.mxu1 %v2136_v42  ;;  %v21_v16 = vld [vmem:[%s2774_s0 + $0x30] sm:$0xff] }
  0x3b   :  { %1077 = vmatprep.mubr.bf16.mxu0 %v1659_v17  ;;  %2001 = vmatpush3.bf16.msra.mxu0 %v2123_v33  ;;  %v1706_v17 = vcombine.low %v95_v9, %v95_v9  ;;  %v1631_v18 = vcombine.high %v17_v15, %v21_v16  ;;  %v1630_v25 = vcombine.low %v17_v15, %v21_v16  ;;  %v81_v15 = vld [vmem:[%s2774_s0 + $0x210] sm:$0xff] }
  0x3c   :  { %1190 = vmatmul.mubr.bf16.gmra.mrb[12].mxu1 %v1652_v21  ;;  %2002 = vmatprep.subr.bf16.mxu0 %v2125_v37  ;;  %v1708_v21 = vcombine.low %v96_v12, %v96_v12  ;;  %v1640_v37 = vcombine.low %v26_v27, %v30_v28  ;;  %v78_v12 = vld [vmem:[%s2774_s0 + $0x1f8] sm:$0xff]  ;;  %v85_v16 = vld [vmem:[%s2774_s0 + $0x230] sm:$0xff] }
  0x3d   :  { %1197 = vmatprep.mubr.bf16.mxu1 %v1661_v23  ;;  %1386 = vmatpush1.bf16.msra.mxu1 %v2121_v29  ;;  %v25_v23 = vld [vmem:[%s2774_s0 + $0x50] sm:$0xff]  ;;  %v1632_v29 = vcombine.low %v18_v19, %v22_v20  ;;  %v82_v19 = vld [vmem:[%s2774_s0 + $0x218] sm:$0xff] }
  0x3e   :  { %1387 = vmatprep.subr.bf16.mxu1 %v2136_v42  ;;  %v1639_v26 = vcombine.high %v25_v23, %v29_v24  ;;  %v1638_v33 = vcombine.low %v25_v23, %v29_v24  ;;  %v86_v20 = vld [vmem:[%s2774_s0 + $0x238] sm:$0xff]  ;;  %v89_v23 = vld [vmem:[%s2774_s0 + $0x250] sm:$0xff] }
  0x3f   :  { %2003 = vmatpush3.bf16.msra.mxu0 %v2126_v40  ;;  %v45_v40 = vld [vmem:[%s2774_s0 + $0xf0] sm:$0xff] }
  0x40   :  { %v1654_v50 = vcombine.low %v41_v39, %v45_v40  ;;  %v93_v24 = vld [vmem:[%s2774_s0 + $0x270] sm:$0xff] }
  0x41   :  { %1388 = vmatpush1.bf16.msra.mxu1 %v2124_v36  ;;  %v38_v36 = vld [vmem:[%s2774_s0 + $0xb8] sm:$0xff] }
  0x42   :  { %1078 = vmatmul.mubr.bf16.gmra.mrb[16].mxu0 %v1658_v30  ;;  %1389 = vmatprep.subr.bf16.mxu1 %v2136_v42  ;;  %v72_v42 = vld [vmem:[%s2774_s0 + $0x1c8] sm:$0xff]  ;;  %v1641_v30 = vcombine.high %v26_v27, %v30_v28  ;;  %v90_v27 = vld [vmem:[%s2774_s0 + $0x258] sm:$0xff] }
  0x43   :  { %1085 = vmatprep.mubr.bf16.mxu0 %v1667_v32  ;;  %v1685_v56 = vcombine.high %v72_v42, %v76_v54  ;;  %v1684_v63 = vcombine.low %v72_v42, %v76_v54  ;;  %v37_v32 = vld [vmem:[%s2774_s0 + $0xb0] sm:$0xff]  ;;  %v94_v28 = vld [vmem:[%s2774_s0 + $0x278] sm:$0xff] }
  0x44   :  { %1198 = vmatmul.mubr.bf16.gmra.mrb[16].mxu1 %v1660_v34  ;;  %v1647_v34 = vcombine.high %v33_v31, %v37_v32  ;;  %v1646_v41 = vcombine.low %v33_v31, %v37_v32  ;;  %v97_v31 = vld [vmem:[%s2774_s0 + $0x290] sm:$0xff]  ;;  %v1702_v32 = vcombine.low %v89_v23, %v93_v24 }
  0x45   :  { %1205 = vmatprep.mubr.bf16.mxu1 %v1669_v35  ;;  %1390 = vmatpush1.bf16.msra.mxu1 %v1011_v47  ;;  %v34_v35 = vld [vmem:[%s2774_s0 + $0x98] sm:$0xff] }
  0x46   :  { %v1649_v38 = vcombine.high %v34_v35, %v38_v36  ;;  %v1648_v46 = vcombine.low %v34_v35, %v38_v36  ;;  %v1704_v35 = vcombine.low %v90_v27, %v94_v28 }
  0x4a   :  { %1086 = vmatmul.mubr.bf16.gmra.mrb[20].mxu0 %v1666_v43  ;;  %v1655_v43 = vcombine.high %v41_v39, %v45_v40  ;;  %v2603_v40 = vld [vmem:[%s2775_s2] ss:$0 sm:$0xff] }
  0x4b   :  { %1093 = vmatprep.mubr.bf16.mxu0 %v1675_v44  ;;  %v42_v44 = vld [vmem:[%s2774_s0 + $0xd8] sm:$0xff] }
  0x4c   :  { %1206 = vmatmul.mubr.bf16.gmra.mrb[20].mxu1 %v1668_v48  ;;  %v1657_v47 = vcombine.high %v42_v44, %v46_v45  ;;  %v49_v48 = vld [vmem:[%s2774_s0 + $0x110] sm:$0xff]  ;;  %v1656_v42 = vcombine.low %v42_v44, %v46_v45 }
  0x4d   :  { %1213 = vmatprep.mubr.bf16.mxu1 %v1677_v49  ;;  %v53_v49 = vld [vmem:[%s2774_s0 + $0x130] sm:$0xff] }
  0x4e   :  { %v1663_v51 = vcombine.high %v49_v48, %v53_v49  ;;  %v1662_v57 = vcombine.low %v49_v48, %v53_v49 }
  0x52   :  { %1094 = vmatmul.mubr.bf16.gmra.mrb[24].mxu0 %v1674_v52  ;;  %v50_v52 = vld [vmem:[%s2774_s0 + $0x118] sm:$0xff] }
  0x53   :  { %1101 = vmatprep.mubr.bf16.mxu0 %v1683_v53  ;;  %v54_v53 = vld [vmem:[%s2774_s0 + $0x138] sm:$0xff] }
  0x54   :  { %1214 = vmatmul.mubr.bf16.gmra.mrb[24].mxu1 %v1676_v55  ;;  %v1665_v54 = vcombine.high %v50_v52, %v54_v53  ;;  %v57_v55 = vld [vmem:[%s2774_s0 + $0x150] sm:$0xff]  ;;  %v1664_v61 = vcombine.low %v50_v52, %v54_v53 }
  0x55   :  { %1221 = vmatprep.mubr.bf16.mxu1 %v1685_v56  ;;  %v61_v56 = vld [vmem:[%s2774_s0 + $0x170] sm:$0xff] }
  0x56   :  { %v1671_v58 = vcombine.high %v57_v55, %v61_v56  ;;  %v1670_v1 = vcombine.low %v57_v55, %v61_v56 }
  0x5a   :  { %1102 = vmatmul.mubr.bf16.gmra.mrb[28].mxu0 %v1682_v59  ;;  %v58_v59 = vld [vmem:[%s2774_s0 + $0x158] sm:$0xff] }
  0x5b   :  { %1109 = vmatprep.mubr.bf16.mxu0 %v1691_v60  ;;  %v62_v60 = vld [vmem:[%s2774_s0 + $0x178] sm:$0xff] }
  0x5c   :  { %1222 = vmatmul.mubr.bf16.gmra.mrb[28].mxu1 %v1684_v63  ;;  %v1673_v62 = vcombine.high %v58_v59, %v62_v60  ;;  %v65_v63 = vld [vmem:[%s2774_s0 + $0x190] sm:$0xff]  ;;  %v1672_v5 = vcombine.low %v58_v59, %v62_v60 }
  0x5d   :  { %1229 = vmatprep.mubr.bf16.mxu1 %v1693_v0  ;;  %v69_v0 = vld [vmem:[%s2774_s0 + $0x1b0] sm:$0xff] }
  0x5e   :  { %v1679_v2 = vcombine.high %v65_v63, %v69_v0  ;;  %v1678_v9 = vcombine.low %v65_v63, %v69_v0 }
  0x62   :  { %1110 = vmatmul.mubr.bf16.gmra.mrb[32].mxu0 %v1690_v3  ;;  %v66_v3 = vld [vmem:[%s2774_s0 + $0x198] sm:$0xff] }
  0x63   :  { %1117 = vmatprep.mubr.bf16.mxu0 %v1699_v4  ;;  %v70_v4 = vld [vmem:[%s2774_s0 + $0x1b8] sm:$0xff] }
  0x64   :  { %1230 = vmatmul.mubr.bf16.gmra.mrb[32].mxu1 %v1692_v7  ;;  %v1681_v6 = vcombine.high %v66_v3, %v70_v4  ;;  %v73_v7 = vld [vmem:[%s2774_s0 + $0x1d0] sm:$0xff] }
  0x65   :  { %1237 = vmatprep.mubr.bf16.mxu1 %v1701_v8  ;;  %v77_v8 = vld [vmem:[%s2774_s0 + $0x1f0] sm:$0xff] }
  0x6a   :  { %1118 = vmatmul.mubr.bf16.gmra.mrb[36].mxu0 %v1698_v10  ;;  %v1687_v10 = vcombine.high %v73_v7, %v77_v8 }
  0x6b   :  { %1125 = vmatprep.mubr.bf16.mxu0 %v1707_v11  ;;  %v74_v11 = vld [vmem:[%s2774_s0 + $0x1d8] sm:$0xff] }
  0x6c   :  { %1238 = vmatmul.mubr.bf16.gmra.mrb[36].mxu1 %v1700_v13  ;;  %v1680_v13 = vcombine.low %v66_v3, %v70_v4 }
  0x6d   :  { %1245 = vmatprep.mubr.bf16.mxu1 %v1709_v14  ;;  %v1689_v14 = vcombine.high %v74_v11, %v78_v12 }
  0x72   :  { %1126 = vmatmul.mubr.bf16.gmra.mrb[40].mxu0 %v1706_v17  ;;  %v1686_v17 = vcombine.low %v73_v7, %v77_v8 }
  0x73   :  { %1285 = vmatprep.mubr.bf16.mxu0 %v1631_v18  ;;  %v1695_v18 = vcombine.high %v81_v15, %v85_v16 }
  0x74   :  { %1246 = vmatmul.mubr.bf16.gmra.mrb[40].mxu1 %v1708_v21  ;;  %v1688_v21 = vcombine.low %v74_v11, %v78_v12 }
  0x75   :  { %1771 = vmatprep.mubr.msk.bf16.mxu1 %vm975_vm1, %v1633_v22  ;;  %v1697_v22 = vcombine.high %v82_v19, %v86_v20 }
  0x7a   :  { %1286 = vmatmul.mubr.bf16.vlgmr.msra.gmra.mrb[44].mxu0 %v1630_v25  ;;  %v1694_v25 = vcombine.low %v81_v15, %v85_v16 }
  0x7b   :  { %1293 = vmatprep.mubr.bf16.mxu0 %v1639_v26  ;;  %v1703_v26 = vcombine.high %v89_v23, %v93_v24 }
  0x7c   :  { %1406 = vmatmul.mubr.bf16.vlgmr.msra.gmra.mrb[44].mxu1 %v1632_v29  ;;  %v1696_v29 = vcombine.low %v82_v19, %v86_v20 }
  0x7d   :  { %1772 = vmatprep.mubr.msk.bf16.mxu1 %vm975_vm1, %v1641_v30  ;;  %v1705_v30 = vcombine.high %v90_v27, %v94_v28 }
  0x82   :  { %1294 = vmatmul.mubr.bf16.gmra.mrb[48].mxu0 %v1638_v33  ;;  %v1711_v33 = vcombine.high %v97_v31, %v97_v31 }
  0x83   :  { %1301 = vmatprep.mubr.bf16.mxu0 %v1647_v34  ;;  %v98_v34 = vld [vmem:[%s2774_s0 + $0x298] sm:$0xff] }
  0x84   :  { %1414 = vmatmul.mubr.bf16.gmra.mrb[48].mxu1 %v1640_v37  ;;  %v1713_v36 = vcombine.high %v98_v34, %v98_v34  ;;  %v1710_v37 = vcombine.low %v97_v31, %v97_v31 }
  0x85   :  { %1773 = vmatprep.mubr.msk.bf16.mxu1 %vm975_vm1, %v1649_v38  ;;  %v1712_v38 = vcombine.low %v98_v34, %v98_v34 }
  0x8a   :  { %1302 = vmatmul.mubr.bf16.gmra.mrb[52].mxu0 %v1646_v41 }
  0x8b   :  { %1309 = vmatprep.mubr.bf16.mxu0 %v1655_v43 }
  0x8c   :  { %1422 = vmatmul.mubr.bf16.gmra.mrb[52].mxu1 %v1648_v46 }
  0x8d   :  { %1774 = vmatprep.mubr.msk.bf16.mxu1 %vm975_vm1, %v1657_v47 }
  0x92   :  { %1310 = vmatmul.mubr.bf16.gmra.mrb[56].mxu0 %v1654_v50 }
  0x93   :  { %1317 = vmatprep.mubr.bf16.mxu0 %v1663_v51 }
  0x94   :  { %1430 = vmatmul.mubr.bf16.gmra.mrb[56].mxu1 %v1656_v42 }
  0x95   :  { %1775 = vmatprep.mubr.msk.bf16.mxu1 %vm975_vm1, %v1665_v54 }
  0x9a   :  { %1318 = vmatmul.mubr.bf16.gmra.mrb[60].mxu0 %v1662_v57 }
  0x9b   :  { %1325 = vmatprep.mubr.bf16.mxu0 %v1671_v58 }
  0x9c   :  { %1438 = vmatmul.mubr.bf16.gmra.mrb[60].mxu1 %v1664_v61 }
  0x9d   :  { %1776 = vmatprep.mubr.msk.bf16.mxu1 %vm975_vm1, %v1673_v62 }
  0xa2   :  { %1326 = vmatmul.mubr.bf16.gmra.mrb[64].mxu0 %v1670_v1 }
  0xa3   :  { %1333 = vmatprep.mubr.bf16.mxu0 %v1679_v2 }
  0xa4   :  { %1446 = vmatmul.mubr.bf16.gmra.mrb[64].mxu1 %v1672_v5 }
  0xa5   :  { %1777 = vmatprep.mubr.msk.bf16.mxu1 %vm975_vm1, %v1681_v6 }
  0xaa   :  { %1334 = vmatmul.mubr.bf16.gmra.mrb[68].mxu0 %v1678_v9 }
  0xab   :  { %1341 = vmatprep.mubr.bf16.mxu0 %v1687_v10 }
  0xac   :  { %1454 = vmatmul.mubr.bf16.gmra.mrb[68].mxu1 %v1680_v13 }
  0xad   :  { %1778 = vmatprep.mubr.msk.bf16.mxu1 %vm975_vm1, %v1689_v14 }
  0xb2   :  { %1342 = vmatmul.mubr.bf16.gmra.mrb[72].mxu0 %v1686_v17 }
  0xb3   :  { %1349 = vmatprep.mubr.bf16.mxu0 %v1695_v18 }
  0xb4   :  { %1462 = vmatmul.mubr.bf16.gmra.mrb[72].mxu1 %v1688_v21 }
  0xb5   :  { %1779 = vmatprep.mubr.msk.bf16.mxu1 %vm975_vm1, %v1697_v22 }
  0xba   :  { %1350 = vmatmul.mubr.bf16.gmra.mrb[76].mxu0 %v1694_v25 }
  0xbb   :  { %1357 = vmatprep.mubr.bf16.mxu0 %v1703_v26 }
  0xbc   :  { %1470 = vmatmul.mubr.bf16.gmra.mrb[76].mxu1 %v1696_v29 }
  0xbd   :  { %1780 = vmatprep.mubr.msk.bf16.mxu1 %vm975_vm1, %v1705_v30 }
  0xc2   :  { %1358 = vmatmul.mubr.bf16.gmra.mrb[80].mxu0 %v1702_v32 }
  0xc3   :  { %1365 = vmatprep.mubr.bf16.mxu0 %v1711_v33 }
  0xc4   :  { %1478 = vmatmul.mubr.bf16.gmra.mrb[80].mxu1 %v1704_v35 }
  0xc5   :  { %1781 = vmatprep.mubr.msk.bf16.mxu1 %vm975_vm1, %v1713_v36 }
  0xca   :  { %1366 = vmatmul.mubr.bf16.gmra.mrb[84].mxu0 %v1710_v37 }
  0xcc   :  { %1486 = vmatmul.mubr.bf16.gmra.mrb[84].mxu1 %v1712_v38 }
  0xf5   :  { %v1840_v39 = vpop.f32.mrb[0].mxu0 }
  0xf6   :  { %v1841_v41 = vpop.f32.mrb[1].mxu0 }
  0xf7   :  { %v1842_v43 = vadd.f32 %v1841_v41, %v1840_v39  ;;  %v1843_v44 = vpop.f32.mrb[2].mxu0  ;;  %v1922_v45 = vpop.f32.mrb[0].mxu1 }
  0xf8   :  { %v1844_v46 = vpop.f32.mrb[3].mxu0  ;;  %v1923_v49 = vpop.f32.mrb[1].mxu1 }
  0xf9   :  { %v1048_v47 = vadd.f32 %v1842_v43, %v2603_v40  ;;  %v1845_v48 = vadd.f32 %v1844_v46, %v1843_v44  ;;  %v1924_v50 = vadd.f32 %v1923_v49, %v1922_v45  ;;  %v1925_v51 = vpop.f32.mrb[2].mxu1 }
  0xfa   :  { %v1926_v53 = vpop.f32.mrb[3].mxu1 }
  0xfb   :  { %v1051_v52 = vadd.f32 %v1845_v48, %v2603_v40  ;;  %v2607_v42 = vadd.f32 %v1924_v50, %v1048_v47  ;;  %v1927_v54 = vadd.f32 %v1926_v53, %v1925_v51 }
  0xfd   :  { %v1846_v55 = vpop.f32.mrb[4].mxu0  ;;  %v2609_v56 = vadd.f32 %v1927_v54, %v1051_v52 }
  0xfe   :  { %v1847_v57 = vpop.f32.mrb[5].mxu0 }
  0xff   :  { %v1848_v58 = vadd.f32 %v1847_v57, %v1846_v55  ;;  %v1849_v59 = vpop.f32.mrb[6].mxu0  ;;  %v1928_v60 = vpop.f32.mrb[4].mxu1 }
 0x100   :  { %v1850_v61 = vpop.f32.mrb[7].mxu0  ;;  %v1929_v0 = vpop.f32.mrb[5].mxu1 }
 0x101   :  { %v1056_v62 = vadd.f32 %v1848_v58, %v2603_v40  ;;  %v1851_v63 = vadd.f32 %v1850_v61, %v1849_v59  ;;  %v1930_v1 = vadd.f32 %v1929_v0, %v1928_v60  ;;  %v1931_v2 = vpop.f32.mrb[6].mxu1 }
 0x102   :  { %v1932_v4 = vpop.f32.mrb[7].mxu1 }
 0x103   :  { %v1059_v3 = vadd.f32 %v1851_v63, %v2603_v40  ;;  %v2613_v5 = vadd.f32 %v1930_v1, %v1056_v62  ;;  %v1933_v6 = vadd.f32 %v1932_v4, %v1931_v2 }
 0x105   :  { %v1852_v7 = vpop.f32.mrb[8].mxu0  ;;  %v2615_v8 = vadd.f32 %v1933_v6, %v1059_v3 }
 0x106   :  { %v1853_v9 = vpop.f32.mrb[9].mxu0 }
 0x107   :  { %v1854_v10 = vadd.f32 %v1853_v9, %v1852_v7  ;;  %v1855_v11 = vpop.f32.mrb[10].mxu0  ;;  %v1934_v12 = vpop.f32.mrb[8].mxu1 }
 0x108   :  { %v1856_v13 = vpop.f32.mrb[11].mxu0  ;;  %v1935_v16 = vpop.f32.mrb[9].mxu1 }
 0x109   :  { %v1064_v14 = vadd.f32 %v1854_v10, %v2603_v40  ;;  %v1857_v15 = vadd.f32 %v1856_v13, %v1855_v11  ;;  %v1936_v17 = vadd.f32 %v1935_v16, %v1934_v12  ;;  %v1937_v18 = vpop.f32.mrb[10].mxu1 }
 0x10a   :  { %v1938_v20 = vpop.f32.mrb[11].mxu1 }
 0x10b   :  { %v1067_v19 = vadd.f32 %v1857_v15, %v2603_v40  ;;  %v2619_v21 = vadd.f32 %v1936_v17, %v1064_v14  ;;  %v1939_v22 = vadd.f32 %v1938_v20, %v1937_v18 }
 0x10d   :  { %v1858_v23 = vpop.f32.mrb[12].mxu0  ;;  %v2621_v24 = vadd.f32 %v1939_v22, %v1067_v19 }
 0x10e   :  { %v1859_v25 = vpop.f32.mrb[13].mxu0 }
 0x10f   :  { %v1860_v26 = vadd.f32 %v1859_v25, %v1858_v23  ;;  %v1861_v27 = vpop.f32.mrb[14].mxu0  ;;  %v1940_v28 = vpop.f32.mrb[12].mxu1 }
 0x110   :  { %v1862_v29 = vpop.f32.mrb[15].mxu0  ;;  %v1941_v32 = vpop.f32.mrb[13].mxu1 }
 0x111   :  { %v1072_v30 = vadd.f32 %v1860_v26, %v2603_v40  ;;  %v1863_v31 = vadd.f32 %v1862_v29, %v1861_v27  ;;  %v1942_v33 = vadd.f32 %v1941_v32, %v1940_v28  ;;  %v1943_v34 = vpop.f32.mrb[14].mxu1 }
 0x112   :  { %v1944_v36 = vpop.f32.mrb[15].mxu1 }
 0x113   :  { %v1075_v35 = vadd.f32 %v1863_v31, %v2603_v40  ;;  %v2625_v37 = vadd.f32 %v1942_v33, %v1072_v30  ;;  %v1945_v38 = vadd.f32 %v1944_v36, %v1943_v34 }
 0x115   :  { %v1864_v39 = vpop.f32.mrb[16].mxu0  ;;  %v2627_v41 = vadd.f32 %v1945_v38, %v1075_v35 }
 0x116   :  { %v1865_v43 = vpop.f32.mrb[17].mxu0 }
 0x117   :  { %v1866_v44 = vadd.f32 %v1865_v43, %v1864_v39  ;;  %v1867_v45 = vpop.f32.mrb[18].mxu0  ;;  %v1946_v46 = vpop.f32.mrb[16].mxu1 }
 0x118   :  { %v1868_v47 = vpop.f32.mrb[19].mxu0  ;;  %v1947_v50 = vpop.f32.mrb[17].mxu1 }
 0x119   :  { %v1080_v48 = vadd.f32 %v1866_v44, %v2603_v40  ;;  %v1869_v49 = vadd.f32 %v1868_v47, %v1867_v45  ;;  %v1948_v51 = vadd.f32 %v1947_v50, %v1946_v46  ;;  %v1949_v52 = vpop.f32.mrb[18].mxu1 }
 0x11a   :  { %v1950_v54 = vpop.f32.mrb[19].mxu1 }
 0x11b   :  { %v1083_v53 = vadd.f32 %v1869_v49, %v2603_v40  ;;  %v2631_v55 = vadd.f32 %v1948_v51, %v1080_v48  ;;  %v1951_v57 = vadd.f32 %v1950_v54, %v1949_v52 }
 0x11d   :  { %v1870_v58 = vpop.f32.mrb[20].mxu0  ;;  %v2633_v59 = vadd.f32 %v1951_v57, %v1083_v53 }
 0x11e   :  { %v1871_v60 = vpop.f32.mrb[21].mxu0 }
 0x11f   :  { %v1872_v61 = vadd.f32 %v1871_v60, %v1870_v58  ;;  %v1873_v62 = vpop.f32.mrb[22].mxu0  ;;  %v1952_v63 = vpop.f32.mrb[20].mxu1 }
 0x120   :  { %v1874_v0 = vpop.f32.mrb[23].mxu0  ;;  %v1953_v3 = vpop.f32.mrb[21].mxu1 }
 0x121   :  { %v1088_v1 = vadd.f32 %v1872_v61, %v2603_v40  ;;  %v1875_v2 = vadd.f32 %v1874_v0, %v1873_v62  ;;  %v1954_v4 = vadd.f32 %v1953_v3, %v1952_v63  ;;  %v1955_v6 = vpop.f32.mrb[22].mxu1 }
 0x122   :  { %v1956_v9 = vpop.f32.mrb[23].mxu1 }
 0x123   :  { %v1091_v7 = vadd.f32 %v1875_v2, %v2603_v40  ;;  %v2637_v10 = vadd.f32 %v1954_v4, %v1088_v1  ;;  %v1957_v11 = vadd.f32 %v1956_v9, %v1955_v6 }
 0x125   :  { %v1876_v12 = vpop.f32.mrb[24].mxu0  ;;  %v2639_v13 = vadd.f32 %v1957_v11, %v1091_v7 }
 0x126   :  { %v1877_v14 = vpop.f32.mrb[25].mxu0 }
 0x127   :  { %v1878_v15 = vadd.f32 %v1877_v14, %v1876_v12  ;;  %v1879_v16 = vpop.f32.mrb[26].mxu0  ;;  %v1958_v17 = vpop.f32.mrb[24].mxu1 }
 0x128   :  { %v1880_v18 = vpop.f32.mrb[27].mxu0  ;;  %v1959_v22 = vpop.f32.mrb[25].mxu1 }
 0x129   :  { %v1096_v19 = vadd.f32 %v1878_v15, %v2603_v40  ;;  %v1881_v20 = vadd.f32 %v1880_v18, %v1879_v16  ;;  %v1960_v23 = vadd.f32 %v1959_v22, %v1958_v17  ;;  %v1961_v25 = vpop.f32.mrb[26].mxu1 }
 0x12a   :  { %v1962_v27 = vpop.f32.mrb[27].mxu1 }
 0x12b   :  { %v1099_v26 = vadd.f32 %v1881_v20, %v2603_v40  ;;  %v2643_v28 = vadd.f32 %v1960_v23, %v1096_v19  ;;  %v1963_v29 = vadd.f32 %v1962_v27, %v1961_v25 }
 0x12d   :  { %v1882_v30 = vpop.f32.mrb[28].mxu0  ;;  %v2645_v31 = vadd.f32 %v1963_v29, %v1099_v26 }
 0x12e   :  { %v1883_v32 = vpop.f32.mrb[29].mxu0 }
 0x12f   :  { %v1884_v33 = vadd.f32 %v1883_v32, %v1882_v30  ;;  %v1885_v34 = vpop.f32.mrb[30].mxu0  ;;  %v1964_v35 = vpop.f32.mrb[28].mxu1 }
 0x130   :  { %v1886_v36 = vpop.f32.mrb[31].mxu0  ;;  %v1965_v43 = vpop.f32.mrb[29].mxu1 }
 0x131   :  { %v1104_v38 = vadd.f32 %v1884_v33, %v2603_v40  ;;  %v1887_v39 = vadd.f32 %v1886_v36, %v1885_v34  ;;  %v1966_v44 = vadd.f32 %v1965_v43, %v1964_v35  ;;  %v1967_v45 = vpop.f32.mrb[30].mxu1 }
 0x132   :  { %v1968_v47 = vpop.f32.mrb[31].mxu1 }
 0x133   :  { %v1107_v46 = vadd.f32 %v1887_v39, %v2603_v40  ;;  %v2649_v48 = vadd.f32 %v1966_v44, %v1104_v38  ;;  %v1969_v49 = vadd.f32 %v1968_v47, %v1967_v45 }
 0x135   :  { %v1888_v50 = vpop.f32.mrb[32].mxu0  ;;  %v2651_v51 = vadd.f32 %v1969_v49, %v1107_v46 }
 0x136   :  { %v1889_v52 = vpop.f32.mrb[33].mxu0 }
 0x137   :  { %v1890_v53 = vadd.f32 %v1889_v52, %v1888_v50  ;;  %v1891_v54 = vpop.f32.mrb[34].mxu0  ;;  %v1970_v57 = vpop.f32.mrb[32].mxu1 }
 0x138   :  { %v1892_v58 = vpop.f32.mrb[35].mxu0  ;;  %v1971_v62 = vpop.f32.mrb[33].mxu1 }
 0x139   :  { %v1112_v60 = vadd.f32 %v1890_v53, %v2603_v40  ;;  %v1893_v61 = vadd.f32 %v1892_v58, %v1891_v54  ;;  %v1972_v63 = vadd.f32 %v1971_v62, %v1970_v57  ;;  %v1973_v0 = vpop.f32.mrb[34].mxu1 }
 0x13a   :  { %v1974_v2 = vpop.f32.mrb[35].mxu1 }
 0x13b   :  { %v1115_v1 = vadd.f32 %v1893_v61, %v2603_v40  ;;  %v2655_v3 = vadd.f32 %v1972_v63, %v1112_v60  ;;  %v1975_v4 = vadd.f32 %v1974_v2, %v1973_v0 }
 0x13d   :  { %v1894_v6 = vpop.f32.mrb[36].mxu0  ;;  %v2657_v7 = vadd.f32 %v1975_v4, %v1115_v1 }
 0x13e   :  { %v1895_v9 = vpop.f32.mrb[37].mxu0 }
 0x13f   :  { %v1896_v11 = vadd.f32 %v1895_v9, %v1894_v6  ;;  %v1897_v12 = vpop.f32.mrb[38].mxu0  ;;  %v1976_v14 = vpop.f32.mrb[36].mxu1 }
 0x140   :  { %v1898_v15 = vpop.f32.mrb[39].mxu0  ;;  %v1977_v18 = vpop.f32.mrb[37].mxu1 }
 0x141   :  { %v1120_v16 = vadd.f32 %v1896_v11, %v2603_v40  ;;  %v1899_v17 = vadd.f32 %v1898_v15, %v1897_v12  ;;  %v1978_v19 = vadd.f32 %v1977_v18, %v1976_v14  ;;  %v1979_v20 = vpop.f32.mrb[38].mxu1 }
 0x142   :  { %v1980_v23 = vpop.f32.mrb[39].mxu1 }
 0x143   :  { %v1123_v22 = vadd.f32 %v1899_v17, %v2603_v40  ;;  %v2661_v25 = vadd.f32 %v1978_v19, %v1120_v16  ;;  %v1981_v26 = vadd.f32 %v1980_v23, %v1979_v20 }
 0x145   :  { %v1900_v27 = vpop.f32.mrb[40].mxu0  ;;  %v2663_v29 = vadd.f32 %v1981_v26, %v1123_v22 }
 0x146   :  { %v1901_v30 = vpop.f32.mrb[41].mxu0 }
 0x147   :  { %v1902_v32 = vadd.f32 %v1901_v30, %v1900_v27  ;;  %v1903_v33 = vpop.f32.mrb[42].mxu0  ;;  %v1982_v34 = vpop.f32.mrb[40].mxu1 }
 0x148   :  { %v1904_v35 = vpop.f32.mrb[43].mxu0  ;;  %v1983_v38 = vpop.f32.mrb[41].mxu1 }
 0x149   :  { %v1128_v36 = vadd.f32 %v1902_v32, %v2603_v40  ;;  %v1984_v39 = vadd.f32 %v1983_v38, %v1982_v34  ;;  %v1985_v43 = vpop.f32.mrb[42].mxu1 }
 0x14a   :  { %v1986_v44 = vpop.f32.mrb[43].mxu1 }
 0x14b   :  { %v2666_v45 = vadd.f32 %v1984_v39, %v1128_v36 }
 0x14d   :  { %v2004_v46 = vpop.f32.mrb[44].mxu0 }
 0x14e   :  { %v2005_v47 = vpop.f32.mrb[45].mxu0 }
 0x14f   :  { %v2006_v49 = vadd.f32 %v2005_v47, %v2004_v46  ;;  %v2007_v50 = vpop.f32.mrb[46].mxu0  ;;  %v1407_v53 = vpop.f32.mrb[44].mxu1 }
 0x150   :  { %v2008_v52 = vpop.f32.mrb[47].mxu0  ;;  %v1409_v58 = vpop.f32.mrb[45].mxu1 }
 0x151   :  { %v2009_v54 = vadd.f32 %v2008_v52, %v2007_v50  ;;  %v1288_v57 = vadd.f32 %v2006_v49, %v2607_v42  ;;  %v1410_v60 = vpop.f32.mrb[46].mxu1 }
 0x152   :  { %v1412_v62 = vpop.f32.mrb[47].mxu1 }
 0x153   :  { %v1408_v61 = vadd.f32 %v1407_v53, %v1288_v57  ;;  %v1291_v40 = vadd.f32 %v2009_v54, %v2609_v56 }
 0x155   :  { %v1493_v63 = vmax.f32 %v1408_v61, 0.0  ;;  %v1411_v0 = vadd.f32 %v1410_v60, %v1291_v40  ;;  %v2010_v1 = vpop.f32.mrb[48].mxu0 }
 0x156   :  { %v2011_v2 = vpop.f32.mrb[49].mxu0 }
 0x157   :  { %v1803_v4 = vpack.c.bf16 %v1493_v63, %v1493_v63  ;;  %v1494_v6 = vmax.f32 %v1411_v0, 0.0  ;;  %v2012_v9 = vadd.f32 %v2011_v2, %v2010_v1  ;;  %v2013_v11 = vpop.f32.mrb[50].mxu0  ;;  %v1415_v14 = vpop.f32.mrb[48].mxu1 }
 0x158   :  { %v2014_v12 = vpop.f32.mrb[51].mxu0  ;;  %v1417_v16 = vpop.f32.mrb[49].mxu1 }
 0x159   :  { %1600 = vst.msk [vmem:[%s2776_s3] sm:$0xf] %vm1599_vm2, %v1803_v4  ;;  %v1804_v42 = vpack.c.bf16 %v1494_v6, %v1494_v6  ;;  %v2015_v15 = vadd.f32 %v2014_v12, %v2013_v11  ;;  %v1296_v56 = vadd.f32 %v2012_v9, %v2613_v5  ;;  %v1418_v17 = vpop.f32.mrb[50].mxu1 }
 0x15a   :  { %v1420_v20 = vpop.f32.mrb[51].mxu1 }
 0x15b   :  { %1601 = vst.msk [vmem:[%s2776_s3 + $0x4] sm:$0xf] %vm1599_vm2, %v1804_v42  ;;  %v1416_v18 = vadd.f32 %v1415_v14, %v1296_v56  ;;  %v1299_v19 = vadd.f32 %v2015_v15, %v2615_v8 }
 0x15d   :  { %v1495_v22 = vmax.f32 %v1416_v18, 0.0  ;;  %v1419_v23 = vadd.f32 %v1418_v17, %v1299_v19  ;;  %v2016_v26 = vpop.f32.mrb[52].mxu0 }
 0x15e   :  { %v2017_v27 = vpop.f32.mrb[53].mxu0 }
 0x15f   :  { %v1805_v30 = vpack.c.bf16 %v1495_v22, %v1495_v22  ;;  %v1496_v32 = vmax.f32 %v1419_v23, 0.0  ;;  %v2018_v33 = vadd.f32 %v2017_v27, %v2016_v26  ;;  %v2019_v34 = vpop.f32.mrb[54].mxu0  ;;  %v1423_v35 = vpop.f32.mrb[52].mxu1 }
 0x160   :  { %v2020_v5 = vpop.f32.mrb[55].mxu0  ;;  %v1425_v39 = vpop.f32.mrb[53].mxu1 }
 0x161   :  { %1602 = vst.msk [vmem:[%s2776_s3 + $0x8] sm:$0xf] %vm1599_vm2, %v1805_v30  ;;  %v1806_v36 = vpack.c.bf16 %v1496_v32, %v1496_v32  ;;  %v2021_v38 = vadd.f32 %v2020_v5, %v2019_v34  ;;  %v1304_v8 = vadd.f32 %v2018_v33, %v2619_v21  ;;  %v1426_v43 = vpop.f32.mrb[54].mxu1 }
 0x162   :  { %v1428_v47 = vpop.f32.mrb[55].mxu1 }
 0x163   :  { %1603 = vst.msk [vmem:[%s2776_s3 + $0xc] sm:$0xf] %vm1599_vm2, %v1806_v36  ;;  %v1424_v44 = vadd.f32 %v1423_v35, %v1304_v8  ;;  %v1307_v46 = vadd.f32 %v2021_v38, %v2621_v24 }
 0x165   :  { %v1497_v49 = vmax.f32 %v1424_v44, 0.0  ;;  %v1427_v50 = vadd.f32 %v1426_v43, %v1307_v46  ;;  %v2022_v52 = vpop.f32.mrb[56].mxu0 }
 0x166   :  { %v2023_v53 = vpop.f32.mrb[57].mxu0 }
 0x167   :  { %v1807_v54 = vpack.c.bf16 %v1497_v49, %v1497_v49  ;;  %v1498_v57 = vmax.f32 %v1427_v50, 0.0  ;;  %v2024_v58 = vadd.f32 %v2023_v53, %v2022_v52  ;;  %v2025_v60 = vpop.f32.mrb[58].mxu0  ;;  %v1431_v61 = vpop.f32.mrb[56].mxu1 }
 0x168   :  { %v2026_v21 = vpop.f32.mrb[59].mxu0  ;;  %v1433_v63 = vpop.f32.mrb[57].mxu1 }
 0x169   :  { %1604 = vst.msk [vmem:[%s2776_s3 + $0x10] sm:$0xf] %vm1599_vm2, %v1807_v54  ;;  %v1808_v40 = vpack.c.bf16 %v1498_v57, %v1498_v57  ;;  %v2027_v62 = vadd.f32 %v2026_v21, %v2025_v60  ;;  %v1312_v24 = vadd.f32 %v2024_v58, %v2625_v37  ;;  %v1434_v0 = vpop.f32.mrb[58].mxu1 }
 0x16a   :  { %v1436_v4 = vpop.f32.mrb[59].mxu1 }
 0x16b   :  { %1605 = vst.msk [vmem:[%s2776_s3 + $0x14] sm:$0xf] %vm1599_vm2, %v1808_v40  ;;  %v1432_v1 = vadd.f32 %v1431_v61, %v1312_v24  ;;  %v1315_v2 = vadd.f32 %v2027_v62, %v2627_v41 }
 0x16d   :  { %v1499_v6 = vmax.f32 %v1432_v1, 0.0  ;;  %v1435_v9 = vadd.f32 %v1434_v0, %v1315_v2  ;;  %v2028_v11 = vpop.f32.mrb[60].mxu0 }
 0x16e   :  { %v2029_v12 = vpop.f32.mrb[61].mxu0 }
 0x16f   :  { %v1809_v14 = vpack.c.bf16 %v1499_v6, %v1499_v6  ;;  %v1500_v42 = vmax.f32 %v1435_v9, 0.0  ;;  %v2030_v15 = vadd.f32 %v2029_v12, %v2028_v11  ;;  %v2031_v56 = vpop.f32.mrb[62].mxu0  ;;  %v1439_v16 = vpop.f32.mrb[60].mxu1 }
 0x170   :  { %v2032_v37 = vpop.f32.mrb[63].mxu0  ;;  %v1441_v19 = vpop.f32.mrb[61].mxu1 }
 0x171   :  { %1606 = vst.msk [vmem:[%s2776_s3 + $0x18] sm:$0xf] %vm1599_vm2, %v1809_v14  ;;  %v1810_v17 = vpack.c.bf16 %v1500_v42, %v1500_v42  ;;  %v2033_v18 = vadd.f32 %v2032_v37, %v2031_v56  ;;  %v1320_v41 = vadd.f32 %v2030_v15, %v2631_v55  ;;  %v1442_v20 = vpop.f32.mrb[62].mxu1 }
 0x172   :  { %v1444_v26 = vpop.f32.mrb[63].mxu1 }
 0x173   :  { %1607 = vst.msk [vmem:[%s2776_s3 + $0x1c] sm:$0xf] %vm1599_vm2, %v1810_v17  ;;  %v1440_v22 = vadd.f32 %v1439_v16, %v1320_v41  ;;  %v1323_v23 = vadd.f32 %v2033_v18, %v2633_v59 }
 0x175   :  { %v1501_v27 = vmax.f32 %v1440_v22, 0.0  ;;  %v1443_v30 = vadd.f32 %v1442_v20, %v1323_v23  ;;  %v2034_v32 = vpop.f32.mrb[64].mxu0 }
 0x176   :  { %v2035_v33 = vpop.f32.mrb[65].mxu0 }
 0x177   :  { %v1811_v34 = vpack.c.bf16 %v1501_v27, %v1501_v27  ;;  %v1502_v5 = vmax.f32 %v1443_v30, 0.0  ;;  %v2036_v35 = vadd.f32 %v2035_v33, %v2034_v32  ;;  %v2037_v36 = vpop.f32.mrb[66].mxu0  ;;  %v1447_v38 = vpop.f32.mrb[64].mxu1 }
 0x178   :  { %v2038_v55 = vpop.f32.mrb[67].mxu0  ;;  %v1449_v43 = vpop.f32.mrb[65].mxu1 }
 0x179   :  { %1608 = vst.msk [vmem:[%s2776_s3 + $0x20] sm:$0xf] %vm1599_vm2, %v1811_v34  ;;  %v1812_v8 = vpack.c.bf16 %v1502_v5, %v1502_v5  ;;  %v2039_v39 = vadd.f32 %v2038_v55, %v2037_v36  ;;  %v1328_v59 = vadd.f32 %v2036_v35, %v2637_v10  ;;  %v1450_v44 = vpop.f32.mrb[66].mxu1 }
 0x17a   :  { %v1452_v49 = vpop.f32.mrb[67].mxu1 }
 0x17b   :  { %1609 = vst.msk [vmem:[%s2776_s3 + $0x24] sm:$0xf] %vm1599_vm2, %v1812_v8  ;;  %v1448_v46 = vadd.f32 %v1447_v38, %v1328_v59  ;;  %v1331_v47 = vadd.f32 %v2039_v39, %v2639_v13 }
 0x17d   :  { %v1503_v50 = vmax.f32 %v1448_v46, 0.0  ;;  %v1451_v52 = vadd.f32 %v1450_v44, %v1331_v47  ;;  %v2040_v53 = vpop.f32.mrb[68].mxu0 }
 0x17e   :  { %v2041_v54 = vpop.f32.mrb[69].mxu0 }
 0x17f   :  { %v1813_v57 = vpack.c.bf16 %v1503_v50, %v1503_v50  ;;  %v1504_v58 = vmax.f32 %v1451_v52, 0.0  ;;  %v2042_v60 = vadd.f32 %v2041_v54, %v2040_v53  ;;  %v2043_v21 = vpop.f32.mrb[70].mxu0  ;;  %v1455_v61 = vpop.f32.mrb[68].mxu1 }
 0x180   :  { %v2044_v10 = vpop.f32.mrb[71].mxu0  ;;  %v1457_v24 = vpop.f32.mrb[69].mxu1 }
 0x181   :  { %1610 = vst.msk [vmem:[%s2776_s3 + $0x28] sm:$0xf] %vm1599_vm2, %v1813_v57  ;;  %v1814_v40 = vpack.c.bf16 %v1504_v58, %v1504_v58  ;;  %v2045_v62 = vadd.f32 %v2044_v10, %v2043_v21  ;;  %v1336_v13 = vadd.f32 %v2042_v60, %v2643_v28  ;;  %v1458_v63 = vpop.f32.mrb[70].mxu1 }
 0x182   :  { %v1460_v2 = vpop.f32.mrb[71].mxu1 }
 0x183   :  { %1611 = vst.msk [vmem:[%s2776_s3 + $0x2c] sm:$0xf] %vm1599_vm2, %v1814_v40  ;;  %v1456_v0 = vadd.f32 %v1455_v61, %v1336_v13  ;;  %v1339_v1 = vadd.f32 %v2045_v62, %v2645_v31 }
 0x185   :  { %v1505_v4 = vmax.f32 %v1456_v0, 0.0  ;;  %v1459_v6 = vadd.f32 %v1458_v63, %v1339_v1  ;;  %v2046_v9 = vpop.f32.mrb[72].mxu0 }
 0x186   :  { %v2047_v11 = vpop.f32.mrb[73].mxu0 }
 0x187   :  { %v1815_v12 = vpack.c.bf16 %v1505_v4, %v1505_v4  ;;  %v1506_v14 = vmax.f32 %v1459_v6, 0.0  ;;  %v2048_v42 = vadd.f32 %v2047_v11, %v2046_v9  ;;  %v2049_v15 = vpop.f32.mrb[74].mxu0  ;;  %v1463_v56 = vpop.f32.mrb[72].mxu1 }
 0x188   :  { %v2050_v28 = vpop.f32.mrb[75].mxu0  ;;  %v1465_v17 = vpop.f32.mrb[73].mxu1 }
 0x189   :  { %1612 = vst.msk [vmem:[%s2776_s3 + $0x30] sm:$0xf] %vm1599_vm2, %v1815_v12  ;;  %v1816_v37 = vpack.c.bf16 %v1506_v14, %v1506_v14  ;;  %v2051_v16 = vadd.f32 %v2050_v28, %v2049_v15  ;;  %v1344_v31 = vadd.f32 %v2048_v42, %v2649_v48  ;;  %v1466_v18 = vpop.f32.mrb[74].mxu1 }
 0x18a   :  { %v1468_v20 = vpop.f32.mrb[75].mxu1 }
 0x18b   :  { %1613 = vst.msk [vmem:[%s2776_s3 + $0x34] sm:$0xf] %vm1599_vm2, %v1816_v37  ;;  %v1464_v41 = vadd.f32 %v1463_v56, %v1344_v31  ;;  %v1347_v19 = vadd.f32 %v2051_v16, %v2651_v51 }
 0x18d   :  { %v1507_v22 = vmax.f32 %v1464_v41, 0.0  ;;  %v1467_v23 = vadd.f32 %v1466_v18, %v1347_v19  ;;  %v2052_v26 = vpop.f32.mrb[76].mxu0 }
 0x18e   :  { %v2053_v27 = vpop.f32.mrb[77].mxu0 }
 0x18f   :  { %v1817_v30 = vpack.c.bf16 %v1507_v22, %v1507_v22  ;;  %v1508_v32 = vmax.f32 %v1467_v23, 0.0  ;;  %v2054_v33 = vadd.f32 %v2053_v27, %v2052_v26  ;;  %v2055_v34 = vpop.f32.mrb[78].mxu0  ;;  %v1471_v5 = vpop.f32.mrb[76].mxu1 }
 0x190   :  { %v2056_v48 = vpop.f32.mrb[79].mxu0  ;;  %v1473_v55 = vpop.f32.mrb[77].mxu1 }
 0x191   :  { %1614 = vst.msk [vmem:[%s2776_s3 + $0x38] sm:$0xf] %vm1599_vm2, %v1817_v30  ;;  %v1818_v35 = vpack.c.bf16 %v1508_v32, %v1508_v32  ;;  %v2057_v36 = vadd.f32 %v2056_v48, %v2055_v34  ;;  %v1352_v51 = vadd.f32 %v2054_v33, %v2655_v3  ;;  %v1474_v38 = vpop.f32.mrb[78].mxu1 }
 0x192   :  { %v1476_v59 = vpop.f32.mrb[79].mxu1 }
 0x193   :  { %1615 = vst.msk [vmem:[%s2776_s3 + $0x3c] sm:$0xf] %vm1599_vm2, %v1818_v35  ;;  %v1472_v8 = vadd.f32 %v1471_v5, %v1352_v51  ;;  %v1355_v39 = vadd.f32 %v2057_v36, %v2657_v7 }
 0x195   :  { %v1509_v43 = vmax.f32 %v1472_v8, 0.0  ;;  %v1475_v44 = vadd.f32 %v1474_v38, %v1355_v39  ;;  %v2058_v46 = vpop.f32.mrb[80].mxu0 }
 0x196   :  { %v2059_v47 = vpop.f32.mrb[81].mxu0 }
 0x197   :  { %v1819_v49 = vpack.c.bf16 %v1509_v43, %v1509_v43  ;;  %v1510_v50 = vmax.f32 %v1475_v44, 0.0  ;;  %v2060_v52 = vadd.f32 %v2059_v47, %v2058_v46  ;;  %v2061_v53 = vpop.f32.mrb[82].mxu0  ;;  %v1479_v54 = vpop.f32.mrb[80].mxu1 }
 0x198   :  { %v2062_v3 = vpop.f32.mrb[83].mxu0  ;;  %v1481_v60 = vpop.f32.mrb[81].mxu1 }
 0x199   :  { %1616 = vst.msk [vmem:[%s2776_s3 + $0x40] sm:$0xf] %vm1599_vm2, %v1819_v49  ;;  %v1820_v57 = vpack.c.bf16 %v1510_v50, %v1510_v50  ;;  %v2063_v58 = vadd.f32 %v2062_v3, %v2061_v53  ;;  %v1360_v7 = vadd.f32 %v2060_v52, %v2661_v25  ;;  %v1482_v21 = vpop.f32.mrb[82].mxu1 }
 0x19a   :  { %v1484_v40 = vpop.f32.mrb[83].mxu1 }
 0x19b   :  { %1617 = vst.msk [vmem:[%s2776_s3 + $0x44] sm:$0xf] %vm1599_vm2, %v1820_v57  ;;  %v1480_v10 = vadd.f32 %v1479_v54, %v1360_v7  ;;  %v1363_v61 = vadd.f32 %v2063_v58, %v2663_v29 }
 0x19d   :  { %v1511_v62 = vmax.f32 %v1480_v10, 0.0  ;;  %v1483_v13 = vadd.f32 %v1482_v21, %v1363_v61  ;;  %v2064_v24 = vpop.f32.mrb[84].mxu0 }
 0x19e   :  { %v2065_v63 = vpop.f32.mrb[85].mxu0 }
 0x19f   :  { %v1821_v0 = vpack.c.bf16 %v1511_v62, %v1511_v62  ;;  %v1512_v1 = vmax.f32 %v1483_v13, 0.0  ;;  %v2066_v2 = vadd.f32 %v2065_v63, %v2064_v24  ;;  %v2067_v4 = vpop.f32.mrb[86].mxu0  ;;  %v1487_v6 = vpop.f32.mrb[84].mxu1 }
 0x1a0   :  { %v2068_v25 = vpop.f32.mrb[87].mxu0  ;;  %v1489_v29 = vpop.f32.mrb[85].mxu1 }
 0x1a1   :  { %1618 = vst.msk [vmem:[%s2776_s3 + $0x48] sm:$0xf] %vm1599_vm2, %v1821_v0  ;;  %v1822_v9 = vpack.c.bf16 %v1512_v1, %v1512_v1  ;;  %v1368_v11 = vadd.f32 %v2066_v2, %v2666_v45  ;;  %v1490_v12 = vpop.f32.mrb[86].mxu1 }
 0x1a2   :  { %v1491_v42 = vpop.f32.mrb[87].mxu1 }
 0x1a3   :  { %1619 = vst.msk [vmem:[%s2776_s3 + $0x4c] sm:$0xf] %vm1599_vm2, %v1822_v9  ;;  %v1488_v14 = vadd.f32 %v1487_v6, %v1368_v11 }
 0x1a5   :  { %v1513_v15 = vmax.f32 %v1488_v14, 0.0 }
 0x1a7   :  { %v1823_v28 = vpack.c.bf16 %v1513_v15, %v1513_v15 }
 0x1a9   :  { %1620 = vst.msk [vmem:[%s2776_s3 + $0x50] sm:$0xf] %vm1599_vm2, %v1823_v28 }

// kernel: pilotnet_forward.10
= control target key start
LH: loop header
LB: loop body
LE: loop exit
PB: predicated region body
PF: predicated region fallthrough
CT: control target
= control target key end

     0   :  { %v888_v0 = vmov 0   ;;  %vm391_vm0 = vcmask 392192   ;;  %vm655_vm1 = vcmask 519168   ;;  %s1156_s1 = inlined_call_operand.vmem [shape: bf16[432,64], index: 1, kind: input, shape index: {}]   ;;  %s1157_s0 = inlined_call_operand.vmem [shape: bf16[98,432], index: 0, kind: input, shape index: {}]   ;;  %s1158_s2 = inlined_call_operand.vmem [shape: f32[1,64], index: 2, kind: input, shape index: {}]   ;;  %s1159_s3 = inlined_call_operand.vmem [shape: bf16[98,64], index: 3, kind: output, shape index: {}]  }
   0x1   :  { %501 = vmatprep.subr.bf16.mxu1 %v888_v0  ;;  %v821_v1 = vld [vmem:[%s1156_s1 + $0x80] sm:$0xff]   ;;  %v824_v4 = vld [vmem:[%s1156_s1 + $0x88] sm:$0xff]   ;;  %v827_v7 = vld [vmem:[%s1156_s1 + $0x90] sm:$0xff]  }
   0x2   :  { %v822_v2 = vld [vmem:[%s1156_s1 + $0x40] sm:$0xff]   ;;  %502 = vmatpush1.bf16.msra.mxu1 %v821_v1  ;;  %v825_v5 = vld [vmem:[%s1156_s1 + $0x48] sm:$0xff]   ;;  %v828_v8 = vld [vmem:[%s1156_s1 + $0x50] sm:$0xff]  }
   0x3   :  { %v823_v3 = vld [vmem:[%s1156_s1] sm:$0xff]   ;;  %762 = vmatprep.subr.bf16.mxu0 %v822_v2  ;;  %503 = vmatprep.subr.bf16.mxu1 %v888_v0  ;;  %v826_v6 = vld [vmem:[%s1156_s1 + $0x8] sm:$0xff]   ;;  %v829_v9 = vld [vmem:[%s1156_s1 + $0x10] sm:$0xff]  }
   0x4   :  { %763 = vmatpush3.bf16.msra.mxu0 %v823_v3  ;;  %v830_v10 = vld [vmem:[%s1156_s1 + $0x98] sm:$0xff]   ;;  %v834_v13 = vld [vmem:[%s1156_s1 + $0x60] sm:$0xff]   ;;  %v837_v16 = vld [vmem:[%s1156_s1 + $0x68] sm:$0xff]  }
   0x5   :  { %764 = vmatprep.subr.bf16.mxu0 %v825_v5  ;;  %v831_v11 = vld [vmem:[%s1156_s1 + $0x58] sm:$0xff]   ;;  %v833_v14 = vld [vmem:[%s1156_s1 + $0xa0] sm:$0xff]   ;;  %v836_v17 = vld [vmem:[%s1156_s1 + $0xa8] sm:$0xff]  }
   0x6   :  { %504 = vmatpush1.bf16.msra.mxu1 %v824_v4  ;;  %v832_v12 = vld [vmem:[%s1156_s1 + $0x18] sm:$0xff]   ;;  %v835_v15 = vld [vmem:[%s1156_s1 + $0x20] sm:$0xff]   ;;  %v838_v18 = vld [vmem:[%s1156_s1 + $0x28] sm:$0xff]  }
   0x7   :  { %505 = vmatprep.subr.bf16.mxu1 %v888_v0  ;;  %v840_v19 = vld [vmem:[%s1156_s1 + $0x70] sm:$0xff]   ;;  %v842_v22 = vld [vmem:[%s1156_s1 + $0xb8] sm:$0xff]   ;;  %v845_v26 = vld [vmem:[%s1156_s1 + $0xc0] sm:$0xff]  }
   0x8   :  { %765 = vmatpush3.bf16.msra.mxu0 %v826_v6  ;;  %v839_v20 = vld [vmem:[%s1156_s1 + $0xb0] sm:$0xff]   ;;  %v843_v23 = vld [vmem:[%s1156_s1 + $0x78] sm:$0xff]   ;;  %v849_v30 = vld [vmem:[%s1156_s1 + $0xc8] sm:$0xff]  }
   0x9   :  { %766 = vmatprep.subr.bf16.mxu0 %v828_v8  ;;  %v841_v21 = vld [vmem:[%s1156_s1 + $0x30] sm:$0xff]   ;;  %v844_v25 = vld [vmem:[%s1156_s1 + $0x38] sm:$0xff]   ;;  %v39_v48 = vld [vmem:[%s1157_s0 + $0xc0] sm:$0xff] }
   0xa   :  { %506 = vmatpush1.bf16.msra.mxu1 %v827_v7  ;;  %v848_v24 = vld [vmem:[%s1157_s0 + $0x4] ss:$16 sps:$4 sm:$0xff]   ;;  %v855_v27 = vld [vmem:[%s1157_s0 + $0xc] ss:$16 sps:$4 sm:$0xff]   ;;  %v846_v28 = vld [vmem:[%s1157_s0] ss:$16 sps:$4 sm:$0xff]   ;;  %v699_v50 = vcombine.high %v39_v48, %v39_v48  ;;  %v698_v53 = vcombine.low %v39_v48, %v39_v48 }
   0xb   :  { %507 = vmatprep.subr.bf16.mxu1 %v888_v0  ;;  %445 = vmatprep.mubr.bf16.mxu0 %v848_v24  ;;  %v851_v29 = vld [vmem:[%s1157_s0 + $0x24] ss:$16 sps:$4 sm:$0xff]   ;;  %v856_v32 = vld [vmem:[%s1157_s0 + $0x20] ss:$16 sps:$4 sm:$0xff]   ;;  %v853_v34 = vld [vmem:[%s1157_s0 + $0x8] ss:$16 sps:$4 sm:$0xff]  }
   0xc   :  { %767 = vmatpush3.bf16.msra.mxu0 %v829_v9  ;;  %729 = vmatprep.mubr.msk.bf16.mxu1 %vm391_vm0, %v855_v27  ;;  %v850_v31 = vld [vmem:[%s1156_s1 + $0xd0] sm:$0xff]   ;;  %v859_v35 = vld [vmem:[%s1157_s0 + $0x2c] ss:$16 sps:$4 sm:$0xff]   ;;  %v862_v38 = vld [vmem:[%s1157_s0 + $0x28] ss:$16 sps:$4 sm:$0xff]  }
   0xd   :  { %768 = vmatprep.subr.bf16.mxu0 %v831_v11  ;;  %v857_v33 = vld [vmem:[%s1157_s0 + $0x44] ss:$16 sps:$4 sm:$0xff]   ;;  %v861_v36 = vld [vmem:[%s1157_s0 + $0x40] ss:$16 sps:$4 sm:$0xff]   ;;  %v865_v39 = vld [vmem:[%s1157_s0 + $0x4c] ss:$16 sps:$4 sm:$0xff]  }
   0xe   :  { %508 = vmatpush1.bf16.msra.mxu1 %v830_v10  ;;  %v863_v37 = vld [vmem:[%s1157_s0 + $0x64] ss:$16 sps:$4 sm:$0xff]   ;;  %v867_v40 = vld [vmem:[%s1157_s0 + $0x60] ss:$16 sps:$4 sm:$0xff]   ;;  %v868_v42 = vld [vmem:[%s1157_s0 + $0x48] ss:$16 sps:$4 sm:$0xff]  }
   0xf   :  { %509 = vmatprep.subr.bf16.mxu1 %v888_v0  ;;  %v869_v41 = vld [vmem:[%s1157_s0 + $0x84] ss:$16 sps:$4 sm:$0xff]   ;;  %v871_v43 = vld [vmem:[%s1157_s0 + $0x6c] ss:$16 sps:$4 sm:$0xff]   ;;  %v873_v44 = vld [vmem:[%s1157_s0 + $0x80] ss:$16 sps:$4 sm:$0xff]  }
  0x10   :  { %769 = vmatpush3.bf16.msra.mxu0 %v832_v12  ;;  %v875_v45 = vld [vmem:[%s1157_s0 + $0xa4] ss:$16 sps:$4 sm:$0xff]   ;;  %v874_v46 = vld [vmem:[%s1157_s0 + $0x68] ss:$16 sps:$4 sm:$0xff]   ;;  %v877_v47 = vld [vmem:[%s1157_s0 + $0x8c] ss:$16 sps:$4 sm:$0xff]  }
  0x11   :  { %770 = vmatprep.subr.bf16.mxu0 %v834_v13  ;;  %v879_v49 = vld [vmem:[%s1157_s0 + $0xa0] ss:$16 sps:$4 sm:$0xff]   ;;  %v880_v51 = vld [vmem:[%s1157_s0 + $0x88] ss:$16 sps:$4 sm:$0xff]   ;;  %v882_v52 = vld [vmem:[%s1157_s0 + $0xac] ss:$16 sps:$4 sm:$0xff]  }
  0x12   :  { %510 = vmatpush1.bf16.msra.mxu1 %v833_v14  ;;  %v40_v54 = vld [vmem:[%s1157_s0 + $0xc8] sm:$0xff] }
  0x13   :  { %511 = vmatprep.subr.bf16.mxu1 %v888_v0  ;;  %v885_v55 = vld [vmem:[%s1157_s0 + $0xa8] ss:$16 sps:$4 sm:$0xff]   ;;  %v701_v56 = vcombine.high %v40_v54, %v40_v54  ;;  %v700_v57 = vcombine.low %v40_v54, %v40_v54 }
  0x14   :  { %771 = vmatpush3.bf16.msra.mxu0 %v835_v15 }
  0x15   :  { %772 = vmatprep.subr.bf16.mxu0 %v837_v16 }
  0x16   :  { %512 = vmatpush1.bf16.msra.mxu1 %v836_v17 }
  0x17   :  { %513 = vmatprep.subr.bf16.mxu1 %v888_v0 }
  0x18   :  { %773 = vmatpush3.bf16.msra.mxu0 %v838_v18 }
  0x19   :  { %774 = vmatprep.subr.bf16.mxu0 %v840_v19 }
  0x1a   :  { %514 = vmatpush1.bf16.msra.mxu1 %v839_v20 }
  0x1b   :  { %515 = vmatprep.subr.bf16.mxu1 %v888_v0 }
  0x1c   :  { %775 = vmatpush3.bf16.msra.mxu0 %v841_v21 }
  0x1d   :  { %776 = vmatprep.subr.bf16.mxu0 %v843_v23 }
  0x1e   :  { %516 = vmatpush1.bf16.msra.mxu1 %v842_v22 }
  0x1f   :  { %517 = vmatprep.subr.bf16.mxu1 %v888_v0 }
  0x20   :  { %777 = vmatpush3.bf16.msra.mxu0 %v844_v25 }
  0x22   :  { %518 = vmatpush1.bf16.msra.mxu1 %v845_v26 }
  0x23   :  { %446 = vmatmul.mubr.bf16.vlgmr.msra.gmra.mrb[0].mxu0 %v846_v28  ;;  %519 = vmatprep.subr.bf16.mxu1 %v888_v0 }
  0x24   :  { %453 = vmatprep.mubr.bf16.mxu0 %v851_v29 }
  0x26   :  { %520 = vmatpush1.bf16.msra.mxu1 %v849_v30 }
  0x27   :  { %521 = vmatprep.subr.bf16.mxu1 %v888_v0  ;;  %v1089_v0 = vld [vmem:[%s1158_s2] ss:$0 sm:$0xff] }
  0x2a   :  { %522 = vmatpush1.bf16.msra.mxu1 %v850_v31 }
  0x2b   :  { %454 = vmatmul.mubr.bf16.gmra.mrb[4].mxu0 %v856_v32 }
  0x2c   :  { %461 = vmatprep.mubr.bf16.mxu0 %v857_v33 }
  0x2d   :  { %534 = vmatmul.mubr.bf16.vlgmr.msra.gmra.mrb[0].mxu1 %v853_v34 }
  0x2e   :  { %730 = vmatprep.mubr.msk.bf16.mxu1 %vm391_vm0, %v859_v35 }
  0x33   :  { %462 = vmatmul.mubr.bf16.gmra.mrb[8].mxu0 %v861_v36 }
  0x34   :  { %469 = vmatprep.mubr.bf16.mxu0 %v863_v37 }
  0x35   :  { %542 = vmatmul.mubr.bf16.gmra.mrb[4].mxu1 %v862_v38 }
  0x36   :  { %731 = vmatprep.mubr.msk.bf16.mxu1 %vm391_vm0, %v865_v39 }
  0x3b   :  { %470 = vmatmul.mubr.bf16.gmra.mrb[12].mxu0 %v867_v40 }
  0x3c   :  { %477 = vmatprep.mubr.bf16.mxu0 %v869_v41 }
  0x3d   :  { %550 = vmatmul.mubr.bf16.gmra.mrb[8].mxu1 %v868_v42 }
  0x3e   :  { %732 = vmatprep.mubr.msk.bf16.mxu1 %vm391_vm0, %v871_v43 }
  0x43   :  { %478 = vmatmul.mubr.bf16.gmra.mrb[16].mxu0 %v873_v44 }
  0x44   :  { %485 = vmatprep.mubr.bf16.mxu0 %v875_v45 }
  0x45   :  { %558 = vmatmul.mubr.bf16.gmra.mrb[12].mxu1 %v874_v46 }
  0x46   :  { %733 = vmatprep.mubr.msk.bf16.mxu1 %vm391_vm0, %v877_v47 }
  0x4b   :  { %486 = vmatmul.mubr.bf16.gmra.mrb[20].mxu0 %v879_v49 }
  0x4c   :  { %493 = vmatprep.mubr.bf16.mxu0 %v699_v50 }
  0x4d   :  { %566 = vmatmul.mubr.bf16.gmra.mrb[16].mxu1 %v880_v51 }
  0x4e   :  { %734 = vmatprep.mubr.msk.bf16.mxu1 %vm391_vm0, %v882_v52 }
  0x53   :  { %494 = vmatmul.mubr.bf16.gmra.mrb[24].mxu0 %v698_v53 }
  0x55   :  { %574 = vmatmul.mubr.bf16.gmra.mrb[20].mxu1 %v885_v55 }
  0x56   :  { %735 = vmatprep.mubr.msk.bf16.mxu1 %vm391_vm0, %v701_v56 }
  0x5d   :  { %582 = vmatmul.mubr.bf16.gmra.mrb[24].mxu1 %v700_v57 }
  0xf6   :  { %v778_v58 = vpop.f32.mrb[0].mxu0 }
  0xf7   :  { %v779_v59 = vpop.f32.mrb[1].mxu0 }
  0xf8   :  { %v780_v60 = vadd.f32 %v779_v59, %v778_v58  ;;  %v781_v61 = vpop.f32.mrb[2].mxu0 }
  0xf9   :  { %v782_v62 = vpop.f32.mrb[3].mxu0 }
  0xfa   :  { %v783_v63 = vadd.f32 %v782_v62, %v781_v61  ;;  %v448_v1 = vadd.f32 %v780_v60, %v1089_v0 }
  0xfc   :  { %v451_v9 = vadd.f32 %v783_v63, %v1089_v0 }
  0xfe   :  { %v784_v2 = vpop.f32.mrb[4].mxu0 }
  0xff   :  { %v785_v3 = vpop.f32.mrb[5].mxu0 }
 0x100   :  { %v535_v4 = vpop.f32.mrb[0].mxu1  ;;  %v786_v5 = vadd.f32 %v785_v3, %v784_v2  ;;  %v787_v6 = vpop.f32.mrb[6].mxu0 }
 0x101   :  { %v536_v7 = vadd.f32 %v535_v4, %v448_v1  ;;  %v537_v8 = vpop.f32.mrb[1].mxu1  ;;  %v788_v10 = vpop.f32.mrb[7].mxu0 }
 0x102   :  { %v538_v11 = vpop.f32.mrb[2].mxu1  ;;  %v789_v12 = vadd.f32 %v788_v10, %v787_v6  ;;  %v456_v18 = vadd.f32 %v786_v5, %v1089_v0 }
 0x103   :  { %v589_v13 = vmax.f32 %v536_v7, 0.0  ;;  %v539_v14 = vadd.f32 %v538_v11, %v451_v9  ;;  %v540_v15 = vpop.f32.mrb[3].mxu1 }
 0x104   :  { %v459_v27 = vadd.f32 %v789_v12, %v1089_v0 }
 0x105   :  { %v749_v16 = vpack.c.bf16 %v589_v13, %v589_v13  ;;  %v590_v17 = vmax.f32 %v539_v14, 0.0 }
 0x106   :  { %v790_v19 = vpop.f32.mrb[8].mxu0 }
 0x107   :  { %656 = vst.msk [vmem:[%s1159_s3] sm:$0xf] %vm655_vm1, %v749_v16  ;;  %v750_v20 = vpack.c.bf16 %v590_v17, %v590_v17  ;;  %v791_v21 = vpop.f32.mrb[9].mxu0 }
 0x108   :  { %v543_v22 = vpop.f32.mrb[4].mxu1  ;;  %v792_v23 = vadd.f32 %v791_v21, %v790_v19  ;;  %v793_v24 = vpop.f32.mrb[10].mxu0 }
 0x109   :  { %657 = vst.msk [vmem:[%s1159_s3 + $0x4] sm:$0xf] %vm655_vm1, %v750_v20  ;;  %v544_v25 = vadd.f32 %v543_v22, %v456_v18  ;;  %v545_v26 = vpop.f32.mrb[5].mxu1  ;;  %v794_v28 = vpop.f32.mrb[11].mxu0 }
 0x10a   :  { %v546_v29 = vpop.f32.mrb[6].mxu1  ;;  %v795_v30 = vadd.f32 %v794_v28, %v793_v24  ;;  %v464_v36 = vadd.f32 %v792_v23, %v1089_v0 }
 0x10b   :  { %v591_v31 = vmax.f32 %v544_v25, 0.0  ;;  %v547_v32 = vadd.f32 %v546_v29, %v459_v27  ;;  %v548_v33 = vpop.f32.mrb[7].mxu1 }
 0x10c   :  { %v467_v45 = vadd.f32 %v795_v30, %v1089_v0 }
 0x10d   :  { %v751_v34 = vpack.c.bf16 %v591_v31, %v591_v31  ;;  %v592_v35 = vmax.f32 %v547_v32, 0.0 }
 0x10e   :  { %v796_v37 = vpop.f32.mrb[12].mxu0 }
 0x10f   :  { %658 = vst.msk [vmem:[%s1159_s3 + $0x8] sm:$0xf] %vm655_vm1, %v751_v34  ;;  %v752_v38 = vpack.c.bf16 %v592_v35, %v592_v35  ;;  %v797_v39 = vpop.f32.mrb[13].mxu0 }
 0x110   :  { %v551_v40 = vpop.f32.mrb[8].mxu1  ;;  %v798_v41 = vadd.f32 %v797_v39, %v796_v37  ;;  %v799_v42 = vpop.f32.mrb[14].mxu0 }
 0x111   :  { %659 = vst.msk [vmem:[%s1159_s3 + $0xc] sm:$0xf] %vm655_vm1, %v752_v38  ;;  %v552_v43 = vadd.f32 %v551_v40, %v464_v36  ;;  %v553_v44 = vpop.f32.mrb[9].mxu1  ;;  %v800_v46 = vpop.f32.mrb[15].mxu0 }
 0x112   :  { %v554_v47 = vpop.f32.mrb[10].mxu1  ;;  %v801_v48 = vadd.f32 %v800_v46, %v799_v42  ;;  %v472_v54 = vadd.f32 %v798_v41, %v1089_v0 }
 0x113   :  { %v593_v49 = vmax.f32 %v552_v43, 0.0  ;;  %v555_v50 = vadd.f32 %v554_v47, %v467_v45  ;;  %v556_v51 = vpop.f32.mrb[11].mxu1 }
 0x114   :  { %v475_v63 = vadd.f32 %v801_v48, %v1089_v0 }
 0x115   :  { %v753_v52 = vpack.c.bf16 %v593_v49, %v593_v49  ;;  %v594_v53 = vmax.f32 %v555_v50, 0.0 }
 0x116   :  { %v802_v55 = vpop.f32.mrb[16].mxu0 }
 0x117   :  { %660 = vst.msk [vmem:[%s1159_s3 + $0x10] sm:$0xf] %vm655_vm1, %v753_v52  ;;  %v754_v56 = vpack.c.bf16 %v594_v53, %v594_v53  ;;  %v803_v57 = vpop.f32.mrb[17].mxu0 }
 0x118   :  { %v559_v58 = vpop.f32.mrb[12].mxu1  ;;  %v804_v59 = vadd.f32 %v803_v57, %v802_v55  ;;  %v805_v60 = vpop.f32.mrb[18].mxu0 }
 0x119   :  { %661 = vst.msk [vmem:[%s1159_s3 + $0x14] sm:$0xf] %vm655_vm1, %v754_v56  ;;  %v560_v61 = vadd.f32 %v559_v58, %v472_v54  ;;  %v561_v62 = vpop.f32.mrb[13].mxu1  ;;  %v806_v1 = vpop.f32.mrb[19].mxu0 }
 0x11a   :  { %v562_v2 = vpop.f32.mrb[14].mxu1  ;;  %v807_v3 = vadd.f32 %v806_v1, %v805_v60  ;;  %v480_v9 = vadd.f32 %v804_v59, %v1089_v0 }
 0x11b   :  { %v595_v4 = vmax.f32 %v560_v61, 0.0  ;;  %v563_v5 = vadd.f32 %v562_v2, %v475_v63  ;;  %v564_v6 = vpop.f32.mrb[15].mxu1 }
 0x11c   :  { %v483_v18 = vadd.f32 %v807_v3, %v1089_v0 }
 0x11d   :  { %v755_v7 = vpack.c.bf16 %v595_v4, %v595_v4  ;;  %v596_v8 = vmax.f32 %v563_v5, 0.0 }
 0x11e   :  { %v808_v10 = vpop.f32.mrb[20].mxu0 }
 0x11f   :  { %662 = vst.msk [vmem:[%s1159_s3 + $0x18] sm:$0xf] %vm655_vm1, %v755_v7  ;;  %v756_v11 = vpack.c.bf16 %v596_v8, %v596_v8  ;;  %v809_v12 = vpop.f32.mrb[21].mxu0 }
 0x120   :  { %v567_v13 = vpop.f32.mrb[16].mxu1  ;;  %v810_v14 = vadd.f32 %v809_v12, %v808_v10  ;;  %v811_v15 = vpop.f32.mrb[22].mxu0 }
 0x121   :  { %663 = vst.msk [vmem:[%s1159_s3 + $0x1c] sm:$0xf] %vm655_vm1, %v756_v11  ;;  %v568_v16 = vadd.f32 %v567_v13, %v480_v9  ;;  %v569_v17 = vpop.f32.mrb[17].mxu1  ;;  %v812_v19 = vpop.f32.mrb[23].mxu0 }
 0x122   :  { %v570_v20 = vpop.f32.mrb[18].mxu1  ;;  %v813_v21 = vadd.f32 %v812_v19, %v811_v15  ;;  %v488_v27 = vadd.f32 %v810_v14, %v1089_v0 }
 0x123   :  { %v597_v22 = vmax.f32 %v568_v16, 0.0  ;;  %v571_v23 = vadd.f32 %v570_v20, %v483_v18  ;;  %v572_v24 = vpop.f32.mrb[19].mxu1 }
 0x124   :  { %v491_v36 = vadd.f32 %v813_v21, %v1089_v0 }
 0x125   :  { %v757_v25 = vpack.c.bf16 %v597_v22, %v597_v22  ;;  %v598_v26 = vmax.f32 %v571_v23, 0.0 }
 0x126   :  { %v814_v28 = vpop.f32.mrb[24].mxu0 }
 0x127   :  { %664 = vst.msk [vmem:[%s1159_s3 + $0x20] sm:$0xf] %vm655_vm1, %v757_v25  ;;  %v758_v29 = vpack.c.bf16 %v598_v26, %v598_v26  ;;  %v815_v30 = vpop.f32.mrb[25].mxu0 }
 0x128   :  { %v575_v31 = vpop.f32.mrb[20].mxu1  ;;  %v816_v32 = vadd.f32 %v815_v30, %v814_v28  ;;  %v817_v33 = vpop.f32.mrb[26].mxu0 }
 0x129   :  { %665 = vst.msk [vmem:[%s1159_s3 + $0x24] sm:$0xf] %vm655_vm1, %v758_v29  ;;  %v576_v34 = vadd.f32 %v575_v31, %v488_v27  ;;  %v577_v35 = vpop.f32.mrb[21].mxu1  ;;  %v818_v37 = vpop.f32.mrb[27].mxu0 }
 0x12a   :  { %v578_v38 = vpop.f32.mrb[22].mxu1  ;;  %v496_v44 = vadd.f32 %v816_v32, %v1089_v0 }
 0x12b   :  { %v599_v39 = vmax.f32 %v576_v34, 0.0  ;;  %v579_v40 = vadd.f32 %v578_v38, %v491_v36  ;;  %v580_v41 = vpop.f32.mrb[23].mxu1 }
 0x12d   :  { %v759_v42 = vpack.c.bf16 %v599_v39, %v599_v39  ;;  %v600_v43 = vmax.f32 %v579_v40, 0.0 }
 0x12f   :  { %666 = vst.msk [vmem:[%s1159_s3 + $0x28] sm:$0xf] %vm655_vm1, %v759_v42  ;;  %v760_v45 = vpack.c.bf16 %v600_v43, %v600_v43 }
 0x130   :  { %v583_v46 = vpop.f32.mrb[24].mxu1 }
 0x131   :  { %667 = vst.msk [vmem:[%s1159_s3 + $0x2c] sm:$0xf] %vm655_vm1, %v760_v45  ;;  %v584_v47 = vadd.f32 %v583_v46, %v496_v44  ;;  %v585_v48 = vpop.f32.mrb[25].mxu1 }
 0x132   :  { %v586_v49 = vpop.f32.mrb[26].mxu1 }
 0x133   :  { %v601_v50 = vmax.f32 %v584_v47, 0.0  ;;  %v587_v51 = vpop.f32.mrb[27].mxu1 }
 0x135   :  { %v761_v52 = vpack.c.bf16 %v601_v50, %v601_v50 }
 0x137   :  { %668 = vst.msk [vmem:[%s1159_s3 + $0x30] sm:$0xf] %vm655_vm1, %v761_v52 }

// kernel: pilotnet_forward.11
= control target key start
LH: loop header
LB: loop body
LE: loop exit
PB: predicated region body
PF: predicated region fallthrough
CT: control target
= control target key end

     0   :  { %vm423_vm0 = vcmask 523264   ;;  %vm664_vm1 = vcmask 519168   ;;  %s1138_s1 = inlined_call_operand.vmem [shape: bf16[576,64], index: 1, kind: input, shape index: {}]   ;;  %s1139_s0 = inlined_call_operand.vmem [shape: bf16[50,576], index: 0, kind: input, shape index: {}]   ;;  %s1140_s2 = inlined_call_operand.vmem [shape: f32[1,64], index: 2, kind: input, shape index: {}]   ;;  %s1141_s3 = inlined_call_operand.vmem [shape: bf16[50,64], index: 3, kind: output, shape index: {}]  }
   0x1   :  { %v863_v0 = vld [vmem:[%s1138_s1 + $0x40] sm:$0xff]   ;;  %v867_v4 = vld [vmem:[%s1138_s1 + $0x48] sm:$0xff]   ;;  %v871_v8 = vld [vmem:[%s1138_s1 + $0x50] sm:$0xff]  }
   0x2   :  { %v864_v1 = vld [vmem:[%s1138_s1 + $0xc0] sm:$0xff]   ;;  %751 = vmatprep.subr.bf16.mxu0 %v863_v0  ;;  %v868_v5 = vld [vmem:[%s1138_s1 + $0xc8] sm:$0xff]   ;;  %v872_v9 = vld [vmem:[%s1138_s1 + $0xd0] sm:$0xff]  }
   0x3   :  { %v865_v2 = vld [vmem:[%s1138_s1] sm:$0xff]   ;;  %791 = vmatprep.subr.bf16.mxu1 %v864_v1  ;;  %v869_v6 = vld [vmem:[%s1138_s1 + $0x8] sm:$0xff]   ;;  %v873_v10 = vld [vmem:[%s1138_s1 + $0x10] sm:$0xff]  }
   0x4   :  { %v866_v3 = vld [vmem:[%s1138_s1 + $0x80] sm:$0xff]   ;;  %752 = vmatpush3.bf16.msra.mxu0 %v865_v2  ;;  %v870_v7 = vld [vmem:[%s1138_s1 + $0x88] sm:$0xff]   ;;  %v874_v11 = vld [vmem:[%s1138_s1 + $0x90] sm:$0xff]  }
   0x5   :  { %792 = vmatpush3.bf16.msra.mxu1 %v866_v3  ;;  %753 = vmatprep.subr.bf16.mxu0 %v867_v4  ;;  %v875_v12 = vld [vmem:[%s1138_s1 + $0x58] sm:$0xff]   ;;  %v879_v16 = vld [vmem:[%s1138_s1 + $0x60] sm:$0xff]   ;;  %v883_v20 = vld [vmem:[%s1138_s1 + $0x68] sm:$0xff]  }
   0x6   :  { %793 = vmatprep.subr.bf16.mxu1 %v868_v5  ;;  %v876_v13 = vld [vmem:[%s1138_s1 + $0xd8] sm:$0xff]   ;;  %v880_v17 = vld [vmem:[%s1138_s1 + $0xe0] sm:$0xff]   ;;  %v884_v21 = vld [vmem:[%s1138_s1 + $0xe8] sm:$0xff]  }
   0x7   :  { %v877_v14 = vld [vmem:[%s1138_s1 + $0x18] sm:$0xff]   ;;  %v881_v18 = vld [vmem:[%s1138_s1 + $0x20] sm:$0xff]   ;;  %v885_v22 = vld [vmem:[%s1138_s1 + $0x28] sm:$0xff]  }
   0x8   :  { %754 = vmatpush3.bf16.msra.mxu0 %v869_v6  ;;  %v878_v15 = vld [vmem:[%s1138_s1 + $0x98] sm:$0xff]   ;;  %v882_v19 = vld [vmem:[%s1138_s1 + $0xa0] sm:$0xff]   ;;  %v886_v23 = vld [vmem:[%s1138_s1 + $0xa8] sm:$0xff]  }
   0x9   :  { %794 = vmatpush3.bf16.msra.mxu1 %v870_v7  ;;  %755 = vmatprep.subr.bf16.mxu0 %v871_v8  ;;  %v887_v24 = vld [vmem:[%s1138_s1 + $0x70] sm:$0xff]   ;;  %v891_v28 = vld [vmem:[%s1138_s1 + $0x78] sm:$0xff]   ;;  %v900_v35 = vld [vmem:[%s1139_s0 + $0xc] ss:$20 sps:$4 sm:$0xff]  }
   0xa   :  { %795 = vmatprep.subr.bf16.mxu1 %v872_v9  ;;  %v888_v25 = vld [vmem:[%s1138_s1 + $0xf0] sm:$0xff]   ;;  %v892_v29 = vld [vmem:[%s1138_s1 + $0xf8] sm:$0xff]   ;;  %v901_v36 = vld [vmem:[%s1138_s1 + $0x100] sm:$0xff]   ;;  %532 = vmatprep.mubr.bf16.mxu1 %v900_v35 }
   0xb   :  { %v889_v26 = vld [vmem:[%s1138_s1 + $0x30] sm:$0xff]   ;;  %v893_v30 = vld [vmem:[%s1138_s1 + $0x38] sm:$0xff]   ;;  %v902_v37 = vld [vmem:[%s1139_s0 + $0x2c] ss:$20 sps:$4 sm:$0xff]  }
   0xc   :  { %756 = vmatpush3.bf16.msra.mxu0 %v873_v10  ;;  %v890_v27 = vld [vmem:[%s1138_s1 + $0xb0] sm:$0xff]   ;;  %v894_v31 = vld [vmem:[%s1138_s1 + $0xb8] sm:$0xff]   ;;  %v908_v39 = vld [vmem:[%s1138_s1 + $0x108] sm:$0xff]  }
   0xd   :  { %796 = vmatpush3.bf16.msra.mxu1 %v874_v11  ;;  %757 = vmatprep.subr.bf16.mxu0 %v875_v12  ;;  %v895_v32 = vld [vmem:[%s1139_s0] ss:$20 sps:$4 sm:$0xff]   ;;  %v897_v33 = vld [vmem:[%s1139_s0 + $0x4] ss:$20 sps:$4 sm:$0xff]   ;;  %v898_v34 = vld [vmem:[%s1139_s0 + $0x8] ss:$20 sps:$4 sm:$0xff]  }
   0xe   :  { %797 = vmatprep.subr.bf16.mxu1 %v876_v13  ;;  %468 = vmatprep.mubr.bf16.mxu0 %v897_v33  ;;  %v904_v38 = vld [vmem:[%s1139_s0 + $0x34] ss:$20 sps:$4 sm:$0xff]   ;;  %v907_v41 = vld [vmem:[%s1139_s0 + $0x30] ss:$20 sps:$4 sm:$0xff]   ;;  %v920_v45 = vld [vmem:[%s1138_s1 + $0x118] sm:$0xff]  }
   0xf   :  { %v906_v40 = vld [vmem:[%s1139_s0 + $0x28] ss:$20 sps:$4 sm:$0xff]   ;;  %v915_v44 = vld [vmem:[%s1138_s1 + $0x110] sm:$0xff]   ;;  %v34_v47 = vld [vmem:[%s1139_s0 + $0x80] sm:$0xff] }
  0x10   :  { %758 = vmatpush3.bf16.msra.mxu0 %v877_v14  ;;  %v909_v42 = vld [vmem:[%s1139_s0 + $0x54] ss:$20 sps:$4 sm:$0xff]   ;;  %v911_v43 = vld [vmem:[%s1139_s0 + $0x5c] ss:$20 sps:$4 sm:$0xff]   ;;  %v914_v49 = vld [vmem:[%s1139_s0 + $0x58] ss:$20 sps:$4 sm:$0xff]   ;;  %v695_v51 = vcombine.high %v34_v47, %v34_v47  ;;  %v694_v53 = vcombine.low %v34_v47, %v34_v47 }
  0x11   :  { %798 = vmatpush3.bf16.msra.mxu1 %v878_v15  ;;  %759 = vmatprep.subr.bf16.mxu0 %v879_v16  ;;  %v33_v46 = vld [vmem:[%s1139_s0 + $0x78] sm:$0xff]  ;;  %v913_v48 = vld [vmem:[%s1139_s0 + $0x50] ss:$20 sps:$4 sm:$0xff]   ;;  %v922_v55 = vld [vmem:[%s1139_s0 + $0x60] ss:$20 sps:$4 sm:$0xff]  }
  0x12   :  { %799 = vmatprep.subr.bf16.mxu1 %v880_v17  ;;  %v693_v50 = vcombine.high %v33_v46, %v33_v46  ;;  %v692_v52 = vcombine.low %v33_v46, %v33_v46  ;;  %v921_v54 = vld [vmem:[%s1139_s0 + $0x10] ss:$20 sps:$4 sm:$0xff]   ;;  %v923_v56 = vld [vmem:[%s1139_s0 + $0x38] ss:$20 sps:$4 sm:$0xff]   ;;  %v924_v57 = vld [vmem:[%s1139_s0 + $0x88] ss:$0 sps:$4 sm:$0xff]  }
  0x13   :  { %v676_v60 = vld [vmem:[%s1140_s2] ss:$0 sm:$0xff] }
  0x14   :  { %760 = vmatpush3.bf16.msra.mxu0 %v881_v18 }
  0x15   :  { %800 = vmatpush3.bf16.msra.mxu1 %v882_v19  ;;  %761 = vmatprep.subr.bf16.mxu0 %v883_v20 }
  0x16   :  { %801 = vmatprep.subr.bf16.mxu1 %v884_v21 }
  0x18   :  { %762 = vmatpush3.bf16.msra.mxu0 %v885_v22 }
  0x19   :  { %802 = vmatpush3.bf16.msra.mxu1 %v886_v23  ;;  %763 = vmatprep.subr.bf16.mxu0 %v887_v24 }
  0x1a   :  { %803 = vmatprep.subr.bf16.mxu1 %v888_v25 }
  0x1c   :  { %764 = vmatpush3.bf16.msra.mxu0 %v889_v26 }
  0x1d   :  { %804 = vmatpush3.bf16.msra.mxu1 %v890_v27  ;;  %765 = vmatprep.subr.bf16.mxu0 %v891_v28 }
  0x1e   :  { %805 = vmatprep.subr.bf16.mxu1 %v892_v29 }
  0x20   :  { %766 = vmatpush3.bf16.msra.mxu0 %v893_v30 }
  0x21   :  { %806 = vmatpush3.bf16.msra.mxu1 %v894_v31  ;;  %839 = vmatprep.subr.bf16.mxu0 %v901_v36 }
  0x22   :  { %855 = vmatprep.subr.bf16.mxu1 %v901_v36 }
  0x23   :  { %469 = vmatmul.mubr.bf16.vlgmr.msra.gmra.mrb[0].mxu0 %v895_v32 }
  0x24   :  { %533 = vmatmul.mubr.bf16.vlgmr.msra.gmra.mrb[0].mxu1 %v898_v34  ;;  %840 = vmatpush3.bf16.msra.mxu0 %v901_v36 }
  0x25   :  { %859 = vmatpush3.bf16.msra.mxu1 %v901_v36  ;;  %476 = vmatprep.mubr.bf16.mxu0 %v902_v37 }
  0x26   :  { %540 = vmatprep.mubr.bf16.mxu1 %v904_v38  ;;  %841 = vmatprep.subr.bf16.mxu0 %v908_v39 }
  0x27   :  { %856 = vmatprep.subr.bf16.mxu1 %v908_v39 }
  0x28   :  { %842 = vmatpush3.bf16.msra.mxu0 %v908_v39 }
  0x29   :  { %860 = vmatpush3.bf16.msra.mxu1 %v908_v39  ;;  %843 = vmatprep.subr.bf16.mxu0 %v915_v44 }
  0x2a   :  { %857 = vmatprep.subr.bf16.mxu1 %v915_v44 }
  0x2b   :  { %477 = vmatmul.mubr.bf16.gmra.mrb[4].mxu0 %v906_v40 }
  0x2c   :  { %541 = vmatmul.mubr.bf16.gmra.mrb[4].mxu1 %v907_v41  ;;  %484 = vmatprep.mubr.bf16.mxu0 %v909_v42 }
  0x2d   :  { %548 = vmatprep.mubr.bf16.mxu1 %v911_v43  ;;  %844 = vmatpush3.bf16.msra.mxu0 %v915_v44 }
  0x2e   :  { %861 = vmatpush3.bf16.msra.mxu1 %v915_v44  ;;  %845 = vmatprep.subr.bf16.mxu0 %v920_v45 }
  0x2f   :  { %858 = vmatprep.subr.bf16.mxu1 %v920_v45 }
  0x31   :  { %846 = vmatpush3.bf16.msra.mxu0 %v920_v45 }
  0x32   :  { %862 = vmatpush3.bf16.msra.mxu1 %v920_v45 }
  0x33   :  { %485 = vmatmul.mubr.bf16.gmra.mrb[8].mxu0 %v913_v48 }
  0x34   :  { %549 = vmatmul.mubr.bf16.gmra.mrb[8].mxu1 %v914_v49  ;;  %492 = vmatprep.mubr.bf16.mxu0 %v693_v50 }
  0x35   :  { %556 = vmatprep.mubr.bf16.mxu1 %v695_v51 }
  0x3b   :  { %493 = vmatmul.mubr.bf16.gmra.mrb[12].mxu0 %v692_v52 }
  0x3c   :  { %557 = vmatmul.mubr.bf16.gmra.mrb[12].mxu1 %v694_v53  ;;  %847 = vmatprep.mubr.msk.bf16.mxu0 %vm423_vm0, %v921_v54 }
  0x3d   :  { %851 = vmatprep.mubr.msk.bf16.mxu1 %vm423_vm0, %v922_v55 }
  0x43   :  { %848 = vmatmul.mubr.msk.bf16.vlgmr.msra.gmra.mrb[16].mxu0 %vm423_vm0, %v923_v56 }
  0x44   :  { %852 = vmatmul.mubr.msk.bf16.vlgmr.msra.gmra.mrb[16].mxu1 %vm423_vm0, %v924_v57 }
  0xf6   :  { %v767_v58 = vpop.f32.mrb[0].mxu0 }
  0xf7   :  { %v807_v59 = vpop.f32.mrb[0].mxu1  ;;  %v768_v61 = vpop.f32.mrb[1].mxu0 }
  0xf8   :  { %v769_v62 = vadd.f32 %v768_v61, %v767_v58  ;;  %v808_v63 = vpop.f32.mrb[1].mxu1  ;;  %v770_v0 = vpop.f32.mrb[2].mxu0 }
  0xf9   :  { %v809_v1 = vadd.f32 %v808_v63, %v807_v59  ;;  %v810_v2 = vpop.f32.mrb[2].mxu1  ;;  %v771_v3 = vpop.f32.mrb[3].mxu0 }
  0xfa   :  { %v471_v4 = vadd.f32 %v769_v62, %v676_v60  ;;  %v772_v5 = vadd.f32 %v771_v3, %v770_v0  ;;  %v811_v6 = vpop.f32.mrb[3].mxu1 }
  0xfb   :  { %v812_v7 = vadd.f32 %v811_v6, %v810_v2 }
  0xfc   :  { %v474_v8 = vadd.f32 %v772_v5, %v676_v60  ;;  %v535_v9 = vadd.f32 %v809_v1, %v471_v4 }
  0xfe   :  { %v773_v10 = vpop.f32.mrb[4].mxu0  ;;  %v538_v11 = vadd.f32 %v812_v7, %v474_v8 }
  0xff   :  { %v813_v12 = vpop.f32.mrb[4].mxu1  ;;  %v774_v13 = vpop.f32.mrb[5].mxu0 }
 0x100   :  { %v775_v14 = vadd.f32 %v774_v13, %v773_v10  ;;  %v814_v15 = vpop.f32.mrb[5].mxu1  ;;  %v776_v16 = vpop.f32.mrb[6].mxu0 }
 0x101   :  { %v815_v17 = vadd.f32 %v814_v15, %v813_v12  ;;  %v816_v18 = vpop.f32.mrb[6].mxu1  ;;  %v777_v19 = vpop.f32.mrb[7].mxu0 }
 0x102   :  { %v479_v20 = vadd.f32 %v775_v14, %v676_v60  ;;  %v778_v21 = vadd.f32 %v777_v19, %v776_v16  ;;  %v817_v22 = vpop.f32.mrb[7].mxu1 }
 0x103   :  { %v818_v23 = vadd.f32 %v817_v22, %v816_v18 }
 0x104   :  { %v482_v24 = vadd.f32 %v778_v21, %v676_v60  ;;  %v543_v25 = vadd.f32 %v815_v17, %v479_v20 }
 0x106   :  { %v779_v26 = vpop.f32.mrb[8].mxu0  ;;  %v546_v27 = vadd.f32 %v818_v23, %v482_v24 }
 0x107   :  { %v819_v28 = vpop.f32.mrb[8].mxu1  ;;  %v780_v29 = vpop.f32.mrb[9].mxu0 }
 0x108   :  { %v781_v30 = vadd.f32 %v780_v29, %v779_v26  ;;  %v820_v31 = vpop.f32.mrb[9].mxu1  ;;  %v782_v32 = vpop.f32.mrb[10].mxu0 }
 0x109   :  { %v821_v33 = vadd.f32 %v820_v31, %v819_v28  ;;  %v822_v34 = vpop.f32.mrb[10].mxu1  ;;  %v783_v35 = vpop.f32.mrb[11].mxu0 }
 0x10a   :  { %v487_v36 = vadd.f32 %v781_v30, %v676_v60  ;;  %v784_v37 = vadd.f32 %v783_v35, %v782_v32  ;;  %v823_v38 = vpop.f32.mrb[11].mxu1 }
 0x10b   :  { %v824_v39 = vadd.f32 %v823_v38, %v822_v34 }
 0x10c   :  { %v490_v40 = vadd.f32 %v784_v37, %v676_v60  ;;  %v551_v41 = vadd.f32 %v821_v33, %v487_v36 }
 0x10e   :  { %v785_v42 = vpop.f32.mrb[12].mxu0  ;;  %v554_v43 = vadd.f32 %v824_v39, %v490_v40 }
 0x10f   :  { %v825_v44 = vpop.f32.mrb[12].mxu1  ;;  %v786_v45 = vpop.f32.mrb[13].mxu0 }
 0x110   :  { %v787_v46 = vadd.f32 %v786_v45, %v785_v42  ;;  %v826_v47 = vpop.f32.mrb[13].mxu1  ;;  %v788_v48 = vpop.f32.mrb[14].mxu0 }
 0x111   :  { %v827_v49 = vadd.f32 %v826_v47, %v825_v44  ;;  %v828_v50 = vpop.f32.mrb[14].mxu1  ;;  %v789_v51 = vpop.f32.mrb[15].mxu0 }
 0x112   :  { %v495_v52 = vadd.f32 %v787_v46, %v676_v60  ;;  %v829_v53 = vpop.f32.mrb[15].mxu1 }
 0x114   :  { %v559_v54 = vadd.f32 %v827_v49, %v495_v52 }
 0x116   :  { %v849_v55 = vpop.f32.mrb[16].mxu0 }
 0x117   :  { %v607_v56 = vadd.f32 %v849_v55, %v543_v25  ;;  %v853_v57 = vpop.f32.mrb[16].mxu1  ;;  %v598_v58 = vpop.f32.mrb[17].mxu0 }
 0x118   :  { %v623_v59 = vadd.f32 %v853_v57, %v559_v54  ;;  %v599_v61 = vadd.f32 %v598_v58, %v535_v9  ;;  %v614_v62 = vpop.f32.mrb[17].mxu1  ;;  %v850_v63 = vpop.f32.mrb[18].mxu0 }
 0x119   :  { %v630_v0 = vmax.f32 %v607_v56, 0.0  ;;  %v615_v1 = vadd.f32 %v614_v62, %v551_v41  ;;  %v610_v2 = vadd.f32 %v850_v63, %v546_v27  ;;  %v854_v3 = vpop.f32.mrb[18].mxu1  ;;  %v601_v4 = vpop.f32.mrb[19].mxu0 }
 0x11a   :  { %v634_v5 = vmax.f32 %v623_v59, 0.0  ;;  %v628_v6 = vmax.f32 %v599_v61, 0.0  ;;  %v602_v7 = vadd.f32 %v601_v4, %v538_v11  ;;  %v617_v60 = vpop.f32.mrb[19].mxu1 }
 0x11b   :  { %v746_v8 = vpack.c.bf16 %v630_v0, %v630_v0  ;;  %v632_v10 = vmax.f32 %v615_v1, 0.0  ;;  %v631_v12 = vmax.f32 %v610_v2, 0.0  ;;  %v618_v13 = vadd.f32 %v617_v60, %v554_v43 }
 0x11c   :  { %v750_v14 = vpack.c.bf16 %v634_v5, %v634_v5  ;;  %v744_v15 = vpack.c.bf16 %v628_v6, %v628_v6  ;;  %v629_v16 = vmax.f32 %v602_v7, 0.0 }
 0x11d   :  { %667 = vst.msk [vmem:[%s1141_s3 + $0x8] sm:$0xf] %vm664_vm1, %v746_v8  ;;  %v748_v9 = vpack.c.bf16 %v632_v10, %v632_v10  ;;  %v747_v17 = vpack.c.bf16 %v631_v12, %v631_v12  ;;  %v633_v18 = vmax.f32 %v618_v13, 0.0 }
 0x11e   :  { %671 = vst.msk [vmem:[%s1141_s3 + $0x18] sm:$0xf] %vm664_vm1, %v750_v14  ;;  %665 = vst.msk [vmem:[%s1141_s3] sm:$0xf] %vm664_vm1, %v744_v15  ;;  %v745_v11 = vpack.c.bf16 %v629_v16, %v629_v16 }
 0x11f   :  { %669 = vst.msk [vmem:[%s1141_s3 + $0x10] sm:$0xf] %vm664_vm1, %v748_v9  ;;  %668 = vst.msk [vmem:[%s1141_s3 + $0xc] sm:$0xf] %vm664_vm1, %v747_v17  ;;  %v749_v19 = vpack.c.bf16 %v633_v18, %v633_v18 }
 0x120   :  { %666 = vst.msk [vmem:[%s1141_s3 + $0x4] sm:$0xf] %vm664_vm1, %v745_v11 }
 0x121   :  { %670 = vst.msk [vmem:[%s1141_s3 + $0x14] sm:$0xf] %vm664_vm1, %v749_v19 }

// kernel: pilotnet_forward.12
= control target key start
LH: loop header
LB: loop body
LE: loop exit
PB: predicated region body
PF: predicated region fallthrough
CT: control target
= control target key end

     0   :  { %s3025_s12 = smov 0   ;;  %s3027_s13 = smov 0   ;;  %s3669_s0 = inlined_call_operand.vmem [shape: bf16[2,1600], index: 0, kind: input, shape index: {}]   ;;  %s3670_s1 = inlined_call_operand.vmem [shape: bf16[1600,1280], index: 1, kind: input, shape index: {}]   ;;  %s3671_s2 = inlined_call_operand.vmem [shape: f32[1,1280], index: 2, kind: input, shape index: {}]   ;;  %s3672_s3 = inlined_call_operand.vmem [shape: f32[2,1280], index: 3, kind: output, shape index: {}]  }
   0x1   :  { %s3029_s14 = smov 0   ;;  %s3031_s15 = smov 0  }
   0x2   :  { %s3033_s16 = smov 0  }
   0x3 LB: > { %s22_s17 = sadd.s32 1, %s2992_s15  ;;  %s2489_s18 = sadd.s32 4294967295, %s2996_s16   ;;  %s2996_s16 = sphi %s3033_s16, %s13_s16   ;;  %s2992_s15 = sphi %s3031_s15, %s3677_s15   ;;  %s2988_s14 = sphi %s3029_s14, %s3676_s14   ;;  %s2984_s13 = sphi %s3027_s13, %s3675_s13   ;;  %s2980_s12 = sphi %s3025_s12, %s3674_s12  }
   0x4   : > { %p23_p0 = scmp.ge.s32.totalorder %s22_s17, 10  ;;  %p65_p1 = scmp.ne.s32.totalorder %s2984_s13, %s2980_s12 }
   0x5   : > { %p66_p2 = scmp.eq.s32.totalorder %s2996_s16, 0  ;;  %p123_p4 = scmp.eq.s32.totalorder %s2489_s18, 9 }
   0x6   : > { %s3679_s17 = smov (%p23_p0, %s22_s17), 0  ;;  %s58_s20 = sadd.s32 1, %s2984_s13 }
   0x7   : > { %p67_p3 = por %p66_p2, %p65_p1  ;;  %s55_s19 = ssub.s32 %s2992_s15, %s3679_s17 }
   0x8   : > { %p56_p5 = scmp.eq.s32.totalorder %s55_s19, 0  ;;  %p3060_p6 = por %p123_p4, %p65_p1 }
   0x9   : > { %p2493_p7 = scmp.ge.s32.totalorder %s2996_s16, 10 }
   0xa   : > { %s3065_s22 = scalar_select %p56_p5, %s2984_s13, %s58_s20  }
   0xb   : > { %160 = sbr.rel (%p2493_p7) target bundleno = 155 (0x9b), region = 20 }
  0x12   : > { %163 = sbr.rel (!%p67_p3) target bundleno = 155 (0x9b), region = 24  ;;  %s165_s23 = sand.u32 (%p67_p3), 1, %s2984_s13  }
  0x13   : > { %s2494_s24 = sshll.u32 (%p67_p3), %s2992_s15, 2  ;;  %s2753_s25 = smul.u32 (%p67_p3), 800, %s165_s23 }
  0x14   : > { %s3073_s28 = scalar_lea.vmem (%p67_p3), %s3670_s1, %s2494_s24 }
  0x15   : > { %v185_v0 = vld [vmem:[%s3073_s28] sm:$0xf] (%p67_p3)  ;;  %v187_v1 = vld [vmem:[%s3073_s28 + $0x28] sm:$0xf] (%p67_p3)  ;;  %v189_v2 = vld [vmem:[%s3073_s28 + $0x50] sm:$0xf] (%p67_p3) }
  0x16   : > { %v191_v3 = vld [vmem:[%s3073_s28 + $0x78] sm:$0xf] (%p67_p3)  ;;  %v193_v4 = vld [vmem:[%s3073_s28 + $0xa0] sm:$0xf] (%p67_p3)  ;;  %s3080_s29 = scalar_lea.vmem (%p67_p3), [#allocation2], %s2753_s25 }
  0x17   : > { %186 = vst [vmem:[%s3080_s29] sm:$0xf] (%p67_p3), %v185_v0  ;;  %188 = vst [vmem:[%s3080_s29 + $0x4] sm:$0xf] (%p67_p3), %v187_v1  ;;  %v195_v5 = vld [vmem:[%s3073_s28 + $0xc8] sm:$0xf] (%p67_p3) }
  0x18   : > { %190 = vst [vmem:[%s3080_s29 + $0x8] sm:$0xf] (%p67_p3), %v189_v2  ;;  %192 = vst [vmem:[%s3080_s29 + $0xc] sm:$0xf] (%p67_p3), %v191_v3  ;;  %v197_v6 = vld [vmem:[%s3073_s28 + $0xf0] sm:$0xf] (%p67_p3) }
  0x19   : > { %194 = vst [vmem:[%s3080_s29 + $0x10] sm:$0xf] %v193_v4  ;;  %v199_v7 = vld [vmem:[%s3073_s28 + $0x118] sm:$0xf]  ;;  %196 = vst [vmem:[%s3080_s29 + $0x14] sm:$0xf] %v195_v5 }
  0x1a   : > { %198 = vst [vmem:[%s3080_s29 + $0x18] sm:$0xf] %v197_v6  ;;  %200 = vst [vmem:[%s3080_s29 + $0x1c] sm:$0xf] %v199_v7  ;;  %v201_v8 = vld [vmem:[%s3073_s28 + $0x140] sm:$0xf] }
  0x1b   : > { %v203_v9 = vld [vmem:[%s3073_s28 + $0x168] sm:$0xf]  ;;  %v205_v10 = vld [vmem:[%s3073_s28 + $0x190] sm:$0xf]  ;;  %202 = vst [vmem:[%s3080_s29 + $0x20] sm:$0xf] %v201_v8 }
  0x1c   : > { %204 = vst [vmem:[%s3080_s29 + $0x24] sm:$0xf] %v203_v9  ;;  %206 = vst [vmem:[%s3080_s29 + $0x28] sm:$0xf] %v205_v10  ;;  %v207_v11 = vld [vmem:[%s3073_s28 + $0x1b8] sm:$0xf] }
  0x1d   : > { %v209_v12 = vld [vmem:[%s3073_s28 + $0x1e0] sm:$0xf]  ;;  %v211_v13 = vld [vmem:[%s3073_s28 + $0x208] sm:$0xf]  ;;  %208 = vst [vmem:[%s3080_s29 + $0x2c] sm:$0xf] %v207_v11 }
  0x1e   : > { %210 = vst [vmem:[%s3080_s29 + $0x30] sm:$0xf] %v209_v12  ;;  %212 = vst [vmem:[%s3080_s29 + $0x34] sm:$0xf] %v211_v13  ;;  %v213_v14 = vld [vmem:[%s3073_s28 + $0x230] sm:$0xf] }
  0x1f   : > { %v215_v15 = vld [vmem:[%s3073_s28 + $0x258] sm:$0xf]  ;;  %v217_v16 = vld [vmem:[%s3073_s28 + $0x280] sm:$0xf]  ;;  %214 = vst [vmem:[%s3080_s29 + $0x38] sm:$0xf] %v213_v14 }
  0x20   : > { %216 = vst [vmem:[%s3080_s29 + $0x3c] sm:$0xf] %v215_v15  ;;  %218 = vst [vmem:[%s3080_s29 + $0x40] sm:$0xf] %v217_v16  ;;  %v219_v17 = vld [vmem:[%s3073_s28 + $0x2a8] sm:$0xf] }
  0x21   : > { %v221_v18 = vld [vmem:[%s3073_s28 + $0x2d0] sm:$0xf]  ;;  %v223_v19 = vld [vmem:[%s3073_s28 + $0x2f8] sm:$0xf]  ;;  %220 = vst [vmem:[%s3080_s29 + $0x44] sm:$0xf] %v219_v17 }
  0x22   : > { %222 = vst [vmem:[%s3080_s29 + $0x48] sm:$0xf] %v221_v18  ;;  %224 = vst [vmem:[%s3080_s29 + $0x4c] sm:$0xf] %v223_v19  ;;  %v225_v20 = vld [vmem:[%s3073_s28 + $0x320] sm:$0xf] }
  0x23   : > { %v227_v21 = vld [vmem:[%s3073_s28 + $0x348] sm:$0xf]  ;;  %v229_v22 = vld [vmem:[%s3073_s28 + $0x370] sm:$0xf]  ;;  %226 = vst [vmem:[%s3080_s29 + $0x50] sm:$0xf] %v225_v20 }
  0x24   : > { %228 = vst [vmem:[%s3080_s29 + $0x54] sm:$0xf] %v227_v21  ;;  %230 = vst [vmem:[%s3080_s29 + $0x58] sm:$0xf] %v229_v22  ;;  %v231_v23 = vld [vmem:[%s3073_s28 + $0x398] sm:$0xf] }
  0x25   : > { %v233_v24 = vld [vmem:[%s3073_s28 + $0x3c0] sm:$0xf]  ;;  %v235_v25 = vld [vmem:[%s3073_s28 + $0x3e8] sm:$0xf]  ;;  %232 = vst [vmem:[%s3080_s29 + $0x5c] sm:$0xf] %v231_v23 }
  0x26   : > { %234 = vst [vmem:[%s3080_s29 + $0x60] sm:$0xf] %v233_v24  ;;  %236 = vst [vmem:[%s3080_s29 + $0x64] sm:$0xf] %v235_v25  ;;  %v237_v26 = vld [vmem:[%s3073_s28 + $0x410] sm:$0xf] }
  0x27   : > { %v239_v27 = vld [vmem:[%s3073_s28 + $0x438] sm:$0xf]  ;;  %v241_v28 = vld [vmem:[%s3073_s28 + $0x460] sm:$0xf]  ;;  %238 = vst [vmem:[%s3080_s29 + $0x68] sm:$0xf] %v237_v26 }
  0x28   : > { %240 = vst [vmem:[%s3080_s29 + $0x6c] sm:$0xf] %v239_v27  ;;  %242 = vst [vmem:[%s3080_s29 + $0x70] sm:$0xf] %v241_v28  ;;  %v243_v29 = vld [vmem:[%s3073_s28 + $0x488] sm:$0xf] }
  0x29   : > { %v245_v30 = vld [vmem:[%s3073_s28 + $0x4b0] sm:$0xf]  ;;  %v247_v31 = vld [vmem:[%s3073_s28 + $0x4d8] sm:$0xf]  ;;  %244 = vst [vmem:[%s3080_s29 + $0x74] sm:$0xf] %v243_v29 }
  0x2a   : > { %246 = vst [vmem:[%s3080_s29 + $0x78] sm:$0xf] %v245_v30  ;;  %248 = vst [vmem:[%s3080_s29 + $0x7c] sm:$0xf] %v247_v31  ;;  %v249_v32 = vld [vmem:[%s3073_s28 + $0x500] sm:$0xf] }
  0x2b   : > { %v251_v33 = vld [vmem:[%s3073_s28 + $0x528] sm:$0xf]  ;;  %v253_v34 = vld [vmem:[%s3073_s28 + $0x550] sm:$0xf]  ;;  %250 = vst [vmem:[%s3080_s29 + $0x80] sm:$0xf] %v249_v32 }
  0x2c   : > { %252 = vst [vmem:[%s3080_s29 + $0x84] sm:$0xf] %v251_v33  ;;  %254 = vst [vmem:[%s3080_s29 + $0x88] sm:$0xf] %v253_v34  ;;  %v255_v35 = vld [vmem:[%s3073_s28 + $0x578] sm:$0xf] }
  0x2d   : > { %v257_v36 = vld [vmem:[%s3073_s28 + $0x5a0] sm:$0xf]  ;;  %v259_v37 = vld [vmem:[%s3073_s28 + $0x5c8] sm:$0xf]  ;;  %256 = vst [vmem:[%s3080_s29 + $0x8c] sm:$0xf] %v255_v35 }
  0x2e   : > { %258 = vst [vmem:[%s3080_s29 + $0x90] sm:$0xf] %v257_v36  ;;  %260 = vst [vmem:[%s3080_s29 + $0x94] sm:$0xf] %v259_v37  ;;  %v261_v38 = vld [vmem:[%s3073_s28 + $0x5f0] sm:$0xf] }
  0x2f   : > { %v263_v39 = vld [vmem:[%s3073_s28 + $0x618] sm:$0xf]  ;;  %v265_v40 = vld [vmem:[%s3073_s28 + $0x640] sm:$0xf]  ;;  %262 = vst [vmem:[%s3080_s29 + $0x98] sm:$0xf] %v261_v38 }
  0x30   : > { %264 = vst [vmem:[%s3080_s29 + $0x9c] sm:$0xf] %v263_v39  ;;  %266 = vst [vmem:[%s3080_s29 + $0xa0] sm:$0xf] %v265_v40  ;;  %v267_v41 = vld [vmem:[%s3073_s28 + $0x668] sm:$0xf] }
  0x31   : > { %v269_v42 = vld [vmem:[%s3073_s28 + $0x690] sm:$0xf]  ;;  %v271_v43 = vld [vmem:[%s3073_s28 + $0x6b8] sm:$0xf]  ;;  %268 = vst [vmem:[%s3080_s29 + $0xa4] sm:$0xf] %v267_v41 }
  0x32   : > { %270 = vst [vmem:[%s3080_s29 + $0xa8] sm:$0xf] %v269_v42  ;;  %272 = vst [vmem:[%s3080_s29 + $0xac] sm:$0xf] %v271_v43  ;;  %v273_v44 = vld [vmem:[%s3073_s28 + $0x6e0] sm:$0xf] }
  0x33   : > { %v275_v45 = vld [vmem:[%s3073_s28 + $0x708] sm:$0xf]  ;;  %v277_v46 = vld [vmem:[%s3073_s28 + $0x730] sm:$0xf]  ;;  %274 = vst [vmem:[%s3080_s29 + $0xb0] sm:$0xf] %v273_v44 }
  0x34   : > { %276 = vst [vmem:[%s3080_s29 + $0xb4] sm:$0xf] %v275_v45  ;;  %278 = vst [vmem:[%s3080_s29 + $0xb8] sm:$0xf] %v277_v46  ;;  %v279_v47 = vld [vmem:[%s3073_s28 + $0x758] sm:$0xf] }
  0x35   : > { %v281_v48 = vld [vmem:[%s3073_s28 + $0x780] sm:$0xf]  ;;  %v283_v49 = vld [vmem:[%s3073_s28 + $0x7a8] sm:$0xf]  ;;  %280 = vst [vmem:[%s3080_s29 + $0xbc] sm:$0xf] %v279_v47 }
  0x36   : > { %282 = vst [vmem:[%s3080_s29 + $0xc0] sm:$0xf] %v281_v48  ;;  %284 = vst [vmem:[%s3080_s29 + $0xc4] sm:$0xf] %v283_v49  ;;  %v285_v50 = vld [vmem:[%s3073_s28 + $0x7d0] sm:$0xf] }
  0x37   : > { %v287_v51 = vld [vmem:[%s3073_s28 + $0x7f8] sm:$0xf]  ;;  %v289_v52 = vld [vmem:[%s3073_s28 + $0x820] sm:$0xf]  ;;  %286 = vst [vmem:[%s3080_s29 + $0xc8] sm:$0xf] %v285_v50 }
  0x38   : > { %288 = vst [vmem:[%s3080_s29 + $0xcc] sm:$0xf] %v287_v51  ;;  %290 = vst [vmem:[%s3080_s29 + $0xd0] sm:$0xf] %v289_v52  ;;  %v291_v53 = vld [vmem:[%s3073_s28 + $0x848] sm:$0xf] }
  0x39   : > { %v293_v54 = vld [vmem:[%s3073_s28 + $0x870] sm:$0xf]  ;;  %v295_v55 = vld [vmem:[%s3073_s28 + $0x898] sm:$0xf]  ;;  %292 = vst [vmem:[%s3080_s29 + $0xd4] sm:$0xf] %v291_v53 }
  0x3a   : > { %294 = vst [vmem:[%s3080_s29 + $0xd8] sm:$0xf] %v293_v54  ;;  %296 = vst [vmem:[%s3080_s29 + $0xdc] sm:$0xf] %v295_v55  ;;  %v297_v56 = vld [vmem:[%s3073_s28 + $0x8c0] sm:$0xf] }
  0x3b   : > { %v299_v57 = vld [vmem:[%s3073_s28 + $0x8e8] sm:$0xf]  ;;  %v301_v58 = vld [vmem:[%s3073_s28 + $0x910] sm:$0xf]  ;;  %298 = vst [vmem:[%s3080_s29 + $0xe0] sm:$0xf] %v297_v56 }
  0x3c   : > { %300 = vst [vmem:[%s3080_s29 + $0xe4] sm:$0xf] %v299_v57  ;;  %302 = vst [vmem:[%s3080_s29 + $0xe8] sm:$0xf] %v301_v58  ;;  %v303_v59 = vld [vmem:[%s3073_s28 + $0x938] sm:$0xf] }
  0x3d   : > { %v305_v60 = vld [vmem:[%s3073_s28 + $0x960] sm:$0xf]  ;;  %v307_v61 = vld [vmem:[%s3073_s28 + $0x988] sm:$0xf]  ;;  %304 = vst [vmem:[%s3080_s29 + $0xec] sm:$0xf] %v303_v59 }
  0x3e   : > { %306 = vst [vmem:[%s3080_s29 + $0xf0] sm:$0xf] %v305_v60  ;;  %308 = vst [vmem:[%s3080_s29 + $0xf4] sm:$0xf] %v307_v61  ;;  %v309_v62 = vld [vmem:[%s3073_s28 + $0x9b0] sm:$0xf] }
  0x3f   : > { %v311_v63 = vld [vmem:[%s3073_s28 + $0x9d8] sm:$0xf]  ;;  %v313_v0 = vld [vmem:[%s3073_s28 + $0xa00] sm:$0xf]  ;;  %310 = vst [vmem:[%s3080_s29 + $0xf8] sm:$0xf] %v309_v62 }
  0x40   : > { %312 = vst [vmem:[%s3080_s29 + $0xfc] sm:$0xf] %v311_v63  ;;  %314 = vst [vmem:[%s3080_s29 + $0x100] sm:$0xf] %v313_v0  ;;  %v315_v1 = vld [vmem:[%s3073_s28 + $0xa28] sm:$0xf] }
  0x41   : > { %v317_v2 = vld [vmem:[%s3073_s28 + $0xa50] sm:$0xf]  ;;  %v319_v3 = vld [vmem:[%s3073_s28 + $0xa78] sm:$0xf]  ;;  %316 = vst [vmem:[%s3080_s29 + $0x104] sm:$0xf] %v315_v1 }
  0x42   : > { %318 = vst [vmem:[%s3080_s29 + $0x108] sm:$0xf] %v317_v2  ;;  %320 = vst [vmem:[%s3080_s29 + $0x10c] sm:$0xf] %v319_v3  ;;  %v321_v4 = vld [vmem:[%s3073_s28 + $0xaa0] sm:$0xf] }
  0x43   : > { %v323_v5 = vld [vmem:[%s3073_s28 + $0xac8] sm:$0xf]  ;;  %v325_v6 = vld [vmem:[%s3073_s28 + $0xaf0] sm:$0xf]  ;;  %322 = vst [vmem:[%s3080_s29 + $0x110] sm:$0xf] %v321_v4 }
  0x44   : > { %324 = vst [vmem:[%s3080_s29 + $0x114] sm:$0xf] %v323_v5  ;;  %326 = vst [vmem:[%s3080_s29 + $0x118] sm:$0xf] %v325_v6  ;;  %v327_v7 = vld [vmem:[%s3073_s28 + $0xb18] sm:$0xf] }
  0x45   : > { %v329_v8 = vld [vmem:[%s3073_s28 + $0xb40] sm:$0xf]  ;;  %v331_v9 = vld [vmem:[%s3073_s28 + $0xb68] sm:$0xf]  ;;  %328 = vst [vmem:[%s3080_s29 + $0x11c] sm:$0xf] %v327_v7 }
  0x46   : > { %330 = vst [vmem:[%s3080_s29 + $0x120] sm:$0xf] %v329_v8  ;;  %332 = vst [vmem:[%s3080_s29 + $0x124] sm:$0xf] %v331_v9  ;;  %v333_v10 = vld [vmem:[%s3073_s28 + $0xb90] sm:$0xf] }
  0x47   : > { %v335_v11 = vld [vmem:[%s3073_s28 + $0xbb8] sm:$0xf]  ;;  %v337_v12 = vld [vmem:[%s3073_s28 + $0xbe0] sm:$0xf]  ;;  %334 = vst [vmem:[%s3080_s29 + $0x128] sm:$0xf] %v333_v10 }
  0x48   : > { %336 = vst [vmem:[%s3080_s29 + $0x12c] sm:$0xf] %v335_v11  ;;  %338 = vst [vmem:[%s3080_s29 + $0x130] sm:$0xf] %v337_v12  ;;  %v339_v13 = vld [vmem:[%s3073_s28 + $0xc08] sm:$0xf] }
  0x49   : > { %v341_v14 = vld [vmem:[%s3073_s28 + $0xc30] sm:$0xf]  ;;  %v343_v15 = vld [vmem:[%s3073_s28 + $0xc58] sm:$0xf]  ;;  %340 = vst [vmem:[%s3080_s29 + $0x134] sm:$0xf] %v339_v13 }
  0x4a   : > { %342 = vst [vmem:[%s3080_s29 + $0x138] sm:$0xf] %v341_v14  ;;  %344 = vst [vmem:[%s3080_s29 + $0x13c] sm:$0xf] %v343_v15  ;;  %v345_v16 = vld [vmem:[%s3073_s28 + $0xc80] sm:$0xf] }
  0x4b   : > { %v347_v17 = vld [vmem:[%s3073_s28 + $0xca8] sm:$0xf]  ;;  %v349_v18 = vld [vmem:[%s3073_s28 + $0xcd0] sm:$0xf]  ;;  %346 = vst [vmem:[%s3080_s29 + $0x140] sm:$0xf] %v345_v16 }
  0x4c   : > { %348 = vst [vmem:[%s3080_s29 + $0x144] sm:$0xf] %v347_v17  ;;  %350 = vst [vmem:[%s3080_s29 + $0x148] sm:$0xf] %v349_v18  ;;  %v351_v19 = vld [vmem:[%s3073_s28 + $0xcf8] sm:$0xf] }
  0x4d   : > { %v353_v20 = vld [vmem:[%s3073_s28 + $0xd20] sm:$0xf]  ;;  %v355_v21 = vld [vmem:[%s3073_s28 + $0xd48] sm:$0xf]  ;;  %352 = vst [vmem:[%s3080_s29 + $0x14c] sm:$0xf] %v351_v19 }
  0x4e   : > { %354 = vst [vmem:[%s3080_s29 + $0x150] sm:$0xf] %v353_v20  ;;  %356 = vst [vmem:[%s3080_s29 + $0x154] sm:$0xf] %v355_v21  ;;  %v357_v22 = vld [vmem:[%s3073_s28 + $0xd70] sm:$0xf] }
  0x4f   : > { %v359_v23 = vld [vmem:[%s3073_s28 + $0xd98] sm:$0xf]  ;;  %v361_v24 = vld [vmem:[%s3073_s28 + $0xdc0] sm:$0xf]  ;;  %358 = vst [vmem:[%s3080_s29 + $0x158] sm:$0xf] %v357_v22 }
  0x50   : > { %360 = vst [vmem:[%s3080_s29 + $0x15c] sm:$0xf] %v359_v23  ;;  %362 = vst [vmem:[%s3080_s29 + $0x160] sm:$0xf] %v361_v24  ;;  %v363_v25 = vld [vmem:[%s3073_s28 + $0xde8] sm:$0xf] }
  0x51   : > { %v365_v26 = vld [vmem:[%s3073_s28 + $0xe10] sm:$0xf]  ;;  %v367_v27 = vld [vmem:[%s3073_s28 + $0xe38] sm:$0xf]  ;;  %364 = vst [vmem:[%s3080_s29 + $0x164] sm:$0xf] %v363_v25 }
  0x52   : > { %366 = vst [vmem:[%s3080_s29 + $0x168] sm:$0xf] %v365_v26  ;;  %368 = vst [vmem:[%s3080_s29 + $0x16c] sm:$0xf] %v367_v27  ;;  %v369_v28 = vld [vmem:[%s3073_s28 + $0xe60] sm:$0xf] }
  0x53   : > { %v371_v29 = vld [vmem:[%s3073_s28 + $0xe88] sm:$0xf]  ;;  %v373_v30 = vld [vmem:[%s3073_s28 + $0xeb0] sm:$0xf]  ;;  %370 = vst [vmem:[%s3080_s29 + $0x170] sm:$0xf] %v369_v28 }
  0x54   : > { %372 = vst [vmem:[%s3080_s29 + $0x174] sm:$0xf] %v371_v29  ;;  %374 = vst [vmem:[%s3080_s29 + $0x178] sm:$0xf] %v373_v30  ;;  %v375_v31 = vld [vmem:[%s3073_s28 + $0xed8] sm:$0xf] }
  0x55   : > { %v377_v32 = vld [vmem:[%s3073_s28 + $0xf00] sm:$0xf]  ;;  %v379_v33 = vld [vmem:[%s3073_s28 + $0xf28] sm:$0xf]  ;;  %376 = vst [vmem:[%s3080_s29 + $0x17c] sm:$0xf] %v375_v31 }
  0x56   : > { %378 = vst [vmem:[%s3080_s29 + $0x180] sm:$0xf] %v377_v32  ;;  %380 = vst [vmem:[%s3080_s29 + $0x184] sm:$0xf] %v379_v33  ;;  %v381_v34 = vld [vmem:[%s3073_s28 + $0xf50] sm:$0xf] }
  0x57   : > { %v383_v35 = vld [vmem:[%s3073_s28 + $0xf78] sm:$0xf]  ;;  %v385_v36 = vld [vmem:[%s3073_s28 + $0xfa0] sm:$0xf]  ;;  %382 = vst [vmem:[%s3080_s29 + $0x188] sm:$0xf] %v381_v34 }
  0x58   : > { %384 = vst [vmem:[%s3080_s29 + $0x18c] sm:$0xf] %v383_v35  ;;  %386 = vst [vmem:[%s3080_s29 + $0x190] sm:$0xf] %v385_v36  ;;  %v387_v37 = vld [vmem:[%s3073_s28 + $0xfc8] sm:$0xf] }
  0x59   : > { %v389_v38 = vld [vmem:[%s3073_s28 + $0xff0] sm:$0xf]  ;;  %v391_v39 = vld [vmem:[%s3073_s28 + $0x1018] sm:$0xf]  ;;  %388 = vst [vmem:[%s3080_s29 + $0x194] sm:$0xf] %v387_v37 }
  0x5a   : > { %390 = vst [vmem:[%s3080_s29 + $0x198] sm:$0xf] %v389_v38  ;;  %392 = vst [vmem:[%s3080_s29 + $0x19c] sm:$0xf] %v391_v39  ;;  %v393_v40 = vld [vmem:[%s3073_s28 + $0x1040] sm:$0xf] }
  0x5b   : > { %v395_v41 = vld [vmem:[%s3073_s28 + $0x1068] sm:$0xf]  ;;  %v397_v42 = vld [vmem:[%s3073_s28 + $0x1090] sm:$0xf]  ;;  %394 = vst [vmem:[%s3080_s29 + $0x1a0] sm:$0xf] %v393_v40 }
  0x5c   : > { %396 = vst [vmem:[%s3080_s29 + $0x1a4] sm:$0xf] %v395_v41  ;;  %398 = vst [vmem:[%s3080_s29 + $0x1a8] sm:$0xf] %v397_v42  ;;  %v399_v43 = vld [vmem:[%s3073_s28 + $0x10b8] sm:$0xf] }
  0x5d   : > { %v401_v44 = vld [vmem:[%s3073_s28 + $0x10e0] sm:$0xf]  ;;  %v403_v45 = vld [vmem:[%s3073_s28 + $0x1108] sm:$0xf]  ;;  %400 = vst [vmem:[%s3080_s29 + $0x1ac] sm:$0xf] %v399_v43 }
  0x5e   : > { %402 = vst [vmem:[%s3080_s29 + $0x1b0] sm:$0xf] %v401_v44  ;;  %404 = vst [vmem:[%s3080_s29 + $0x1b4] sm:$0xf] %v403_v45  ;;  %v405_v46 = vld [vmem:[%s3073_s28 + $0x1130] sm:$0xf] }
  0x5f   : > { %v407_v47 = vld [vmem:[%s3073_s28 + $0x1158] sm:$0xf]  ;;  %v409_v48 = vld [vmem:[%s3073_s28 + $0x1180] sm:$0xf]  ;;  %406 = vst [vmem:[%s3080_s29 + $0x1b8] sm:$0xf] %v405_v46 }
  0x60   : > { %408 = vst [vmem:[%s3080_s29 + $0x1bc] sm:$0xf] %v407_v47  ;;  %410 = vst [vmem:[%s3080_s29 + $0x1c0] sm:$0xf] %v409_v48  ;;  %v411_v49 = vld [vmem:[%s3073_s28 + $0x11a8] sm:$0xf] }
  0x61   : > { %v413_v50 = vld [vmem:[%s3073_s28 + $0x11d0] sm:$0xf]  ;;  %v415_v51 = vld [vmem:[%s3073_s28 + $0x11f8] sm:$0xf]  ;;  %412 = vst [vmem:[%s3080_s29 + $0x1c4] sm:$0xf] %v411_v49 }
  0x62   : > { %414 = vst [vmem:[%s3080_s29 + $0x1c8] sm:$0xf] %v413_v50  ;;  %416 = vst [vmem:[%s3080_s29 + $0x1cc] sm:$0xf] %v415_v51  ;;  %v417_v52 = vld [vmem:[%s3073_s28 + $0x1220] sm:$0xf] }
  0x63   : > { %v419_v53 = vld [vmem:[%s3073_s28 + $0x1248] sm:$0xf]  ;;  %v421_v54 = vld [vmem:[%s3073_s28 + $0x1270] sm:$0xf]  ;;  %418 = vst [vmem:[%s3080_s29 + $0x1d0] sm:$0xf] %v417_v52 }
  0x64   : > { %420 = vst [vmem:[%s3080_s29 + $0x1d4] sm:$0xf] %v419_v53  ;;  %422 = vst [vmem:[%s3080_s29 + $0x1d8] sm:$0xf] %v421_v54  ;;  %v423_v55 = vld [vmem:[%s3073_s28 + $0x1298] sm:$0xf] }
  0x65   : > { %v425_v56 = vld [vmem:[%s3073_s28 + $0x12c0] sm:$0xf]  ;;  %v427_v57 = vld [vmem:[%s3073_s28 + $0x12e8] sm:$0xf]  ;;  %424 = vst [vmem:[%s3080_s29 + $0x1dc] sm:$0xf] %v423_v55 }
  0x66   : > { %426 = vst [vmem:[%s3080_s29 + $0x1e0] sm:$0xf] %v425_v56  ;;  %428 = vst [vmem:[%s3080_s29 + $0x1e4] sm:$0xf] %v427_v57  ;;  %v429_v58 = vld [vmem:[%s3073_s28 + $0x1310] sm:$0xf] }
  0x67   : > { %v431_v59 = vld [vmem:[%s3073_s28 + $0x1338] sm:$0xf]  ;;  %v433_v60 = vld [vmem:[%s3073_s28 + $0x1360] sm:$0xf]  ;;  %430 = vst [vmem:[%s3080_s29 + $0x1e8] sm:$0xf] %v429_v58 }
  0x68   : > { %432 = vst [vmem:[%s3080_s29 + $0x1ec] sm:$0xf] %v431_v59  ;;  %434 = vst [vmem:[%s3080_s29 + $0x1f0] sm:$0xf] %v433_v60  ;;  %v435_v61 = vld [vmem:[%s3073_s28 + $0x1388] sm:$0xf] }
  0x69   : > { %v437_v62 = vld [vmem:[%s3073_s28 + $0x13b0] sm:$0xf]  ;;  %v439_v63 = vld [vmem:[%s3073_s28 + $0x13d8] sm:$0xf]  ;;  %436 = vst [vmem:[%s3080_s29 + $0x1f4] sm:$0xf] %v435_v61 }
  0x6a   : > { %438 = vst [vmem:[%s3080_s29 + $0x1f8] sm:$0xf] %v437_v62  ;;  %440 = vst [vmem:[%s3080_s29 + $0x1fc] sm:$0xf] %v439_v63  ;;  %v441_v0 = vld [vmem:[%s3073_s28 + $0x1400] sm:$0xf] }
  0x6b   : > { %v443_v1 = vld [vmem:[%s3073_s28 + $0x1428] sm:$0xf]  ;;  %v445_v2 = vld [vmem:[%s3073_s28 + $0x1450] sm:$0xf]  ;;  %442 = vst [vmem:[%s3080_s29 + $0x200] sm:$0xf] %v441_v0 }
  0x6c   : > { %444 = vst [vmem:[%s3080_s29 + $0x204] sm:$0xf] %v443_v1  ;;  %446 = vst [vmem:[%s3080_s29 + $0x208] sm:$0xf] %v445_v2  ;;  %v447_v3 = vld [vmem:[%s3073_s28 + $0x1478] sm:$0xf] }
  0x6d   : > { %v449_v4 = vld [vmem:[%s3073_s28 + $0x14a0] sm:$0xf]  ;;  %v451_v5 = vld [vmem:[%s3073_s28 + $0x14c8] sm:$0xf]  ;;  %448 = vst [vmem:[%s3080_s29 + $0x20c] sm:$0xf] %v447_v3 }
  0x6e   : > { %450 = vst [vmem:[%s3080_s29 + $0x210] sm:$0xf] %v449_v4  ;;  %452 = vst [vmem:[%s3080_s29 + $0x214] sm:$0xf] %v451_v5  ;;  %v453_v6 = vld [vmem:[%s3073_s28 + $0x14f0] sm:$0xf] }
  0x6f   : > { %v455_v7 = vld [vmem:[%s3073_s28 + $0x1518] sm:$0xf]  ;;  %v457_v8 = vld [vmem:[%s3073_s28 + $0x1540] sm:$0xf]  ;;  %454 = vst [vmem:[%s3080_s29 + $0x218] sm:$0xf] %v453_v6 }
  0x70   : > { %456 = vst [vmem:[%s3080_s29 + $0x21c] sm:$0xf] %v455_v7  ;;  %458 = vst [vmem:[%s3080_s29 + $0x220] sm:$0xf] %v457_v8  ;;  %v459_v9 = vld [vmem:[%s3073_s28 + $0x1568] sm:$0xf] }
  0x71   : > { %v461_v10 = vld [vmem:[%s3073_s28 + $0x1590] sm:$0xf]  ;;  %v463_v11 = vld [vmem:[%s3073_s28 + $0x15b8] sm:$0xf]  ;;  %460 = vst [vmem:[%s3080_s29 + $0x224] sm:$0xf] %v459_v9 }
  0x72   : > { %462 = vst [vmem:[%s3080_s29 + $0x228] sm:$0xf] %v461_v10  ;;  %464 = vst [vmem:[%s3080_s29 + $0x22c] sm:$0xf] %v463_v11  ;;  %v465_v12 = vld [vmem:[%s3073_s28 + $0x15e0] sm:$0xf] }
  0x73   : > { %v467_v13 = vld [vmem:[%s3073_s28 + $0x1608] sm:$0xf]  ;;  %v469_v14 = vld [vmem:[%s3073_s28 + $0x1630] sm:$0xf]  ;;  %466 = vst [vmem:[%s3080_s29 + $0x230] sm:$0xf] %v465_v12 }
  0x74   : > { %468 = vst [vmem:[%s3080_s29 + $0x234] sm:$0xf] %v467_v13  ;;  %470 = vst [vmem:[%s3080_s29 + $0x238] sm:$0xf] %v469_v14  ;;  %v471_v15 = vld [vmem:[%s3073_s28 + $0x1658] sm:$0xf] }
  0x75   : > { %v473_v16 = vld [vmem:[%s3073_s28 + $0x1680] sm:$0xf]  ;;  %v475_v17 = vld [vmem:[%s3073_s28 + $0x16a8] sm:$0xf]  ;;  %472 = vst [vmem:[%s3080_s29 + $0x23c] sm:$0xf] %v471_v15 }
  0x76   : > { %474 = vst [vmem:[%s3080_s29 + $0x240] sm:$0xf] %v473_v16  ;;  %476 = vst [vmem:[%s3080_s29 + $0x244] sm:$0xf] %v475_v17  ;;  %v477_v18 = vld [vmem:[%s3073_s28 + $0x16d0] sm:$0xf] }
  0x77   : > { %v479_v19 = vld [vmem:[%s3073_s28 + $0x16f8] sm:$0xf]  ;;  %v481_v20 = vld [vmem:[%s3073_s28 + $0x1720] sm:$0xf]  ;;  %478 = vst [vmem:[%s3080_s29 + $0x248] sm:$0xf] %v477_v18 }
  0x78   : > { %480 = vst [vmem:[%s3080_s29 + $0x24c] sm:$0xf] %v479_v19  ;;  %482 = vst [vmem:[%s3080_s29 + $0x250] sm:$0xf] %v481_v20  ;;  %v483_v21 = vld [vmem:[%s3073_s28 + $0x1748] sm:$0xf] }
  0x79   : > { %v485_v22 = vld [vmem:[%s3073_s28 + $0x1770] sm:$0xf]  ;;  %v487_v23 = vld [vmem:[%s3073_s28 + $0x1798] sm:$0xf]  ;;  %484 = vst [vmem:[%s3080_s29 + $0x254] sm:$0xf] %v483_v21 }
  0x7a   : > { %486 = vst [vmem:[%s3080_s29 + $0x258] sm:$0xf] %v485_v22  ;;  %488 = vst [vmem:[%s3080_s29 + $0x25c] sm:$0xf] %v487_v23  ;;  %v489_v24 = vld [vmem:[%s3073_s28 + $0x17c0] sm:$0xf] }
  0x7b   : > { %v491_v25 = vld [vmem:[%s3073_s28 + $0x17e8] sm:$0xf]  ;;  %v493_v26 = vld [vmem:[%s3073_s28 + $0x1810] sm:$0xf]  ;;  %490 = vst [vmem:[%s3080_s29 + $0x260] sm:$0xf] %v489_v24 }
  0x7c   : > { %492 = vst [vmem:[%s3080_s29 + $0x264] sm:$0xf] %v491_v25  ;;  %494 = vst [vmem:[%s3080_s29 + $0x268] sm:$0xf] %v493_v26  ;;  %v495_v27 = vld [vmem:[%s3073_s28 + $0x1838] sm:$0xf] }
  0x7d   : > { %v497_v28 = vld [vmem:[%s3073_s28 + $0x1860] sm:$0xf]  ;;  %v499_v29 = vld [vmem:[%s3073_s28 + $0x1888] sm:$0xf]  ;;  %496 = vst [vmem:[%s3080_s29 + $0x26c] sm:$0xf] %v495_v27 }
  0x7e   : > { %498 = vst [vmem:[%s3080_s29 + $0x270] sm:$0xf] %v497_v28  ;;  %500 = vst [vmem:[%s3080_s29 + $0x274] sm:$0xf] %v499_v29  ;;  %v501_v30 = vld [vmem:[%s3073_s28 + $0x18b0] sm:$0xf] }
  0x7f   : > { %v503_v31 = vld [vmem:[%s3073_s28 + $0x18d8] sm:$0xf]  ;;  %v505_v32 = vld [vmem:[%s3073_s28 + $0x1900] sm:$0xf]  ;;  %502 = vst [vmem:[%s3080_s29 + $0x278] sm:$0xf] %v501_v30 }
  0x80   : > { %504 = vst [vmem:[%s3080_s29 + $0x27c] sm:$0xf] %v503_v31  ;;  %506 = vst [vmem:[%s3080_s29 + $0x280] sm:$0xf] %v505_v32  ;;  %v507_v33 = vld [vmem:[%s3073_s28 + $0x1928] sm:$0xf] }
  0x81   : > { %v509_v34 = vld [vmem:[%s3073_s28 + $0x1950] sm:$0xf]  ;;  %v511_v35 = vld [vmem:[%s3073_s28 + $0x1978] sm:$0xf]  ;;  %508 = vst [vmem:[%s3080_s29 + $0x284] sm:$0xf] %v507_v33 }
  0x82   : > { %510 = vst [vmem:[%s3080_s29 + $0x288] sm:$0xf] %v509_v34  ;;  %512 = vst [vmem:[%s3080_s29 + $0x28c] sm:$0xf] %v511_v35  ;;  %v513_v36 = vld [vmem:[%s3073_s28 + $0x19a0] sm:$0xf] }
  0x83   : > { %v515_v37 = vld [vmem:[%s3073_s28 + $0x19c8] sm:$0xf]  ;;  %v517_v38 = vld [vmem:[%s3073_s28 + $0x19f0] sm:$0xf]  ;;  %514 = vst [vmem:[%s3080_s29 + $0x290] sm:$0xf] %v513_v36 }
  0x84   : > { %516 = vst [vmem:[%s3080_s29 + $0x294] sm:$0xf] %v515_v37  ;;  %518 = vst [vmem:[%s3080_s29 + $0x298] sm:$0xf] %v517_v38  ;;  %v519_v39 = vld [vmem:[%s3073_s28 + $0x1a18] sm:$0xf] }
  0x85   : > { %v521_v40 = vld [vmem:[%s3073_s28 + $0x1a40] sm:$0xf]  ;;  %v523_v41 = vld [vmem:[%s3073_s28 + $0x1a68] sm:$0xf]  ;;  %520 = vst [vmem:[%s3080_s29 + $0x29c] sm:$0xf] %v519_v39 }
  0x86   : > { %522 = vst [vmem:[%s3080_s29 + $0x2a0] sm:$0xf] %v521_v40  ;;  %524 = vst [vmem:[%s3080_s29 + $0x2a4] sm:$0xf] %v523_v41  ;;  %v525_v42 = vld [vmem:[%s3073_s28 + $0x1a90] sm:$0xf] }
  0x87   : > { %v527_v43 = vld [vmem:[%s3073_s28 + $0x1ab8] sm:$0xf]  ;;  %v529_v44 = vld [vmem:[%s3073_s28 + $0x1ae0] sm:$0xf]  ;;  %526 = vst [vmem:[%s3080_s29 + $0x2a8] sm:$0xf] %v525_v42 }
  0x88   : > { %528 = vst [vmem:[%s3080_s29 + $0x2ac] sm:$0xf] %v527_v43  ;;  %530 = vst [vmem:[%s3080_s29 + $0x2b0] sm:$0xf] %v529_v44  ;;  %v531_v45 = vld [vmem:[%s3073_s28 + $0x1b08] sm:$0xf] }
  0x89   : > { %v533_v46 = vld [vmem:[%s3073_s28 + $0x1b30] sm:$0xf]  ;;  %v535_v47 = vld [vmem:[%s3073_s28 + $0x1b58] sm:$0xf]  ;;  %532 = vst [vmem:[%s3080_s29 + $0x2b4] sm:$0xf] %v531_v45 }
  0x8a   : > { %534 = vst [vmem:[%s3080_s29 + $0x2b8] sm:$0xf] %v533_v46  ;;  %536 = vst [vmem:[%s3080_s29 + $0x2bc] sm:$0xf] %v535_v47  ;;  %v537_v48 = vld [vmem:[%s3073_s28 + $0x1b80] sm:$0xf] }
  0x8b   : > { %v539_v49 = vld [vmem:[%s3073_s28 + $0x1ba8] sm:$0xf]  ;;  %v541_v50 = vld [vmem:[%s3073_s28 + $0x1bd0] sm:$0xf]  ;;  %538 = vst [vmem:[%s3080_s29 + $0x2c0] sm:$0xf] %v537_v48 }
  0x8c   : > { %540 = vst [vmem:[%s3080_s29 + $0x2c4] sm:$0xf] %v539_v49  ;;  %542 = vst [vmem:[%s3080_s29 + $0x2c8] sm:$0xf] %v541_v50  ;;  %v543_v51 = vld [vmem:[%s3073_s28 + $0x1bf8] sm:$0xf] }
  0x8d   : > { %v545_v52 = vld [vmem:[%s3073_s28 + $0x1c20] sm:$0xf]  ;;  %v547_v53 = vld [vmem:[%s3073_s28 + $0x1c48] sm:$0xf]  ;;  %544 = vst [vmem:[%s3080_s29 + $0x2cc] sm:$0xf] %v543_v51 }
  0x8e   : > { %546 = vst [vmem:[%s3080_s29 + $0x2d0] sm:$0xf] %v545_v52  ;;  %548 = vst [vmem:[%s3080_s29 + $0x2d4] sm:$0xf] %v547_v53  ;;  %v549_v54 = vld [vmem:[%s3073_s28 + $0x1c70] sm:$0xf] }
  0x8f   : > { %v551_v55 = vld [vmem:[%s3073_s28 + $0x1c98] sm:$0xf]  ;;  %v553_v56 = vld [vmem:[%s3073_s28 + $0x1cc0] sm:$0xf]  ;;  %550 = vst [vmem:[%s3080_s29 + $0x2d8] sm:$0xf] %v549_v54 }
  0x90   : > { %552 = vst [vmem:[%s3080_s29 + $0x2dc] sm:$0xf] %v551_v55  ;;  %554 = vst [vmem:[%s3080_s29 + $0x2e0] sm:$0xf] %v553_v56  ;;  %v555_v57 = vld [vmem:[%s3073_s28 + $0x1ce8] sm:$0xf] }
  0x91   : > { %v557_v58 = vld [vmem:[%s3073_s28 + $0x1d10] sm:$0xf]  ;;  %v559_v59 = vld [vmem:[%s3073_s28 + $0x1d38] sm:$0xf]  ;;  %556 = vst [vmem:[%s3080_s29 + $0x2e4] sm:$0xf] %v555_v57 }
  0x92   : > { %558 = vst [vmem:[%s3080_s29 + $0x2e8] sm:$0xf] %v557_v58  ;;  %560 = vst [vmem:[%s3080_s29 + $0x2ec] sm:$0xf] %v559_v59  ;;  %v561_v60 = vld [vmem:[%s3073_s28 + $0x1d60] sm:$0xf] }
  0x93   : > { %v563_v61 = vld [vmem:[%s3073_s28 + $0x1d88] sm:$0xf]  ;;  %v565_v62 = vld [vmem:[%s3073_s28 + $0x1db0] sm:$0xf]  ;;  %562 = vst [vmem:[%s3080_s29 + $0x2f0] sm:$0xf] %v561_v60 }
  0x94   : > { %564 = vst [vmem:[%s3080_s29 + $0x2f4] sm:$0xf] %v563_v61  ;;  %566 = vst [vmem:[%s3080_s29 + $0x2f8] sm:$0xf] %v565_v62  ;;  %v567_v63 = vld [vmem:[%s3073_s28 + $0x1dd8] sm:$0xf] }
  0x95   : > { %v569_v0 = vld [vmem:[%s3073_s28 + $0x1e00] sm:$0xf]  ;;  %v571_v1 = vld [vmem:[%s3073_s28 + $0x1e28] sm:$0xf]  ;;  %568 = vst [vmem:[%s3080_s29 + $0x2fc] sm:$0xf] %v567_v63 }
  0x96   : > { %570 = vst [vmem:[%s3080_s29 + $0x300] sm:$0xf] %v569_v0  ;;  %572 = vst [vmem:[%s3080_s29 + $0x304] sm:$0xf] %v571_v1  ;;  %v573_v2 = vld [vmem:[%s3073_s28 + $0x1e50] sm:$0xf] }
  0x97   : > { %v575_v3 = vld [vmem:[%s3073_s28 + $0x1e78] sm:$0xf]  ;;  %v577_v4 = vld [vmem:[%s3073_s28 + $0x1ea0] sm:$0xf]  ;;  %574 = vst [vmem:[%s3080_s29 + $0x308] sm:$0xf] %v573_v2 }
  0x98   : > { %576 = vst [vmem:[%s3080_s29 + $0x30c] sm:$0xf] %v575_v3  ;;  %578 = vst [vmem:[%s3080_s29 + $0x310] sm:$0xf] %v577_v4  ;;  %v579_v5 = vld [vmem:[%s3073_s28 + $0x1ec8] sm:$0xf] }
  0x99   : > { %v581_v6 = vld [vmem:[%s3073_s28 + $0x1ef0] sm:$0xf]  ;;  %v583_v7 = vld [vmem:[%s3073_s28 + $0x1f18] sm:$0xf]  ;;  %580 = vst [vmem:[%s3080_s29 + $0x314] sm:$0xf] %v579_v5 }
  0x9a   : > { %582 = vst [vmem:[%s3080_s29 + $0x318] sm:$0xf] %v581_v6  ;;  %584 = vst [vmem:[%s3080_s29 + $0x31c] sm:$0xf] %v583_v7 }
  0x9b PF: > { %p2495_p8 = scmp.ge.s32.totalorder %s2996_s16, 1  ;;  %p1012_p9 = scmp.lt.s32.totalorder %s2996_s16, 11 }
  0x9d   : > { %p1013_p10 = pnand %p2495_p8, %p1012_p9 }
  0x9e   : > { %s1019_s30 = sand.u32 (!%p1013_p10), 1, %s2980_s12   ;;  %v1301_v8 = vlaneseq (!%p1013_p10)  ;;  %v3002_v9 = vmov (!%p1013_p10), 1966171168   ;;  %v2861_v11 = vld [vmem:[%s3669_s0] ss:$13 sps:$4 sm:$0xff] (!%p1013_p10)   ;;  %vm3004_vm0 = vmmov (!%p1013_p10), 0  }
  0x9f   : > { %1016 = sbr.rel (%p1013_p10) target bundleno = 501 (0x1f5), region = 69  ;;  %v1299_v10 = vunpack.c.l.s4 (!%p1013_p10), %v3002_v9  ;;  %v2864_v12 = vld [vmem:[%s3669_s0 + $0x1a] ss:$13 sps:$4 sm:$0xff] (!%p1013_p10)   ;;  %v2866_v38 = vld [vmem:[%s3669_s0 + $0x1e] ss:$13 sps:$4 sm:$0xff] (!%p1013_p10)   ;;  %vm2032_vm1 = vcmask (!%p1013_p10), 523264  }
  0xa0   : > { %s2754_s4 = smul.u32 (!%p1013_p10), 800, %s1019_s30  ;;  %v1302_v13 = vshrl.u32 (!%p1013_p10), %v1301_v8, 7  ;;  %v2863_v37 = vld [vmem:[%s3669_s0 + $0x4] ss:$13 sps:$4 sm:$0xff] (!%p1013_p10)   ;;  %p1064_p11 = scmp.lt.s32.totalorder (!%p1013_p10), %s2988_s14, 9 }
  0xa1   : > { %v1300_v14 = vunpack.c.0.s8 (!%p1013_p10), %v1299_v10  ;;  %s2496_s8 = sshll.u32 (!%p1013_p10), %s1019_s30, 3 }
  0xa2   : > { %s3488_s9 = scalar_lea.vmem (!%p1013_p10), [#allocation2], %s2754_s4 }
  0xa3   : > { %v2830_v15 = vld [vmem:[%s3488_s9 + $0x40] sm:$0xff] (!%p1013_p10)   ;;  %v3492_v17 = vsub.s32 (!%p1013_p10), %v1300_v14, %v1302_v13  ;;  %v2834_v22 = vld [vmem:[%s3488_s9 + $0x48] sm:$0xff] (!%p1013_p10)   ;;  %v2838_v28 = vld [vmem:[%s3488_s9 + $0x50] sm:$0xff] (!%p1013_p10)  }
  0xa4   : > { %v2831_v16 = vld [vmem:[%s3488_s9] sm:$0xff] (!%p1013_p10)   ;;  %2604 = vmatprep.subr.bf16.mxu0 (!%p1013_p10), %v2830_v15  ;;  %v2835_v23 = vld [vmem:[%s3488_s9 + $0x8] sm:$0xff] (!%p1013_p10)   ;;  %v2839_v29 = vld [vmem:[%s3488_s9 + $0x10] sm:$0xff] (!%p1013_p10)  }
  0xa5   : > { %v2832_v18 = vld [vmem:[%s3488_s9 + $0xc0] sm:$0xff] (!%p1013_p10)   ;;  %2605 = vmatpush3.bf16.msra.mxu0 (!%p1013_p10), %v2831_v16  ;;  %v3497_v20 = vrot.slane (!%p1013_p10), %v2861_v11, %v3492_v17  ;;  %v3500_v21 = vrot.slane (!%p1013_p10), %v2864_v12, %v3492_v17  ;;  %v2836_v25 = vld [vmem:[%s3488_s9 + $0xc8] sm:$0xff] (!%p1013_p10)   ;;  %v2840_v31 = vld [vmem:[%s3488_s9 + $0xd0] sm:$0xff] (!%p1013_p10)   ;;  %v3530_v45 = vrot.slane (!%p1013_p10), %v2863_v37, %v3492_v17  ;;  %v3533_v46 = vrot.slane (!%p1013_p10), %v2866_v38, %v3492_v17 }
  0xa6   : > { %v2833_v19 = vld [vmem:[%s3488_s9 + $0x80] sm:$0xff]   ;;  %2626 = vmatprep.subr.bf16.mxu1 %v2832_v18  ;;  %2606 = vmatprep.subr.bf16.mxu0 %v2834_v22  ;;  %v2837_v26 = vld [vmem:[%s3488_s9 + $0x88] sm:$0xff]   ;;  %v2841_v32 = vld [vmem:[%s3488_s9 + $0x90] sm:$0xff]   ;;  %s1065_s4 = scalar_select %p1064_p11, %s2988_s14, 9 }
  0xa7   : > { %2627 = vmatpush3.bf16.msra.mxu1 %v2833_v19  ;;  %v1327_v24 = vcombine.high %v3497_v20, %v3500_v21  ;;  %v2842_v33 = vld [vmem:[%s3488_s9 + $0x58] sm:$0xff]   ;;  %v2846_v39 = vld [vmem:[%s3488_s9 + $0x60] sm:$0xff]   ;;  %v2850_v43 = vld [vmem:[%s3488_s9 + $0x68] sm:$0xff]   ;;  %v1326_v50 = vcombine.low %v3497_v20, %v3500_v21  ;;  %v1329_v52 = vcombine.high %v3530_v45, %v3533_v46  ;;  %s2600_s10 = sshll.u32 (%p3060_p6), %s2988_s14, 1  ;;  %s2998_s20 = smov (%p3060_p6), 0  }
  0xa8   : > { %2628 = vmatprep.subr.bf16.mxu1 %v2836_v25  ;;  %v2843_v34 = vld [vmem:[%s3488_s9 + $0x18] sm:$0xff]   ;;  %v2847_v40 = vld [vmem:[%s3488_s9 + $0x20] sm:$0xff]   ;;  %v2851_v44 = vld [vmem:[%s3488_s9 + $0x28] sm:$0xff]   ;;  %v1328_v25 = vcombine.low %v3530_v45, %v3533_v46  ;;  %s1066_s7 = scalar_lea.vmem %s3671_s2, %s1065_s4  ;;  %s2331_s19 = scalar_lea.vmem (%p3060_p6), %s3672_s3, %s2600_s10  }
  0xa9   : > { %2607 = vmatpush3.bf16.msra.mxu0 %v2835_v23  ;;  %v1350_v27 = vrot.slane %v1327_v24, %v3492_v17  ;;  %v2844_v35 = vld [vmem:[%s3488_s9 + $0xd8] sm:$0xff]   ;;  %v2848_v41 = vld [vmem:[%s3488_s9 + $0xe0] sm:$0xff]   ;;  %v2852_v47 = vld [vmem:[%s3488_s9 + $0xe8] sm:$0xff]   ;;  %v1336_v56 = vrot.slane %v1326_v50, %v3492_v17  ;;  %v1357_v58 = vrot.slane %v1329_v52, %v3492_v17 }
  0xaa   : > { %2608 = vmatprep.subr.bf16.mxu0 %v2838_v28  ;;  %v2845_v36 = vld [vmem:[%s3488_s9 + $0x98] sm:$0xff]   ;;  %v2849_v42 = vld [vmem:[%s3488_s9 + $0xa0] sm:$0xff]   ;;  %v2853_v48 = vld [vmem:[%s3488_s9 + $0xa8] sm:$0xff]  }
  0xab   : > { %2629 = vmatpush3.bf16.msra.mxu1 %v2837_v26  ;;  %2068 = vmatprep.mubr.bf16.mxu0 %v1350_v27  ;;  %v1360_v30 = vcombine.high %v1350_v27, %v1350_v27  ;;  %v2854_v49 = vld [vmem:[%s3488_s9 + $0x70] sm:$0xff]   ;;  %v2858_v55 = vld [vmem:[%s3488_s9 + $0x78] sm:$0xff]   ;;  %v2868_v61 = vld [vmem:[%s3488_s9 + $0x140] sm:$0xff]   ;;  %v1358_v62 = vcombine.high %v1336_v56, %v1336_v56  ;;  %v1361_v0 = vcombine.high %v1357_v58, %v1357_v58 }
  0xac   : > { %2630 = vmatprep.subr.bf16.mxu1 %v2840_v31  ;;  %v2855_v51 = vld [vmem:[%s3488_s9 + $0x30] sm:$0xff]   ;;  %v2859_v57 = vld [vmem:[%s3488_s9 + $0x38] sm:$0xff]   ;;  %v2869_v63 = vld [vmem:[%s3488_s9 + $0x100] sm:$0xff]  }
  0xad   : > { %2609 = vmatpush3.bf16.msra.mxu0 %v2839_v29  ;;  %2108 = vmatprep.mubr.bf16.mxu1 %v1360_v30  ;;  %v2856_v53 = vld [vmem:[%s3488_s9 + $0xf0] sm:$0xff]   ;;  %v2860_v59 = vld [vmem:[%s3488_s9 + $0xf8] sm:$0xff]   ;;  %v2870_v1 = vld [vmem:[%s3488_s9 + $0x1c0] sm:$0xff]   ;;  %v1343_v30 = vrot.slane %v1328_v25, %v3492_v17 }
  0xae   : > { %2610 = vmatprep.subr.bf16.mxu0 %v2842_v33  ;;  %v2857_v54 = vld [vmem:[%s3488_s9 + $0xb0] sm:$0xff]   ;;  %v2867_v60 = vld [vmem:[%s3488_s9 + $0xb8] sm:$0xff]   ;;  %v2871_v2 = vld [vmem:[%s3488_s9 + $0x180] sm:$0xff]  }
  0xaf   : > { %2631 = vmatpush3.bf16.msra.mxu1 %v2841_v32  ;;  %v2872_v3 = vld [vmem:[%s3488_s9 + $0x148] sm:$0xff]   ;;  %v2876_v7 = vld [vmem:[%s3488_s9 + $0x150] sm:$0xff]   ;;  %v2880_v11 = vld [vmem:[%s3488_s9 + $0x158] sm:$0xff]  }
  0xb0   : > { %2632 = vmatprep.subr.bf16.mxu1 %v2844_v35  ;;  %v2873_v4 = vld [vmem:[%s3488_s9 + $0x108] sm:$0xff]   ;;  %v2877_v8 = vld [vmem:[%s3488_s9 + $0x110] sm:$0xff]   ;;  %v2881_v12 = vld [vmem:[%s3488_s9 + $0x118] sm:$0xff]   ;;  %v1359_v35 = vcombine.high %v1343_v30, %v1343_v30 }
  0xb1   : > { %2611 = vmatpush3.bf16.msra.mxu0 %v2843_v34  ;;  %v2874_v5 = vld [vmem:[%s3488_s9 + $0x1c8] sm:$0xff]   ;;  %v2878_v9 = vld [vmem:[%s3488_s9 + $0x1d0] sm:$0xff]   ;;  %v2882_v13 = vld [vmem:[%s3488_s9 + $0x1d8] sm:$0xff]  }
  0xb2   : > { %2612 = vmatprep.subr.bf16.mxu0 %v2846_v39  ;;  %v2875_v6 = vld [vmem:[%s3488_s9 + $0x188] sm:$0xff]   ;;  %v2879_v10 = vld [vmem:[%s3488_s9 + $0x190] sm:$0xff]   ;;  %v2883_v14 = vld [vmem:[%s3488_s9 + $0x198] sm:$0xff]  }
  0xb3   : > { %2633 = vmatpush3.bf16.msra.mxu1 %v2845_v36  ;;  %v2884_v15 = vld [vmem:[%s3488_s9 + $0x160] sm:$0xff]   ;;  %v2888_v20 = vld [vmem:[%s3488_s9 + $0x168] sm:$0xff]   ;;  %v2892_v24 = vld [vmem:[%s3488_s9 + $0x170] sm:$0xff]  }
  0xb4   : > { %2634 = vmatprep.subr.bf16.mxu1 %v2848_v41  ;;  %v2885_v16 = vld [vmem:[%s3488_s9 + $0x120] sm:$0xff]   ;;  %v2889_v21 = vld [vmem:[%s3488_s9 + $0x128] sm:$0xff]   ;;  %v2893_v26 = vld [vmem:[%s3488_s9 + $0x130] sm:$0xff]  }
  0xb5   : > { %2613 = vmatpush3.bf16.msra.mxu0 %v2847_v40  ;;  %v2886_v18 = vld [vmem:[%s3488_s9 + $0x1e0] sm:$0xff]   ;;  %v2890_v22 = vld [vmem:[%s3488_s9 + $0x1e8] sm:$0xff]   ;;  %v2894_v27 = vld [vmem:[%s3488_s9 + $0x1f0] sm:$0xff]  }
  0xb6   : > { %2614 = vmatprep.subr.bf16.mxu0 %v2850_v43  ;;  %v2887_v19 = vld [vmem:[%s3488_s9 + $0x1a0] sm:$0xff]   ;;  %v2891_v23 = vld [vmem:[%s3488_s9 + $0x1a8] sm:$0xff]   ;;  %v2895_v28 = vld [vmem:[%s3488_s9 + $0x1b0] sm:$0xff]  }
  0xb7   : > { %2635 = vmatpush3.bf16.msra.mxu1 %v2849_v42  ;;  %v2896_v29 = vld [vmem:[%s3488_s9 + $0x178] sm:$0xff]   ;;  %v2900_v34 = vld [vmem:[%s3488_s9 + $0x240] sm:$0xff]   ;;  %v2904_v39 = vld [vmem:[%s3488_s9 + $0x248] sm:$0xff]  }
  0xb8   : > { %2636 = vmatprep.subr.bf16.mxu1 %v2852_v47  ;;  %v2897_v31 = vld [vmem:[%s3488_s9 + $0x138] sm:$0xff]   ;;  %v2901_v36 = vld [vmem:[%s3488_s9 + $0x200] sm:$0xff]   ;;  %v2905_v40 = vld [vmem:[%s3488_s9 + $0x208] sm:$0xff]  }
  0xb9   : > { %2615 = vmatpush3.bf16.msra.mxu0 %v2851_v44  ;;  %v2898_v32 = vld [vmem:[%s3488_s9 + $0x1f8] sm:$0xff]   ;;  %v2902_v37 = vld [vmem:[%s3488_s9 + $0x2c0] sm:$0xff]   ;;  %v2906_v41 = vld [vmem:[%s3488_s9 + $0x2c8] sm:$0xff]  }
  0xba   : > { %2616 = vmatprep.subr.bf16.mxu0 %v2854_v49  ;;  %v2899_v33 = vld [vmem:[%s3488_s9 + $0x1b8] sm:$0xff]   ;;  %v2903_v38 = vld [vmem:[%s3488_s9 + $0x280] sm:$0xff]   ;;  %v2907_v42 = vld [vmem:[%s3488_s9 + $0x288] sm:$0xff]  }
  0xbb   : > { %2637 = vmatpush3.bf16.msra.mxu1 %v2853_v48  ;;  %v2908_v43 = vld [vmem:[%s3488_s9 + $0x250] sm:$0xff]   ;;  %v2912_v47 = vld [vmem:[%s3488_s9 + $0x258] sm:$0xff]   ;;  %v2917_v52 = vld [vmem:[%s3488_s9 + $0x220] sm:$0xff]  }
  0xbc   : > { %2638 = vmatprep.subr.bf16.mxu1 %v2856_v53  ;;  %v2909_v44 = vld [vmem:[%s3488_s9 + $0x210] sm:$0xff]   ;;  %v2913_v48 = vld [vmem:[%s3488_s9 + $0x218] sm:$0xff]   ;;  %v2918_v53 = vld [vmem:[%s3488_s9 + $0x2e0] sm:$0xff]  }
  0xbd   : > { %2617 = vmatpush3.bf16.msra.mxu0 %v2855_v51  ;;  %v2910_v45 = vld [vmem:[%s3488_s9 + $0x2d0] sm:$0xff]   ;;  %v2914_v49 = vld [vmem:[%s3488_s9 + $0x2d8] sm:$0xff]   ;;  %v2916_v51 = vld [vmem:[%s3488_s9 + $0x260] sm:$0xff]  }
  0xbe   : > { %2618 = vmatprep.subr.bf16.mxu0 %v2858_v55  ;;  %v2911_v46 = vld [vmem:[%s3488_s9 + $0x290] sm:$0xff]   ;;  %v2915_v50 = vld [vmem:[%s3488_s9 + $0x298] sm:$0xff]   ;;  %v2920_v55 = vld [vmem:[%s3488_s9 + $0x268] sm:$0xff]  }
  0xbf   : > { %2639 = vmatpush3.bf16.msra.mxu1 %v2857_v54  ;;  %v2919_v54 = vld [vmem:[%s3488_s9 + $0x2a0] sm:$0xff]  }
  0xc0   : > { %2640 = vmatprep.subr.bf16.mxu1 %v2860_v59  ;;  %v2924_v59 = vld [vmem:[%s3488_s9 + $0x270] sm:$0xff]  }
  0xc1   : > { %2619 = vmatpush3.bf16.msra.mxu0 %v2859_v57  ;;  %v2922_v57 = vld [vmem:[%s3488_s9 + $0x2e8] sm:$0xff]  }
  0xc2   : > { %2648 = vmatprep.subr.bf16.mxu0 %v2868_v61  ;;  %v2926_v61 = vld [vmem:[%s3488_s9 + $0x2f0] sm:$0xff]  }
  0xc3   : > { %2641 = vmatpush3.bf16.msra.mxu1 %v2867_v60  ;;  %v2925_v60 = vld [vmem:[%s3488_s9 + $0x230] sm:$0xff]  }
  0xc4   : > { %2069 = vmatmul.mubr.bf16.vlgmr.msra.gmra.mrb[0].mxu0 %v1336_v56  ;;  %2670 = vmatprep.subr.bf16.mxu1 %v2870_v1  ;;  %v2921_v56 = vld [vmem:[%s3488_s9 + $0x228] sm:$0xff]   ;;  %v2930_v1 = vld [vmem:[%s3488_s9 + $0x2f8] sm:$0xff]  }
  0xc5   : > { %2649 = vmatpush3.bf16.msra.mxu0 %v2869_v63  ;;  %2148 = vmatprep.mubr.bf16.mxu0 %v1357_v58  ;;  %v2923_v58 = vld [vmem:[%s3488_s9 + $0x2a8] sm:$0xff]   ;;  %v2928_v63 = vld [vmem:[%s3488_s9 + $0x278] sm:$0xff]  }
  0xc6   : > { %2109 = vmatmul.mubr.bf16.vlgmr.msra.gmra.mrb[0].mxu1 %v1358_v62  ;;  %2650 = vmatprep.subr.bf16.mxu0 %v2872_v3  ;;  %v2927_v62 = vld [vmem:[%s3488_s9 + $0x2b0] sm:$0xff]  }
  0xc7   : > { %2671 = vmatpush3.bf16.msra.mxu1 %v2871_v2  ;;  %2188 = vmatprep.mubr.bf16.mxu1 %v1361_v0  ;;  %v2929_v0 = vld [vmem:[%s3488_s9 + $0x238] sm:$0xff]   ;;  %v2934_v3 = vld [vmem:[%s3669_s0 + $0x22] ss:$13 sps:$4 sm:$0xff]  }
  0xc8   : > { %2672 = vmatprep.subr.bf16.mxu1 %v2874_v5  ;;  %v2931_v2 = vld [vmem:[%s3669_s0 + $0x8] ss:$13 sps:$4 sm:$0xff]   ;;  %v3003_v5 = vmov 0.0  }
  0xc9   : > { %2651 = vmatpush3.bf16.msra.mxu0 %v2873_v4  ;;  %v2937_v4 = vld [vmem:[%s3488_s9 + $0x2b8] sm:$0xff]  }
  0xca   : > { %2652 = vmatprep.subr.bf16.mxu0 %v2876_v7  ;;  %v1386_v7 = vrot.slane %v2934_v3, %v3492_v17 }
  0xcb   : > { %2673 = vmatpush3.bf16.msra.mxu1 %v2875_v6  ;;  %v1372_v6 = vrot.slane %v2931_v2, %v3492_v17 }
  0xcc   : > { %2674 = vmatprep.subr.bf16.mxu1 %v2878_v9 }
  0xcd   : > { %2653 = vmatpush3.bf16.msra.mxu0 %v2877_v8  ;;  %v1395_v8 = vcombine.high %v1372_v6, %v1386_v7  ;;  %v1394_v9 = vcombine.low %v1372_v6, %v1386_v7 }
  0xce   : > { %2654 = vmatprep.subr.bf16.mxu0 %v2880_v11 }
  0xcf   : > { %2675 = vmatpush3.bf16.msra.mxu1 %v2879_v10  ;;  %v1417_v10 = vrot.slane %v1395_v8, %v3492_v17  ;;  %v1403_v11 = vrot.slane %v1394_v9, %v3492_v17 }
  0xd0   : > { %2676 = vmatprep.subr.bf16.mxu1 %v2882_v13 }
  0xd1   : > { %2655 = vmatpush3.bf16.msra.mxu0 %v2881_v12  ;;  %v2938_v12 = vld [vmem:[%s3488_s9 + $0x300] sm:$0xff]   ;;  %v1419_v13 = vcombine.high %v1417_v10, %v1417_v10 }
  0xd2   : > { %2656 = vmatprep.subr.bf16.mxu0 %v2884_v15  ;;  %v2933_v15 = vld [vmem:[%s3669_s0 + $0xc] ss:$13 sps:$4 sm:$0x11]  }
  0xd3   : > { %2677 = vmatpush3.bf16.msra.mxu1 %v2883_v14  ;;  %v1418_v14 = vcombine.high %v1403_v11, %v1403_v11 }
  0xd4   : > { %2678 = vmatprep.subr.bf16.mxu1 %v2886_v18  ;;  %v2939_v18 = vld [vmem:[%s3488_s9 + $0x308] sm:$0xff]  }
  0xd5   : > { %2657 = vmatpush3.bf16.msra.mxu0 %v2885_v16  ;;  %v2936_v16 = vld [vmem:[%s3669_s0 + $0x26] ss:$13 sps:$4 sm:$0x11]  }
  0xd6   : > { %2658 = vmatprep.subr.bf16.mxu0 %v2888_v20  ;;  %v1393_v20 = vrot.slane %v2936_v16, %v3492_v17 }
  0xd7   : > { %2679 = vmatpush3.bf16.msra.mxu1 %v2887_v19  ;;  %v1379_v19 = vrot.slane %v2933_v15, %v3492_v17 }
  0xd8   : > { %2680 = vmatprep.subr.bf16.mxu1 %v2890_v22 }
  0xd9   : > { %2659 = vmatpush3.bf16.msra.mxu0 %v2889_v21  ;;  %v2940_v21 = vld [vmem:[%s3488_s9 + $0x310] sm:$0xff]   ;;  %v1396_v22 = vcombine.low %v1379_v19, %v1393_v20 }
  0xda   : > { %2660 = vmatprep.subr.bf16.mxu0 %v2892_v24 }
  0xdb   : > { %2681 = vmatpush3.bf16.msra.mxu1 %v2891_v23  ;;  %v2941_v23 = vld [vmem:[%s3488_s9 + $0x318] sm:$0xff]   ;;  %v1410_v24 = vrot.slane %v1396_v22, %v3492_v17  ;;  %s1051_s9 = scalar_lea.vmem [#allocation3], %s2496_s8  }
  0xdc   : > { %2682 = vmatprep.subr.bf16.mxu1 %v2894_v27 }
  0xdd   : > { %2661 = vmatpush3.bf16.msra.mxu0 %v2893_v26  ;;  %v2497_v26 = vld [vmem:[%s1066_s7] ss:$0 sm:$0xff] }
  0xde   : > { %2662 = vmatprep.subr.bf16.mxu0 %v2896_v29 }
  0xdf   : > { %2683 = vmatpush3.bf16.msra.mxu1 %v2895_v28 }
  0xe0   : > { %2684 = vmatprep.subr.bf16.mxu1 %v2898_v32 }
  0xe1   : > { %2663 = vmatpush3.bf16.msra.mxu0 %v2897_v31 }
  0xe2   : > { %2692 = vmatprep.subr.bf16.mxu0 %v2900_v34 }
  0xe3   : > { %2685 = vmatpush3.bf16.msra.mxu1 %v2899_v33 }
  0xe4   : > { %2149 = vmatmul.mubr.bf16.vlgmr.msra.gmra.mrb[4].mxu0 %v1343_v30  ;;  %2714 = vmatprep.subr.bf16.mxu1 %v2902_v37 }
  0xe5   : > { %2693 = vmatpush3.bf16.msra.mxu0 %v2901_v36  ;;  %2228 = vmatprep.mubr.bf16.mxu0 %v1417_v10 }
  0xe6   : > { %2189 = vmatmul.mubr.bf16.vlgmr.msra.gmra.mrb[4].mxu1 %v1359_v35  ;;  %2694 = vmatprep.subr.bf16.mxu0 %v2904_v39 }
  0xe7   : > { %2715 = vmatpush3.bf16.msra.mxu1 %v2903_v38  ;;  %2268 = vmatprep.mubr.bf16.mxu1 %v1419_v13 }
  0xe8   : > { %2716 = vmatprep.subr.bf16.mxu1 %v2906_v41 }
  0xe9   : > { %2695 = vmatpush3.bf16.msra.mxu0 %v2905_v40 }
  0xea   : > { %2696 = vmatprep.subr.bf16.mxu0 %v2908_v43 }
  0xeb   : > { %2717 = vmatpush3.bf16.msra.mxu1 %v2907_v42 }
  0xec   : > { %2718 = vmatprep.subr.bf16.mxu1 %v2910_v45 }
  0xed   : > { %2697 = vmatpush3.bf16.msra.mxu0 %v2909_v44 }
  0xee   : > { %2698 = vmatprep.subr.bf16.mxu0 %v2912_v47 }
  0xef   : > { %2719 = vmatpush3.bf16.msra.mxu1 %v2911_v46 }
  0xf0   : > { %2720 = vmatprep.subr.bf16.mxu1 %v2914_v49 }
  0xf1   : > { %2699 = vmatpush3.bf16.msra.mxu0 %v2913_v48 }
  0xf2   : > { %2700 = vmatprep.subr.bf16.mxu0 %v2916_v51 }
  0xf3   : > { %2721 = vmatpush3.bf16.msra.mxu1 %v2915_v50 }
  0xf4   : > { %2722 = vmatprep.subr.bf16.mxu1 %v2918_v53 }
  0xf5   : > { %2701 = vmatpush3.bf16.msra.mxu0 %v2917_v52 }
  0xf6   : > { %2702 = vmatprep.subr.bf16.mxu0 %v2920_v55 }
  0xf7   : > { %2723 = vmatpush3.bf16.msra.mxu1 %v2919_v54 }
  0xf8   : > { %2724 = vmatprep.subr.bf16.mxu1 %v2922_v57 }
  0xf9   : > { %2703 = vmatpush3.bf16.msra.mxu0 %v2921_v56 }
  0xfa   : > { %2704 = vmatprep.subr.bf16.mxu0 %v2924_v59 }
  0xfb   : > { %2725 = vmatpush3.bf16.msra.mxu1 %v2923_v58 }
  0xfc   : > { %2726 = vmatprep.subr.bf16.mxu1 %v2926_v61 }
  0xfd   : > { %2705 = vmatpush3.bf16.msra.mxu0 %v2925_v60 }
  0xfe   : > { %2706 = vmatprep.subr.bf16.mxu0 %v2928_v63 }
  0xff   : > { %2727 = vmatpush3.bf16.msra.mxu1 %v2927_v62 }
 0x100   : > { %2728 = vmatprep.subr.bf16.mxu1 %v2930_v1 }
 0x101   : > { %2707 = vmatpush3.bf16.msra.mxu0 %v2929_v0 }
 0x102   : > { %2741 = vmatprep.subr.bf16.mxu0 %v3003_v5 }
 0x103   : > { %2729 = vmatpush3.bf16.msra.mxu1 %v2937_v4 }
 0x104   : > { %2229 = vmatmul.mubr.bf16.vlgmr.msra.gmra.mrb[8].mxu0 %v1403_v11 }
 0x105   : > { %2742 = vmatpush3.bf16.msra.mxu0 %v2938_v12  ;;  %2749 = vmatprep.mubr.msk.bf16.mxu0 %vm3004_vm0, %v3003_v5 }
 0x106   : > { %2269 = vmatmul.mubr.bf16.vlgmr.msra.gmra.mrb[8].mxu1 %v1418_v14  ;;  %2743 = vmatprep.subr.bf16.mxu0 %v3003_v5 }
 0x109   : > { %2744 = vmatpush3.bf16.msra.mxu0 %v2939_v18 }
 0x10a   : > { %2745 = vmatprep.subr.bf16.mxu0 %v3003_v5 }
 0x10d   : > { %2746 = vmatpush3.bf16.msra.mxu0 %v2940_v21 }
 0x10e   : > { %2747 = vmatprep.subr.bf16.mxu0 %v3003_v5 }
 0x111   : > { %2748 = vmatpush3.bf16.msra.mxu0 %v2941_v23 }
 0x114   : > { %2750 = vmatmul.mubr.msk.bf16.vlgmr.msra.gmra.mrb[12].mxu0 %vm2032_vm1, %v1410_v24 }
 0x197   : > { %v2620_v25 = vpop.f32.mrb[0].mxu0 }
 0x198   : > { %v2621_v27 = vpop.f32.mrb[1].mxu0 }
 0x199   : > { %v2622_v28 = vadd.f32 %v2621_v27, %v2620_v25  ;;  %v2623_v29 = vpop.f32.mrb[2].mxu0  ;;  %v2642_v30 = vpop.f32.mrb[0].mxu1 }
 0x19a   : > { %v2624_v31 = vpop.f32.mrb[3].mxu0  ;;  %v2643_v32 = vpop.f32.mrb[1].mxu1 }
 0x19b   : > { %v2071_v33 = vadd.f32 %v2622_v28, %v2497_v26  ;;  %v2644_v34 = vadd.f32 %v2643_v32, %v2642_v30  ;;  %v2645_v17 = vpop.f32.mrb[2].mxu1 }
 0x19c   : > { %v2646_v35 = vpop.f32.mrb[3].mxu1 }
 0x19d   : > { %v2111_v36 = vadd.f32 %v2644_v34, %v2071_v33 }
 0x1b7   : > { %v2664_v37 = vpop.f32.mrb[4].mxu0 }
 0x1b8   : > { %v2665_v38 = vpop.f32.mrb[5].mxu0 }
 0x1b9   : > { %v2666_v39 = vadd.f32 %v2665_v38, %v2664_v37  ;;  %v2667_v40 = vpop.f32.mrb[6].mxu0  ;;  %v2686_v41 = vpop.f32.mrb[4].mxu1 }
 0x1ba   : > { %v2668_v42 = vpop.f32.mrb[7].mxu0  ;;  %v2687_v43 = vpop.f32.mrb[5].mxu1 }
 0x1bb   : > { %v2151_v44 = vadd.f32 %v2666_v39, %v2111_v36  ;;  %v2688_v45 = vadd.f32 %v2687_v43, %v2686_v41  ;;  %v2689_v46 = vpop.f32.mrb[6].mxu1 }
 0x1bc   : > { %v2690_v47 = vpop.f32.mrb[7].mxu1 }
 0x1bd   : > { %v2191_v48 = vadd.f32 %v2688_v45, %v2151_v44 }
 0x1d7   : > { %v2708_v49 = vpop.f32.mrb[8].mxu0 }
 0x1d8   : > { %v2709_v50 = vpop.f32.mrb[9].mxu0 }
 0x1d9   : > { %v2710_v51 = vadd.f32 %v2709_v50, %v2708_v49  ;;  %v2711_v52 = vpop.f32.mrb[10].mxu0  ;;  %v2730_v53 = vpop.f32.mrb[8].mxu1 }
 0x1da   : > { %v2712_v54 = vpop.f32.mrb[11].mxu0  ;;  %v2731_v55 = vpop.f32.mrb[9].mxu1 }
 0x1db   : > { %v2231_v56 = vadd.f32 %v2710_v51, %v2191_v48  ;;  %v2732_v57 = vadd.f32 %v2731_v55, %v2730_v53  ;;  %v2733_v58 = vpop.f32.mrb[10].mxu1 }
 0x1dc   : > { %v2734_v59 = vpop.f32.mrb[11].mxu1 }
 0x1dd   : > { %v2271_v60 = vadd.f32 %v2732_v57, %v2231_v56 }
 0x1e4   : > { %2323 = sbr.rel (!%p3060_p6) target bundleno = 501 (0x1f5), region = 77 }
 0x1e7   : > { %v2310_v61 = vpop.f32.mrb[12].mxu0 }
 0x1e8   : > { %v2311_v62 = vadd.f32 %v2310_v61, %v2271_v60  ;;  %v2751_v63 = vpop.f32.mrb[13].mxu0 }
 0x1e9   : > { %v2313_v0 = vpop.f32.mrb[14].mxu0 }
 0x1ea   : > { %2316 = vst [vmem:[%s1051_s9] sm:$0xff] %v2311_v62  ;;  %v2752_v1 = vpop.f32.mrb[15].mxu0 }
 0x1eb LB: >> { %s2343_s20 = sadd.s32 1, %s3000_s20   ;;  %s3000_s20 = sphi %s2998_s20, %s2343_s20  }
 0x1ec   : >> { %p2342_p12 = scmp.ge.s32.totalorder %s2343_s20, 1 }
 0x1ee   : > { %2345 = sbr.rel (!%p2342_p12) target bundleno = 491 (0x1eb), region = 148 }
 0x1f1   : >> { %v2349_v2 = vld [vmem:[%s1051_s9] sm:$0x3] }
 0x1f2   : >> { %2350 = vst [vmem:[%s2331_s19] sm:$0x3] %v2349_v2 }
 0x1f5 PF: > { %s13_s16 = sadd.s32 1, %s2996_s16   ;;  %s3674_s12 = smov %s2984_s13 }
 0x1f6   : > { %p10_p13 = scmp.ge.s32.totalorder %s13_s16, 12   ;;  %s3675_s13 = smov %s3065_s22 }
 0x1f7   : > { %s3676_s14 = smov %s2992_s15  ;;  %s3677_s15 = smov %s3679_s17 }
 0x1f8   :  { %12 = sbr.rel (!%p10_p13) target bundleno = 3 (0x3), region = 159 }

// kernel: pilotnet_forward.13
= control target key start
LH: loop header
LB: loop body
LE: loop exit
PB: predicated region body
PF: predicated region fallthrough
CT: control target
= control target key end

     0   :  { %v44_v27 = vlaneseq  ;;  %v1603_v35 = vmov 1983009808   ;;  %s1990_s0 = inlined_call_operand.vmem [shape: f32[2,1280], index: 0, kind: input, shape index: {}]   ;;  %s1991_s1 = inlined_call_operand.vmem [shape: bf16[1280,100], index: 1, kind: input, shape index: {}]   ;;  %s1992_s2 = inlined_call_operand.vmem [shape: f32[1,100], index: 2, kind: input, shape index: {}]   ;;  %s1993_s3 = inlined_call_operand.vmem [shape: bf16[100,50], index: 3, kind: input, shape index: {}]   ;;  %s1994_s4 = inlined_call_operand.vmem [shape: f32[1,50], index: 4, kind: input, shape index: {}]   ;;  %s1995_s5 = inlined_call_operand.vmem [shape: bf16[50,10], index: 5, kind: input, shape index: {}]   ;;  %s1996_s6 = inlined_call_operand.vmem [shape: f32[1,10], index: 6, kind: input, shape index: {}]   ;;  %s1997_s7 = inlined_call_operand.vmem [shape: bf16[10,2], index: 7, kind: input, shape index: {}]   ;;  %s1998_s8 = inlined_call_operand.vmem [shape: f32[1,2], index: 8, kind: input, shape index: {}]   ;;  %s1999_s9 = inlined_call_operand.hbm [shape: f32[2,2], index: 9, kind: output, shape index: {}]  }
   0x1   :  { %v1485_v0 = vld [vmem:[%s1991_s1 + $0x40] sm:$0xff]   ;;  %v1489_v4 = vld [vmem:[%s1991_s1 + $0x48] sm:$0xff]   ;;  %v1493_v8 = vld [vmem:[%s1991_s1 + $0x50] sm:$0xff]   ;;  %v42_v36 = vunpack.c.l.s4 %v1603_v35 }
   0x2   :  { %v1486_v1 = vld [vmem:[%s1991_s1] sm:$0xff]   ;;  %1320 = vmatprep.subr.bf16.mxu0 %v1485_v0  ;;  %v1490_v5 = vld [vmem:[%s1991_s1 + $0x8] sm:$0xff]   ;;  %v1494_v9 = vld [vmem:[%s1991_s1 + $0x10] sm:$0xff]   ;;  %v45_v32 = vshrl.u32 %v44_v27, 7 }
   0x3   :  { %v1487_v2 = vld [vmem:[%s1991_s1 + $0xc0] sm:$0xff]   ;;  %1321 = vmatpush3.bf16.msra.mxu0 %v1486_v1  ;;  %v1491_v6 = vld [vmem:[%s1991_s1 + $0xc8] sm:$0xff]   ;;  %v1495_v10 = vld [vmem:[%s1991_s1 + $0xd0] sm:$0xff]   ;;  %v43_v38 = vunpack.c.0.s8 %v42_v36 }
   0x4   :  { %v1488_v3 = vld [vmem:[%s1991_s1 + $0x80] sm:$0xff]   ;;  %1342 = vmatprep.subr.bf16.mxu1 %v1487_v2  ;;  %1322 = vmatprep.subr.bf16.mxu0 %v1489_v4  ;;  %v1492_v7 = vld [vmem:[%s1991_s1 + $0x88] sm:$0xff]   ;;  %v1496_v11 = vld [vmem:[%s1991_s1 + $0x90] sm:$0xff]  }
   0x5   :  { %1343 = vmatpush3.bf16.msra.mxu1 %v1488_v3  ;;  %v1497_v12 = vld [vmem:[%s1991_s1 + $0x58] sm:$0xff]   ;;  %v1501_v16 = vld [vmem:[%s1991_s1 + $0x60] sm:$0xff]   ;;  %v1505_v20 = vld [vmem:[%s1991_s1 + $0x68] sm:$0xff]   ;;  %v1762_v41 = vsub.s32 %v43_v38, %v45_v32 }
   0x6   :  { %1344 = vmatprep.subr.bf16.mxu1 %v1491_v6  ;;  %v1498_v13 = vld [vmem:[%s1991_s1 + $0x18] sm:$0xff]   ;;  %v1502_v17 = vld [vmem:[%s1991_s1 + $0x20] sm:$0xff]   ;;  %v1506_v21 = vld [vmem:[%s1991_s1 + $0x28] sm:$0xff]  }
   0x7   :  { %1323 = vmatpush3.bf16.msra.mxu0 %v1490_v5  ;;  %v1499_v14 = vld [vmem:[%s1991_s1 + $0xd8] sm:$0xff]   ;;  %v1503_v18 = vld [vmem:[%s1991_s1 + $0xe0] sm:$0xff]   ;;  %v1507_v22 = vld [vmem:[%s1991_s1 + $0xe8] sm:$0xff]  }
   0x8   :  { %1324 = vmatprep.subr.bf16.mxu0 %v1493_v8  ;;  %v1500_v15 = vld [vmem:[%s1991_s1 + $0x98] sm:$0xff]   ;;  %v1504_v19 = vld [vmem:[%s1991_s1 + $0xa0] sm:$0xff]   ;;  %v1508_v23 = vld [vmem:[%s1991_s1 + $0xa8] sm:$0xff]  }
   0x9   :  { %1345 = vmatpush3.bf16.msra.mxu1 %v1492_v7  ;;  %v1509_v24 = vld [vmem:[%s1991_s1 + $0x70] sm:$0xff]   ;;  %v1513_v29 = vld [vmem:[%s1991_s1 + $0x78] sm:$0xff]   ;;  %v34_v33 = vld [vmem:[%s1990_s0] sm:$0xff] }
   0xa   :  { %1346 = vmatprep.subr.bf16.mxu1 %v1495_v10  ;;  %v1510_v25 = vld [vmem:[%s1991_s1 + $0x30] sm:$0xff]   ;;  %v1514_v30 = vld [vmem:[%s1991_s1 + $0x38] sm:$0xff]   ;;  %v1517_v37 = vld [vmem:[%s1991_s1 + $0x140] sm:$0xff]   ;;  %v40_v39 = vcombine.high %v34_v33, %v34_v33  ;;  %v47_v42 = vrot.slane %v34_v33, %v1762_v41 }
   0xb   :  { %1325 = vmatpush3.bf16.msra.mxu0 %v1494_v9  ;;  %v1511_v26 = vld [vmem:[%s1991_s1 + $0xf0] sm:$0xff]   ;;  %v1515_v31 = vld [vmem:[%s1991_s1 + $0xf8] sm:$0xff]   ;;  %v1520_v40 = vld [vmem:[%s1991_s1 + $0x1c0] sm:$0xff]  }
   0xc   :  { %1326 = vmatprep.subr.bf16.mxu0 %v1497_v12  ;;  %v1512_v28 = vld [vmem:[%s1991_s1 + $0xb0] sm:$0xff]   ;;  %v1516_v34 = vld [vmem:[%s1991_s1 + $0xb8] sm:$0xff]   ;;  %v54_v43 = vrot.slane %v40_v39, %v1762_v41  ;;  %v55_v44 = vcombine.high %v47_v42, %v47_v42  ;;  %v1519_v46 = vld [vmem:[%s1991_s1 + $0x100] sm:$0xff]   ;;  %v92_v47 = vpack.c.bf16 %v47_v42, %v47_v42 }
   0xd   :  { %1347 = vmatpush3.bf16.msra.mxu1 %v1496_v11  ;;  %v1521_v49 = vld [vmem:[%s1991_s1 + $0x180] sm:$0xff]   ;;  %v1522_v52 = vld [vmem:[%s1991_s1 + $0x148] sm:$0xff]   ;;  %v1526_v56 = vld [vmem:[%s1991_s1 + $0x150] sm:$0xff]  }
   0xe   :  { %1348 = vmatprep.subr.bf16.mxu1 %v1499_v14  ;;  %v56_v45 = vcombine.high %v54_v43, %v54_v43  ;;  %v94_v48 = vpack.c.bf16 %v54_v43, %v54_v43  ;;  %v93_v50 = vpack.c.bf16 %v55_v44, %v55_v44  ;;  %v1524_v53 = vld [vmem:[%s1991_s1 + $0x1c8] sm:$0xff]   ;;  %v1528_v57 = vld [vmem:[%s1991_s1 + $0x1d0] sm:$0xff]   ;;  %v1530_v60 = vld [vmem:[%s1991_s1 + $0x158] sm:$0xff]  }
   0xf   :  { %1327 = vmatpush3.bf16.msra.mxu0 %v1498_v13  ;;  %v1523_v54 = vld [vmem:[%s1991_s1 + $0x108] sm:$0xff]   ;;  %v1527_v58 = vld [vmem:[%s1991_s1 + $0x110] sm:$0xff]   ;;  %v1532_v61 = vld [vmem:[%s1991_s1 + $0x1d8] sm:$0xff]  }
  0x10   :  { %1328 = vmatprep.subr.bf16.mxu0 %v1501_v16  ;;  %v95_v51 = vpack.c.bf16 %v56_v45, %v56_v45  ;;  %781 = vmatprep.mubr.bf16.mxu0 %v93_v50  ;;  %v1525_v55 = vld [vmem:[%s1991_s1 + $0x188] sm:$0xff]   ;;  %v1529_v59 = vld [vmem:[%s1991_s1 + $0x190] sm:$0xff]   ;;  %v1531_v62 = vld [vmem:[%s1991_s1 + $0x118] sm:$0xff]  }
  0x11   :  { %1349 = vmatpush3.bf16.msra.mxu1 %v1500_v15  ;;  %v1533_v63 = vld [vmem:[%s1991_s1 + $0x198] sm:$0xff]   ;;  %v1534_v0 = vld [vmem:[%s1991_s1 + $0x160] sm:$0xff]   ;;  %v1538_v4 = vld [vmem:[%s1991_s1 + $0x168] sm:$0xff]  }
  0x12   :  { %1350 = vmatprep.subr.bf16.mxu1 %v1503_v18  ;;  %821 = vmatprep.mubr.bf16.mxu1 %v95_v51  ;;  %v1536_v1 = vld [vmem:[%s1991_s1 + $0x1e0] sm:$0xff]   ;;  %v1540_v5 = vld [vmem:[%s1991_s1 + $0x1e8] sm:$0xff]   ;;  %v1542_v8 = vld [vmem:[%s1991_s1 + $0x170] sm:$0xff]  }
  0x13   :  { %1329 = vmatpush3.bf16.msra.mxu0 %v1502_v17  ;;  %v1535_v2 = vld [vmem:[%s1991_s1 + $0x120] sm:$0xff]   ;;  %v1539_v6 = vld [vmem:[%s1991_s1 + $0x128] sm:$0xff]   ;;  %v1544_v9 = vld [vmem:[%s1991_s1 + $0x1f0] sm:$0xff]  }
  0x14   :  { %1330 = vmatprep.subr.bf16.mxu0 %v1505_v20  ;;  %v1537_v3 = vld [vmem:[%s1991_s1 + $0x1a0] sm:$0xff]   ;;  %v1541_v7 = vld [vmem:[%s1991_s1 + $0x1a8] sm:$0xff]   ;;  %v1543_v11 = vld [vmem:[%s1991_s1 + $0x130] sm:$0xff]  }
  0x15   :  { %1351 = vmatpush3.bf16.msra.mxu1 %v1504_v19  ;;  %v35_v10 = vld [vmem:[%s1990_s0 + $0x8] sm:$0xff]  ;;  %v1545_v14 = vld [vmem:[%s1991_s1 + $0x1b0] sm:$0xff]   ;;  %v1546_v15 = vld [vmem:[%s1991_s1 + $0x178] sm:$0xff]  }
  0x16   :  { %1352 = vmatprep.subr.bf16.mxu1 %v1507_v22  ;;  %v64_v12 = vrot.slane %v35_v10, %v1762_v41  ;;  %v57_v13 = vcombine.high %v35_v10, %v35_v10  ;;  %v1548_v18 = vld [vmem:[%s1991_s1 + $0x1f8] sm:$0xff]   ;;  %v1552_v27 = vld [vmem:[%s1991_s1 + $0x200] sm:$0xff]   ;;  %v1220_v33 = vld.sshfl [vmem:[%s1990_s0 + $0x10] sm:$0x33 pattern:$0x76325410] }
  0x17   :  { %1331 = vmatpush3.bf16.msra.mxu0 %v1506_v21  ;;  %v1547_v21 = vld [vmem:[%s1991_s1 + $0x138] sm:$0xff]  }
  0x18   :  { %1332 = vmatprep.subr.bf16.mxu0 %v1509_v24  ;;  %v72_v16 = vcombine.high %v64_v12, %v64_v12  ;;  %v71_v17 = vrot.slane %v57_v13, %v1762_v41  ;;  %v1549_v22 = vld [vmem:[%s1991_s1 + $0x1b8] sm:$0xff]   ;;  %v1550_v24 = vld [vmem:[%s1991_s1 + $0x240] sm:$0xff]  }
  0x19   :  { %1353 = vmatpush3.bf16.msra.mxu1 %v1508_v23  ;;  %v1557_v32 = vld [vmem:[%s1991_s1 + $0x258] sm:$0xff]  }
  0x1a   :  { %1354 = vmatprep.subr.bf16.mxu1 %v1511_v26  ;;  %v97_v19 = vpack.c.bf16 %v72_v16, %v72_v16  ;;  %v73_v20 = vcombine.high %v71_v17, %v71_v17  ;;  %v98_v26 = vpack.c.bf16 %v71_v17, %v71_v17  ;;  %v1558_v35 = vld [vmem:[%s1991_s1 + $0x218] sm:$0xff]  }
  0x1b   :  { %1333 = vmatpush3.bf16.msra.mxu0 %v1510_v25  ;;  %v96_v25 = vpack.c.bf16 %v64_v12, %v64_v12 }
  0x1c   :  { %1334 = vmatprep.subr.bf16.mxu0 %v1513_v29  ;;  %v99_v23 = vpack.c.bf16 %v73_v20, %v73_v20  ;;  %v1554_v29 = vld [vmem:[%s1991_s1 + $0x208] sm:$0xff]  }
  0x1d   :  { %1355 = vmatpush3.bf16.msra.mxu1 %v1512_v28  ;;  %v1553_v28 = vld [vmem:[%s1991_s1 + $0x248] sm:$0xff]  }
  0x1e   :  { %1356 = vmatprep.subr.bf16.mxu1 %v1515_v31  ;;  %v1556_v31 = vld [vmem:[%s1991_s1 + $0x210] sm:$0xff]  }
  0x1f   :  { %1335 = vmatpush3.bf16.msra.mxu0 %v1514_v30  ;;  %v1555_v30 = vld [vmem:[%s1991_s1 + $0x250] sm:$0xff]  }
  0x20   :  { %1364 = vmatprep.subr.bf16.mxu0 %v1517_v37  ;;  %v1559_v37 = vld [vmem:[%s1991_s1 + $0x260] sm:$0xff]  }
  0x21   :  { %1357 = vmatpush3.bf16.msra.mxu1 %v1516_v34  ;;  %v81_v34 = vcombine.high %v1220_v33, %v1220_v33 }
  0x22   :  { %1386 = vmatprep.subr.bf16.mxu1 %v1520_v40  ;;  %782 = vmatmul.mubr.bf16.vlgmr.msra.gmra.mrb[0].mxu0 %v92_v47 }
  0x23   :  { %1365 = vmatpush3.bf16.msra.mxu0 %v1519_v46  ;;  %861 = vmatprep.mubr.bf16.mxu0 %v97_v19  ;;  %v101_v36 = vpack.c.bf16 %v81_v34, %v81_v34 }
  0x24   :  { %822 = vmatmul.mubr.bf16.vlgmr.msra.gmra.mrb[0].mxu1 %v94_v48  ;;  %1366 = vmatprep.subr.bf16.mxu0 %v1522_v52 }
  0x25   :  { %1387 = vmatpush3.bf16.msra.mxu1 %v1521_v49  ;;  %901 = vmatprep.mubr.bf16.mxu1 %v99_v23 }
  0x26   :  { %1388 = vmatprep.subr.bf16.mxu1 %v1524_v53 }
  0x27   :  { %1367 = vmatpush3.bf16.msra.mxu0 %v1523_v54 }
  0x28   :  { %1368 = vmatprep.subr.bf16.mxu0 %v1526_v56 }
  0x29   :  { %1389 = vmatpush3.bf16.msra.mxu1 %v1525_v55 }
  0x2a   :  { %1390 = vmatprep.subr.bf16.mxu1 %v1528_v57 }
  0x2b   :  { %1369 = vmatpush3.bf16.msra.mxu0 %v1527_v58 }
  0x2c   :  { %1370 = vmatprep.subr.bf16.mxu0 %v1530_v60 }
  0x2d   :  { %1391 = vmatpush3.bf16.msra.mxu1 %v1529_v59 }
  0x2e   :  { %1392 = vmatprep.subr.bf16.mxu1 %v1532_v61 }
  0x2f   :  { %1371 = vmatpush3.bf16.msra.mxu0 %v1531_v62 }
  0x30   :  { %1372 = vmatprep.subr.bf16.mxu0 %v1534_v0 }
  0x31   :  { %1393 = vmatpush3.bf16.msra.mxu1 %v1533_v63 }
  0x32   :  { %1394 = vmatprep.subr.bf16.mxu1 %v1536_v1 }
  0x33   :  { %1373 = vmatpush3.bf16.msra.mxu0 %v1535_v2 }
  0x34   :  { %1374 = vmatprep.subr.bf16.mxu0 %v1538_v4 }
  0x35   :  { %1395 = vmatpush3.bf16.msra.mxu1 %v1537_v3 }
  0x36   :  { %1396 = vmatprep.subr.bf16.mxu1 %v1540_v5 }
  0x37   :  { %1375 = vmatpush3.bf16.msra.mxu0 %v1539_v6 }
  0x38   :  { %1376 = vmatprep.subr.bf16.mxu0 %v1542_v8 }
  0x39   :  { %1397 = vmatpush3.bf16.msra.mxu1 %v1541_v7 }
  0x3a   :  { %1398 = vmatprep.subr.bf16.mxu1 %v1544_v9 }
  0x3b   :  { %1377 = vmatpush3.bf16.msra.mxu0 %v1543_v11 }
  0x3c   :  { %1378 = vmatprep.subr.bf16.mxu0 %v1546_v15 }
  0x3d   :  { %1399 = vmatpush3.bf16.msra.mxu1 %v1545_v14 }
  0x3e   :  { %1400 = vmatprep.subr.bf16.mxu1 %v1548_v18 }
  0x3f   :  { %1379 = vmatpush3.bf16.msra.mxu0 %v1547_v21 }
  0x40   :  { %1408 = vmatprep.subr.bf16.mxu0 %v1550_v24 }
  0x41   :  { %1401 = vmatpush3.bf16.msra.mxu1 %v1549_v22 }
  0x42   :  { %862 = vmatmul.mubr.bf16.vlgmr.msra.gmra.mrb[4].mxu0 %v96_v25 }
  0x43   :  { %1409 = vmatpush3.bf16.msra.mxu0 %v1552_v27  ;;  %941 = vmatprep.mubr.bf16.mxu0 %v101_v36 }
  0x44   :  { %902 = vmatmul.mubr.bf16.vlgmr.msra.gmra.mrb[4].mxu1 %v98_v26  ;;  %1410 = vmatprep.subr.bf16.mxu0 %v1553_v28 }
  0x47   :  { %1411 = vmatpush3.bf16.msra.mxu0 %v1554_v29 }
  0x48   :  { %1412 = vmatprep.subr.bf16.mxu0 %v1555_v30 }
  0x4b   :  { %1413 = vmatpush3.bf16.msra.mxu0 %v1556_v31 }
  0x4c   :  { %1414 = vmatprep.subr.bf16.mxu0 %v1557_v32 }
  0x4d   :  { %14 = vsyncpa [#allocation3], 0  ;;  %v1560_v38 = vld [vmem:[%s1991_s1 + $0x220] sm:$0xff]   ;;  %v1561_v39 = vld [vmem:[%s1991_s1 + $0x268] sm:$0xff]   ;;  %v100_v45 = vpack.c.bf16 %v1220_v33, %v1220_v33  ;;  %v1604_v47 = vmov 0.0   ;;  %vm1013_vm0 = vcmask 1041408  }
  0x4e   :  { %v1562_v40 = vld [vmem:[%s1991_s1 + $0x228] sm:$0xff]   ;;  %v1563_v41 = vld [vmem:[%s1991_s1 + $0x270] sm:$0xff]   ;;  %v1565_v43 = vld [vmem:[%s1991_s1 + $0x278] sm:$0xff]   ;;  %1445 = vmatprep.subr.bf16.mxu1 %v1604_v47  ;;  %vm1605_vm1 = vmmov 0   ;;  %vm1009_vm2 = vcmask 818176   ;;  %vm1097_vm3 = vcmask 1040384  }
  0x4f   :  { %1415 = vmatpush3.bf16.msra.mxu0 %v1558_v35  ;;  %v1564_v42 = vld [vmem:[%s1991_s1 + $0x230] sm:$0xff]   ;;  %v1566_v44 = vld [vmem:[%s1991_s1 + $0x238] sm:$0xff]   ;;  %v1567_v46 = vld [vmem:[%s1993_s3] sm:$0xff]   ;;  %1459 = vmatprep.mubr.msk.bf16.mxu1 %vm1605_vm1, %v1604_v47  ;;  %vm1160_vm4 = vcmask 1044480   ;;  %vm1093_vm5 = vcmask 408576   ;;  %vm1156_vm6 = vcmask 80896  }
  0x50   :  { %1416 = vmatprep.subr.bf16.mxu0 %v1559_v37  ;;  %1446 = vmatpush3.bf16.msra.mxu1 %v1567_v46  ;;  %v1568_v48 = vld [vmem:[%s1993_s3 + $0x8] sm:$0xff]   ;;  %v1569_v49 = vld [vmem:[%s1993_s3 + $0x10] sm:$0xff]   ;;  %v1570_v50 = vld [vmem:[%s1993_s3 + $0x18] sm:$0xff]   ;;  %s1606_s1 = smov [#allocation2]   ;;  %vm1204_vm7 = vcmask 9216  }
  0x51   :  { %1447 = vmatprep.subr.bf16.mxu1 %v1604_v47  ;;  %v1571_v51 = vld [vmem:[%s1993_s3 + $0x20] sm:$0xff]   ;;  %v1572_v52 = vld [vmem:[%s1993_s3 + $0x28] sm:$0xff]   ;;  %v1573_v53 = vld [vmem:[%s1993_s3 + $0x30] ss:$0 sps:$4 sm:$0x33]   ;;  %s1212_s10 = sshll.u32 %s1606_s1, 4  ;;  %s1213_s10 = int_to_ptr.vmem [resolvable:$true] %s1212_s10 }
  0x52   :  { %v1015_v54 = vsel %vm1013_vm0, %v1573_v53, 0  ;;  %v1221_v57 = vld [vmem:[%s1992_s2] ss:$0 sm:$0xff]  ;;  %v1575_v24 = vld [vmem:[%s1995_s5 + $0x8] sm:$0xff]   ;;  %v1576_v25 = vld [vmem:[%s1995_s5 + $0x10] sm:$0xff]   ;;  %p1584_p1 = scmp.lt.s32.totalorder %s1213_s10, %s1213_s10 }
  0x53   :  { %1417 = vmatpush3.bf16.msra.mxu0 %v1560_v38  ;;  %v1574_v22 = vld [vmem:[%s1995_s5] sm:$0xff]   ;;  %v1577_v26 = vld [vmem:[%s1995_s5 + $0x18] ss:$0 sps:$4 sm:$0x11]  }
  0x54   :  { %1418 = vmatprep.subr.bf16.mxu0 %v1561_v39  ;;  %1448 = vmatpush3.bf16.msra.mxu1 %v1568_v48  ;;  %v1099_v27 = vsel %vm1097_vm3, %v1577_v26, 0  ;;  %v1578_v28 = vld [vmem:[%s1997_s7] sm:$0x1f]  }
  0x55   :  { %1449 = vmatprep.subr.bf16.mxu1 %v1604_v47  ;;  %v1162_v29 = vsel %vm1160_vm4, %v1578_v28, 0  ;;  %v1302_v30 = vld [vmem:[%s1994_s4] ss:$0 sm:$0xff] }
  0x56   :  { %v1311_v37 = vld [vmem:[%s1996_s6] ss:$0 sm:$0xff]  ;;  %s1579_s6 = scalar_lea.vmem %s1213_s10, 32 }
  0x57   :  { %1419 = vmatpush3.bf16.msra.mxu0 %v1562_v40  ;;  %p1580_p0 = scmp.ne.s32.totalorder %s1213_s10, %s1579_s6  ;;  %p1585_p2 = scmp.lt.s32.totalorder %s1579_s6, %s1579_s6 }
  0x58   :  { %1420 = vmatprep.subr.bf16.mxu0 %v1563_v41  ;;  %1450 = vmatpush3.bf16.msra.mxu1 %v1569_v49 }
  0x59   :  { %1451 = vmatprep.subr.bf16.mxu1 %v1604_v47  ;;  %p1586_p3 = por %p1585_p2, %p1584_p1 }
  0x5b   :  { %1421 = vmatpush3.bf16.msra.mxu0 %v1564_v42  ;;  %p1587_p4 = pnand %p1586_p3, %p1580_p0 }
  0x5c   :  { %1422 = vmatprep.subr.bf16.mxu0 %v1565_v43  ;;  %1452 = vmatpush3.bf16.msra.mxu1 %v1570_v50 }
  0x5d   :  { %1453 = vmatprep.subr.bf16.mxu1 %v1604_v47 }
  0x5f   :  { %1423 = vmatpush3.bf16.msra.mxu0 %v1566_v44  ;;  %v1317_v44 = vld [vmem:[%s1998_s8] ss:$0 sm:$0xff] }
  0x60   :  { %1475 = vmatprep.subr.bf16.mxu0 %v1604_v47  ;;  %1454 = vmatpush3.bf16.msra.mxu1 %v1571_v51 }
  0x61   :  { %1455 = vmatprep.subr.bf16.mxu1 %v1604_v47 }
  0x62   :  { %942 = vmatmul.mubr.bf16.vlgmr.msra.gmra.mrb[8].mxu0 %v100_v45 }
  0x63   :  { %1477 = vmatprep.mubr.msk.bf16.mxu0 %vm1605_vm1, %v1604_v47  ;;  %1476 = vmatpush3.bf16.msra.mxu0 %v1162_v29 }
  0x64   :  { %1456 = vmatpush3.bf16.msra.mxu1 %v1572_v52 }
  0x65   :  { %1457 = vmatprep.subr.bf16.mxu1 %v1604_v47 }
  0x68   :  { %1458 = vmatpush3.bf16.msra.mxu1 %v1015_v54 }
  0x69   :  { %1463 = vmatprep.subr.bf16.mxu1 %v1604_v47 }
  0xf5   :  { %v1336_v55 = vpop.f32.mrb[0].mxu0 }
  0xf6   :  { %v1337_v58 = vpop.f32.mrb[1].mxu0 }
  0xf7   :  { %v1358_v56 = vpop.f32.mrb[0].mxu1  ;;  %v1338_v60 = vadd.f32 %v1337_v58, %v1336_v55  ;;  %v1339_v61 = vpop.f32.mrb[2].mxu0 }
  0xf8   :  { %v1359_v59 = vpop.f32.mrb[1].mxu1  ;;  %v1340_v0 = vpop.f32.mrb[3].mxu0 }
  0xf9   :  { %v1360_v62 = vadd.f32 %v1359_v59, %v1358_v56  ;;  %v1361_v63 = vpop.f32.mrb[2].mxu1  ;;  %v784_v2 = vadd.f32 %v1338_v60, %v1221_v57 }
  0xfa   :  { %v1362_v1 = vpop.f32.mrb[3].mxu1 }
  0xfb   :  { %v824_v3 = vadd.f32 %v1360_v62, %v784_v2 }
 0x115   :  { %v1380_v4 = vpop.f32.mrb[4].mxu0 }
 0x116   :  { %v1381_v6 = vpop.f32.mrb[5].mxu0 }
 0x117   :  { %v1402_v5 = vpop.f32.mrb[4].mxu1  ;;  %v1382_v8 = vadd.f32 %v1381_v6, %v1380_v4  ;;  %v1383_v9 = vpop.f32.mrb[6].mxu0 }
 0x118   :  { %v1403_v7 = vpop.f32.mrb[5].mxu1  ;;  %v1384_v12 = vpop.f32.mrb[7].mxu0 }
 0x119   :  { %v1404_v10 = vadd.f32 %v1403_v7, %v1402_v5  ;;  %v1405_v11 = vpop.f32.mrb[6].mxu1  ;;  %v864_v14 = vadd.f32 %v1382_v8, %v824_v3 }
 0x11a   :  { %v1406_v13 = vpop.f32.mrb[7].mxu1 }
 0x11b   :  { %v904_v15 = vadd.f32 %v1404_v10, %v864_v14 }
 0x135   :  { %v1424_v16 = vpop.f32.mrb[8].mxu0 }
 0x136   :  { %v1425_v17 = vpop.f32.mrb[9].mxu0 }
 0x137   :  { %v1426_v18 = vadd.f32 %v1425_v17, %v1424_v16  ;;  %v1427_v19 = vpop.f32.mrb[10].mxu0 }
 0x138   :  { %v1428_v20 = vpop.f32.mrb[11].mxu0 }
 0x139   :  { %v944_v21 = vadd.f32 %v1426_v18, %v904_v15 }
 0x13b   :  { %v949_v23 = vpack.c.bf16 %v944_v21, %v944_v21 }
 0x13d   :  { %1460 = vmatmul.mubr.msk.bf16.vlgmr.msra.gmra.mrb[8].mxu1 %vm1009_vm2, %v949_v23 }
 0x13e   :  { %1464 = vmatpush3.bf16.msra.mxu1 %v1574_v22  ;;  %1471 = vmatprep.mubr.msk.bf16.mxu1 %vm1605_vm1, %v1604_v47 }
 0x13f   :  { %1465 = vmatprep.subr.bf16.mxu1 %v1604_v47 }
 0x142   :  { %1466 = vmatpush3.bf16.msra.mxu1 %v1575_v24 }
 0x143   :  { %1467 = vmatprep.subr.bf16.mxu1 %v1604_v47 }
 0x146   :  { %1468 = vmatpush3.bf16.msra.mxu1 %v1576_v25 }
 0x147   :  { %1469 = vmatprep.subr.bf16.mxu1 %v1604_v47 }
 0x14a   :  { %1470 = vmatpush3.bf16.msra.mxu1 %v1099_v27 }
 0x210   :  { %v1051_v31 = vpop.f32.mrb[8].mxu1 }
 0x211   :  { %v1052_v32 = vadd.f32 %v1302_v30, %v1051_v31  ;;  %v1461_v33 = vpop.f32.mrb[9].mxu1 }
 0x212   :  { %v1054_v34 = vpop.f32.mrb[10].mxu1 }
 0x213   :  { %v1057_v35 = vpack.c.bf16 %v1052_v32, %v1052_v32  ;;  %v1462_v36 = vpop.f32.mrb[11].mxu1 }
 0x215   :  { %1472 = vmatmul.mubr.msk.bf16.vlgmr.msra.gmra.mrb[12].mxu1 %vm1093_vm5, %v1057_v35 }
 0x2e8   :  { %v1135_v38 = vpop.f32.mrb[12].mxu1 }
 0x2e9   :  { %v1136_v39 = vadd.f32 %v1311_v37, %v1135_v38  ;;  %v1473_v40 = vpop.f32.mrb[13].mxu1 }
 0x2ea   :  { %v1138_v41 = vpop.f32.mrb[14].mxu1 }
 0x2eb   :  { %v1141_v42 = vpack.c.bf16 %v1136_v39, %v1136_v39  ;;  %v1474_v43 = vpop.f32.mrb[15].mxu1 }
 0x2ed   :  { %1478 = vmatmul.mubr.msk.bf16.vlgmr.msra.gmra.mrb[12].mxu0 %vm1156_vm6, %v1141_v42 }
 0x3c0   :  { %v1198_v45 = vpop.f32.mrb[12].mxu0 }
 0x3c1   :  { %v1199_v46 = vadd.f32 %v1317_v44, %v1198_v45  ;;  %v1479_v47 = vpop.f32.mrb[13].mxu0 }
 0x3c2   :  { %v1201_v48 = vpop.f32.mrb[14].mxu0 }
 0x3c3   :  { %v1480_v49 = vpop.f32.mrb[15].mxu0  ;;  %1205 = vst.msk [vmem:[#allocation2] sm:$0x3] %vm1204_vm7, %v1199_v46 }
 0x3c4   :  { %1590 = shalt.err (!%p1587_p4)
}
 0x3c5   :  { %s1591_s8 = scalar_lea.hbm %s1999_s9, 32 }
 0x3c6   :  { %p1592_p5 = scmp.ne.s32.totalorder %s1999_s9, %s1591_s8  ;;  %p1595_p6 = scmp.lt.u32.totalorder %s1591_s8, %s1999_s9 }
 0x3c8   :  { %p1597_p7 = pnand %p1595_p6, %p1592_p5 }
 0x3ca   :  { %1600 = shalt.err (!%p1597_p7)
}
 0x3cb   :  { %1215 = dma.vmem_to_hbm [thread:$0]  %s1213_s10, 32, %s1999_s9, [#allocation3]  }
 0x3cc   :  { %1601 = dma.done.wait [#allocation3], 32  }
 0x3cd   :  { %1602 = vsyncadd [#allocation3], 4294967264 }
 0x3ce   :  { %1219 = vsyncpa [#allocation3], 1 }

</bundles_post_ra>
